<compile_context>
chip_gen: v7x
topology: tpu7x:2x2x1
jax: 0.10.0
libtpu: 0.0.40
codegen_flags: <defaults>
</compile_context>

<pallas_src>
import functools

import jax
import jax.numpy as jnp
import numpy as np
from jax.experimental import pallas as pl
from jax.experimental.pallas import tpu as pltpu

K = 5        # conv kernel size
PAD = 2      # "same" padding for 5x5
LANES = 128
MATMUL_DTYPE = jnp.float32   # jnp.bfloat16 doubles MXU rate on v6e/v7x
                             # (at ~1e-2 relative error on the logits).


def round_up(x, m):
    return (x + m - 1) // m * m


# ---------------------------------------------------------------------------
# Fused forward kernel: one grid step == `block_b` images, everything in VMEM.
# ---------------------------------------------------------------------------
def fused_forward_kernel(x_ref, w1_ref, b1_ref, w2_ref, b2_ref,
                         wf1_ref, bf1_ref, wf2_ref, bf2_ref,
                         o_ref, pad1_ref, pad2_ref):
    # x_ref   : (B, Cin, H, W)                 NCHW input tile
    # w1_ref  : (K, Cin*W, C1*W)               conv1 banded (per-kh) weights
    # b1_ref  : (1, C1*(W//2))                 conv1 bias, lane-tiled
    # w2_ref  : (K, C1*(W//2), C2*(W//2))      conv2 banded weights
    # b2_ref  : (1, C2*(W//4))                 conv2 bias, lane-tiled
    # wf1_ref : (C2*7*7, F)                    fc1 weight, rows permuted
    # bf1_ref : (1, F)
    # wf2_ref : (F, C_pad)                     fc_logits, lane-padded to 128
    # bf2_ref : (1, C_pad)
    # o_ref   : (B, C_pad)                     lane-dense logits slab
    # pad1_ref: VMEM (B, H+4, Cin*W)           H-padded channel-planar scratch
    # pad2_ref: VMEM (B, rnd8(H/2+4), C1*W/2)
    B, Cin, H, W = x_ref.shape
    H2 = H // 2
    Hp1, L1 = pad1_ref.shape[1], pad1_ref.shape[2]
    Hp2, L2 = pad2_ref.shape[1], pad2_ref.shape[2]
    N1 = w1_ref.shape[2]
    N2 = w2_ref.shape[2]

    # ---- conv1 ------------------------------------------------------------
    # Fill the H-padded, channel-planar scratch (lane index = c*W + w).
    # Only the border rows are zeroed; the interior is rewritten every step,
    # so there is no cross-step scratch dependence (megacore-safe).
    pad1_ref[:, :PAD, :] = jnp.zeros((B, PAD, L1), jnp.float32)
    pad1_ref[:, PAD + H:, :] = jnp.zeros((B, Hp1 - PAD - H, L1), jnp.float32)
    for c in range(Cin):                       # NCHW -> channel-planar lanes
        pad1_ref[:, PAD:PAD + H, c * W:(c + 1) * W] = x_ref[:, c, :, :]

    p1 = pad1_ref[...].reshape(B * Hp1, L1).astype(w1_ref.dtype)
    y1 = None
    for kh in range(K):                        # sum over kernel rows
        contrib = jnp.dot(p1, w1_ref[kh], preferred_element_type=jnp.float32)
        contrib = contrib.reshape(B, Hp1, N1)[:, kh:kh + H, :]
        y1 = contrib if y1 is None else y1 + contrib

    # 2x2 max-pool.  The banded weight's column order puts the two members of
    # each W-pool pair exactly N1//2 lanes apart -> contiguous halving.
    half1 = N1 // 2
    pw = jnp.maximum(y1[:, :, :half1], y1[:, :, half1:])          # pool W
    pr = pw.reshape(B, H2, 2, half1)
    ph = jnp.maximum(pr[:, :, 0, :], pr[:, :, 1, :])              # pool H
    # per-channel bias commutes with max-pool -> add it after the pool
    act1 = jnp.maximum(ph + b1_ref[...], 0.0)                     # (B, H2, C1*W2)

    # ---- conv2 ------------------------------------------------------------
    pad2_ref[:, :PAD, :] = jnp.zeros((B, PAD, L2), jnp.float32)
    pad2_ref[:, PAD + H2:, :] = jnp.zeros((B, Hp2 - PAD - H2, L2), jnp.float32)
    pad2_ref[:, PAD:PAD + H2, :] = act1        # layout already matches

    p2 = pad2_ref[...].reshape(B * Hp2, L2).astype(w2_ref.dtype)
    y2 = None
    for kh in range(K):
        contrib = jnp.dot(p2, w2_ref[kh], preferred_element_type=jnp.float32)
        contrib = contrib.reshape(B, Hp2, N2)[:, kh:kh + H2, :]
        y2 = contrib if y2 is None else y2 + contrib

    half2 = N2 // 2
    pw2 = jnp.maximum(y2[:, :, :half2], y2[:, :, half2:])
    pr2 = pw2.reshape(B, H2 // 2, 2, half2)
    ph2 = jnp.maximum(pr2[:, :, 0, :], pr2[:, :, 1, :])
    act2 = jnp.maximum(ph2 + b2_ref[...], 0.0)                    # (B, 7, C2*7)

    # ---- flatten + MLP ------------------------------------------------------
    flat = act2.reshape(B, (H2 // 2) * half2).astype(wf1_ref.dtype)   # (B, 784)
    hid = jnp.dot(flat, wf1_ref[...], preferred_element_type=jnp.float32)
    hid = jnp.maximum(hid + bf1_ref[...], 0.0).astype(wf2_ref.dtype)
    out = jnp.dot(hid, wf2_ref[...], preferred_element_type=jnp.float32)
    o_ref[...] = out + bf2_ref[...]


# ---------------------------------------------------------------------------
# One-time parameter re-layout (zero runtime cost).
# ---------------------------------------------------------------------------
def banded_conv_weight(w_hwio, width):
    """HWIO conv weight (KH,KW,Cin,Cout) -> (KH, Cin*width, Cout*width) banded
    matrices for the "rows = (b, padded h), lanes = (c, w)" conv formulation.

    Row index    = c*width + w_in        (channel-planar input lanes)
    Column index = (w_out % 2)*(Cout*width//2) + o*(width//2) + w_out//2
    so the two members of every 2x1 W-pool pair are width//2*Cout lanes apart
    (contiguous halving) and the pooled lanes come out as o*(width//2) + w2,
    i.e. exactly the next layer's channel-planar input layout.
    The 'same' W-padding is realised by simply dropping out-of-range taps."""
    kh_, kw_, cin, cout = w_hwio.shape
    half = width // 2
    w = np.asarray(w_hwio, np.float32)
    out = np.zeros((kh_, cin * width, cout * width), np.float32)
    for kh in range(kh_):
        for kw in range(kw_):
            for wo in range(width):
                wi = wo + kw - PAD
                if 0 <= wi < width:
                    rows = np.arange(cin) * width + wi
                    cols = (wo % 2) * (cout * half) + np.arange(cout) * half + wo // 2
                    out[kh, rows[:, None], cols[None, :]] = w[kh, kw]
    return out


def prepare_params(params, dot_dtype=MATMUL_DTYPE):
    c1 = params["w_conv1"].shape[-1]
    c2 = params["w_conv2"].shape[-1]
    fc1_in, fc1_w = params["w_fc1"].shape
    class_count = params["w_fc2"].shape[-1]
    hw = int(round(np.sqrt(fc1_in // c2)))          # 7 for 28x28 input
    w2_width, w1_width = 2 * hw, 4 * hw             # 14, 28
    c_pad = round_up(class_count, LANES)

    # conv weights -> banded matrices; biases lane-tiled for the pooled layout
    w1b = banded_conv_weight(np.asarray(params["w_conv1"]), w1_width)
    w2b = banded_conv_weight(np.asarray(params["w_conv2"]), w2_width)
    b1t = np.repeat(np.asarray(params["b_conv1"], np.float32), w2_width).reshape(1, -1)
    b2t = np.repeat(np.asarray(params["b_conv2"], np.float32), hw).reshape(1, -1)

    # fc1 rows: PyTorch (c, h, w) flatten order -> our (h, c, w) order
    wf1 = (np.asarray(params["w_fc1"], np.float32)
           .reshape(c2, hw, hw, fc1_w)
           .transpose(1, 0, 2, 3)
           .reshape(hw * c2 * hw, fc1_w))
    # fc_logits lane-padded to 128 columns (extra columns exact zeros)
    wf2 = np.zeros((fc1_w, c_pad), np.float32)
    wf2[:, :class_count] = np.asarray(params["w_fc2"], np.float32)
    bf2 = np.zeros((1, c_pad), np.float32)
    bf2[:, :class_count] = np.asarray(params["b_fc2"], np.float32)

    return {
        "w1b": jnp.asarray(w1b, dot_dtype),
        "b1t": jnp.asarray(b1t, jnp.float32),
        "w2b": jnp.asarray(w2b, dot_dtype),
        "b2t": jnp.asarray(b2t, jnp.float32),
        "wf1": jnp.asarray(wf1, dot_dtype),
        "bf1": jnp.asarray(params["b_fc1"], jnp.float32).reshape(1, fc1_w),
        "wf2": jnp.asarray(wf2, dot_dtype),
        "bf2": jnp.asarray(bf2, jnp.float32),
    }


# ---------------------------------------------------------------------------
# Full forward pass: ONE fused pallas_call, NCHW in, logits out.
# ---------------------------------------------------------------------------
@functools.partial(jax.jit, static_argnames=("class_count", "block_b"))
def model_forward(x_nchw, prep, *, class_count, block_b=8):
    x = x_nchw.astype(jnp.float32)
    N, Cin, H, W = x.shape
    n_extra = (-N) % block_b
    if n_extra:                                   # pad batch to a block multiple
        x = jnp.concatenate(
            [x, jnp.zeros((n_extra, Cin, H, W), x.dtype)], axis=0)
    Np = N + n_extra
    H2, W2 = H // 2, W // 2
    c1 = prep["b1t"].shape[-1] // W2
    c_pad = prep["bf2"].shape[-1]
    hp1 = round_up(H + 2 * PAD, 8)
    hp2 = round_up(H2 + 2 * PAD, 8)

    out = pl.pallas_call(
        fused_forward_kernel,
        out_shape=jax.ShapeDtypeStruct((Np, c_pad), jnp.float32),
        grid=(Np // block_b,),
        in_specs=[
            pl.BlockSpec((block_b, Cin, H, W), lambda n: (n, 0, 0, 0)),
            pl.BlockSpec(prep["w1b"].shape, lambda n: (0, 0, 0)),
            pl.BlockSpec(prep["b1t"].shape, lambda n: (0, 0)),
            pl.BlockSpec(prep["w2b"].shape, lambda n: (0, 0, 0)),
            pl.BlockSpec(prep["b2t"].shape, lambda n: (0, 0)),
            pl.BlockSpec(prep["wf1"].shape, lambda n: (0, 0)),
            pl.BlockSpec(prep["bf1"].shape, lambda n: (0, 0)),
            pl.BlockSpec(prep["wf2"].shape, lambda n: (0, 0)),
            pl.BlockSpec(prep["bf2"].shape, lambda n: (0, 0)),
        ],
        out_specs=pl.BlockSpec((block_b, c_pad), lambda n: (n, 0)),
        scratch_shapes=[
            pltpu.VMEM((block_b, hp1, Cin * W), jnp.float32),
            pltpu.VMEM((block_b, hp2, c1 * W2), jnp.float32),
        ],
        compiler_params=pltpu.CompilerParams(
            dimension_semantics=("parallel",)),
    )(x, prep["w1b"], prep["b1t"], prep["w2b"], prep["b2t"],
      prep["wf1"], prep["bf1"], prep["wf2"], prep["bf2"])
    return out[:N, :class_count]


# ---------------------------------------------------------------------------
# Plain-JAX reference (for the correctness check)
# ---------------------------------------------------------------------------
def reference_forward(x_nchw, params):
    def conv_block(h, w_hwio, b):
        w = jnp.transpose(w_hwio, (3, 2, 0, 1))              # HWIO -> OIHW
        h = jax.lax.conv_general_dilated(
            h, w, (1, 1), ((PAD, PAD), (PAD, PAD)),
            dimension_numbers=("NCHW", "OIHW", "NCHW"))
        h = h + b.reshape(1, -1, 1, 1)
        h = jax.lax.reduce_window(h, -jnp.inf, jax.lax.max,
                                  (1, 1, 2, 2), (1, 1, 2, 2), "VALID")
        return jnp.maximum(h, 0.0)

    h = conv_block(x_nchw, params["w_conv1"], params["b_conv1"])
    h = conv_block(h, params["w_conv2"], params["b_conv2"])
    h = h.reshape(h.shape[0], -1)                            # (C,H,W) flatten
    h = jnp.maximum(h @ params["w_fc1"] + params["b_fc1"], 0.0)
    return h @ params["w_fc2"] + params["b_fc2"]


# ---------------------------------------------------------------------------
# Deterministic parameter initialization (mirrors reset_parameters semantics)
# ---------------------------------------------------------------------------
def init_params(key, in_channels, conv1_width, conv2_width, fc1_width,
                class_count):
    ks = jax.random.split(key, 8)

    def kaiming_normal(k, shape, fan_in):
        return jax.random.normal(k, shape, jnp.float32) * np.sqrt(2.0 / fan_in)

    fc1_in = conv2_width * 7 * 7
    return {
        # conv weights stored HWIO
        "w_conv1": kaiming_normal(ks[0], (K, K, in_channels, conv1_width),
                                  in_channels * K * K),
        "b_conv1": jnp.zeros((conv1_width,), jnp.float32),
        "w_conv2": kaiming_normal(ks[1], (K, K, conv1_width, conv2_width),
                                  conv1_width * K * K),
        "b_conv2": jnp.zeros((conv2_width,), jnp.float32),
        # fc weights stored (in, out) with PyTorch (C,H,W) flatten row order
        "w_fc1": kaiming_normal(ks[2], (fc1_in, fc1_width), fc1_in),
        "b_fc1": jnp.zeros((fc1_width,), jnp.float32),
        # fc_logits: PyTorch default Linear reset (uniform +- 1/sqrt(fan_in))
        "w_fc2": jax.random.uniform(ks[3], (fc1_width, class_count),
                                    jnp.float32,
                                    -1.0 / np.sqrt(fc1_width),
                                    1.0 / np.sqrt(fc1_width)),
        "b_fc2": jax.random.uniform(ks[4], (class_count,), jnp.float32,
                                    -1.0 / np.sqrt(fc1_width),
                                    1.0 / np.sqrt(fc1_width)),
    }


if __name__ == "__main__":
    # Small deterministic config; spatial must be 28x28 (fc1 expects C2*7*7).
    # batch=16 with block_b=8 -> 2 parallel grid steps (both TCs on v7x).
    batch, in_channels = 16, 4
    conv1_width, conv2_width = 8, 16
    fc1_width, class_count = 32, 10
    H = W = 28

    key = jax.random.PRNGKey(0)
    k_x, k_p = jax.random.split(key)
    x = jax.random.normal(k_x, (batch, in_channels, H, W), jnp.float32)  # NCHW
    params = init_params(k_p, in_channels, conv1_width, conv2_width,
                         fc1_width, class_count)
    prep = prepare_params(params)

    logits = model_forward(x, prep, class_count=class_count, block_b=8)
    logits = jax.block_until_ready(logits)

    ref = jax.block_until_ready(reference_forward(x, params))
    np.testing.assert_allclose(np.asarray(logits), np.asarray(ref),
                               rtol=2e-3, atol=2e-3)
    assert logits.shape == (batch, class_count)
    print("KERNEL_OK")
</pallas_src>

<mosaic_0001>
module attributes {stable_mosaic.version = 11 : i64} {
  func.func @fused_forward_kernel(%arg0: i32, %arg1: memref<8x4x28x28xf32, #tpu.memory_space<vmem>>, %arg2: memref<5x112x224xf32, #tpu.memory_space<vmem>>, %arg3: memref<1x112xf32, #tpu.memory_space<vmem>>, %arg4: memref<5x112x224xf32, #tpu.memory_space<vmem>>, %arg5: memref<1x112xf32, #tpu.memory_space<vmem>>, %arg6: memref<784x32xf32, #tpu.memory_space<vmem>>, %arg7: memref<1x32xf32, #tpu.memory_space<vmem>>, %arg8: memref<32x128xf32, #tpu.memory_space<vmem>>, %arg9: memref<1x128xf32, #tpu.memory_space<vmem>>, %arg10: memref<8x128xf32, #tpu.memory_space<vmem>>, %arg11: memref<8x32x112xf32, #tpu.memory_space<vmem>>, %arg12: memref<8x24x112xf32, #tpu.memory_space<vmem>>) attributes {dimension_semantics = [#tpu.dimension_semantics<parallel>], iteration_bounds = array<i64: 2>, scalar_prefetch = 0 : i64, scratch_operands = 2 : i64, tpu.core_type = #tpu.core_type<tc>, window_params = [{transform_indices = @transform_0, window_bounds = array<i64: 8, 4, 28, 28>}, {pipeline_mode = #tpu.pipeline_mode<synchronous>, transform_indices = @transform_1, window_bounds = array<i64: 5, 112, 224>}, {pipeline_mode = #tpu.pipeline_mode<synchronous>, transform_indices = @transform_2, window_bounds = array<i64: 1, 112>}, {pipeline_mode = #tpu.pipeline_mode<synchronous>, transform_indices = @transform_3, window_bounds = array<i64: 5, 112, 224>}, {pipeline_mode = #tpu.pipeline_mode<synchronous>, transform_indices = @transform_4, window_bounds = array<i64: 1, 112>}, {pipeline_mode = #tpu.pipeline_mode<synchronous>, transform_indices = @transform_5, window_bounds = array<i64: 784, 32>}, {pipeline_mode = #tpu.pipeline_mode<synchronous>, transform_indices = @transform_6, window_bounds = array<i64: 1, 32>}, {pipeline_mode = #tpu.pipeline_mode<synchronous>, transform_indices = @transform_7, window_bounds = array<i64: 32, 128>}, {pipeline_mode = #tpu.pipeline_mode<synchronous>, transform_indices = @transform_8, window_bounds = array<i64: 1, 128>}, {transform_indices = @transform_9, window_bounds = array<i64: 8, 128>}]} {
    %cst = arith.constant 0.000000e+00 : f32
    %0 = vector.broadcast %cst : f32 to vector<8x2x112xf32>
    %c0 = arith.constant 0 : index
    %c0_0 = arith.constant 0 : index
    %c0_1 = arith.constant 0 : index
    %1 = vector.load %arg11[%c0, %c0_0, %c0_1] : memref<8x32x112xf32, #tpu.memory_space<vmem>>, vector<8x2x112xf32>
    tpu.vector_store %arg11[%c0, %c0_0, %c0_1], %0 {strides = array<i32>} : memref<8x32x112xf32, #tpu.memory_space<vmem>>, vector<8x2x112xf32>,
    %cst_2 = arith.constant 0.000000e+00 : f32
    %2 = vector.broadcast %cst_2 : f32 to vector<8x2x112xf32>
    %c0_3 = arith.constant 0 : index
    %c30 = arith.constant 30 : index
    %c0_4 = arith.constant 0 : index
    %3 = vector.load %arg11[%c0_3, %c30, %c0_4] : memref<8x32x112xf32, #tpu.memory_space<vmem>>, vector<8x2x112xf32>
    tpu.vector_store %arg11[%c0_3, %c30, %c0_4], %2 {strides = array<i32>} : memref<8x32x112xf32, #tpu.memory_space<vmem>>, vector<8x2x112xf32>,
    %c0_5 = arith.constant 0 : index
    %c0_6 = arith.constant 0 : index
    %c0_7 = arith.constant 0 : index
    %c0_8 = arith.constant 0 : index
    %4 = vector.load %arg1[%c0_5, %c0_6, %c0_7, %c0_8] : memref<8x4x28x28xf32, #tpu.memory_space<vmem>>, vector<8x1x28x28xf32>
    %5 = vector.shape_cast %4 : vector<8x1x28x28xf32> to vector<8x28x28xf32>
    %c0_9 = arith.constant 0 : index
    %c2 = arith.constant 2 : index
    %c0_10 = arith.constant 0 : index
    %6 = vector.load %arg11[%c0_9, %c2, %c0_10] : memref<8x32x112xf32, #tpu.memory_space<vmem>>, vector<8x28x28xf32>
    tpu.vector_store %arg11[%c0_9, %c2, %c0_10], %5 {strides = array<i32>} : memref<8x32x112xf32, #tpu.memory_space<vmem>>, vector<8x28x28xf32>,
    %c0_11 = arith.constant 0 : index
    %c1 = arith.constant 1 : index
    %c0_12 = arith.constant 0 : index
    %c0_13 = arith.constant 0 : index
    %7 = vector.load %arg1[%c0_11, %c1, %c0_12, %c0_13] : memref<8x4x28x28xf32, #tpu.memory_space<vmem>>, vector<8x1x28x28xf32>
    %8 = vector.shape_cast %7 : vector<8x1x28x28xf32> to vector<8x28x28xf32>
    %c0_14 = arith.constant 0 : index
    %c2_15 = arith.constant 2 : index
    %c28 = arith.constant 28 : index
    %9 = vector.load %arg11[%c0_14, %c2_15, %c28] : memref<8x32x112xf32, #tpu.memory_space<vmem>>, vector<8x28x28xf32>
    tpu.vector_store %arg11[%c0_14, %c2_15, %c28], %8 {strides = array<i32>} : memref<8x32x112xf32, #tpu.memory_space<vmem>>, vector<8x28x28xf32>,
    %c0_16 = arith.constant 0 : index
    %c2_17 = arith.constant 2 : index
    %c0_18 = arith.constant 0 : index
    %c0_19 = arith.constant 0 : index
    %10 = vector.load %arg1[%c0_16, %c2_17, %c0_18, %c0_19] : memref<8x4x28x28xf32, #tpu.memory_space<vmem>>, vector<8x1x28x28xf32>
    %11 = vector.shape_cast %10 : vector<8x1x28x28xf32> to vector<8x28x28xf32>
    %c0_20 = arith.constant 0 : index
    %c2_21 = arith.constant 2 : index
    %c56 = arith.constant 56 : index
    %12 = vector.load %arg11[%c0_20, %c2_21, %c56] : memref<8x32x112xf32, #tpu.memory_space<vmem>>, vector<8x28x28xf32>
    tpu.vector_store %arg11[%c0_20, %c2_21, %c56], %11 {strides = array<i32>} : memref<8x32x112xf32, #tpu.memory_space<vmem>>, vector<8x28x28xf32>,
    %c0_22 = arith.constant 0 : index
    %c3 = arith.constant 3 : index
    %c0_23 = arith.constant 0 : index
    %c0_24 = arith.constant 0 : index
    %13 = vector.load %arg1[%c0_22, %c3, %c0_23, %c0_24] : memref<8x4x28x28xf32, #tpu.memory_space<vmem>>, vector<8x1x28x28xf32>
    %14 = vector.shape_cast %13 : vector<8x1x28x28xf32> to vector<8x28x28xf32>
    %c0_25 = arith.constant 0 : index
    %c2_26 = arith.constant 2 : index
    %c84 = arith.constant 84 : index
    %15 = vector.load %arg11[%c0_25, %c2_26, %c84] : memref<8x32x112xf32, #tpu.memory_space<vmem>>, vector<8x28x28xf32>
    tpu.vector_store %arg11[%c0_25, %c2_26, %c84], %14 {strides = array<i32>} : memref<8x32x112xf32, #tpu.memory_space<vmem>>, vector<8x28x28xf32>,
    %c0_27 = arith.constant 0 : index
    %c0_28 = arith.constant 0 : index
    %c0_29 = arith.constant 0 : index
    %16 = vector.load %arg11[%c0_27, %c0_28, %c0_29] : memref<8x32x112xf32, #tpu.memory_space<vmem>>, vector<8x32x112xf32>
    %17 = vector.shape_cast %16 : vector<8x32x112xf32> to vector<256x112xf32>
    %c0_30 = arith.constant 0 : index
    %c0_31 = arith.constant 0 : index
    %c0_32 = arith.constant 0 : index
    %18 = vector.load %arg2[%c0_30, %c0_31, %c0_32] : memref<5x112x224xf32, #tpu.memory_space<vmem>>, vector<1x112x224xf32>
    %19 = vector.shape_cast %18 : vector<1x112x224xf32> to vector<112x224xf32>
    %cst_33 = arith.constant dense<0.000000e+00> : vector<256x224xf32>
    %20 = tpu.matmul %17, %19, %cst_33 {dimension_numbers = #tpu.dot_dimension_numbers<[1], [0], [0], [1], [0, 0, 1, 1], [], []>} : vector<256x112xf32>, vector<112x224xf32>, vector<256x224xf32> -> vector<256x224xf32>
    %21 = vector.shape_cast %20 : vector<256x224xf32> to vector<8x32x224xf32>
    %22 = vector.extract_strided_slice %21 {offsets = [0, 0, 0], sizes = [8, 28, 224], strides = [1, 1, 1]} : vector<8x32x224xf32> to vector<8x28x224xf32>
    %c1_34 = arith.constant 1 : index
    %c0_35 = arith.constant 0 : index
    %c0_36 = arith.constant 0 : index
    %23 = vector.load %arg2[%c1_34, %c0_35, %c0_36] : memref<5x112x224xf32, #tpu.memory_space<vmem>>, vector<1x112x224xf32>
    %24 = vector.shape_cast %23 : vector<1x112x224xf32> to vector<112x224xf32>
    %cst_37 = arith.constant dense<0.000000e+00> : vector<256x224xf32>
    %25 = tpu.matmul %17, %24, %cst_37 {dimension_numbers = #tpu.dot_dimension_numbers<[1], [0], [0], [1], [0, 0, 1, 1], [], []>} : vector<256x112xf32>, vector<112x224xf32>, vector<256x224xf32> -> vector<256x224xf32>
    %26 = vector.shape_cast %25 : vector<256x224xf32> to vector<8x32x224xf32>
    %27 = vector.extract_strided_slice %26 {offsets = [0, 1, 0], sizes = [8, 28, 224], strides = [1, 1, 1]} : vector<8x32x224xf32> to vector<8x28x224xf32>
    %28 = arith.addf %22, %27 : vector<8x28x224xf32>
    %c2_38 = arith.constant 2 : index
    %c0_39 = arith.constant 0 : index
    %c0_40 = arith.constant 0 : index
    %29 = vector.load %arg2[%c2_38, %c0_39, %c0_40] : memref<5x112x224xf32, #tpu.memory_space<vmem>>, vector<1x112x224xf32>
    %30 = vector.shape_cast %29 : vector<1x112x224xf32> to vector<112x224xf32>
    %cst_41 = arith.constant dense<0.000000e+00> : vector<256x224xf32>
    %31 = tpu.matmul %17, %30, %cst_41 {dimension_numbers = #tpu.dot_dimension_numbers<[1], [0], [0], [1], [0, 0, 1, 1], [], []>} : vector<256x112xf32>, vector<112x224xf32>, vector<256x224xf32> -> vector<256x224xf32>
    %32 = vector.shape_cast %31 : vector<256x224xf32> to vector<8x32x224xf32>
    %33 = vector.extract_strided_slice %32 {offsets = [0, 2, 0], sizes = [8, 28, 224], strides = [1, 1, 1]} : vector<8x32x224xf32> to vector<8x28x224xf32>
    %34 = arith.addf %28, %33 : vector<8x28x224xf32>
    %c3_42 = arith.constant 3 : index
    %c0_43 = arith.constant 0 : index
    %c0_44 = arith.constant 0 : index
    %35 = vector.load %arg2[%c3_42, %c0_43, %c0_44] : memref<5x112x224xf32, #tpu.memory_space<vmem>>, vector<1x112x224xf32>
    %36 = vector.shape_cast %35 : vector<1x112x224xf32> to vector<112x224xf32>
    %cst_45 = arith.constant dense<0.000000e+00> : vector<256x224xf32>
    %37 = tpu.matmul %17, %36, %cst_45 {dimension_numbers = #tpu.dot_dimension_numbers<[1], [0], [0], [1], [0, 0, 1, 1], [], []>} : vector<256x112xf32>, vector<112x224xf32>, vector<256x224xf32> -> vector<256x224xf32>
    %38 = vector.shape_cast %37 : vector<256x224xf32> to vector<8x32x224xf32>
    %39 = vector.extract_strided_slice %38 {offsets = [0, 3, 0], sizes = [8, 28, 224], strides = [1, 1, 1]} : vector<8x32x224xf32> to vector<8x28x224xf32>
    %40 = arith.addf %34, %39 : vector<8x28x224xf32>
    %c4 = arith.constant 4 : index
    %c0_46 = arith.constant 0 : index
    %c0_47 = arith.constant 0 : index
    %41 = vector.load %arg2[%c4, %c0_46, %c0_47] : memref<5x112x224xf32, #tpu.memory_space<vmem>>, vector<1x112x224xf32>
    %42 = vector.shape_cast %41 : vector<1x112x224xf32> to vector<112x224xf32>
    %cst_48 = arith.constant dense<0.000000e+00> : vector<256x224xf32>
    %43 = tpu.matmul %17, %42, %cst_48 {dimension_numbers = #tpu.dot_dimension_numbers<[1], [0], [0], [1], [0, 0, 1, 1], [], []>} : vector<256x112xf32>, vector<112x224xf32>, vector<256x224xf32> -> vector<256x224xf32>
    %44 = vector.shape_cast %43 : vector<256x224xf32> to vector<8x32x224xf32>
    %45 = vector.extract_strided_slice %44 {offsets = [0, 4, 0], sizes = [8, 28, 224], strides = [1, 1, 1]} : vector<8x32x224xf32> to vector<8x28x224xf32>
    %46 = arith.addf %40, %45 : vector<8x28x224xf32>
    %47 = vector.extract_strided_slice %46 {offsets = [0, 0, 0], sizes = [8, 28, 112], strides = [1, 1, 1]} : vector<8x28x224xf32> to vector<8x28x112xf32>
    %48 = vector.extract_strided_slice %46 {offsets = [0, 0, 112], sizes = [8, 28, 112], strides = [1, 1, 1]} : vector<8x28x224xf32> to vector<8x28x112xf32>
    %49 = arith.maximumf %47, %48 : vector<8x28x112xf32>
    %50 = vector.shape_cast %49 : vector<8x28x112xf32> to vector<8x14x2x112xf32>
    %51 = vector.extract_strided_slice %50 {offsets = [0, 0, 0, 0], sizes = [8, 14, 1, 112], strides = [1, 1, 1, 1]} : vector<8x14x2x112xf32> to vector<8x14x1x112xf32>
    %52 = vector.shape_cast %51 : vector<8x14x1x112xf32> to vector<8x14x112xf32>
    %53 = vector.extract_strided_slice %50 {offsets = [0, 0, 1, 0], sizes = [8, 14, 1, 112], strides = [1, 1, 1, 1]} : vector<8x14x2x112xf32> to vector<8x14x1x112xf32>
    %54 = vector.shape_cast %53 : vector<8x14x1x112xf32> to vector<8x14x112xf32>
    %55 = arith.maximumf %52, %54 : vector<8x14x112xf32>
    %c0_49 = arith.constant 0 : index
    %c0_50 = arith.constant 0 : index
    %56 = vector.load %arg3[%c0_49, %c0_50] : memref<1x112xf32, #tpu.memory_space<vmem>>, vector<1x112xf32>
    %57 = vector.shape_cast %56 : vector<1x112xf32> to vector<1x1x112xf32>
    %58 = vector.broadcast %57 : vector<1x1x112xf32> to vector<8x14x112xf32>
    %59 = arith.addf %55, %58 : vector<8x14x112xf32>
    %cst_51 = arith.constant 0.000000e+00 : f32
    %60 = vector.broadcast %cst_51 : f32 to vector<8x14x112xf32>
    %61 = arith.maximumf %59, %60 : vector<8x14x112xf32>
    %cst_52 = arith.constant 0.000000e+00 : f32
    %62 = vector.broadcast %cst_52 : f32 to vector<8x2x112xf32>
    %c0_53 = arith.constant 0 : index
    %c0_54 = arith.constant 0 : index
    %c0_55 = arith.constant 0 : index
    %63 = vector.load %arg12[%c0_53, %c0_54, %c0_55] : memref<8x24x112xf32, #tpu.memory_space<vmem>>, vector<8x2x112xf32>
    tpu.vector_store %arg12[%c0_53, %c0_54, %c0_55], %62 {strides = array<i32>} : memref<8x24x112xf32, #tpu.memory_space<vmem>>, vector<8x2x112xf32>,
    %cst_56 = arith.constant 0.000000e+00 : f32
    %64 = vector.broadcast %cst_56 : f32 to vector<8x8x112xf32>
    %c0_57 = arith.constant 0 : index
    %c16 = arith.constant 16 : index
    %c0_58 = arith.constant 0 : index
    %65 = vector.load %arg12[%c0_57, %c16, %c0_58] : memref<8x24x112xf32, #tpu.memory_space<vmem>>, vector<8x8x112xf32>
    tpu.vector_store %arg12[%c0_57, %c16, %c0_58], %64 {strides = array<i32>} : memref<8x24x112xf32, #tpu.memory_space<vmem>>, vector<8x8x112xf32>,
    %c0_59 = arith.constant 0 : index
    %c2_60 = arith.constant 2 : index
    %c0_61 = arith.constant 0 : index
    %66 = vector.load %arg12[%c0_59, %c2_60, %c0_61] : memref<8x24x112xf32, #tpu.memory_space<vmem>>, vector<8x14x112xf32>
    tpu.vector_store %arg12[%c0_59, %c2_60, %c0_61], %61 {strides = array<i32>} : memref<8x24x112xf32, #tpu.memory_space<vmem>>, vector<8x14x112xf32>,
    %c0_62 = arith.constant 0 : index
    %c0_63 = arith.constant 0 : index
    %c0_64 = arith.constant 0 : index
    %67 = vector.load %arg12[%c0_62, %c0_63, %c0_64] : memref<8x24x112xf32, #tpu.memory_space<vmem>>, vector<8x24x112xf32>
    %68 = vector.shape_cast %67 : vector<8x24x112xf32> to vector<192x112xf32>
    %c0_65 = arith.constant 0 : index
    %c0_66 = arith.constant 0 : index
    %c0_67 = arith.constant 0 : index
    %69 = vector.load %arg4[%c0_65, %c0_66, %c0_67] : memref<5x112x224xf32, #tpu.memory_space<vmem>>, vector<1x112x224xf32>
    %70 = vector.shape_cast %69 : vector<1x112x224xf32> to vector<112x224xf32>
    %cst_68 = arith.constant dense<0.000000e+00> : vector<192x224xf32>
    %71 = tpu.matmul %68, %70, %cst_68 {dimension_numbers = #tpu.dot_dimension_numbers<[1], [0], [0], [1], [0, 0, 1, 1], [], []>} : vector<192x112xf32>, vector<112x224xf32>, vector<192x224xf32> -> vector<192x224xf32>
    %72 = vector.shape_cast %71 : vector<192x224xf32> to vector<8x24x224xf32>
    %73 = vector.extract_strided_slice %72 {offsets = [0, 0, 0], sizes = [8, 14, 224], strides = [1, 1, 1]} : vector<8x24x224xf32> to vector<8x14x224xf32>
    %c1_69 = arith.constant 1 : index
    %c0_70 = arith.constant 0 : index
    %c0_71 = arith.constant 0 : index
    %74 = vector.load %arg4[%c1_69, %c0_70, %c0_71] : memref<5x112x224xf32, #tpu.memory_space<vmem>>, vector<1x112x224xf32>
    %75 = vector.shape_cast %74 : vector<1x112x224xf32> to vector<112x224xf32>
    %cst_72 = arith.constant dense<0.000000e+00> : vector<192x224xf32>
    %76 = tpu.matmul %68, %75, %cst_72 {dimension_numbers = #tpu.dot_dimension_numbers<[1], [0], [0], [1], [0, 0, 1, 1], [], []>} : vector<192x112xf32>, vector<112x224xf32>, vector<192x224xf32> -> vector<192x224xf32>
    %77 = vector.shape_cast %76 : vector<192x224xf32> to vector<8x24x224xf32>
    %78 = vector.extract_strided_slice %77 {offsets = [0, 1, 0], sizes = [8, 14, 224], strides = [1, 1, 1]} : vector<8x24x224xf32> to vector<8x14x224xf32>
    %79 = arith.addf %73, %78 : vector<8x14x224xf32>
    %c2_73 = arith.constant 2 : index
    %c0_74 = arith.constant 0 : index
    %c0_75 = arith.constant 0 : index
    %80 = vector.load %arg4[%c2_73, %c0_74, %c0_75] : memref<5x112x224xf32, #tpu.memory_space<vmem>>, vector<1x112x224xf32>
    %81 = vector.shape_cast %80 : vector<1x112x224xf32> to vector<112x224xf32>
    %cst_76 = arith.constant dense<0.000000e+00> : vector<192x224xf32>
    %82 = tpu.matmul %68, %81, %cst_76 {dimension_numbers = #tpu.dot_dimension_numbers<[1], [0], [0], [1], [0, 0, 1, 1], [], []>} : vector<192x112xf32>, vector<112x224xf32>, vector<192x224xf32> -> vector<192x224xf32>
    %83 = vector.shape_cast %82 : vector<192x224xf32> to vector<8x24x224xf32>
    %84 = vector.extract_strided_slice %83 {offsets = [0, 2, 0], sizes = [8, 14, 224], strides = [1, 1, 1]} : vector<8x24x224xf32> to vector<8x14x224xf32>
    %85 = arith.addf %79, %84 : vector<8x14x224xf32>
    %c3_77 = arith.constant 3 : index
    %c0_78 = arith.constant 0 : index
    %c0_79 = arith.constant 0 : index
    %86 = vector.load %arg4[%c3_77, %c0_78, %c0_79] : memref<5x112x224xf32, #tpu.memory_space<vmem>>, vector<1x112x224xf32>
    %87 = vector.shape_cast %86 : vector<1x112x224xf32> to vector<112x224xf32>
    %cst_80 = arith.constant dense<0.000000e+00> : vector<192x224xf32>
    %88 = tpu.matmul %68, %87, %cst_80 {dimension_numbers = #tpu.dot_dimension_numbers<[1], [0], [0], [1], [0, 0, 1, 1], [], []>} : vector<192x112xf32>, vector<112x224xf32>, vector<192x224xf32> -> vector<192x224xf32>
    %89 = vector.shape_cast %88 : vector<192x224xf32> to vector<8x24x224xf32>
    %90 = vector.extract_strided_slice %89 {offsets = [0, 3, 0], sizes = [8, 14, 224], strides = [1, 1, 1]} : vector<8x24x224xf32> to vector<8x14x224xf32>
    %91 = arith.addf %85, %90 : vector<8x14x224xf32>
    %c4_81 = arith.constant 4 : index
    %c0_82 = arith.constant 0 : index
    %c0_83 = arith.constant 0 : index
    %92 = vector.load %arg4[%c4_81, %c0_82, %c0_83] : memref<5x112x224xf32, #tpu.memory_space<vmem>>, vector<1x112x224xf32>
    %93 = vector.shape_cast %92 : vector<1x112x224xf32> to vector<112x224xf32>
    %cst_84 = arith.constant dense<0.000000e+00> : vector<192x224xf32>
    %94 = tpu.matmul %68, %93, %cst_84 {dimension_numbers = #tpu.dot_dimension_numbers<[1], [0], [0], [1], [0, 0, 1, 1], [], []>} : vector<192x112xf32>, vector<112x224xf32>, vector<192x224xf32> -> vector<192x224xf32>
    %95 = vector.shape_cast %94 : vector<192x224xf32> to vector<8x24x224xf32>
    %96 = vector.extract_strided_slice %95 {offsets = [0, 4, 0], sizes = [8, 14, 224], strides = [1, 1, 1]} : vector<8x24x224xf32> to vector<8x14x224xf32>
    %97 = arith.addf %91, %96 : vector<8x14x224xf32>
    %98 = vector.extract_strided_slice %97 {offsets = [0, 0, 0], sizes = [8, 14, 112], strides = [1, 1, 1]} : vector<8x14x224xf32> to vector<8x14x112xf32>
    %99 = vector.extract_strided_slice %97 {offsets = [0, 0, 112], sizes = [8, 14, 112], strides = [1, 1, 1]} : vector<8x14x224xf32> to vector<8x14x112xf32>
    %100 = arith.maximumf %98, %99 : vector<8x14x112xf32>
    %101 = vector.shape_cast %100 : vector<8x14x112xf32> to vector<8x7x2x112xf32>
    %102 = vector.extract_strided_slice %101 {offsets = [0, 0, 0, 0], sizes = [8, 7, 1, 112], strides = [1, 1, 1, 1]} : vector<8x7x2x112xf32> to vector<8x7x1x112xf32>
    %103 = vector.shape_cast %102 : vector<8x7x1x112xf32> to vector<8x7x112xf32>
    %104 = vector.extract_strided_slice %101 {offsets = [0, 0, 1, 0], sizes = [8, 7, 1, 112], strides = [1, 1, 1, 1]} : vector<8x7x2x112xf32> to vector<8x7x1x112xf32>
    %105 = vector.shape_cast %104 : vector<8x7x1x112xf32> to vector<8x7x112xf32>
    %106 = arith.maximumf %103, %105 : vector<8x7x112xf32>
    %c0_85 = arith.constant 0 : index
    %c0_86 = arith.constant 0 : index
    %107 = vector.load %arg5[%c0_85, %c0_86] : memref<1x112xf32, #tpu.memory_space<vmem>>, vector<1x112xf32>
    %108 = vector.shape_cast %107 : vector<1x112xf32> to vector<1x1x112xf32>
    %109 = vector.broadcast %108 : vector<1x1x112xf32> to vector<8x7x112xf32>
    %110 = arith.addf %106, %109 : vector<8x7x112xf32>
    %cst_87 = arith.constant 0.000000e+00 : f32
    %111 = vector.broadcast %cst_87 : f32 to vector<8x7x112xf32>
    %112 = arith.maximumf %110, %111 : vector<8x7x112xf32>
    %113 = vector.shape_cast %112 : vector<8x7x112xf32> to vector<8x784xf32>
    %c0_88 = arith.constant 0 : index
    %c0_89 = arith.constant 0 : index
    %114 = vector.load %arg6[%c0_88, %c0_89] : memref<784x32xf32, #tpu.memory_space<vmem>>, vector<784x32xf32>
    %cst_90 = arith.constant dense<0.000000e+00> : vector<8x32xf32>
    %115 = tpu.matmul %113, %114, %cst_90 {dimension_numbers = #tpu.dot_dimension_numbers<[1], [0], [0], [1], [0, 0, 1, 1], [], []>} : vector<8x784xf32>, vector<784x32xf32>, vector<8x32xf32> -> vector<8x32xf32>
    %c0_91 = arith.constant 0 : index
    %c0_92 = arith.constant 0 : index
    %116 = vector.load %arg7[%c0_91, %c0_92] : memref<1x32xf32, #tpu.memory_space<vmem>>, vector<1x32xf32>
    %117 = vector.broadcast %116 : vector<1x32xf32> to vector<8x32xf32>
    %118 = arith.addf %115, %117 : vector<8x32xf32>
    %cst_93 = arith.constant 0.000000e+00 : f32
    %119 = vector.broadcast %cst_93 : f32 to vector<8x32xf32>
    %120 = arith.maximumf %118, %119 : vector<8x32xf32>
    %c0_94 = arith.constant 0 : index
    %c0_95 = arith.constant 0 : index
    %121 = vector.load %arg8[%c0_94, %c0_95] : memref<32x128xf32, #tpu.memory_space<vmem>>, vector<32x128xf32>
    %cst_96 = arith.constant dense<0.000000e+00> : vector<8x128xf32>
    %122 = tpu.matmul %120, %121, %cst_96 {dimension_numbers = #tpu.dot_dimension_numbers<[1], [0], [0], [1], [0, 0, 1, 1], [], []>} : vector<8x32xf32>, vector<32x128xf32>, vector<8x128xf32> -> vector<8x128xf32>
    %c0_97 = arith.constant 0 : index
    %c0_98 = arith.constant 0 : index
    %123 = vector.load %arg9[%c0_97, %c0_98] : memref<1x128xf32, #tpu.memory_space<vmem>>, vector<1x128xf32>
    %124 = vector.broadcast %123 : vector<1x128xf32> to vector<8x128xf32>
    %125 = arith.addf %122, %124 : vector<8x128xf32>
    %c0_99 = arith.constant 0 : index
    %c0_100 = arith.constant 0 : index
    %126 = vector.load %arg10[%c0_99, %c0_100] : memref<8x128xf32, #tpu.memory_space<vmem>>, vector<8x128xf32>
    tpu.vector_store %arg10[%c0_99, %c0_100], %125 {strides = array<i32>} : memref<8x128xf32, #tpu.memory_space<vmem>>, vector<8x128xf32>,
    return
  }
  func.func @transform_0(%arg0: i32) -> (i32, i32, i32, i32) {
    %c0_i32 = arith.constant 0 : i32
    %c0_i32_0 = arith.constant 0 : i32
    %c0_i32_1 = arith.constant 0 : i32
    %c0_i32_2 = arith.constant 0 : i32
    return %arg0, %c0_i32, %c0_i32_0, %c0_i32_1 : i32, i32, i32, i32
  }
  func.func @transform_1(%arg0: i32) -> (i32, i32, i32) {
    %c0_i32 = arith.constant 0 : i32
    %c0_i32_0 = arith.constant 0 : i32
    %c0_i32_1 = arith.constant 0 : i32
    %c0_i32_2 = arith.constant 0 : i32
    return %c0_i32, %c0_i32_0, %c0_i32_1 : i32, i32, i32
  }
  func.func @transform_2(%arg0: i32) -> (i32, i32) {
    %c0_i32 = arith.constant 0 : i32
    %c0_i32_0 = arith.constant 0 : i32
    %c0_i32_1 = arith.constant 0 : i32
    return %c0_i32, %c0_i32_0 : i32, i32
  }
  func.func @transform_3(%arg0: i32) -> (i32, i32, i32) {
    %c0_i32 = arith.constant 0 : i32
    %c0_i32_0 = arith.constant 0 : i32
    %c0_i32_1 = arith.constant 0 : i32
    %c0_i32_2 = arith.constant 0 : i32
    return %c0_i32, %c0_i32_0, %c0_i32_1 : i32, i32, i32
  }
  func.func @transform_4(%arg0: i32) -> (i32, i32) {
    %c0_i32 = arith.constant 0 : i32
    %c0_i32_0 = arith.constant 0 : i32
    %c0_i32_1 = arith.constant 0 : i32
    return %c0_i32, %c0_i32_0 : i32, i32
  }
  func.func @transform_5(%arg0: i32) -> (i32, i32) {
    %c0_i32 = arith.constant 0 : i32
    %c0_i32_0 = arith.constant 0 : i32
    %c0_i32_1 = arith.constant 0 : i32
    return %c0_i32, %c0_i32_0 : i32, i32
  }
  func.func @transform_6(%arg0: i32) -> (i32, i32) {
    %c0_i32 = arith.constant 0 : i32
    %c0_i32_0 = arith.constant 0 : i32
    %c0_i32_1 = arith.constant 0 : i32
    return %c0_i32, %c0_i32_0 : i32, i32
  }
  func.func @transform_7(%arg0: i32) -> (i32, i32) {
    %c0_i32 = arith.constant 0 : i32
    %c0_i32_0 = arith.constant 0 : i32
    %c0_i32_1 = arith.constant 0 : i32
    return %c0_i32, %c0_i32_0 : i32, i32
  }
  func.func @transform_8(%arg0: i32) -> (i32, i32) {
    %c0_i32 = arith.constant 0 : i32
    %c0_i32_0 = arith.constant 0 : i32
    %c0_i32_1 = arith.constant 0 : i32
    return %c0_i32, %c0_i32_0 : i32, i32
  }
  func.func @transform_9(%arg0: i32) -> (i32, i32) {
    %c0_i32 = arith.constant 0 : i32
    %c0_i32_0 = arith.constant 0 : i32
    return %arg0, %c0_i32 : i32, i32
  }
}

</mosaic_0001>

<bundles_post_ra>
// kernel: model_forward.1
= control target key start
LH: loop header
LB: loop body
LE: loop exit
PB: predicated region body
PF: predicated region fallthrough
CT: control target
= control target key end

     0   :  { %14 = vsyncpa [#allocation5], 0  ;;  %s16528_s0 = inlined_call_operand.vmem [shape: f32[16,4,28,28], index: 0, kind: input, shape index: {}]   ;;  %s16529_s1 = inlined_call_operand.vmem [shape: f32[5,112,224], index: 1, kind: input, shape index: {}]   ;;  %s16530_s2 = inlined_call_operand.vmem [shape: f32[1,112], index: 2, kind: input, shape index: {}]   ;;  %s16531_s3 = inlined_call_operand.vmem [shape: f32[5,112,224], index: 3, kind: input, shape index: {}]   ;;  %s16532_s4 = inlined_call_operand.vmem [shape: f32[1,112], index: 4, kind: input, shape index: {}]   ;;  %s16533_s5 = inlined_call_operand.vmem [shape: f32[784,32], index: 5, kind: input, shape index: {}]   ;;  %s16534_s6 = inlined_call_operand.vmem [shape: f32[1,32], index: 6, kind: input, shape index: {}]   ;;  %s16535_s7 = inlined_call_operand.vmem [shape: f32[32,128], index: 7, kind: input, shape index: {}]   ;;  %s16536_s8 = inlined_call_operand.vmem [shape: f32[1,128], index: 8, kind: input, shape index: {}]   ;;  %s16537_s9 = inlined_call_operand.hbm [shape: f32[16,128], index: 9, kind: output, shape index: {}]  }
   0x1   :  { %16 = vsyncpa [#allocation5 + $0x1], 0  ;;  %s11542_s30 = smov 0   ;;  %s11544_s10 = smov 0  }
   0x2   :  { %s11546_s11 = smov 0   ;;  %s11548_s12 = smov 0  }
   0x3 LB: > { %s11563_s13 = sadd.s32 4294967295, %s11474_s12   ;;  %s9999_s14 = sadd.s32 4294967294, %s11474_s12   ;;  %s11474_s12 = sphi %s11548_s12, %s16789_s12   ;;  %s11470_s11 = sphi %s11546_s11, %s16788_s11   ;;  %s11466_s10 = sphi %s11544_s10, %s16787_s10   ;;  %s11462_s30 = sphi %s11542_s30, %s16786_s30  }
   0x4   : > { %s11567_s15 = sadd.s32 1, %s11474_s12   ;;  %s223_s16 = sadd.s32 1, %s11470_s11 }
   0x5   : > { %s220_s17 = ssub.s32 %s11474_s12, %s11567_s15  ;;  %p233_p0 = scmp.ne.s32.totalorder %s11470_s11, %s11466_s10 }
   0x6   : > { %p221_p1 = scmp.eq.s32.totalorder %s220_s17, 0  ;;  %p234_p2 = scmp.eq.s32.totalorder %s11563_s13, 1 }
   0x7   : > { %p239_p3 = scmp.ne.s32.totalorder %s11466_s10, %s11462_s30  ;;  %p240_p4 = scmp.eq.s32.totalorder %s9999_s14, 1 }
   0x8   : > { %s11578_s18 = scalar_select %p221_p1, %s11470_s11, %s223_s16  }
   0x9   : > { %p11580_p5 = por %p234_p2, %p233_p0  ;;  %p11584_p6 = por %p240_p4, %p239_p3 }
   0xa   : > { %p10002_p7 = scmp.ge.s32.totalorder %s11474_s12, 1  ;;  %p292_p8 = scmp.lt.s32.totalorder %s11474_s12, 3 }
   0xc   : > { %p293_p9 = pnand %p10002_p7, %p292_p8 }
   0xe   : > { %296 = sbr.rel (%p293_p9) target bundleno = 2236 (0x8bc), region = 56 }
  0x15   : > { %s10004_s21 = sshll.u32 %s11563_s13, 3  ;;  %v1037_v0 = vld [vmem:[%s16529_s1 + $0x8] sm:$0xff]  ;;  %v1039_v1 = vld [vmem:[%s16529_s1 + $0x18] sm:$0xff]  ;;  %v1036_v5 = vld [vmem:[%s16529_s1] sm:$0xff]  ;;  %vm336_vm0 = vcmask 910336   ;;  %v16542_v21 = vmov 0.0  }
  0x16   : > { %v10136_v2 = vld [vmem:[%s16529_s1 + $0xe8] sm:$0xff]  ;;  %p330_p10 = scmp.lt.s32.totalorder %s10004_s21, 15  ;;  %v10923_v3 = vpack.c.bf16 %v1039_v1, %v1037_v0  ;;  %v10138_v4 = vld [vmem:[%s16529_s1 + $0xf8] sm:$0xff]  ;;  %v1038_v6 = vld [vmem:[%s16529_s1 + $0x10] sm:$0xff]  ;;  %337 = vst.msk [vmem:[#allocation2] sm:$0x3] %vm336_vm0, %v16542_v21  ;;  %1225 = vmatprep.mubr.f32.mxu0 %v16542_v21  ;;  %1511 = vmatprep.mubr.f32.mxu1 %v16542_v21 }
  0x17   : > { %v10951_v7 = vpack.c.bf16 %v10138_v4, %v10136_v2  ;;  %v10925_v8 = vpack.c.bf16 %v1038_v6, %v1036_v5  ;;  %v10135_v9 = vld [vmem:[%s16529_s1 + $0xe0] sm:$0xff]  ;;  %v10137_v10 = vld [vmem:[%s16529_s1 + $0xf0] sm:$0xff]  ;;  %v1041_v11 = vld [vmem:[%s16529_s1 + $0x28] sm:$0xff]  ;;  %338 = vst.msk [vmem:[#allocation2 + $0x20] sm:$0x3] %vm336_vm0, %v16542_v21  ;;  %vm1064_vm1 = vcmask 916480  }
  0x18   : > { %s16791_s21 = smov (!%p330_p10, %s10004_s21), 15  ;;  %10924 = vmatprep.subr.bf16.mxu0 %v10923_v3  ;;  %v10953_v12 = vpack.c.bf16 %v10137_v10, %v10135_v9  ;;  %v1043_v13 = vld [vmem:[%s16529_s1 + $0x38] sm:$0xff]  ;;  %v10140_v14 = vld [vmem:[%s16529_s1 + $0x108] sm:$0xff]  ;;  %v1040_v18 = vld [vmem:[%s16529_s1 + $0x20] sm:$0xff]  ;;  %339 = vst.msk [vmem:[#allocation2 + $0x40] sm:$0x3] %vm336_vm0, %v16542_v21 }
  0x19   : > { %v10142_v15 = vld [vmem:[%s16529_s1 + $0x118] sm:$0xff]  ;;  %10952 = vmatprep.subr.bf16.mxu1 %v10951_v7  ;;  %10926 = vmatpush1.bf16.msra.mxu0 %v10925_v8  ;;  %v10927_v16 = vpack.c.bf16 %v1043_v13, %v1041_v11  ;;  %v1042_v19 = vld [vmem:[%s16529_s1 + $0x30] sm:$0xff]  ;;  %v10139_v20 = vld [vmem:[%s16529_s1 + $0x100] sm:$0xff]  ;;  %340 = vst.msk [vmem:[#allocation2 + $0x60] sm:$0x3] %vm336_vm0, %v16542_v21  ;;  %s10791_s14 = sshll.u32 %s16791_s21, 7 }
  0x1a   : > { %v10955_v17 = vpack.c.bf16 %v10142_v15, %v10140_v14  ;;  %341 = vst.msk [vmem:[#allocation2 + $0x80] sm:$0x3] %vm336_vm0, %v16542_v21  ;;  %342 = vst.msk [vmem:[#allocation2 + $0xa0] sm:$0x3] %vm336_vm0, %v16542_v21  ;;  %10954 = vmatpush1.bf16.msra.mxu1 %v10953_v12  ;;  %v10929_v22 = vpack.c.bf16 %v1042_v19, %v1040_v18  ;;  %v10141_v23 = vld [vmem:[%s16529_s1 + $0x110] sm:$0xff]  ;;  %v1045_v24 = vld [vmem:[%s16529_s1 + $0x48] sm:$0xff]  ;;  %s11700_s21 = scalar_lea.vmem %s16528_s0, %s10791_s14 }
  0x1b   : > { %343 = vst.msk [vmem:[#allocation2 + $0xc0] sm:$0x3] %vm336_vm0, %v16542_v21  ;;  %344 = vst.msk [vmem:[#allocation2 + $0xe0] sm:$0x3] %vm336_vm0, %v16542_v21  ;;  %v1047_v25 = vld [vmem:[%s16529_s1 + $0x58] sm:$0xff]  ;;  %10928 = vmatprep.subr.bf16.mxu0 %v10927_v16  ;;  %v10957_v26 = vpack.c.bf16 %v10141_v23, %v10139_v20  ;;  %v10144_v28 = vld [vmem:[%s16529_s1 + $0x128] sm:$0xff] }
  0x1c   : > { %345 = vst.msk [vmem:[#allocation2 + $0x1e] sm:$0x3] %vm336_vm0, %v16542_v21  ;;  %346 = vst.msk [vmem:[#allocation2 + $0x3e] sm:$0x3] %vm336_vm0, %v16542_v21  ;;  %10956 = vmatprep.subr.bf16.mxu1 %v10955_v17  ;;  %v10931_v27 = vpack.c.bf16 %v1047_v25, %v1045_v24  ;;  %v10146_v29 = vld [vmem:[%s16529_s1 + $0x138] sm:$0xff]  ;;  %v10007_v30 = vld [vmem:[%s11700_s21 + $0x20] sm:$0xff] }
  0x1d   : > { %347 = vst.msk [vmem:[#allocation2 + $0x5e] sm:$0x3] %vm336_vm0, %v16542_v21  ;;  %348 = vst.msk [vmem:[#allocation2 + $0x7e] sm:$0x3] %vm336_vm0, %v16542_v21  ;;  %v10071_v31 = vld [vmem:[%s11700_s21 + $0x60] sm:$0xff]  ;;  %v10959_v32 = vpack.c.bf16 %v10146_v29, %v10144_v28  ;;  %s16540_s14 = smov 28   ;;  %10930 = vmatpush1.bf16.msra.mxu0 %v10929_v22 }
  0x1e   : > { %349 = vst.msk [vmem:[#allocation2 + $0x9e] sm:$0x3] %vm336_vm0, %v16542_v21  ;;  %350 = vst.msk [vmem:[#allocation2 + $0xbe] sm:$0x3] %vm336_vm0, %v16542_v21  ;;  %484 = vrot.lane.b32.xlu0 %v10007_v30, %s16540_s14  ;;  %s16538_s22 = smov 84   ;;  %v10039_v33 = vld [vmem:[%s11700_s21 + $0x40] sm:$0xff]  ;;  %10958 = vmatpush1.bf16.msra.mxu1 %v10957_v26 }
  0x1f   : > { %351 = vst.msk [vmem:[#allocation2 + $0xde] sm:$0x3] %vm336_vm0, %v16542_v21  ;;  %352 = vst.msk [vmem:[#allocation2 + $0xfe] sm:$0x3] %vm336_vm0, %v16542_v21  ;;  %874 = vrot.lane.b32.xlu1 %v10071_v31, %s16538_s22  ;;  %v10008_v34 = vld [vmem:[%s11700_s21 + $0x28] sm:$0xff]  ;;  %10932 = vmatprep.subr.bf16.mxu0 %v10931_v27  ;;  %s11479_s23 = smov 56  }
  0x20   : > { %5394 = vst.msk [vmem:[#allocation3] sm:$0x3] %vm336_vm0, %v16542_v21  ;;  %5395 = vst.msk [vmem:[#allocation3 + $0x18] sm:$0x3] %vm336_vm0, %v16542_v21  ;;  %10960 = vmatprep.subr.bf16.mxu1 %v10959_v32  ;;  %v10040_v35 = vld [vmem:[%s11700_s21 + $0x48] sm:$0xff]  ;;  %v10009_v37 = vld [vmem:[%s11700_s21 + $0x30] sm:$0xff] }
  0x21   : > { %5396 = vst.msk [vmem:[#allocation3 + $0x30] sm:$0x3] %vm336_vm0, %v16542_v21  ;;  %5397 = vst.msk [vmem:[#allocation3 + $0x48] sm:$0x3] %vm336_vm0, %v16542_v21  ;;  %v10072_v36 = vld [vmem:[%s11700_s21 + $0x68] sm:$0xff]  ;;  %v10041_v38 = vld [vmem:[%s11700_s21 + $0x50] sm:$0xff] }
  0x22   : > { %5398 = vst.msk [vmem:[#allocation3 + $0x60] sm:$0x3] %vm336_vm0, %v16542_v21  ;;  %5399 = vst.msk [vmem:[#allocation3 + $0x78] sm:$0x3] %vm336_vm0, %v16542_v21  ;;  %679 = vrot.lane.b32.xlu0 %v10039_v33, %s11479_s23  ;;  %v10073_v39 = vld [vmem:[%s11700_s21 + $0x70] sm:$0xff]  ;;  %v1044_v43 = vld [vmem:[%s16529_s1 + $0x40] sm:$0xff] }
  0x23   : > { %5400 = vst.msk [vmem:[#allocation3 + $0x90] sm:$0x3] %vm336_vm0, %v16542_v21  ;;  %5401 = vst.msk [vmem:[#allocation3 + $0xa8] sm:$0x3] %vm336_vm0, %v16542_v21  ;;  %486 = vrot.lane.b32.xlu1 %v10008_v34, %s16540_s14  ;;  %v10010_v40 = vld [vmem:[%s11700_s21 + $0x38] sm:$0xf] }
  0x24   : > { %5402 = vst.msk [vmem:[#allocation3 + $0x10] sm:$0xff] %vm1064_vm1, %v16542_v21  ;;  %5403 = vst.msk [vmem:[#allocation3 + $0x28] sm:$0xff] %vm1064_vm1, %v16542_v21  ;;  %v10042_v41 = vld [vmem:[%s11700_s21 + $0x58] sm:$0xf]  ;;  %v10011_v44 = vld [vmem:[%s11700_s21 + $0xa0] sm:$0xff]  ;;  %vm385_vm2 = vcmask 228352  }
  0x25   : > { %5404 = vst.msk [vmem:[#allocation3 + $0x40] sm:$0xff] %vm1064_vm1, %v16542_v21  ;;  %5405 = vst.msk [vmem:[#allocation3 + $0x58] sm:$0xff] %vm1064_vm1, %v16542_v21  ;;  %v10074_v42 = vld [vmem:[%s11700_s21 + $0x78] sm:$0xf]  ;;  %v1046_v45 = vld [vmem:[%s16529_s1 + $0x50] sm:$0xff]  ;;  %s16570_s29 = smov 84  }
  0x26   : > { %5406 = vst.msk [vmem:[#allocation3 + $0x70] sm:$0xff] %vm1064_vm1, %v16542_v21  ;;  %5407 = vst.msk [vmem:[#allocation3 + $0x88] sm:$0xff] %vm1064_vm1, %v16542_v21  ;;  %681 = vrot.lane.b32.xlu0 %v10040_v35, %s11479_s23  ;;  %v10143_v46 = vld [vmem:[%s16529_s1 + $0x120] sm:$0xff]  ;;  %v10145_v47 = vld [vmem:[%s16529_s1 + $0x130] sm:$0xff]  ;;  %v10933_v49 = vpack.c.bf16 %v1046_v45, %v1044_v43  ;;  %vm389_vm3 = vcmask 224256   ;;  %s16571_s26 = smov 28  }
  0x27   : > { %5408 = vst.msk [vmem:[#allocation3 + $0xa0] sm:$0xff] %vm1064_vm1, %v16542_v21  ;;  %5409 = vst.msk [vmem:[#allocation3 + $0xb8] sm:$0xff] %vm1064_vm1, %v16542_v21  ;;  %876 = vrot.lane.b32.xlu1 %v10072_v36, %s16538_s22  ;;  %v10043_v48 = vld [vmem:[%s11700_s21 + $0xc0] sm:$0xff]  ;;  %v10961_v50 = vpack.c.bf16 %v10145_v47, %v10143_v46  ;;  %v1049_v51 = vld [vmem:[%s16529_s1 + $0x68] sm:$0xff]  ;;  %vm580_vm4 = vcmask 457952   ;;  %vm775_vm5 = vcmask 687552  }
  0x28   : > { %v1051_v52 = vld [vmem:[%s16529_s1 + $0x78] sm:$0xff]  ;;  %v10148_v53 = vld [vmem:[%s16529_s1 + $0x148] sm:$0xff]  ;;  %10934 = vmatpush1.bf16.msra.mxu0 %v10933_v49  ;;  %v1048_v57 = vld [vmem:[%s16529_s1 + $0x60] sm:$0xff]  ;;  %vm970_vm6 = vcmask 917152   ;;  %vm584_vm7 = vcmask 453856   ;;  %vm779_vm8 = vcmask 683456  }
  0x29   : > { %v10150_v54 = vld [vmem:[%s16529_s1 + $0x158] sm:$0xff]  ;;  %10962 = vmatpush1.bf16.msra.mxu1 %v10961_v50  ;;  %v10935_v55 = vpack.c.bf16 %v1051_v52, %v1049_v51  ;;  %v1050_v58 = vld [vmem:[%s16529_s1 + $0x70] sm:$0xff]  ;;  %v10075_v59 = vld [vmem:[%s11700_s21 + $0xe0] sm:$0xff]  ;;  %vm974_vm9 = vcmask 913056   ;;  %vm1768_vm10 = vcmask 1046528   ;;  %vm2359_vm11 = vcmask 1045504  }
  0x2a   : > { %488 = vrot.lane.b32.xlu0 %v10009_v37, %s16540_s14  ;;  %v10963_v56 = vpack.c.bf16 %v10150_v54, %v10148_v53  ;;  %v10012_v60 = vld [vmem:[%s11700_s21 + $0xa8] sm:$0xff]  ;;  %v10937_v61 = vpack.c.bf16 %v1050_v58, %v1048_v57  ;;  %v10147_v62 = vld [vmem:[%s16529_s1 + $0x140] sm:$0xff]  ;;  %v10149_v63 = vld [vmem:[%s16529_s1 + $0x150] sm:$0xff]  ;;  %vm2950_vm12 = vcmask 1044480   ;;  %vm3541_vm13 = vcmask 1043456   ;;  %s326_s24 = sand.u32 1, %s11466_s10  }
  0x2b   : > { %683 = vrot.lane.b32.xlu1 %v10041_v38, %s11479_s23  ;;  %v10965_v0 = vpack.c.bf16 %v10149_v63, %v10147_v62  ;;  %v353_v1 = vld [vmem:[%s11700_s21] sm:$0xff]  ;;  %v1053_v2 = vld [vmem:[%s16529_s1 + $0x88] sm:$0xff]  ;;  %10936 = vmatprep.subr.bf16.mxu0 %v10935_v55  ;;  %v1055_v3 = vld [vmem:[%s16529_s1 + $0x98] sm:$0xff]  ;;  %vm3974_vm14 = vcmask 130048   ;;  %vm5970_vm15 = vcmask 1041409   ;;  %vm5972_vm0 = vcmask 1042434  }
  0x2c   : > { %10964 = vmatprep.subr.bf16.mxu1 %v10963_v56  ;;  %386 = vst.msk [vmem:[#allocation2 + $0x2] sm:$0xff] %vm385_vm2, %v353_v1  ;;  %v10152_v4 = vld [vmem:[%s16529_s1 + $0x168] sm:$0xff]  ;;  %v10154_v5 = vld [vmem:[%s16529_s1 + $0x178] sm:$0xff]  ;;  %10938 = vmatpush1.bf16.msra.mxu0 %v10937_v61  ;;  %v10939_v6 = vpack.c.bf16 %v1055_v3, %v1053_v2  ;;  %v1052_v8 = vld [vmem:[%s16529_s1 + $0x80] sm:$0xff]  ;;  %s10003_s25 = sshll.u32 %s326_s24, 3 }
  0x2d   : > { %10966 = vmatpush1.bf16.msra.mxu1 %v10965_v0  ;;  %v10967_v7 = vpack.c.bf16 %v10154_v5, %v10152_v4  ;;  %v1054_v9 = vld [vmem:[%s16529_s1 + $0x90] sm:$0xff]  ;;  %v10044_v10 = vld [vmem:[%s11700_s21 + $0xc8] sm:$0xff]  ;;  %v10151_v13 = vld [vmem:[%s16529_s1 + $0x160] sm:$0xff]  ;;  %s328_s28 = scalar_lea.vmem [#allocation4], %s10003_s25 }
  0x2e   : > { %878 = vrot.lane.b32.xlu0 %v10073_v39, %s16538_s22  ;;  %v10076_v11 = vld [vmem:[%s11700_s21 + $0xe8] sm:$0xff]  ;;  %v10941_v12 = vpack.c.bf16 %v1054_v9, %v1052_v8  ;;  %v10153_v14 = vld [vmem:[%s16529_s1 + $0x170] sm:$0xff]  ;;  %10940 = vmatprep.subr.bf16.mxu0 %v10939_v6  ;;  %v1059_v18 = vld [vmem:[%s16529_s1 + $0xb8] sm:$0xff]  ;;  %s9940_s16 = sshll.u32 %s328_s28, 4  ;;  %s16488_s16 = int_to_ptr.vmem [resolvable:$true] %s9940_s16 }
  0x2f   : > { %490 = vrot.lane.b32.xlu1 %v10010_v40, %s16540_s14  ;;  %v10969_v15 = vpack.c.bf16 %v10153_v14, %v10151_v13  ;;  %v354_v16 = vld [vmem:[%s11700_s21 + $0x8] sm:$0xff]  ;;  %10968 = vmatprep.subr.bf16.mxu1 %v10967_v7  ;;  %v10158_v20 = vld [vmem:[%s16529_s1 + $0x198] sm:$0xff]  ;;  %v1056_v24 = vld [vmem:[%s16529_s1 + $0xa0] sm:$0xff]  ;;  %s11412_s17 = scalar_lea.vmem %s16488_s16, 128 }
  0x30   : > { %v1057_v17 = vld [vmem:[%s16529_s1 + $0xa8] sm:$0xff]  ;;  %387 = vst.msk [vmem:[#allocation2 + $0xa] sm:$0xff] %vm385_vm2, %v354_v16  ;;  %10942 = vmatpush1.bf16.msra.mxu0 %v10941_v12  ;;  %v1058_v25 = vld [vmem:[%s16529_s1 + $0xb0] sm:$0xff]  ;;  %v10155_v28 = vld [vmem:[%s16529_s1 + $0x180] sm:$0xff]  ;;  %p11413_p11 = scmp.ne.s32.totalorder %s16488_s16, %s11412_s17 }
  0x31   : > { %v10156_v19 = vld [vmem:[%s16529_s1 + $0x188] sm:$0xff]  ;;  %10970 = vmatpush1.bf16.msra.mxu1 %v10969_v15  ;;  %v10943_v22 = vpack.c.bf16 %v1059_v18, %v1057_v17  ;;  %v10013_v26 = vld [vmem:[%s11700_s21 + $0xb0] sm:$0xff]  ;;  %v10945_v27 = vpack.c.bf16 %v1058_v25, %v1056_v24  ;;  %v1063_v32 = vld [vmem:[%s16529_s1 + $0xd8] sm:$0xff] }
  0x32   : > { %685 = vrot.lane.b32.xlu0 %v10042_v41, %s11479_s23  ;;  %v10971_v23 = vpack.c.bf16 %v10158_v20, %v10156_v19  ;;  %v10157_v29 = vld [vmem:[%s16529_s1 + $0x190] sm:$0xff]  ;;  %v1061_v31 = vld [vmem:[%s16529_s1 + $0xc8] sm:$0xff]  ;;  %v10162_v36 = vld [vmem:[%s16529_s1 + $0x1b8] sm:$0xff]  ;;  %p11414_p12 = pnand %p11413_p11, %p11580_p5 }
  0x33   : > { %880 = vrot.lane.b32.xlu1 %v10074_v42, %s16538_s22  ;;  %v10973_v30 = vpack.c.bf16 %v10157_v29, %v10155_v28  ;;  %v10045_v33 = vld [vmem:[%s11700_s21 + $0xd0] sm:$0xff]  ;;  %10944 = vmatprep.subr.bf16.mxu0 %v10943_v22  ;;  %v10947_v34 = vpack.c.bf16 %v1063_v32, %v1061_v31  ;;  %v10160_v35 = vld [vmem:[%s16529_s1 + $0x1a8] sm:$0xff]  ;;  %v1060_v38 = vld [vmem:[%s16529_s1 + $0xc0] sm:$0xff]  ;;  %s11480_s22 = smov 16  }
  0x34   : > { %10972 = vmatprep.subr.bf16.mxu1 %v10971_v23  ;;  %10946 = vmatpush1.bf16.msra.mxu0 %v10945_v27  ;;  %v10975_v37 = vpack.c.bf16 %v10162_v36, %v10160_v35  ;;  %v1062_v39 = vld [vmem:[%s16529_s1 + $0xd0] sm:$0xff]  ;;  %v10159_v40 = vld [vmem:[%s16529_s1 + $0x1a0] sm:$0xff]  ;;  %v10014_v46 = vld [vmem:[%s11700_s21 + $0xb8] sm:$0xf]  ;;  %p11415_p13 = pneg %p11414_p12 }
  0x35   : > { %10974 = vmatpush1.bf16.msra.mxu1 %v10973_v30  ;;  %10948 = vmatprep.subr.bf16.mxu0 %v10947_v34  ;;  %v10949_v41 = vpack.c.bf16 %v1062_v39, %v1060_v38  ;;  %v10161_v42 = vld [vmem:[%s16529_s1 + $0x1b0] sm:$0xff]  ;;  %v356_v47 = vld [vmem:[%s11700_s21 + $0x18] sm:$0xf]  ;;  %v358_v49 = vld [vmem:[%s11700_s21 + $0x88] sm:$0xff] }
  0x36   : > { %492 = vrot.lane.b32.xlu0 %v10011_v44, %s16540_s14  ;;  %v355_v43 = vld [vmem:[%s11700_s21 + $0x10] sm:$0xff]  ;;  %v10977_v44 = vpack.c.bf16 %v10161_v42, %v10159_v40  ;;  %10976 = vmatprep.subr.bf16.mxu1 %v10975_v37  ;;  %390 = vst.msk [vmem:[#allocation2 + $0x1a] sm:$0xf] %vm389_vm3, %v356_v47  ;;  %v10046_v50 = vld [vmem:[%s11700_s21 + $0xd8] sm:$0xf]  ;;  %v361_v54 = vld [vmem:[%s11700_s21 + $0x100] sm:$0xff] }
  0x37   : > { %687 = vrot.lane.b32.xlu1 %v10043_v48, %s11479_s23  ;;  %388 = vst.msk [vmem:[#allocation2 + $0x12] sm:$0xff] %vm385_vm2, %v355_v43  ;;  %v10077_v45 = vld [vmem:[%s11700_s21 + $0xf0] sm:$0xff]  ;;  %v357_v48 = vld [vmem:[%s11700_s21 + $0x80] sm:$0xff]  ;;  %392 = vst.msk [vmem:[#allocation2 + $0x2a] sm:$0xff] %vm385_vm2, %v358_v49 }
  0x38   : > { %10950 = vmatpush1.bf16.msra.mxu0 %v10949_v41  ;;  %391 = vst.msk [vmem:[#allocation2 + $0x22] sm:$0xff] %vm385_vm2, %v357_v48  ;;  %v10078_v51 = vld [vmem:[%s11700_s21 + $0xf8] sm:$0xf]  ;;  %v359_v52 = vld [vmem:[%s11700_s21 + $0x90] sm:$0xff]  ;;  %v10015_v55 = vld [vmem:[%s11700_s21 + $0x120] sm:$0xff] }
  0x39   : > { %10978 = vmatpush1.bf16.msra.mxu1 %v10977_v44  ;;  %393 = vst.msk [vmem:[#allocation2 + $0x32] sm:$0xff] %vm385_vm2, %v359_v52  ;;  %v360_v53 = vld [vmem:[%s11700_s21 + $0x98] sm:$0xf]  ;;  %v10047_v56 = vld [vmem:[%s11700_s21 + $0x140] sm:$0xff]  ;;  %395 = vst.msk [vmem:[#allocation2 + $0x42] sm:$0xff] %vm385_vm2, %v361_v54 }
  0x3a   : > { %882 = vrot.lane.b32.xlu0 %v10075_v59, %s16570_s29  ;;  %394 = vst.msk [vmem:[#allocation2 + $0x3a] sm:$0xf] %vm389_vm3, %v360_v53  ;;  %v362_v57 = vld [vmem:[%s11700_s21 + $0x108] sm:$0xff]  ;;  %v363_v58 = vld [vmem:[%s11700_s21 + $0x110] sm:$0xff]  ;;  %v10079_v59 = vld [vmem:[%s11700_s21 + $0x160] sm:$0xff] }
  0x3b   : > { %494 = vrot.lane.b32.xlu1 %v10012_v60, %s16540_s14  ;;  %396 = vst.msk [vmem:[#allocation2 + $0x4a] sm:$0xff] %vm385_vm2, %v362_v57  ;;  %397 = vst.msk [vmem:[#allocation2 + $0x52] sm:$0xff] %vm385_vm2, %v363_v58  ;;  %v10016_v60 = vld [vmem:[%s11700_s21 + $0x128] sm:$0xff]  ;;  %v364_v61 = vld [vmem:[%s11700_s21 + $0x118] sm:$0xf]  ;;  %s11485_s14 = smov 80  }
  0x3c   : > { %398 = vst.msk [vmem:[#allocation2 + $0x5a] sm:$0xf] %vm389_vm3, %v364_v61  ;;  %v10048_v62 = vld [vmem:[%s11700_s21 + $0x148] sm:$0xff]  ;;  %v10017_v0 = vld [vmem:[%s11700_s21 + $0x130] sm:$0xff]  ;;  %v365_v2 = vld [vmem:[%s11700_s21 + $0x180] sm:$0xff] }
  0x3d   : > { %v10080_v63 = vld [vmem:[%s11700_s21 + $0x168] sm:$0xff]  ;;  %v10049_v1 = vld [vmem:[%s11700_s21 + $0x150] sm:$0xff]  ;;  %399 = vst.msk [vmem:[#allocation2 + $0x62] sm:$0xff] %vm385_vm2, %v365_v2  ;;  %v10198_v4 = vld [vmem:[%s16529_s1 + $0x1d8] sm:$0xff] }
  0x3e   : > { %689 = vrot.lane.b32.xlu0 %v10044_v10, %s11479_s23  ;;  %v10196_v3 = vld [vmem:[%s16529_s1 + $0x1c8] sm:$0xff]  ;;  %v10081_v6 = vld [vmem:[%s11700_s21 + $0x170] sm:$0xff]  ;;  %v10018_v7 = vld [vmem:[%s11700_s21 + $0x138] sm:$0xf] }
  0x3f   : > { %884 = vrot.lane.b32.xlu1 %v10076_v11, %s16570_s29  ;;  %v10979_v5 = vpack.c.bf16 %v10198_v4, %v10196_v3  ;;  %v366_v8 = vld [vmem:[%s11700_s21 + $0x188] sm:$0xff]  ;;  %v10050_v9 = vld [vmem:[%s11700_s21 + $0x158] sm:$0xf]  ;;  %v10019_v11 = vld [vmem:[%s11700_s21 + $0x1a0] sm:$0xff] }
  0x40   : > { %400 = vst.msk [vmem:[#allocation2 + $0x6a] sm:$0xff] %vm385_vm2, %v366_v8  ;;  %v10082_v10 = vld [vmem:[%s11700_s21 + $0x178] sm:$0xf]  ;;  %v10051_v12 = vld [vmem:[%s11700_s21 + $0x1c0] sm:$0xff]  ;;  %v367_v13 = vld [vmem:[%s11700_s21 + $0x190] sm:$0xff] }
  0x41   : > { %10980 = vmatprep.subr.bf16.mxu0 %v10979_v5  ;;  %401 = vst.msk [vmem:[#allocation2 + $0x72] sm:$0xff] %vm385_vm2, %v367_v13  ;;  %v10083_v14 = vld [vmem:[%s11700_s21 + $0x1e0] sm:$0xff]  ;;  %v10020_v15 = vld [vmem:[%s11700_s21 + $0x1a8] sm:$0xff]  ;;  %v368_v16 = vld [vmem:[%s11700_s21 + $0x198] sm:$0xf] }
  0x42   : > { %496 = vrot.lane.b32.xlu0 %v10013_v26, %s16571_s26  ;;  %402 = vst.msk [vmem:[#allocation2 + $0x7a] sm:$0xf] %vm389_vm3, %v368_v16  ;;  %v10052_v17 = vld [vmem:[%s11700_s21 + $0x1c8] sm:$0xff]  ;;  %v10021_v19 = vld [vmem:[%s11700_s21 + $0x1b0] sm:$0xff]  ;;  %v369_v22 = vld [vmem:[%s11700_s21 + $0x200] sm:$0xff] }
  0x43   : > { %691 = vrot.lane.b32.xlu1 %v10045_v33, %s11479_s23  ;;  %v10084_v18 = vld [vmem:[%s11700_s21 + $0x1e8] sm:$0xff]  ;;  %v10053_v20 = vld [vmem:[%s11700_s21 + $0x1d0] sm:$0xff]  ;;  %403 = vst.msk [vmem:[#allocation2 + $0x82] sm:$0xff] %vm385_vm2, %v369_v22  ;;  %v10022_v24 = vld [vmem:[%s11700_s21 + $0x1b8] sm:$0xf] }
  0x44   : > { %v10085_v23 = vld [vmem:[%s11700_s21 + $0x1f0] sm:$0xff]  ;;  %v370_v25 = vld [vmem:[%s11700_s21 + $0x208] sm:$0xff]  ;;  %v10054_v26 = vld [vmem:[%s11700_s21 + $0x1d8] sm:$0xf] }
  0x45   : > { %404 = vst.msk [vmem:[#allocation2 + $0x8a] sm:$0xff] %vm385_vm2, %v370_v25  ;;  %v10086_v27 = vld [vmem:[%s11700_s21 + $0x1f8] sm:$0xf]  ;;  %v10023_v28 = vld [vmem:[%s11700_s21 + $0x220] sm:$0xff]  ;;  %v371_v30 = vld [vmem:[%s11700_s21 + $0x210] sm:$0xff] }
  0x46   : > { %886 = vrot.lane.b32.xlu0 %v10077_v45, %s16570_s29  ;;  %v10055_v29 = vld [vmem:[%s11700_s21 + $0x240] sm:$0xff]  ;;  %405 = vst.msk [vmem:[#allocation2 + $0x92] sm:$0xff] %vm385_vm2, %v371_v30  ;;  %v10024_v32 = vld [vmem:[%s11700_s21 + $0x228] sm:$0xff]  ;;  %v372_v33 = vld [vmem:[%s11700_s21 + $0x218] sm:$0xf] }
  0x47   : > { %498 = vrot.lane.b32.xlu1 %v10014_v46, %s16571_s26  ;;  %v10087_v31 = vld [vmem:[%s11700_s21 + $0x260] sm:$0xff]  ;;  %406 = vst.msk [vmem:[#allocation2 + $0x9a] sm:$0xf] %vm389_vm3, %v372_v33  ;;  %v10056_v34 = vld [vmem:[%s11700_s21 + $0x248] sm:$0xff]  ;;  %v10025_v36 = vld [vmem:[%s11700_s21 + $0x230] sm:$0xff] }
  0x48   : > { %v10088_v35 = vld [vmem:[%s11700_s21 + $0x268] sm:$0xff]  ;;  %v10057_v37 = vld [vmem:[%s11700_s21 + $0x250] sm:$0xff]  ;;  %v373_v38 = vld [vmem:[%s11700_s21 + $0x280] sm:$0xff] }
  0x49   : > { %407 = vst.msk [vmem:[#allocation2 + $0xa2] sm:$0xff] %vm385_vm2, %v373_v38  ;;  %v10089_v39 = vld [vmem:[%s11700_s21 + $0x270] sm:$0xff]  ;;  %v10026_v40 = vld [vmem:[%s11700_s21 + $0x238] sm:$0xf]  ;;  %v374_v41 = vld [vmem:[%s11700_s21 + $0x288] sm:$0xff] }
  0x4a   : > { %693 = vrot.lane.b32.xlu0 %v10046_v50, %s11479_s23  ;;  %408 = vst.msk [vmem:[#allocation2 + $0xaa] sm:$0xff] %vm385_vm2, %v374_v41  ;;  %v10058_v42 = vld [vmem:[%s11700_s21 + $0x258] sm:$0xf]  ;;  %v10027_v46 = vld [vmem:[%s11700_s21 + $0x2a0] sm:$0xff]  ;;  %v375_v50 = vld [vmem:[%s11700_s21 + $0x290] sm:$0xff] }
  0x4b   : > { %888 = vrot.lane.b32.xlu1 %v10078_v51, %s16570_s29  ;;  %v10090_v43 = vld [vmem:[%s11700_s21 + $0x278] sm:$0xf]  ;;  %v10059_v47 = vld [vmem:[%s11700_s21 + $0x2c0] sm:$0xff]  ;;  %409 = vst.msk [vmem:[#allocation2 + $0xb2] sm:$0xff] %vm385_vm2, %v375_v50  ;;  %v10028_v52 = vld [vmem:[%s11700_s21 + $0x2a8] sm:$0xff] }
  0x4c   : > { %v10091_v51 = vld [vmem:[%s11700_s21 + $0x2e0] sm:$0xff]  ;;  %v10197_v57 = vld [vmem:[%s16529_s1 + $0x1d0] sm:$0xff]  ;;  %v10060_v58 = vld [vmem:[%s11700_s21 + $0x2c8] sm:$0xff] }
  0x4d   : > { %v10092_v61 = vld [vmem:[%s11700_s21 + $0x2e8] sm:$0xff]  ;;  %v10202_v2 = vld [vmem:[%s16529_s1 + $0x1f8] sm:$0xff]  ;;  %v10061_v3 = vld [vmem:[%s11700_s21 + $0x2d0] sm:$0xff] }
  0x4e   : > { %500 = vrot.lane.b32.xlu0 %v10015_v55, %s16571_s26  ;;  %v376_v55 = vld [vmem:[%s11700_s21 + $0x298] sm:$0xf]  ;;  %v10199_v4 = vld [vmem:[%s16529_s1 + $0x1e0] sm:$0xff]  ;;  %v10201_v5 = vld [vmem:[%s16529_s1 + $0x1f0] sm:$0xff] }
  0x4f   : > { %695 = vrot.lane.b32.xlu1 %v10047_v56, %s11479_s23  ;;  %v10195_v56 = vld [vmem:[%s16529_s1 + $0x1c0] sm:$0xff]  ;;  %410 = vst.msk [vmem:[#allocation2 + $0xba] sm:$0xf] %vm389_vm3, %v376_v55  ;;  %v10204_v8 = vld [vmem:[%s16529_s1 + $0x208] sm:$0xff]  ;;  %v10985_v13 = vpack.c.bf16 %v10201_v5, %v10199_v4  ;;  %v10062_v25 = vld [vmem:[%s11700_s21 + $0x2d8] sm:$0xf] }
  0x50   : > { %v378_v22 = vld [vmem:[%s11700_s21 + $0x308] sm:$0xff]  ;;  %v10209_v33 = vld [vmem:[%s16529_s1 + $0x230] sm:$0xff]  ;;  %v380_v50 = vld [vmem:[%s11700_s21 + $0x318] sm:$0xf] }
  0x51   : > { %412 = vst.msk [vmem:[#allocation2 + $0xca] sm:$0xff] %vm385_vm2, %v378_v22  ;;  %v10096_v55 = vld [vmem:[%s11700_s21 + $0x368] sm:$0xff]  ;;  %v10097_v5 = vld [vmem:[%s11700_s21 + $0x370] sm:$0xff] }
  0x52   : > { %890 = vrot.lane.b32.xlu0 %v10079_v59, %s16570_s29  ;;  %414 = vst.msk [vmem:[#allocation2 + $0xda] sm:$0xf] %vm389_vm3, %v380_v50  ;;  %v10260_v22 = vld [vmem:[%s16529_s1 + $0x2c8] sm:$0xff]  ;;  %v10270_v50 = vld [vmem:[%s16529_s1 + $0x318] sm:$0xff] }
  0x53   : > { %502 = vrot.lane.b32.xlu1 %v10016_v60, %s16571_s26 }
  0x56   : > { %697 = vrot.lane.b32.xlu0 %v10048_v62, %s11479_s23 }
  0x57   : > { %892 = vrot.lane.b32.xlu1 %v10080_v63, %s16570_s29  ;;  %v10981_v63 = vpack.c.bf16 %v10197_v57, %v10195_v56  ;;  %v10216_v57 = vld [vmem:[%s16529_s1 + $0x268] sm:$0xff] }
  0x5a   : > { %504 = vrot.lane.b32.xlu0 %v10017_v0, %s16571_s26  ;;  %v10029_v0 = vld [vmem:[%s11700_s21 + $0x2b0] sm:$0xff] }
  0x5b   : > { %699 = vrot.lane.b32.xlu1 %v10049_v1, %s11479_s23  ;;  %v10200_v1 = vld [vmem:[%s16529_s1 + $0x1e8] sm:$0xff] }
  0x5e   : > { %894 = vrot.lane.b32.xlu0 %v10081_v6, %s16570_s29 }
  0x5f   : > { %506 = vrot.lane.b32.xlu1 %v10018_v7, %s16571_s26 }
  0x62   : > { %701 = vrot.lane.b32.xlu0 %v10050_v9, %s11479_s23  ;;  %v10206_v9 = vld [vmem:[%s16529_s1 + $0x218] sm:$0xff] }
  0x63   : > { %896 = vrot.lane.b32.xlu1 %v10082_v10, %s16570_s29  ;;  %v377_v10 = vld [vmem:[%s11700_s21 + $0x300] sm:$0xff] }
  0x64   : > { %411 = vst.msk [vmem:[#allocation2 + $0xc2] sm:$0xff] %vm385_vm2, %v377_v10  ;;  %v10258_v10 = vld [vmem:[%s16529_s1 + $0x2b8] sm:$0xff] }
  0x66   : > { %508 = vrot.lane.b32.xlu0 %v10019_v11, %s16571_s26 }
  0x67   : > { %703 = vrot.lane.b32.xlu1 %v10051_v12, %s11479_s23  ;;  %v10983_v12 = vpack.c.bf16 %v10202_v2, %v10200_v1  ;;  %v10065_v1 = vld [vmem:[%s11700_s21 + $0x350] sm:$0xff]  ;;  %v381_v2 = vld [vmem:[%s11700_s21 + $0x380] sm:$0xff] }
  0x68   : > { %415 = vst.msk [vmem:[#allocation2 + $0xe2] sm:$0xff] %vm385_vm2, %v381_v2  ;;  %v10274_v2 = vld [vmem:[%s16529_s1 + $0x338] sm:$0xff] }
  0x6a   : > { %898 = vrot.lane.b32.xlu0 %v10083_v14, %s16570_s29  ;;  %v10093_v14 = vld [vmem:[%s11700_s21 + $0x2f0] sm:$0xff] }
  0x6b   : > { %510 = vrot.lane.b32.xlu1 %v10020_v15, %s16571_s26  ;;  %v10987_v15 = vpack.c.bf16 %v10206_v9, %v10204_v8  ;;  %v10034_v8 = vld [vmem:[%s11700_s21 + $0x338] sm:$0xf]  ;;  %v10256_v9 = vld [vmem:[%s16529_s1 + $0x2a8] sm:$0xff] }
  0x6e   : > { %705 = vrot.lane.b32.xlu0 %v10052_v17, %s11479_s23 }
  0x6f   : > { %900 = vrot.lane.b32.xlu1 %v10084_v18, %s16570_s29  ;;  %v10030_v18 = vld [vmem:[%s11700_s21 + $0x2b8] sm:$0xf] }
  0x72   : > { %512 = vrot.lane.b32.xlu0 %v10021_v19, %s16571_s26  ;;  %v10203_v19 = vld [vmem:[%s16529_s1 + $0x200] sm:$0xff] }
  0x73   : > { %707 = vrot.lane.b32.xlu1 %v10053_v20, %s11479_s23  ;;  %v10205_v20 = vld [vmem:[%s16529_s1 + $0x210] sm:$0xff] }
  0x74   : > { %v10989_v30 = vpack.c.bf16 %v10205_v20, %v10203_v19 }
  0x76   : > { %902 = vrot.lane.b32.xlu0 %v10085_v23, %s16570_s29  ;;  %v10208_v23 = vld [vmem:[%s16529_s1 + $0x228] sm:$0xff] }
  0x77   : > { %514 = vrot.lane.b32.xlu1 %v10022_v24, %s16571_s26  ;;  %v10210_v24 = vld [vmem:[%s16529_s1 + $0x238] sm:$0xff] }
  0x7a   : > { %709 = vrot.lane.b32.xlu0 %v10054_v26, %s11479_s23 }
  0x7b   : > { %904 = vrot.lane.b32.xlu1 %v10086_v27, %s16570_s29 }
  0x7e   : > { %516 = vrot.lane.b32.xlu0 %v10023_v28, %s16571_s26 }
  0x7f   : > { %711 = vrot.lane.b32.xlu1 %v10055_v29, %s11479_s23  ;;  %v10094_v29 = vld [vmem:[%s11700_s21 + $0x2f8] sm:$0xf] }
  0x82   : > { %906 = vrot.lane.b32.xlu0 %v10087_v31, %s16570_s29  ;;  %v10991_v31 = vpack.c.bf16 %v10210_v24, %v10208_v23  ;;  %v10262_v23 = vld [vmem:[%s16529_s1 + $0x2d8] sm:$0xff] }
  0x83   : > { %518 = vrot.lane.b32.xlu1 %v10024_v32, %s16571_s26  ;;  %v10207_v32 = vld [vmem:[%s16529_s1 + $0x220] sm:$0xff]  ;;  %v11011_v24 = vpack.c.bf16 %v10262_v23, %v10260_v22  ;;  %v10277_v23 = vld [vmem:[%s16529_s1 + $0x350] sm:$0xff] }
  0x84   : > { %v10275_v22 = vld [vmem:[%s16529_s1 + $0x340] sm:$0xff] }
  0x86   : > { %713 = vrot.lane.b32.xlu0 %v10056_v34, %s11479_s23  ;;  %v10031_v34 = vld [vmem:[%s11700_s21 + $0x320] sm:$0xff] }
  0x87   : > { %908 = vrot.lane.b32.xlu1 %v10088_v35, %s16570_s29  ;;  %v10212_v35 = vld [vmem:[%s16529_s1 + $0x248] sm:$0xff] }
  0x8a   : > { %520 = vrot.lane.b32.xlu0 %v10025_v36, %s16571_s26  ;;  %v10214_v36 = vld [vmem:[%s16529_s1 + $0x258] sm:$0xff] }
  0x8b   : > { %715 = vrot.lane.b32.xlu1 %v10057_v37, %s11479_s23 }
  0x8e   : > { %910 = vrot.lane.b32.xlu0 %v10089_v39, %s16570_s29  ;;  %v10063_v39 = vld [vmem:[%s11700_s21 + $0x340] sm:$0xff] }
  0x8f   : > { %522 = vrot.lane.b32.xlu1 %v10026_v40, %s16571_s26  ;;  %v379_v40 = vld [vmem:[%s11700_s21 + $0x310] sm:$0xff] }
  0x90   : > { %v485_v44 = vpop.permute.xlu0 %484  ;;  %413 = vst.msk [vmem:[#allocation2 + $0xd2] sm:$0xff] %vm385_vm2, %v379_v40  ;;  %v10220_v40 = vld [vmem:[%s16529_s1 + $0x288] sm:$0xff] }
  0x91   : > { %v875_v45 = vpop.permute.xlu1 %874  ;;  %581 = vst.msk [vmem:[#allocation2 + $0x2] sm:$0xff] %vm580_vm4, %v485_v44  ;;  %v10095_v44 = vld [vmem:[%s11700_s21 + $0x360] sm:$0xff] }
  0x92   : > { %717 = vrot.lane.b32.xlu0 %v10058_v42, %s11479_s23  ;;  %v10993_v42 = vpack.c.bf16 %v10209_v33, %v10207_v32  ;;  %v383_v33 = vld [vmem:[%s11700_s21 + $0x390] sm:$0xff] }
  0x93   : > { %912 = vrot.lane.b32.xlu1 %v10090_v43, %s16570_s29  ;;  %v10995_v43 = vpack.c.bf16 %v10214_v36, %v10212_v35  ;;  %v10266_v35 = vld [vmem:[%s16529_s1 + $0x2f8] sm:$0xff]  ;;  %417 = vst.msk [vmem:[#allocation2 + $0xf2] sm:$0xff] %vm385_vm2, %v383_v33 }
  0x94   : > { %v680_v48 = vpop.permute.xlu0 %679  ;;  %v10102_v33 = vld [vmem:[%s11700_s21 + $0x3f8] sm:$0xf] }
  0x95   : > { %v487_v49 = vpop.permute.xlu1 %486  ;;  %776 = vst.msk [vmem:[#allocation2 + $0x2] sm:$0xff] %vm775_vm5, %v680_v48  ;;  %v10211_v48 = vld [vmem:[%s16529_s1 + $0x240] sm:$0xff] }
  0x96   : > { %582 = vst.msk [vmem:[#allocation2 + $0xa] sm:$0xff] %vm580_vm4, %v487_v49  ;;  %524 = vrot.lane.b32.xlu0 %v10027_v46, %s16571_s26  ;;  %v10213_v49 = vld [vmem:[%s16529_s1 + $0x250] sm:$0xff] }
  0x97   : > { %971 = vst.msk [vmem:[#allocation2 + $0x2] sm:$0xff] %vm970_vm6, %v875_v45  ;;  %719 = vrot.lane.b32.xlu1 %v10059_v47, %s11479_s23  ;;  %v10032_v47 = vld [vmem:[%s11700_s21 + $0x328] sm:$0xff]  ;;  %v10997_v56 = vpack.c.bf16 %v10213_v49, %v10211_v48 }
  0x98   : > { %v682_v53 = vpop.permute.xlu0 %681  ;;  %v10036_v48 = vld [vmem:[%s11700_s21 + $0x3a8] sm:$0xff] }
  0x99   : > { %v877_v54 = vpop.permute.xlu1 %876  ;;  %777 = vst.msk [vmem:[#allocation2 + $0xa] sm:$0xff] %vm775_vm5, %v682_v53  ;;  %v10268_v49 = vld [vmem:[%s16529_s1 + $0x308] sm:$0xff] }
  0x9a   : > { %972 = vst.msk [vmem:[#allocation2 + $0xa] sm:$0xff] %vm970_vm6, %v877_v54  ;;  %914 = vrot.lane.b32.xlu0 %v10091_v51, %s16570_s29  ;;  %v10064_v51 = vld [vmem:[%s11700_s21 + $0x348] sm:$0xff] }
  0x9b   : > { %526 = vrot.lane.b32.xlu1 %v10028_v52, %s16571_s26 }
  0x9c   : > { %v489_v59 = vpop.permute.xlu0 %488 }
  0x9d   : > { %v684_v60 = vpop.permute.xlu1 %683  ;;  %583 = vst.msk [vmem:[#allocation2 + $0x12] sm:$0xff] %vm580_vm4, %v489_v59  ;;  %v10215_v59 = vld [vmem:[%s16529_s1 + $0x260] sm:$0xff] }
  0x9e   : > { %v1004_v62 = vld [vmem:[#allocation2] sm:$0xff]  ;;  %778 = vst.msk [vmem:[#allocation2 + $0x12] sm:$0xff] %vm775_vm5, %v684_v60  ;;  %721 = vrot.lane.b32.xlu0 %v10060_v58, %s11479_s23  ;;  %v10218_v58 = vld [vmem:[%s16529_s1 + $0x278] sm:$0xff]  ;;  %v10033_v60 = vld [vmem:[%s11700_s21 + $0x330] sm:$0xff] }
  0x9f   : > { %10103 = vmatmul.mubr.msk.f32.vlgmr.msra.gmra.mrb[0].mxu0 %vm1064_vm1, %v1004_v62  ;;  %10163 = vmatmul.mubr.msk.f32.vlgmr.msra.gmra.mrb[0].mxu1 %vm1064_vm1, %v1004_v62  ;;  %v10217_v62 = vld [vmem:[%s16529_s1 + $0x270] sm:$0xff] }
  0xa0   : > { %916 = vrot.lane.b32.xlu1 %v10092_v61, %s16570_s29  ;;  %v879_v6 = vpop.permute.xlu0 %878  ;;  %1231 = vmatprep.mubr.f32.mxu0 %v16542_v21  ;;  %v10999_v61 = vpack.c.bf16 %v10218_v58, %v10216_v57  ;;  %v11001_v4 = vpack.c.bf16 %v10217_v62, %v10215_v59  ;;  %v10267_v57 = vld [vmem:[%s16529_s1 + $0x300] sm:$0xff]  ;;  %v10269_v58 = vld [vmem:[%s16529_s1 + $0x310] sm:$0xff]  ;;  %v10068_v59 = vld [vmem:[%s11700_s21 + $0x3c8] sm:$0xff] }
  0xa1   : > { %v491_v7 = vpop.permute.xlu1 %490  ;;  %1517 = vmatprep.mubr.f32.mxu1 %v16542_v21  ;;  %973 = vst.msk [vmem:[#allocation2 + $0x12] sm:$0xff] %vm970_vm6, %v879_v6  ;;  %v1005_v11 = vld [vmem:[#allocation2 + $0x8] sm:$0xff]  ;;  %10982 = vmatpush1.bf16.msra.mxu0 %v10981_v63 }
  0xa2   : > { %585 = vst.msk [vmem:[#allocation2 + $0x1a] sm:$0xf] %vm584_vm7, %v491_v7  ;;  %528 = vrot.lane.b32.xlu0 %v10029_v0, %s16571_s26  ;;  %10984 = vmatprep.subr.bf16.mxu0 %v10983_v12  ;;  %v11007_v12 = vpack.c.bf16 %v10258_v10, %v10256_v9  ;;  %v10069_v10 = vld [vmem:[%s11700_s21 + $0x3d0] sm:$0xff] }
  0xa3   : > { %10104 = vmatmul.mubr.msk.f32.gmra.mrb[2].mxu0 %vm1064_vm1, %v1005_v11  ;;  %10164 = vmatmul.mubr.msk.f32.gmra.mrb[2].mxu1 %vm1064_vm1, %v1005_v11  ;;  %v382_v11 = vld [vmem:[%s11700_s21 + $0x388] sm:$0xff] }
  0xa4   : > { %723 = vrot.lane.b32.xlu1 %v10061_v3, %s11479_s23  ;;  %v686_v16 = vpop.permute.xlu0 %685  ;;  %1237 = vmatprep.mubr.f32.mxu0 %v16542_v21  ;;  %416 = vst.msk [vmem:[#allocation2 + $0xea] sm:$0xff] %vm385_vm2, %v382_v11  ;;  %v10276_v11 = vld [vmem:[%s16529_s1 + $0x348] sm:$0xff]  ;;  %vm5974_vm2 = vcmask 1043459  }
  0xa5   : > { %v881_v17 = vpop.permute.xlu1 %880  ;;  %1523 = vmatprep.mubr.f32.mxu1 %v16542_v21  ;;  %780 = vst.msk [vmem:[#allocation2 + $0x1a] sm:$0xf] %vm779_vm8, %v686_v16  ;;  %10986 = vmatpush1.bf16.msra.mxu0 %v10985_v13  ;;  %v10255_v13 = vld [vmem:[%s16529_s1 + $0x2a0] sm:$0xff]  ;;  %v10066_v16 = vld [vmem:[%s11700_s21 + $0x358] sm:$0xf] }
  0xa6   : > { %975 = vst.msk [vmem:[#allocation2 + $0x1a] sm:$0xf] %vm974_vm9, %v881_v17  ;;  %918 = vrot.lane.b32.xlu0 %v10093_v14, %s16570_s29  ;;  %10988 = vmatprep.subr.bf16.mxu0 %v10987_v15  ;;  %v10257_v14 = vld [vmem:[%s16529_s1 + $0x2b0] sm:$0xff]  ;;  %v10098_v17 = vld [vmem:[%s11700_s21 + $0x378] sm:$0xf] }
  0xa7   : > { %v11009_v15 = vpack.c.bf16 %v10257_v14, %v10255_v13  ;;  %11008 = vmatprep.subr.bf16.mxu1 %v11007_v12  ;;  %v10278_v12 = vld [vmem:[%s16529_s1 + $0x358] sm:$0xff] }
  0xa8   : > { %530 = vrot.lane.b32.xlu1 %v10030_v18, %s16571_s26  ;;  %v493_v26 = vpop.permute.xlu0 %492  ;;  %v12088_v28 = vld [vmem:[#allocation2 + $0x10] sm:$0xff] }
  0xa9   : > { %v688_v27 = vpop.permute.xlu1 %687  ;;  %586 = vst.msk [vmem:[#allocation2 + $0x22] sm:$0xff] %vm580_vm4, %v493_v26  ;;  %10105 = vmatmul.mubr.msk.f32.gmra.mrb[4].mxu0 %vm1064_vm1, %v12088_v28  ;;  %10165 = vmatmul.mubr.msk.f32.gmra.mrb[4].mxu1 %vm1064_vm1, %v12088_v28  ;;  %v10261_v26 = vld [vmem:[%s16529_s1 + $0x2d0] sm:$0xff] }
  0xaa   : > { %781 = vst.msk [vmem:[#allocation2 + $0x22] sm:$0xff] %vm775_vm5, %v688_v27  ;;  %725 = vrot.lane.b32.xlu0 %v10062_v25, %s11479_s23  ;;  %1243 = vmatprep.mubr.f32.mxu0 %v16542_v21  ;;  %v10259_v25 = vld [vmem:[%s16529_s1 + $0x2c0] sm:$0xff] }
  0xab   : > { %1529 = vmatprep.mubr.f32.mxu1 %v16542_v21  ;;  %10990 = vmatpush1.bf16.msra.mxu0 %v10989_v30  ;;  %v11013_v27 = vpack.c.bf16 %v10261_v26, %v10259_v25  ;;  %v10067_v30 = vld [vmem:[%s11700_s21 + $0x3c0] sm:$0xff]  ;;  %v10282_v25 = vld [vmem:[%s16529_s1 + $0x378] sm:$0xff] }
  0xac   : > { %920 = vrot.lane.b32.xlu1 %v10094_v29, %s16570_s29  ;;  %v883_v37 = vpop.permute.xlu0 %882  ;;  %10992 = vmatprep.subr.bf16.mxu0 %v10991_v31  ;;  %v10035_v29 = vld [vmem:[%s11700_s21 + $0x3a0] sm:$0xff]  ;;  %v10070_v26 = vld [vmem:[%s11700_s21 + $0x3d8] sm:$0xf] }
  0xad   : > { %v495_v38 = vpop.permute.xlu1 %494  ;;  %976 = vst.msk [vmem:[#allocation2 + $0x22] sm:$0xff] %vm970_vm6, %v883_v37  ;;  %v12118_v41 = vld [vmem:[#allocation2 + $0x18] sm:$0xff]  ;;  %11010 = vmatpush1.bf16.msra.mxu1 %v11009_v15  ;;  %v11027_v15 = vpack.c.bf16 %v10278_v12, %v10276_v11 }
  0xae   : > { %587 = vst.msk [vmem:[#allocation2 + $0x2a] sm:$0xff] %vm580_vm4, %v495_v38  ;;  %532 = vrot.lane.b32.xlu0 %v10031_v34, %s16571_s26  ;;  %10106 = vmatmul.mubr.msk.f32.gmra.mrb[6].mxu0 %vm1064_vm1, %v12118_v41  ;;  %v10264_v34 = vld [vmem:[%s16529_s1 + $0x2e8] sm:$0xff]  ;;  %v10263_v38 = vld [vmem:[%s16529_s1 + $0x2e0] sm:$0xff] }
  0xaf   : > { %10166 = vmatmul.mubr.msk.f32.gmra.mrb[6].mxu1 %vm1064_vm1, %v12118_v41  ;;  %1249 = vmatprep.mubr.f32.mxu0 %v16542_v21  ;;  %v11015_v37 = vpack.c.bf16 %v10266_v35, %v10264_v34  ;;  %v11029_v34 = vpack.c.bf16 %v10277_v23, %v10275_v22 }
  0xb0   : > { %727 = vrot.lane.b32.xlu1 %v10063_v39, %s11479_s23  ;;  %v690_v45 = vpop.permute.xlu0 %689  ;;  %1535 = vmatprep.mubr.f32.mxu1 %v16542_v21  ;;  %v10265_v39 = vld [vmem:[%s16529_s1 + $0x2f0] sm:$0xff] }
  0xb1   : > { %v885_v46 = vpop.permute.xlu1 %884  ;;  %782 = vst.msk [vmem:[#allocation2 + $0x2a] sm:$0xff] %vm775_vm5, %v690_v45  ;;  %10994 = vmatpush1.bf16.msra.mxu0 %v10993_v42  ;;  %11012 = vmatprep.subr.bf16.mxu1 %v11011_v24  ;;  %v10222_v42 = vld [vmem:[%s16529_s1 + $0x298] sm:$0xff]  ;;  %v10280_v24 = vld [vmem:[%s16529_s1 + $0x368] sm:$0xff] }
  0xb2   : > { %977 = vst.msk [vmem:[#allocation2 + $0x2a] sm:$0xff] %vm970_vm6, %v885_v46  ;;  %922 = vrot.lane.b32.xlu0 %v10095_v44, %s16570_s29  ;;  %10996 = vmatprep.subr.bf16.mxu0 %v10995_v43  ;;  %v11017_v43 = vpack.c.bf16 %v10265_v39, %v10263_v38  ;;  %v10099_v44 = vld [vmem:[%s11700_s21 + $0x3e0] sm:$0xff]  ;;  %v11003_v45 = vpack.c.bf16 %v10222_v42, %v10220_v40  ;;  %v10281_v39 = vld [vmem:[%s16529_s1 + $0x370] sm:$0xff] }
  0xb3   : > { %11014 = vmatpush1.bf16.msra.mxu1 %v11013_v27  ;;  %v10316_v27 = vld [vmem:[%s16529_s1 + $0x388] sm:$0xff]  ;;  %v10279_v38 = vld [vmem:[%s16529_s1 + $0x360] sm:$0xff] }
  0xb4   : > { %534 = vrot.lane.b32.xlu1 %v10032_v47, %s16571_s26  ;;  %v497_v52 = vpop.permute.xlu0 %496  ;;  %v12144_v54 = vld [vmem:[#allocation2 + $0x20] sm:$0xff]  ;;  %11016 = vmatprep.subr.bf16.mxu1 %v11015_v37  ;;  %v11031_v37 = vpack.c.bf16 %v10282_v25, %v10280_v24 }
  0xb5   : > { %v692_v53 = vpop.permute.xlu1 %691  ;;  %588 = vst.msk [vmem:[#allocation2 + $0x32] sm:$0xff] %vm580_vm4, %v497_v52  ;;  %10107 = vmatmul.mubr.msk.f32.gmra.mrb[8].mxu0 %vm1064_vm1, %v12144_v54  ;;  %10167 = vmatmul.mubr.msk.f32.gmra.mrb[8].mxu1 %vm1064_vm1, %v12144_v54  ;;  %v10221_v52 = vld [vmem:[%s16529_s1 + $0x290] sm:$0xff] }
  0xb6   : > { %783 = vst.msk [vmem:[#allocation2 + $0x32] sm:$0xff] %vm775_vm5, %v692_v53  ;;  %729 = vrot.lane.b32.xlu0 %v10064_v51, %s11479_s23  ;;  %1255 = vmatprep.mubr.f32.mxu0 %v16542_v21  ;;  %v10219_v51 = vld [vmem:[%s16529_s1 + $0x280] sm:$0xff]  ;;  %v384_v53 = vld [vmem:[%s11700_s21 + $0x398] sm:$0xf] }
  0xb7   : > { %1541 = vmatprep.mubr.f32.mxu1 %v16542_v21  ;;  %10998 = vmatpush1.bf16.msra.mxu0 %v10997_v56  ;;  %v11005_v56 = vpack.c.bf16 %v10221_v52, %v10219_v51  ;;  %418 = vst.msk [vmem:[#allocation2 + $0xfa] sm:$0xf] %vm389_vm3, %v384_v53  ;;  %vm5976_vm3 = vcmask 1044484  }
  0xb8   : > { %924 = vrot.lane.b32.xlu1 %v10096_v55, %s16570_s29  ;;  %v887_v63 = vpop.permute.xlu0 %886  ;;  %11000 = vmatprep.subr.bf16.mxu0 %v10999_v61  ;;  %v11019_v55 = vpack.c.bf16 %v10270_v50, %v10268_v49 }
  0xb9   : > { %v499_v0 = vpop.permute.xlu1 %498  ;;  %978 = vst.msk [vmem:[#allocation2 + $0x32] sm:$0xff] %vm970_vm6, %v887_v63  ;;  %v12174_v3 = vld [vmem:[#allocation2 + $0x28] sm:$0xff]  ;;  %11018 = vmatpush1.bf16.msra.mxu1 %v11017_v43  ;;  %v11033_v43 = vpack.c.bf16 %v10281_v39, %v10279_v38 }
  0xba   : > { %589 = vst.msk [vmem:[#allocation2 + $0x3a] sm:$0xf] %vm584_vm7, %v499_v0  ;;  %536 = vrot.lane.b32.xlu0 %v10033_v60, %s16571_s26  ;;  %10108 = vmatmul.mubr.msk.f32.gmra.mrb[10].mxu0 %vm1064_vm1, %v12174_v3  ;;  %v10100_v60 = vld [vmem:[%s11700_s21 + $0x3e8] sm:$0xff]  ;;  %v11021_v0 = vpack.c.bf16 %v10269_v58, %v10267_v57 }
  0xbb   : > { %10168 = vmatmul.mubr.msk.f32.gmra.mrb[10].mxu1 %vm1064_vm1, %v12174_v3  ;;  %1261 = vmatprep.mubr.f32.mxu0 %v16542_v21 }
  0xbc   : > { %731 = vrot.lane.b32.xlu1 %v10065_v1, %s11479_s23  ;;  %v694_v6 = vpop.permute.xlu0 %693  ;;  %1547 = vmatprep.mubr.f32.mxu1 %v16542_v21  ;;  %v10272_v1 = vld [vmem:[%s16529_s1 + $0x328] sm:$0xff] }
  0xbd   : > { %v889_v7 = vpop.permute.xlu1 %888  ;;  %784 = vst.msk [vmem:[#allocation2 + $0x3a] sm:$0xf] %vm779_vm8, %v694_v6  ;;  %11002 = vmatpush1.bf16.msra.mxu0 %v11001_v4  ;;  %11020 = vmatprep.subr.bf16.mxu1 %v11019_v55  ;;  %v11023_v4 = vpack.c.bf16 %v10274_v2, %v10272_v1  ;;  %v10273_v6 = vld [vmem:[%s16529_s1 + $0x330] sm:$0xff] }
  0xbe   : > { %979 = vst.msk [vmem:[#allocation2 + $0x3a] sm:$0xf] %vm974_vm9, %v889_v7  ;;  %926 = vrot.lane.b32.xlu0 %v10097_v5, %s16570_s29  ;;  %11004 = vmatprep.subr.bf16.mxu0 %v11003_v45  ;;  %v10271_v5 = vld [vmem:[%s16529_s1 + $0x320] sm:$0xff]  ;;  %v10037_v7 = vld [vmem:[%s11700_s21 + $0x3b0] sm:$0xff] }
  0xbf   : > { %11022 = vmatpush1.bf16.msra.mxu1 %v11021_v0  ;;  %v11025_v14 = vpack.c.bf16 %v10273_v6, %v10271_v5 }
  0xc0   : > { %538 = vrot.lane.b32.xlu1 %v10034_v8, %s16571_s26  ;;  %v501_v18 = vpop.permute.xlu0 %500  ;;  %v12207_v20 = vld [vmem:[#allocation2 + $0x30] sm:$0xff]  ;;  %11024 = vmatprep.subr.bf16.mxu1 %v11023_v4 }
  0xc1   : > { %v696_v19 = vpop.permute.xlu1 %695  ;;  %590 = vst.msk [vmem:[#allocation2 + $0x42] sm:$0xff] %vm580_vm4, %v501_v18  ;;  %10109 = vmatmul.mubr.msk.f32.gmra.mrb[12].mxu0 %vm1064_vm1, %v12207_v20  ;;  %10169 = vmatmul.mubr.msk.f32.gmra.mrb[12].mxu1 %vm1064_vm1, %v12207_v20 }
  0xc2   : > { %785 = vst.msk [vmem:[#allocation2 + $0x42] sm:$0xff] %vm775_vm5, %v696_v19  ;;  %733 = vrot.lane.b32.xlu0 %v10066_v16, %s11479_s23  ;;  %1267 = vmatprep.mubr.f32.mxu0 %v16542_v21  ;;  %v10101_v16 = vld [vmem:[%s11700_s21 + $0x3f0] sm:$0xff]  ;;  %v10038_v19 = vld [vmem:[%s11700_s21 + $0x3b8] sm:$0xf]  ;;  %s11486_s21 = smov 48  }
  0xc3   : > { %1553 = vmatprep.mubr.f32.mxu1 %v16542_v21  ;;  %11006 = vmatpush1.bf16.msra.mxu0 %v11005_v56 }
  0xc4   : > { %928 = vrot.lane.b32.xlu1 %v10098_v17, %s16570_s29  ;;  %v891_v31 = vpop.permute.xlu0 %890  ;;  %11026 = vmatpush1.bf16.msra.mxu1 %v11025_v14 }
  0xc5   : > { %v503_v32 = vpop.permute.xlu1 %502  ;;  %980 = vst.msk [vmem:[#allocation2 + $0x42] sm:$0xff] %vm970_vm6, %v891_v31  ;;  %v12242_v36 = vld [vmem:[#allocation2 + $0x38] sm:$0xff]  ;;  %11028 = vmatprep.subr.bf16.mxu1 %v11027_v15 }
  0xc6   : > { %591 = vst.msk [vmem:[#allocation2 + $0x4a] sm:$0xff] %vm580_vm4, %v503_v32  ;;  %540 = vrot.lane.b32.xlu0 %v10035_v29, %s16571_s26  ;;  %10110 = vmatmul.mubr.msk.f32.gmra.mrb[14].mxu0 %vm1064_vm1, %v12242_v36  ;;  %v10318_v29 = vld [vmem:[%s16529_s1 + $0x398] sm:$0xff] }
  0xc7   : > { %10170 = vmatmul.mubr.msk.f32.gmra.mrb[14].mxu1 %vm1064_vm1, %v12242_v36  ;;  %1273 = vmatprep.mubr.f32.mxu0 %v16542_v21  ;;  %v11035_v35 = vpack.c.bf16 %v10318_v29, %v10316_v27 }
  0xc8   : > { %735 = vrot.lane.b32.xlu1 %v10067_v30, %s11479_s23  ;;  %v698_v46 = vpop.permute.xlu0 %697  ;;  %1559 = vmatprep.mubr.f32.mxu1 %v16542_v21 }
  0xc9   : > { %v893_v47 = vpop.permute.xlu1 %892  ;;  %786 = vst.msk [vmem:[#allocation2 + $0x4a] sm:$0xff] %vm775_vm5, %v698_v46  ;;  %11030 = vmatpush1.bf16.msra.mxu1 %v11029_v34  ;;  %11036 = vmatprep.subr.bf16.mxu0 %v11035_v35 }
  0xca   : > { %981 = vst.msk [vmem:[#allocation2 + $0x4a] sm:$0xff] %vm970_vm6, %v893_v47  ;;  %930 = vrot.lane.b32.xlu0 %v10099_v44, %s16570_s29  ;;  %11032 = vmatprep.subr.bf16.mxu1 %v11031_v37 }
  0xcc   : > { %542 = vrot.lane.b32.xlu1 %v10036_v48, %s16571_s26  ;;  %v505_v61 = vpop.permute.xlu0 %504  ;;  %v12293_v63 = vld [vmem:[#allocation2 + $0x40] sm:$0xff] }
  0xcd   : > { %v700_v62 = vpop.permute.xlu1 %699  ;;  %592 = vst.msk [vmem:[#allocation2 + $0x52] sm:$0xff] %vm580_vm4, %v505_v61  ;;  %10111 = vmatmul.mubr.msk.f32.gmra.mrb[16].mxu0 %vm1064_vm1, %v12293_v63  ;;  %10171 = vmatmul.mubr.msk.f32.gmra.mrb[16].mxu1 %vm1064_vm1, %v12293_v63 }
  0xce   : > { %787 = vst.msk [vmem:[#allocation2 + $0x52] sm:$0xff] %vm775_vm5, %v700_v62  ;;  %737 = vrot.lane.b32.xlu0 %v10068_v59, %s11479_s23  ;;  %1279 = vmatprep.mubr.f32.mxu0 %v16542_v21 }
  0xcf   : > { %1565 = vmatprep.mubr.f32.mxu1 %v16542_v21  ;;  %11034 = vmatpush1.bf16.msra.mxu1 %v11033_v43 }
  0xd0   : > { %932 = vrot.lane.b32.xlu1 %v10100_v60, %s16570_s29  ;;  %v895_v8 = vpop.permute.xlu0 %894 }
  0xd1   : > { %v507_v9 = vpop.permute.xlu1 %506  ;;  %982 = vst.msk [vmem:[#allocation2 + $0x52] sm:$0xff] %vm970_vm6, %v895_v8  ;;  %v12327_v13 = vld [vmem:[#allocation2 + $0x48] sm:$0xff] }
  0xd2   : > { %593 = vst.msk [vmem:[#allocation2 + $0x5a] sm:$0xf] %vm584_vm7, %v507_v9  ;;  %544 = vrot.lane.b32.xlu0 %v10037_v7, %s16571_s26  ;;  %10112 = vmatmul.mubr.msk.f32.gmra.mrb[18].mxu0 %vm1064_vm1, %v12327_v13 }
  0xd3   : > { %10172 = vmatmul.mubr.msk.f32.gmra.mrb[18].mxu1 %vm1064_vm1, %v12327_v13  ;;  %1285 = vmatprep.mubr.f32.mxu0 %v16542_v21 }
  0xd4   : > { %739 = vrot.lane.b32.xlu1 %v10069_v10, %s11479_s23  ;;  %v702_v17 = vpop.permute.xlu0 %701  ;;  %1571 = vmatprep.mubr.f32.mxu1 %v16542_v21 }
  0xd5   : > { %v897_v18 = vpop.permute.xlu1 %896  ;;  %788 = vst.msk [vmem:[#allocation2 + $0x5a] sm:$0xf] %vm779_vm8, %v702_v17 }
  0xd6   : > { %983 = vst.msk [vmem:[#allocation2 + $0x5a] sm:$0xf] %vm974_vm9, %v897_v18  ;;  %934 = vrot.lane.b32.xlu0 %v10101_v16, %s16570_s29 }
  0xd8   : > { %546 = vrot.lane.b32.xlu1 %v10038_v19, %s16571_s26  ;;  %v509_v30 = vpop.permute.xlu0 %508  ;;  %v12362_v32 = vld [vmem:[#allocation2 + $0x50] sm:$0xff] }
  0xd9   : > { %v704_v31 = vpop.permute.xlu1 %703  ;;  %594 = vst.msk [vmem:[#allocation2 + $0x62] sm:$0xff] %vm580_vm4, %v509_v30  ;;  %10113 = vmatmul.mubr.msk.f32.gmra.mrb[20].mxu0 %vm1064_vm1, %v12362_v32  ;;  %10173 = vmatmul.mubr.msk.f32.gmra.mrb[20].mxu1 %vm1064_vm1, %v12362_v32 }
  0xda   : > { %789 = vst.msk [vmem:[#allocation2 + $0x62] sm:$0xff] %vm775_vm5, %v704_v31  ;;  %741 = vrot.lane.b32.xlu0 %v10070_v26, %s11479_s23  ;;  %1291 = vmatprep.mubr.f32.mxu0 %v16542_v21  ;;  %s11487_s23 = smov 64  }
  0xdb   : > { %1577 = vmatprep.mubr.f32.mxu1 %v16542_v21 }
  0xdc   : > { %936 = vrot.lane.b32.xlu1 %v10102_v33, %s16570_s29  ;;  %v899_v40 = vpop.permute.xlu0 %898  ;;  %s11484_s29 = smov 96  }
  0xdd   : > { %v511_v42 = vpop.permute.xlu1 %510  ;;  %984 = vst.msk [vmem:[#allocation2 + $0x62] sm:$0xff] %vm970_vm6, %v899_v40  ;;  %v12383_v44 = vld [vmem:[#allocation2 + $0x58] sm:$0xff] }
  0xde   : > { %595 = vst.msk [vmem:[#allocation2 + $0x6a] sm:$0xff] %vm580_vm4, %v511_v42  ;;  %10114 = vmatmul.mubr.msk.f32.gmra.mrb[22].mxu0 %vm1064_vm1, %v12383_v44  ;;  %10174 = vmatmul.mubr.msk.f32.gmra.mrb[22].mxu1 %vm1064_vm1, %v12383_v44 }
  0xdf   : > { %1297 = vmatprep.mubr.f32.mxu0 %v16542_v21  ;;  %1583 = vmatprep.mubr.f32.mxu1 %v16542_v21 }
  0xe0   : > { %v706_v45 = vpop.permute.xlu0 %705 }
  0xe1   : > { %v901_v46 = vpop.permute.xlu1 %900  ;;  %790 = vst.msk [vmem:[#allocation2 + $0x6a] sm:$0xff] %vm775_vm5, %v706_v45 }
  0xe2   : > { %985 = vst.msk [vmem:[#allocation2 + $0x6a] sm:$0xff] %vm970_vm6, %v901_v46 }
  0xe4   : > { %v513_v47 = vpop.permute.xlu0 %512  ;;  %v12393_v49 = vld [vmem:[#allocation2 + $0x60] sm:$0xff] }
  0xe5   : > { %v708_v48 = vpop.permute.xlu1 %707  ;;  %596 = vst.msk [vmem:[#allocation2 + $0x72] sm:$0xff] %vm580_vm4, %v513_v47  ;;  %10115 = vmatmul.mubr.msk.f32.gmra.mrb[24].mxu0 %vm1064_vm1, %v12393_v49  ;;  %10175 = vmatmul.mubr.msk.f32.gmra.mrb[24].mxu1 %vm1064_vm1, %v12393_v49 }
  0xe6   : > { %791 = vst.msk [vmem:[#allocation2 + $0x72] sm:$0xff] %vm775_vm5, %v708_v48  ;;  %1303 = vmatprep.mubr.f32.mxu0 %v16542_v21  ;;  %1589 = vmatprep.mubr.f32.mxu1 %v16542_v21 }
  0xe8   : > { %v903_v50 = vpop.permute.xlu0 %902 }
  0xe9   : > { %v515_v51 = vpop.permute.xlu1 %514  ;;  %986 = vst.msk [vmem:[#allocation2 + $0x72] sm:$0xff] %vm970_vm6, %v903_v50  ;;  %v12405_v52 = vld [vmem:[#allocation2 + $0x68] sm:$0xff] }
  0xea   : > { %597 = vst.msk [vmem:[#allocation2 + $0x7a] sm:$0xf] %vm584_vm7, %v515_v51  ;;  %10116 = vmatmul.mubr.msk.f32.gmra.mrb[26].mxu0 %vm1064_vm1, %v12405_v52  ;;  %10176 = vmatmul.mubr.msk.f32.gmra.mrb[26].mxu1 %vm1064_vm1, %v12405_v52 }
  0xeb   : > { %1309 = vmatprep.mubr.f32.mxu0 %v16542_v21  ;;  %1595 = vmatprep.mubr.f32.mxu1 %v16542_v21 }
  0xec   : > { %v710_v53 = vpop.permute.xlu0 %709 }
  0xed   : > { %v905_v55 = vpop.permute.xlu1 %904  ;;  %792 = vst.msk [vmem:[#allocation2 + $0x7a] sm:$0xf] %vm779_vm8, %v710_v53 }
  0xee   : > { %987 = vst.msk [vmem:[#allocation2 + $0x7a] sm:$0xf] %vm974_vm9, %v905_v55 }
  0xf0   : > { %v517_v56 = vpop.permute.xlu0 %516  ;;  %v12415_v58 = vld [vmem:[#allocation2 + $0x70] sm:$0xff] }
  0xf1   : > { %v712_v57 = vpop.permute.xlu1 %711  ;;  %598 = vst.msk [vmem:[#allocation2 + $0x82] sm:$0xff] %vm580_vm4, %v517_v56  ;;  %10117 = vmatmul.mubr.msk.f32.gmra.mrb[28].mxu0 %vm1064_vm1, %v12415_v58  ;;  %10177 = vmatmul.mubr.msk.f32.gmra.mrb[28].mxu1 %vm1064_vm1, %v12415_v58 }
  0xf2   : > { %793 = vst.msk [vmem:[#allocation2 + $0x82] sm:$0xff] %vm775_vm5, %v712_v57  ;;  %1315 = vmatprep.mubr.f32.mxu0 %v16542_v21  ;;  %1601 = vmatprep.mubr.f32.mxu1 %v16542_v21 }
  0xf4   : > { %v907_v59 = vpop.permute.xlu0 %906 }
  0xf5   : > { %v519_v60 = vpop.permute.xlu1 %518  ;;  %988 = vst.msk [vmem:[#allocation2 + $0x82] sm:$0xff] %vm970_vm6, %v907_v59  ;;  %v12427_v61 = vld [vmem:[#allocation2 + $0x78] sm:$0xff] }
  0xf6   : > { %599 = vst.msk [vmem:[#allocation2 + $0x8a] sm:$0xff] %vm580_vm4, %v519_v60  ;;  %10118 = vmatmul.mubr.msk.f32.gmra.mrb[30].mxu0 %vm1064_vm1, %v12427_v61  ;;  %10178 = vmatmul.mubr.msk.f32.gmra.mrb[30].mxu1 %vm1064_vm1, %v12427_v61 }
  0xf7   : > { %1321 = vmatprep.mubr.f32.mxu0 %v16542_v21  ;;  %1607 = vmatprep.mubr.f32.mxu1 %v16542_v21 }
  0xf8   : > { %v714_v62 = vpop.permute.xlu0 %713 }
  0xf9   : > { %v909_v0 = vpop.permute.xlu1 %908  ;;  %794 = vst.msk [vmem:[#allocation2 + $0x8a] sm:$0xff] %vm775_vm5, %v714_v62 }
  0xfa   : > { %989 = vst.msk [vmem:[#allocation2 + $0x8a] sm:$0xff] %vm970_vm6, %v909_v0 }
  0xfc   : > { %v521_v1 = vpop.permute.xlu0 %520  ;;  %v12437_v4 = vld [vmem:[#allocation2 + $0x80] sm:$0xff] }
  0xfd   : > { %v716_v2 = vpop.permute.xlu1 %715  ;;  %600 = vst.msk [vmem:[#allocation2 + $0x92] sm:$0xff] %vm580_vm4, %v521_v1  ;;  %10119 = vmatmul.mubr.msk.f32.gmra.mrb[32].mxu0 %vm1064_vm1, %v12437_v4  ;;  %10179 = vmatmul.mubr.msk.f32.gmra.mrb[32].mxu1 %vm1064_vm1, %v12437_v4 }
  0xfe   : > { %795 = vst.msk [vmem:[#allocation2 + $0x92] sm:$0xff] %vm775_vm5, %v716_v2  ;;  %1327 = vmatprep.mubr.f32.mxu0 %v16542_v21  ;;  %1613 = vmatprep.mubr.f32.mxu1 %v16542_v21 }
 0x100   : > { %v911_v5 = vpop.permute.xlu0 %910 }
 0x101   : > { %v523_v6 = vpop.permute.xlu1 %522  ;;  %990 = vst.msk [vmem:[#allocation2 + $0x92] sm:$0xff] %vm970_vm6, %v911_v5  ;;  %v12449_v7 = vld [vmem:[#allocation2 + $0x88] sm:$0xff] }
 0x102   : > { %601 = vst.msk [vmem:[#allocation2 + $0x9a] sm:$0xf] %vm584_vm7, %v523_v6  ;;  %10120 = vmatmul.mubr.msk.f32.gmra.mrb[34].mxu0 %vm1064_vm1, %v12449_v7  ;;  %10180 = vmatmul.mubr.msk.f32.gmra.mrb[34].mxu1 %vm1064_vm1, %v12449_v7 }
 0x103   : > { %1333 = vmatprep.mubr.f32.mxu0 %v16542_v21  ;;  %1619 = vmatprep.mubr.f32.mxu1 %v16542_v21 }
 0x104   : > { %v718_v8 = vpop.permute.xlu0 %717 }
 0x105   : > { %v913_v9 = vpop.permute.xlu1 %912  ;;  %796 = vst.msk [vmem:[#allocation2 + $0x9a] sm:$0xf] %vm779_vm8, %v718_v8 }
 0x106   : > { %991 = vst.msk [vmem:[#allocation2 + $0x9a] sm:$0xf] %vm974_vm9, %v913_v9 }
 0x108   : > { %v525_v10 = vpop.permute.xlu0 %524  ;;  %v12459_v12 = vld [vmem:[#allocation2 + $0x90] sm:$0xff] }
 0x109   : > { %v720_v11 = vpop.permute.xlu1 %719  ;;  %602 = vst.msk [vmem:[#allocation2 + $0xa2] sm:$0xff] %vm580_vm4, %v525_v10  ;;  %10121 = vmatmul.mubr.msk.f32.gmra.mrb[36].mxu0 %vm1064_vm1, %v12459_v12  ;;  %10181 = vmatmul.mubr.msk.f32.gmra.mrb[36].mxu1 %vm1064_vm1, %v12459_v12 }
 0x10a   : > { %797 = vst.msk [vmem:[#allocation2 + $0xa2] sm:$0xff] %vm775_vm5, %v720_v11  ;;  %1339 = vmatprep.mubr.f32.mxu0 %v16542_v21  ;;  %1625 = vmatprep.mubr.f32.mxu1 %v16542_v21 }
 0x10c   : > { %v915_v14 = vpop.permute.xlu0 %914 }
 0x10d   : > { %v527_v15 = vpop.permute.xlu1 %526  ;;  %992 = vst.msk [vmem:[#allocation2 + $0xa2] sm:$0xff] %vm970_vm6, %v915_v14  ;;  %v12471_v16 = vld [vmem:[#allocation2 + $0x98] sm:$0xff]  ;;  %v10315_v14 = vld [vmem:[%s16529_s1 + $0x380] sm:$0xff] }
 0x10e   : > { %603 = vst.msk [vmem:[#allocation2 + $0xaa] sm:$0xff] %vm580_vm4, %v527_v15  ;;  %10122 = vmatmul.mubr.msk.f32.gmra.mrb[38].mxu0 %vm1064_vm1, %v12471_v16  ;;  %10182 = vmatmul.mubr.msk.f32.gmra.mrb[38].mxu1 %vm1064_vm1, %v12471_v16  ;;  %v10317_v15 = vld [vmem:[%s16529_s1 + $0x390] sm:$0xff] }
 0x10f   : > { %1345 = vmatprep.mubr.f32.mxu0 %v16542_v21  ;;  %1631 = vmatprep.mubr.f32.mxu1 %v16542_v21 }
 0x110   : > { %v722_v17 = vpop.permute.xlu0 %721 }
 0x111   : > { %798 = vst.msk [vmem:[#allocation2 + $0xaa] sm:$0xff] %vm775_vm5, %v722_v17 }
 0x112   : > { %v917_v18 = vpop.permute.xlu1 %916 }
 0x113   : > { %993 = vst.msk [vmem:[#allocation2 + $0xaa] sm:$0xff] %vm970_vm6, %v917_v18  ;;  %v10320_v18 = vld [vmem:[%s16529_s1 + $0x3a8] sm:$0xff] }
 0x114   : > { %v529_v19 = vpop.permute.xlu0 %528  ;;  %v12481_v22 = vld [vmem:[#allocation2 + $0xa0] sm:$0xff] }
 0x115   : > { %604 = vst.msk [vmem:[#allocation2 + $0xb2] sm:$0xff] %vm580_vm4, %v529_v19  ;;  %10123 = vmatmul.mubr.msk.f32.gmra.mrb[40].mxu0 %vm1064_vm1, %v12481_v22  ;;  %10183 = vmatmul.mubr.msk.f32.gmra.mrb[40].mxu1 %vm1064_vm1, %v12481_v22  ;;  %v10322_v19 = vld [vmem:[%s16529_s1 + $0x3b8] sm:$0xff] }
 0x116   : > { %v724_v23 = vpop.permute.xlu1 %723  ;;  %1351 = vmatprep.mubr.f32.mxu0 %v16542_v21  ;;  %1637 = vmatprep.mubr.f32.mxu1 %v16542_v21 }
 0x117   : > { %799 = vst.msk [vmem:[#allocation2 + $0xb2] sm:$0xff] %vm775_vm5, %v724_v23  ;;  %v11037_v23 = vpack.c.bf16 %v10317_v15, %v10315_v14  ;;  %v10342_v14 = vld [vmem:[%s16529_s1 + $0x458] sm:$0xff] }
 0x118   : > { %v919_v24 = vpop.permute.xlu0 %918 }
 0x119   : > { %994 = vst.msk [vmem:[#allocation2 + $0xb2] sm:$0xff] %vm970_vm6, %v919_v24  ;;  %v11039_v24 = vpack.c.bf16 %v10322_v19, %v10320_v18  ;;  %v10341_v19 = vld [vmem:[%s16529_s1 + $0x450] sm:$0xff] }
 0x11a   : > { %v531_v25 = vpop.permute.xlu1 %530  ;;  %v12492_v26 = vld [vmem:[#allocation2 + $0xa8] sm:$0xff] }
 0x11b   : > { %605 = vst.msk [vmem:[#allocation2 + $0xba] sm:$0xf] %vm584_vm7, %v531_v25  ;;  %10124 = vmatmul.mubr.msk.f32.gmra.mrb[42].mxu0 %vm1064_vm1, %v12492_v26  ;;  %10184 = vmatmul.mubr.msk.f32.gmra.mrb[42].mxu1 %vm1064_vm1, %v12492_v26  ;;  %v10319_v25 = vld [vmem:[%s16529_s1 + $0x3a0] sm:$0xff] }
 0x11c   : > { %1357 = vmatprep.mubr.f32.mxu0 %v16542_v21  ;;  %1643 = vmatprep.mubr.f32.mxu1 %v16542_v21  ;;  %v726_v27 = vpop.permute.xlu0 %725 }
 0x11d   : > { %800 = vst.msk [vmem:[#allocation2 + $0xba] sm:$0xf] %vm779_vm8, %v726_v27  ;;  %v10321_v27 = vld [vmem:[%s16529_s1 + $0x3b0] sm:$0xff] }
 0x11e   : > { %v921_v29 = vpop.permute.xlu1 %920 }
 0x11f   : > { %995 = vst.msk [vmem:[#allocation2 + $0xba] sm:$0xf] %vm974_vm9, %v921_v29  ;;  %v12625_v29 = vld [vmem:[#allocation2] sm:$0xff] }
 0x120   : > { %v533_v30 = vpop.permute.xlu0 %532  ;;  %v12503_v31 = vld [vmem:[#allocation2 + $0xb0] sm:$0xff] }
 0x121   : > { %606 = vst.msk [vmem:[#allocation2 + $0xc2] sm:$0xff] %vm580_vm4, %v533_v30  ;;  %10125 = vmatmul.mubr.msk.f32.gmra.mrb[44].mxu0 %vm1064_vm1, %v12503_v31  ;;  %10185 = vmatmul.mubr.msk.f32.gmra.mrb[44].mxu1 %vm1064_vm1, %v12503_v31  ;;  %v10324_v30 = vld [vmem:[%s16529_s1 + $0x3c8] sm:$0xff] }
 0x122   : > { %v728_v33 = vpop.permute.xlu1 %727  ;;  %1363 = vmatprep.mubr.f32.mxu0 %v16542_v21  ;;  %1649 = vmatprep.mubr.f32.mxu1 %v16542_v21 }
 0x123   : > { %801 = vst.msk [vmem:[#allocation2 + $0xc2] sm:$0xff] %vm775_vm5, %v728_v33  ;;  %v10326_v33 = vld [vmem:[%s16529_s1 + $0x3d8] sm:$0xff] }
 0x124   : > { %v923_v34 = vpop.permute.xlu0 %922 }
 0x125   : > { %996 = vst.msk [vmem:[#allocation2 + $0xc2] sm:$0xff] %vm970_vm6, %v923_v34  ;;  %v11041_v34 = vpack.c.bf16 %v10321_v27, %v10319_v25 }
 0x126   : > { %v535_v35 = vpop.permute.xlu1 %534  ;;  %v12514_v37 = vld [vmem:[#allocation2 + $0xb8] sm:$0xff] }
 0x127   : > { %607 = vst.msk [vmem:[#allocation2 + $0xca] sm:$0xff] %vm580_vm4, %v535_v35  ;;  %10126 = vmatmul.mubr.msk.f32.gmra.mrb[46].mxu0 %vm1064_vm1, %v12514_v37  ;;  %10186 = vmatmul.mubr.msk.f32.gmra.mrb[46].mxu1 %vm1064_vm1, %v12514_v37  ;;  %v11043_v35 = vpack.c.bf16 %v10326_v33, %v10324_v30 }
 0x128   : > { %1369 = vmatprep.mubr.f32.mxu0 %v16542_v21  ;;  %1655 = vmatprep.mubr.f32.mxu1 %v16542_v21  ;;  %v730_v38 = vpop.permute.xlu0 %729 }
 0x129   : > { %802 = vst.msk [vmem:[#allocation2 + $0xca] sm:$0xff] %vm775_vm5, %v730_v38  ;;  %v10323_v38 = vld [vmem:[%s16529_s1 + $0x3c0] sm:$0xff] }
 0x12a   : > { %v925_v39 = vpop.permute.xlu1 %924 }
 0x12b   : > { %997 = vst.msk [vmem:[#allocation2 + $0xca] sm:$0xff] %vm970_vm6, %v925_v39  ;;  %v10325_v39 = vld [vmem:[%s16529_s1 + $0x3d0] sm:$0xff] }
 0x12c   : > { %v537_v40 = vpop.permute.xlu0 %536  ;;  %v12525_v42 = vld [vmem:[#allocation2 + $0xc0] sm:$0xff] }
 0x12d   : > { %608 = vst.msk [vmem:[#allocation2 + $0xd2] sm:$0xff] %vm580_vm4, %v537_v40  ;;  %10127 = vmatmul.mubr.msk.f32.gmra.mrb[48].mxu0 %vm1064_vm1, %v12525_v42  ;;  %10187 = vmatmul.mubr.msk.f32.gmra.mrb[48].mxu1 %vm1064_vm1, %v12525_v42  ;;  %v12645_v40 = vld [vmem:[#allocation2 + $0x8] sm:$0xff] }
 0x12e   : > { %v732_v43 = vpop.permute.xlu1 %731  ;;  %1375 = vmatprep.mubr.f32.mxu0 %v16542_v21  ;;  %1661 = vmatprep.mubr.f32.mxu1 %v16542_v21 }
 0x12f   : > { %803 = vst.msk [vmem:[#allocation2 + $0xd2] sm:$0xff] %vm775_vm5, %v732_v43  ;;  %v10328_v43 = vld [vmem:[%s16529_s1 + $0x3e8] sm:$0xff] }
 0x130   : > { %v927_v45 = vpop.permute.xlu0 %926 }
 0x131   : > { %998 = vst.msk [vmem:[#allocation2 + $0xd2] sm:$0xff] %vm970_vm6, %v927_v45  ;;  %v10330_v45 = vld [vmem:[%s16529_s1 + $0x3f8] sm:$0xff] }
 0x132   : > { %v539_v46 = vpop.permute.xlu1 %538  ;;  %v12536_v47 = vld [vmem:[#allocation2 + $0xc8] sm:$0xff] }
 0x133   : > { %609 = vst.msk [vmem:[#allocation2 + $0xda] sm:$0xf] %vm584_vm7, %v539_v46  ;;  %10128 = vmatmul.mubr.msk.f32.gmra.mrb[50].mxu0 %vm1064_vm1, %v12536_v47  ;;  %10188 = vmatmul.mubr.msk.f32.gmra.mrb[50].mxu1 %vm1064_vm1, %v12536_v47  ;;  %v11045_v46 = vpack.c.bf16 %v10325_v39, %v10323_v38 }
 0x134   : > { %1381 = vmatprep.mubr.f32.mxu0 %v16542_v21  ;;  %1667 = vmatprep.mubr.f32.mxu1 %v16542_v21  ;;  %v734_v48 = vpop.permute.xlu0 %733 }
 0x135   : > { %804 = vst.msk [vmem:[#allocation2 + $0xda] sm:$0xf] %vm779_vm8, %v734_v48  ;;  %v11047_v48 = vpack.c.bf16 %v10330_v45, %v10328_v43 }
 0x136   : > { %v929_v50 = vpop.permute.xlu1 %928 }
 0x137   : > { %999 = vst.msk [vmem:[#allocation2 + $0xda] sm:$0xf] %vm974_vm9, %v929_v50  ;;  %v10327_v50 = vld [vmem:[%s16529_s1 + $0x3e0] sm:$0xff] }
 0x138   : > { %v541_v51 = vpop.permute.xlu0 %540  ;;  %v12547_v53 = vld [vmem:[#allocation2 + $0xd0] sm:$0xff] }
 0x139   : > { %610 = vst.msk [vmem:[#allocation2 + $0xe2] sm:$0xff] %vm580_vm4, %v541_v51  ;;  %10129 = vmatmul.mubr.msk.f32.gmra.mrb[52].mxu0 %vm1064_vm1, %v12547_v53  ;;  %10189 = vmatmul.mubr.msk.f32.gmra.mrb[52].mxu1 %vm1064_vm1, %v12547_v53  ;;  %v10329_v51 = vld [vmem:[%s16529_s1 + $0x3f0] sm:$0xff] }
 0x13a   : > { %v736_v55 = vpop.permute.xlu1 %735  ;;  %1387 = vmatprep.mubr.f32.mxu0 %v16542_v21  ;;  %1673 = vmatprep.mubr.f32.mxu1 %v16542_v21 }
 0x13b   : > { %805 = vst.msk [vmem:[#allocation2 + $0xe2] sm:$0xff] %vm775_vm5, %v736_v55  ;;  %v10332_v55 = vld [vmem:[%s16529_s1 + $0x408] sm:$0xff] }
 0x13c   : > { %v931_v56 = vpop.permute.xlu0 %930 }
 0x13d   : > { %1000 = vst.msk [vmem:[#allocation2 + $0xe2] sm:$0xff] %vm970_vm6, %v931_v56  ;;  %v10334_v56 = vld [vmem:[%s16529_s1 + $0x418] sm:$0xff] }
 0x13e   : > { %v543_v57 = vpop.permute.xlu1 %542  ;;  %v12558_v59 = vld [vmem:[#allocation2 + $0xd8] sm:$0xff] }
 0x13f   : > { %611 = vst.msk [vmem:[#allocation2 + $0xea] sm:$0xff] %vm580_vm4, %v543_v57  ;;  %10130 = vmatmul.mubr.msk.f32.gmra.mrb[54].mxu0 %vm1064_vm1, %v12558_v59  ;;  %10190 = vmatmul.mubr.msk.f32.gmra.mrb[54].mxu1 %vm1064_vm1, %v12558_v59  ;;  %v11049_v57 = vpack.c.bf16 %v10329_v51, %v10327_v50 }
 0x140   : > { %1393 = vmatprep.mubr.f32.mxu0 %v16542_v21  ;;  %1679 = vmatprep.mubr.f32.mxu1 %v16542_v21  ;;  %v738_v60 = vpop.permute.xlu0 %737 }
 0x141   : > { %806 = vst.msk [vmem:[#allocation2 + $0xea] sm:$0xff] %vm775_vm5, %v738_v60  ;;  %v11051_v60 = vpack.c.bf16 %v10334_v56, %v10332_v55 }
 0x142   : > { %v933_v62 = vpop.permute.xlu1 %932 }
 0x143   : > { %1001 = vst.msk [vmem:[#allocation2 + $0xea] sm:$0xff] %vm970_vm6, %v933_v62  ;;  %v10333_v62 = vld [vmem:[%s16529_s1 + $0x410] sm:$0xff] }
 0x144   : > { %v545_v0 = vpop.permute.xlu0 %544  ;;  %v12569_v1 = vld [vmem:[#allocation2 + $0xe0] sm:$0xff] }
 0x145   : > { %612 = vst.msk [vmem:[#allocation2 + $0xf2] sm:$0xff] %vm580_vm4, %v545_v0  ;;  %10131 = vmatmul.mubr.msk.f32.gmra.mrb[56].mxu0 %vm1064_vm1, %v12569_v1  ;;  %10191 = vmatmul.mubr.msk.f32.gmra.mrb[56].mxu1 %vm1064_vm1, %v12569_v1  ;;  %v10336_v0 = vld [vmem:[%s16529_s1 + $0x428] sm:$0xff]  ;;  %vm5978_vm4 = vcmask 1045509  }
 0x146   : > { %v740_v2 = vpop.permute.xlu1 %739  ;;  %1399 = vmatprep.mubr.f32.mxu0 %v16542_v21  ;;  %1685 = vmatprep.mubr.f32.mxu1 %v16542_v21 }
 0x147   : > { %807 = vst.msk [vmem:[#allocation2 + $0xf2] sm:$0xff] %vm775_vm5, %v740_v2  ;;  %v10338_v2 = vld [vmem:[%s16529_s1 + $0x438] sm:$0xff]  ;;  %vm5980_vm5 = vcmask 1046534  }
 0x148   : > { %v935_v5 = vpop.permute.xlu0 %934 }
 0x149   : > { %1002 = vst.msk [vmem:[#allocation2 + $0xf2] sm:$0xff] %vm970_vm6, %v935_v5  ;;  %vm5982_vm6 = vcmask 1047559  }
 0x14a   : > { %v547_v6 = vpop.permute.xlu1 %546  ;;  %v12580_v8 = vld [vmem:[#allocation2 + $0xe8] sm:$0xff] }
 0x14b   : > { %613 = vst.msk [vmem:[#allocation2 + $0xfa] sm:$0xf] %vm584_vm7, %v547_v6  ;;  %10132 = vmatmul.mubr.msk.f32.gmra.mrb[58].mxu0 %vm1064_vm1, %v12580_v8  ;;  %10192 = vmatmul.mubr.msk.f32.gmra.mrb[58].mxu1 %vm1064_vm1, %v12580_v8  ;;  %v11055_v6 = vpack.c.bf16 %v10338_v2, %v10336_v0  ;;  %vm6090_vm7 = vcmask 914432  }
 0x14c   : > { %1405 = vmatprep.mubr.f32.mxu0 %v16542_v21  ;;  %1691 = vmatprep.mubr.f32.mxu1 %v16542_v21  ;;  %v742_v9 = vpop.permute.xlu0 %741 }
 0x14d   : > { %808 = vst.msk [vmem:[#allocation2 + $0xfa] sm:$0xf] %vm779_vm8, %v742_v9  ;;  %v10337_v9 = vld [vmem:[%s16529_s1 + $0x430] sm:$0xff]  ;;  %vm9443_vm8 = vcmask 785408  }
 0x14e   : > { %v937_v10 = vpop.permute.xlu1 %936 }
 0x14f   : > { %1003 = vst.msk [vmem:[#allocation2 + $0xfa] sm:$0xf] %vm974_vm9, %v937_v10  ;;  %v10340_v10 = vld [vmem:[%s16529_s1 + $0x448] sm:$0xff]  ;;  %vm9445_vm9 = vcmask 654336  }
 0x150   : > { %v12591_v11 = vld [vmem:[#allocation2 + $0xf0] sm:$0xff]  ;;  %v11059_v18 = vpack.c.bf16 %v10342_v14, %v10340_v10 }
 0x151   : > { %10133 = vmatmul.mubr.msk.f32.gmra.mrb[60].mxu0 %vm1064_vm1, %v12591_v11  ;;  %10193 = vmatmul.mubr.msk.f32.gmra.mrb[60].mxu1 %vm1064_vm1, %v12591_v11 }
 0x152   : > { %1411 = vmatprep.mubr.f32.mxu0 %v16542_v21  ;;  %1697 = vmatprep.mubr.f32.mxu1 %v16542_v21 }
 0x156   : > { %v12605_v17 = vld [vmem:[#allocation2 + $0xf8] sm:$0xff] }
 0x157   : > { %10134 = vmatmul.mubr.msk.f32.gmra.mrb[62].mxu0 %vm1064_vm1, %v12605_v17  ;;  %10194 = vmatmul.mubr.msk.f32.gmra.mrb[62].mxu1 %vm1064_vm1, %v12605_v17 }
 0x158   : > { %2102 = vmatprep.mubr.f32.mxu0 %v16542_v21  ;;  %2693 = vmatprep.mubr.f32.mxu1 %v16542_v21 }
 0x15b   : > { %10223 = vmatmul.mubr.msk.f32.vlgmr.msra.gmra.mrb[64].mxu0 %vm1064_vm1, %v12625_v29  ;;  %10283 = vmatmul.mubr.msk.f32.vlgmr.msra.gmra.mrb[64].mxu1 %vm1064_vm1, %v12625_v29 }
 0x15c   : > { %11038 = vmatpush1.bf16.msra.mxu0 %v11037_v23  ;;  %2108 = vmatprep.mubr.f32.mxu0 %v16542_v21 }
 0x15d   : > { %2699 = vmatprep.mubr.f32.mxu1 %v16542_v21  ;;  %11040 = vmatprep.subr.bf16.mxu0 %v11039_v24 }
 0x15f   : > { %10224 = vmatmul.mubr.msk.f32.gmra.mrb[66].mxu0 %vm1064_vm1, %v12645_v40  ;;  %10284 = vmatmul.mubr.msk.f32.gmra.mrb[66].mxu1 %vm1064_vm1, %v12645_v40 }
 0x160   : > { %2114 = vmatprep.mubr.f32.mxu0 %v16542_v21  ;;  %2705 = vmatprep.mubr.f32.mxu1 %v16542_v21 }
 0x161   : > { %11042 = vmatpush1.bf16.msra.mxu0 %v11041_v34 }
 0x162   : > { %11044 = vmatprep.subr.bf16.mxu0 %v11043_v35 }
 0x163   : > { %10225 = vmatmul.mubr.msk.f32.gmra.mrb[68].mxu0 %vm1064_vm1, %v12088_v28  ;;  %10285 = vmatmul.mubr.msk.f32.gmra.mrb[68].mxu1 %vm1064_vm1, %v12088_v28  ;;  %v10331_v28 = vld [vmem:[%s16529_s1 + $0x400] sm:$0xff] }
 0x164   : > { %2120 = vmatprep.mubr.f32.mxu0 %v16542_v21  ;;  %2711 = vmatprep.mubr.f32.mxu1 %v16542_v21  ;;  %v11053_v5 = vpack.c.bf16 %v10333_v62, %v10331_v28 }
 0x165   : > { %11046 = vmatpush1.bf16.msra.mxu0 %v11045_v46 }
 0x166   : > { %11048 = vmatprep.subr.bf16.mxu0 %v11047_v48 }
 0x167   : > { %10226 = vmatmul.mubr.msk.f32.gmra.mrb[70].mxu0 %vm1064_vm1, %v12118_v41  ;;  %10286 = vmatmul.mubr.msk.f32.gmra.mrb[70].mxu1 %vm1064_vm1, %v12118_v41  ;;  %v10335_v41 = vld [vmem:[%s16529_s1 + $0x420] sm:$0xff] }
 0x168   : > { %2126 = vmatprep.mubr.f32.mxu0 %v16542_v21  ;;  %2717 = vmatprep.mubr.f32.mxu1 %v16542_v21  ;;  %v11057_v15 = vpack.c.bf16 %v10337_v9, %v10335_v41 }
 0x169   : > { %11050 = vmatpush1.bf16.msra.mxu0 %v11049_v57 }
 0x16a   : > { %11052 = vmatprep.subr.bf16.mxu0 %v11051_v60 }
 0x16b   : > { %10227 = vmatmul.mubr.msk.f32.gmra.mrb[72].mxu0 %vm1064_vm1, %v12144_v54  ;;  %10287 = vmatmul.mubr.msk.f32.gmra.mrb[72].mxu1 %vm1064_vm1, %v12144_v54  ;;  %v10339_v54 = vld [vmem:[%s16529_s1 + $0x440] sm:$0xff] }
 0x16c   : > { %2132 = vmatprep.mubr.f32.mxu0 %v16542_v21  ;;  %2723 = vmatprep.mubr.f32.mxu1 %v16542_v21  ;;  %v11061_v23 = vpack.c.bf16 %v10341_v19, %v10339_v54 }
 0x16d   : > { %11054 = vmatpush1.bf16.msra.mxu0 %v11053_v5 }
 0x16e   : > { %11056 = vmatprep.subr.bf16.mxu0 %v11055_v6 }
 0x16f   : > { %10228 = vmatmul.mubr.msk.f32.gmra.mrb[74].mxu0 %vm1064_vm1, %v12174_v3  ;;  %10288 = vmatmul.mubr.msk.f32.gmra.mrb[74].mxu1 %vm1064_vm1, %v12174_v3 }
 0x170   : > { %2138 = vmatprep.mubr.f32.mxu0 %v16542_v21  ;;  %2729 = vmatprep.mubr.f32.mxu1 %v16542_v21 }
 0x171   : > { %11058 = vmatpush1.bf16.msra.mxu0 %v11057_v15 }
 0x172   : > { %v1227_v24 = vpop.f32.mrb[0].mxu0  ;;  %11060 = vmatprep.subr.bf16.mxu0 %v11059_v18  ;;  %v1513_v25 = vpop.f32.mrb[0].mxu1 }
 0x173   : > { %v1229_v27 = vpop.f32.mrb[1].mxu0  ;;  %10229 = vmatmul.mubr.msk.f32.gmra.mrb[76].mxu0 %vm1064_vm1, %v12207_v20  ;;  %10289 = vmatmul.mubr.msk.f32.gmra.mrb[76].mxu1 %vm1064_vm1, %v12207_v20  ;;  %v1515_v30 = vpop.f32.mrb[1].mxu1  ;;  %v1769_v35 = vrot.slane %v1513_v25, 1 }
 0x174   : > { %2144 = vmatprep.mubr.f32.mxu0 %v16542_v21  ;;  %2735 = vmatprep.mubr.f32.mxu1 %v16542_v21  ;;  %v1772_v20 = vrot.slane %v1515_v30, 1 }
 0x175   : > { %11062 = vmatpush1.bf16.msra.mxu0 %v11061_v23 }
 0x176   : > { %v1233_v3 = vpop.f32.mrb[2].mxu0  ;;  %v1519_v33 = vpop.f32.mrb[2].mxu1 }
 0x177   : > { %v1235_v34 = vpop.f32.mrb[3].mxu0  ;;  %10230 = vmatmul.mubr.msk.f32.gmra.mrb[78].mxu0 %vm1064_vm1, %v12242_v36  ;;  %10290 = vmatmul.mubr.msk.f32.gmra.mrb[78].mxu1 %vm1064_vm1, %v12242_v36  ;;  %v1770_v38 = vrot.slane %v1519_v33, 1  ;;  %v1521_v39 = vpop.f32.mrb[3].mxu1 }
 0x178   : > { %2150 = vmatprep.mubr.f32.mxu0 %v16542_v21  ;;  %2741 = vmatprep.mubr.f32.mxu1 %v16542_v21  ;;  %v1773_v43 = vrot.slane %v1521_v39, 1 }
 0x179   : > { %v1771_v45 = vsel %vm1768_vm10, %v1769_v35, %v1770_v38 }
 0x17a   : > { %v1774_v46 = vsel %vm1768_vm10, %v1772_v20, %v1773_v43  ;;  %v12743_v36 = vadd.f32 %v1771_v45, %v1227_v24 }
 0x17b   : > { %10231 = vmatmul.mubr.msk.f32.gmra.mrb[80].mxu0 %vm1064_vm1, %v12293_v63  ;;  %10291 = vmatmul.mubr.msk.f32.gmra.mrb[80].mxu1 %vm1064_vm1, %v12293_v63  ;;  %v12747_v48 = vadd.f32 %v1774_v46, %v1229_v27 }
 0x17c   : > { %2156 = vmatprep.mubr.f32.mxu0 %v16542_v21  ;;  %2747 = vmatprep.mubr.f32.mxu1 %v16542_v21  ;;  %v1239_v50 = vpop.f32.mrb[4].mxu0  ;;  %v1525_v51 = vpop.f32.mrb[4].mxu1 }
 0x17d   : > { %v1775_v55 = vrot.slane %v1525_v51, 1  ;;  %v1241_v56 = vpop.f32.mrb[5].mxu0  ;;  %v1527_v57 = vpop.f32.mrb[5].mxu1 }
 0x17e   : > { %v1777_v60 = vrot.slane %v1527_v57, 1 }
 0x17f   : > { %10232 = vmatmul.mubr.msk.f32.gmra.mrb[82].mxu0 %vm1064_vm1, %v12327_v13  ;;  %10292 = vmatmul.mubr.msk.f32.gmra.mrb[82].mxu1 %vm1064_vm1, %v12327_v13  ;;  %v1776_v63 = vsel %vm1768_vm10, %v1770_v38, %v1775_v55 }
 0x180   : > { %2162 = vmatprep.mubr.f32.mxu0 %v16542_v21  ;;  %2753 = vmatprep.mubr.f32.mxu1 %v16542_v21  ;;  %v1778_v28 = vsel %vm1768_vm10, %v1773_v43, %v1777_v60  ;;  %v12757_v62 = vadd.f32 %v1776_v63, %v1233_v3 }
 0x181   : > { %v1245_v0 = vpop.f32.mrb[6].mxu0  ;;  %v12759_v2 = vadd.f32 %v1778_v28, %v1235_v34 }
 0x182   : > { %v1531_v5 = vpop.f32.mrb[6].mxu1  ;;  %v1247_v6 = vpop.f32.mrb[7].mxu0 }
 0x183   : > { %10233 = vmatmul.mubr.msk.f32.gmra.mrb[84].mxu0 %vm1064_vm1, %v12362_v32  ;;  %10293 = vmatmul.mubr.msk.f32.gmra.mrb[84].mxu1 %vm1064_vm1, %v12362_v32  ;;  %v1779_v13 = vrot.slane %v1531_v5, 1  ;;  %v1533_v41 = vpop.f32.mrb[7].mxu1 }
 0x184   : > { %2168 = vmatprep.mubr.f32.mxu0 %v16542_v21  ;;  %2759 = vmatprep.mubr.f32.mxu1 %v16542_v21  ;;  %v1781_v9 = vrot.slane %v1533_v41, 1 }
 0x185   : > { %v1780_v10 = vsel %vm1768_vm10, %v1775_v55, %v1779_v13  ;;  %v12768_v14 = vadd.f32 %v1779_v13, %v1245_v0 }
 0x186   : > { %v1782_v15 = vsel %vm1768_vm10, %v1777_v60, %v1781_v9  ;;  %v12775_v32 = vadd.f32 %v1780_v10, %v1239_v50  ;;  %v12777_v18 = vadd.f32 %v1781_v9, %v1247_v6 }
 0x187   : > { %10234 = vmatmul.mubr.msk.f32.gmra.mrb[86].mxu0 %vm1064_vm1, %v12383_v44  ;;  %10294 = vmatmul.mubr.msk.f32.gmra.mrb[86].mxu1 %vm1064_vm1, %v12383_v44  ;;  %v12781_v54 = vadd.f32 %v1782_v15, %v1241_v56 }
 0x188   : > { %2174 = vmatprep.mubr.f32.mxu0 %v16542_v21  ;;  %2765 = vmatprep.mubr.f32.mxu1 %v16542_v21  ;;  %v1251_v19 = vpop.f32.mrb[8].mxu0  ;;  %v1537_v23 = vpop.f32.mrb[8].mxu1 }
 0x189   : > { %v1253_v24 = vpop.f32.mrb[9].mxu0  ;;  %v1539_v25 = vpop.f32.mrb[9].mxu1  ;;  %v1783_v3 = vrot.slane %v1537_v23, 1 }
 0x18b   : > { %10235 = vmatmul.mubr.msk.f32.gmra.mrb[88].mxu0 %vm1064_vm1, %v12393_v49  ;;  %10295 = vmatmul.mubr.msk.f32.gmra.mrb[88].mxu1 %vm1064_vm1, %v12393_v49  ;;  %v1786_v49 = vrot.slane %v1539_v25, 1 }
 0x18c   : > { %2180 = vmatprep.mubr.f32.mxu0 %v16542_v21  ;;  %2771 = vmatprep.mubr.f32.mxu1 %v16542_v21 }
 0x18d   : > { %v1257_v44 = vpop.f32.mrb[10].mxu0 }
 0x18e   : > { %v1543_v27 = vpop.f32.mrb[10].mxu1  ;;  %v1259_v30 = vpop.f32.mrb[11].mxu0 }
 0x18f   : > { %10236 = vmatmul.mubr.msk.f32.gmra.mrb[90].mxu0 %vm1064_vm1, %v12405_v52  ;;  %10296 = vmatmul.mubr.msk.f32.gmra.mrb[90].mxu1 %vm1064_vm1, %v12405_v52  ;;  %v1784_v33 = vrot.slane %v1543_v27, 1  ;;  %v1545_v34 = vpop.f32.mrb[11].mxu1 }
 0x190   : > { %2186 = vmatprep.mubr.f32.mxu0 %v16542_v21  ;;  %2777 = vmatprep.mubr.f32.mxu1 %v16542_v21  ;;  %v1787_v35 = vrot.slane %v1545_v34, 1 }
 0x191   : > { %v1785_v38 = vsel %vm1768_vm10, %v1783_v3, %v1784_v33 }
 0x192   : > { %v1788_v39 = vsel %vm1768_vm10, %v1786_v49, %v1787_v35  ;;  %v12801_v52 = vadd.f32 %v1785_v38, %v1251_v19 }
 0x193   : > { %10237 = vmatmul.mubr.msk.f32.gmra.mrb[92].mxu0 %vm1064_vm1, %v12415_v58  ;;  %10297 = vmatmul.mubr.msk.f32.gmra.mrb[92].mxu1 %vm1064_vm1, %v12415_v58  ;;  %v12805_v20 = vadd.f32 %v1788_v39, %v1253_v24 }
 0x194   : > { %2192 = vmatprep.mubr.f32.mxu0 %v16542_v21  ;;  %2783 = vmatprep.mubr.f32.mxu1 %v16542_v21  ;;  %v1263_v43 = vpop.f32.mrb[12].mxu0  ;;  %v1549_v45 = vpop.f32.mrb[12].mxu1 }
 0x195   : > { %v1789_v46 = vrot.slane %v1549_v45, 1  ;;  %v1265_v50 = vpop.f32.mrb[13].mxu0  ;;  %v1551_v51 = vpop.f32.mrb[13].mxu1 }
 0x196   : > { %v1791_v55 = vrot.slane %v1551_v51, 1 }
 0x197   : > { %10238 = vmatmul.mubr.msk.f32.gmra.mrb[94].mxu0 %vm1064_vm1, %v12427_v61  ;;  %10298 = vmatmul.mubr.msk.f32.gmra.mrb[94].mxu1 %vm1064_vm1, %v12427_v61  ;;  %v1790_v58 = vsel %vm1768_vm10, %v1784_v33, %v1789_v46 }
 0x198   : > { %2198 = vmatprep.mubr.f32.mxu0 %v16542_v21  ;;  %2789 = vmatprep.mubr.f32.mxu1 %v16542_v21  ;;  %v1792_v56 = vsel %vm1768_vm10, %v1787_v35, %v1791_v55  ;;  %v12815_v57 = vadd.f32 %v1790_v58, %v1257_v44 }
 0x199   : > { %v1269_v60 = vpop.f32.mrb[14].mxu0  ;;  %v12817_v63 = vadd.f32 %v1792_v56, %v1259_v30 }
 0x19a   : > { %v1555_v28 = vpop.f32.mrb[14].mxu1  ;;  %v1271_v0 = vpop.f32.mrb[15].mxu0 }
 0x19b   : > { %10239 = vmatmul.mubr.msk.f32.gmra.mrb[96].mxu0 %vm1064_vm1, %v12437_v4  ;;  %10299 = vmatmul.mubr.msk.f32.gmra.mrb[96].mxu1 %vm1064_vm1, %v12437_v4  ;;  %v1793_v61 = vrot.slane %v1555_v28, 1  ;;  %v1557_v5 = vpop.f32.mrb[15].mxu1 }
 0x19c   : > { %2204 = vmatprep.mubr.f32.mxu0 %v16542_v21  ;;  %2795 = vmatprep.mubr.f32.mxu1 %v16542_v21  ;;  %v1795_v6 = vrot.slane %v1557_v5, 1 }
 0x19d   : > { %v1794_v13 = vsel %vm1768_vm10, %v1789_v46, %v1793_v61  ;;  %v12826_v41 = vadd.f32 %v1793_v61, %v1269_v60 }
 0x19e   : > { %v1796_v9 = vsel %vm1768_vm10, %v1791_v55, %v1795_v6  ;;  %v12833_v4 = vadd.f32 %v1794_v13, %v1263_v43  ;;  %v12835_v10 = vadd.f32 %v1795_v6, %v1271_v0 }
 0x19f   : > { %10240 = vmatmul.mubr.msk.f32.gmra.mrb[98].mxu0 %vm1064_vm1, %v12449_v7  ;;  %10300 = vmatmul.mubr.msk.f32.gmra.mrb[98].mxu1 %vm1064_vm1, %v12449_v7  ;;  %v12839_v15 = vadd.f32 %v1796_v9, %v1265_v50 }
 0x1a0   : > { %2210 = vmatprep.mubr.f32.mxu0 %v16542_v21  ;;  %2801 = vmatprep.mubr.f32.mxu1 %v16542_v21  ;;  %v1275_v19 = vpop.f32.mrb[16].mxu0  ;;  %v1561_v23 = vpop.f32.mrb[16].mxu1 }
 0x1a1   : > { %v1277_v24 = vpop.f32.mrb[17].mxu0  ;;  %v1563_v25 = vpop.f32.mrb[17].mxu1  ;;  %v1797_v30 = vrot.slane %v1561_v23, 1 }
 0x1a3   : > { %10241 = vmatmul.mubr.msk.f32.gmra.mrb[100].mxu0 %vm1064_vm1, %v12459_v12  ;;  %10301 = vmatmul.mubr.msk.f32.gmra.mrb[100].mxu1 %vm1064_vm1, %v12459_v12  ;;  %v1800_v12 = vrot.slane %v1563_v25, 1 }
 0x1a4   : > { %2216 = vmatprep.mubr.f32.mxu0 %v16542_v21  ;;  %2807 = vmatprep.mubr.f32.mxu1 %v16542_v21 }
 0x1a5   : > { %v1281_v7 = vpop.f32.mrb[18].mxu0 }
 0x1a6   : > { %v1567_v44 = vpop.f32.mrb[18].mxu1  ;;  %v1283_v27 = vpop.f32.mrb[19].mxu0 }
 0x1a7   : > { %10242 = vmatmul.mubr.msk.f32.gmra.mrb[102].mxu0 %vm1064_vm1, %v12471_v16  ;;  %10302 = vmatmul.mubr.msk.f32.gmra.mrb[102].mxu1 %vm1064_vm1, %v12471_v16  ;;  %v1798_v3 = vrot.slane %v1567_v44, 1  ;;  %v1569_v33 = vpop.f32.mrb[19].mxu1 }
 0x1a8   : > { %2222 = vmatprep.mubr.f32.mxu0 %v16542_v21  ;;  %2813 = vmatprep.mubr.f32.mxu1 %v16542_v21  ;;  %v1801_v34 = vrot.slane %v1569_v33, 1 }
 0x1a9   : > { %v1799_v49 = vsel %vm1768_vm10, %v1797_v30, %v1798_v3 }
 0x1aa   : > { %v1802_v35 = vsel %vm1768_vm10, %v1800_v12, %v1801_v34  ;;  %v12859_v16 = vadd.f32 %v1799_v49, %v1275_v19 }
 0x1ab   : > { %10243 = vmatmul.mubr.msk.f32.gmra.mrb[104].mxu0 %vm1064_vm1, %v12481_v22  ;;  %10303 = vmatmul.mubr.msk.f32.gmra.mrb[104].mxu1 %vm1064_vm1, %v12481_v22  ;;  %v12863_v38 = vadd.f32 %v1802_v35, %v1277_v24 }
 0x1ac   : > { %2228 = vmatprep.mubr.f32.mxu0 %v16542_v21  ;;  %2819 = vmatprep.mubr.f32.mxu1 %v16542_v21  ;;  %v1287_v39 = vpop.f32.mrb[20].mxu0  ;;  %v1573_v43 = vpop.f32.mrb[20].mxu1 }
 0x1ad   : > { %v1803_v45 = vrot.slane %v1573_v43, 1  ;;  %v1289_v46 = vpop.f32.mrb[21].mxu0  ;;  %v1575_v50 = vpop.f32.mrb[21].mxu1 }
 0x1ae   : > { %v1805_v51 = vrot.slane %v1575_v50, 1 }
 0x1af   : > { %10244 = vmatmul.mubr.msk.f32.gmra.mrb[106].mxu0 %vm1064_vm1, %v12492_v26  ;;  %10304 = vmatmul.mubr.msk.f32.gmra.mrb[106].mxu1 %vm1064_vm1, %v12492_v26  ;;  %v1804_v22 = vsel %vm1768_vm10, %v1798_v3, %v1803_v45 }
 0x1b0   : > { %2234 = vmatprep.mubr.f32.mxu0 %v16542_v21  ;;  %2825 = vmatprep.mubr.f32.mxu1 %v16542_v21  ;;  %v1806_v55 = vsel %vm1768_vm10, %v1801_v34, %v1805_v51  ;;  %v12873_v58 = vadd.f32 %v1804_v22, %v1281_v7 }
 0x1b1   : > { %v1293_v56 = vpop.f32.mrb[22].mxu0  ;;  %v1579_v60 = vpop.f32.mrb[22].mxu1  ;;  %v12875_v28 = vadd.f32 %v1806_v55, %v1283_v27 }
 0x1b2   : > { %v1807_v0 = vrot.slane %v1579_v60, 1  ;;  %v1295_v61 = vpop.f32.mrb[23].mxu0  ;;  %v1581_v5 = vpop.f32.mrb[23].mxu1 }
 0x1b3   : > { %10245 = vmatmul.mubr.msk.f32.gmra.mrb[108].mxu0 %vm1064_vm1, %v12503_v31  ;;  %10305 = vmatmul.mubr.msk.f32.gmra.mrb[108].mxu1 %vm1064_vm1, %v12503_v31  ;;  %v1809_v26 = vrot.slane %v1581_v5, 1 }
 0x1b4   : > { %2240 = vmatprep.mubr.f32.mxu0 %v16542_v21  ;;  %2831 = vmatprep.mubr.f32.mxu1 %v16542_v21  ;;  %v1808_v6 = vsel %vm1768_vm10, %v1803_v45, %v1807_v0  ;;  %v12884_v13 = vadd.f32 %v1807_v0, %v1293_v56 }
 0x1b5   : > { %v12886_v9 = vadd.f32 %v1808_v6, %v1287_v39  ;;  %v1810_v19 = vsel %vm1768_vm10, %v1805_v51, %v1809_v26  ;;  %v12889_v23 = vadd.f32 %v1809_v26, %v1295_v61 }
 0x1b6   : > { %v12891_v24 = vadd.f32 %v1810_v19, %v1289_v46 }
 0x1b7   : > { %10246 = vmatmul.mubr.msk.f32.gmra.mrb[110].mxu0 %vm1064_vm1, %v12514_v37  ;;  %10306 = vmatmul.mubr.msk.f32.gmra.mrb[110].mxu1 %vm1064_vm1, %v12514_v37 }
 0x1b8   : > { %2246 = vmatprep.mubr.f32.mxu0 %v16542_v21  ;;  %2837 = vmatprep.mubr.f32.mxu1 %v16542_v21  ;;  %v1299_v31 = vpop.f32.mrb[24].mxu0  ;;  %v1585_v25 = vpop.f32.mrb[24].mxu1 }
 0x1b9   : > { %v1301_v7 = vpop.f32.mrb[25].mxu0  ;;  %v1587_v44 = vpop.f32.mrb[25].mxu1  ;;  %v1811_v30 = vrot.slane %v1585_v25, 1 }
 0x1ba   : > { %v1814_v34 = vrot.slane %v1587_v44, 1 }
 0x1bb   : > { %10247 = vmatmul.mubr.msk.f32.gmra.mrb[112].mxu0 %vm1064_vm1, %v12525_v42  ;;  %10307 = vmatmul.mubr.msk.f32.gmra.mrb[112].mxu1 %vm1064_vm1, %v12525_v42 }
 0x1bc   : > { %2252 = vmatprep.mubr.f32.mxu0 %v16542_v21  ;;  %2843 = vmatprep.mubr.f32.mxu1 %v16542_v21 }
 0x1bd   : > { %v1305_v27 = vpop.f32.mrb[26].mxu0  ;;  %v1591_v37 = vpop.f32.mrb[26].mxu1 }
 0x1be   : > { %v1812_v3 = vrot.slane %v1591_v37, 1  ;;  %v1307_v33 = vpop.f32.mrb[27].mxu0  ;;  %v1593_v12 = vpop.f32.mrb[27].mxu1 }
 0x1bf   : > { %10248 = vmatmul.mubr.msk.f32.gmra.mrb[114].mxu0 %vm1064_vm1, %v12536_v47  ;;  %10308 = vmatmul.mubr.msk.f32.gmra.mrb[114].mxu1 %vm1064_vm1, %v12536_v47  ;;  %v1815_v49 = vrot.slane %v1593_v12, 1 }
 0x1c0   : > { %2258 = vmatprep.mubr.f32.mxu0 %v16542_v21  ;;  %2849 = vmatprep.mubr.f32.mxu1 %v16542_v21  ;;  %v1813_v42 = vsel %vm1768_vm10, %v1811_v30, %v1812_v3 }
 0x1c1   : > { %v12912_v35 = vadd.f32 %v1813_v42, %v1299_v31  ;;  %v1816_v39 = vsel %vm1768_vm10, %v1814_v34, %v1815_v49 }
 0x1c2   : > { %v12915_v43 = vadd.f32 %v1816_v39, %v1301_v7 }
 0x1c3   : > { %10249 = vmatmul.mubr.msk.f32.gmra.mrb[116].mxu0 %vm1064_vm1, %v12547_v53  ;;  %10309 = vmatmul.mubr.msk.f32.gmra.mrb[116].mxu1 %vm1064_vm1, %v12547_v53 }
 0x1c4   : > { %2264 = vmatprep.mubr.f32.mxu0 %v16542_v21  ;;  %2855 = vmatprep.mubr.f32.mxu1 %v16542_v21  ;;  %v1311_v47 = vpop.f32.mrb[28].mxu0  ;;  %v1597_v45 = vpop.f32.mrb[28].mxu1 }
 0x1c5   : > { %v1817_v46 = vrot.slane %v1597_v45, 1  ;;  %v1313_v50 = vpop.f32.mrb[29].mxu0  ;;  %v1599_v51 = vpop.f32.mrb[29].mxu1 }
 0x1c6   : > { %v1819_v22 = vrot.slane %v1599_v51, 1 }
 0x1c7   : > { %10250 = vmatmul.mubr.msk.f32.gmra.mrb[118].mxu0 %vm1064_vm1, %v12558_v59  ;;  %10310 = vmatmul.mubr.msk.f32.gmra.mrb[118].mxu1 %vm1064_vm1, %v12558_v59  ;;  %v1818_v55 = vsel %vm1768_vm10, %v1812_v3, %v1817_v46 }
 0x1c8   : > { %2270 = vmatprep.mubr.f32.mxu0 %v16542_v21  ;;  %2861 = vmatprep.mubr.f32.mxu1 %v16542_v21  ;;  %v12930_v53 = vadd.f32 %v1818_v55, %v1305_v27  ;;  %v1820_v56 = vsel %vm1768_vm10, %v1815_v49, %v1819_v22 }
 0x1c9   : > { %v12933_v60 = vadd.f32 %v1820_v56, %v1307_v33  ;;  %v1317_v0 = vpop.f32.mrb[30].mxu0  ;;  %v1603_v61 = vpop.f32.mrb[30].mxu1 }
 0x1ca   : > { %v1821_v5 = vrot.slane %v1603_v61, 1  ;;  %v1319_v26 = vpop.f32.mrb[31].mxu0  ;;  %v1605_v6 = vpop.f32.mrb[31].mxu1 }
 0x1cb   : > { %10251 = vmatmul.mubr.msk.f32.gmra.mrb[120].mxu0 %vm1064_vm1, %v12569_v1  ;;  %10311 = vmatmul.mubr.msk.f32.gmra.mrb[120].mxu1 %vm1064_vm1, %v12569_v1  ;;  %v1823_v59 = vrot.slane %v1605_v6, 1 }
 0x1cc   : > { %2276 = vmatprep.mubr.f32.mxu0 %v16542_v21  ;;  %2867 = vmatprep.mubr.f32.mxu1 %v16542_v21  ;;  %v1822_v19 = vsel %vm1768_vm10, %v1817_v46, %v1821_v5  ;;  %v12942_v31 = vadd.f32 %v1821_v5, %v1317_v0 }
 0x1cd   : > { %v12944_v25 = vadd.f32 %v1822_v19, %v1311_v47  ;;  %v1824_v7 = vsel %vm1768_vm10, %v1819_v22, %v1823_v59  ;;  %v12947_v44 = vadd.f32 %v1823_v59, %v1319_v26 }
 0x1ce   : > { %v12949_v27 = vadd.f32 %v1824_v7, %v1313_v50 }
 0x1cf   : > { %10252 = vmatmul.mubr.msk.f32.gmra.mrb[122].mxu0 %vm1064_vm1, %v12580_v8  ;;  %10312 = vmatmul.mubr.msk.f32.gmra.mrb[122].mxu1 %vm1064_vm1, %v12580_v8 }
 0x1d0   : > { %2282 = vmatprep.mubr.f32.mxu0 %v16542_v21  ;;  %2873 = vmatprep.mubr.f32.mxu1 %v16542_v21  ;;  %v1323_v1 = vpop.f32.mrb[32].mxu0  ;;  %v1609_v37 = vpop.f32.mrb[32].mxu1 }
 0x1d1   : > { %v1325_v30 = vpop.f32.mrb[33].mxu0  ;;  %v1611_v3 = vpop.f32.mrb[33].mxu1  ;;  %v1825_v12 = vrot.slane %v1609_v37, 1  ;;  %v11364_v37 = vld [vmem:[#allocation2 + $0x10] sm:$0xff] }
 0x1d2   : > { %v1828_v39 = vrot.slane %v1611_v3, 1 }
 0x1d3   : > { %10253 = vmatmul.mubr.msk.f32.gmra.mrb[124].mxu0 %vm1064_vm1, %v12591_v11  ;;  %10313 = vmatmul.mubr.msk.f32.gmra.mrb[124].mxu1 %vm1064_vm1, %v12591_v11 }
 0x1d4   : > { %2288 = vmatprep.mubr.f32.mxu0 %v16542_v21  ;;  %2879 = vmatprep.mubr.f32.mxu1 %v16542_v21 }
 0x1d5   : > { %v1329_v33 = vpop.f32.mrb[34].mxu0  ;;  %v1615_v8 = vpop.f32.mrb[34].mxu1 }
 0x1d6   : > { %v1826_v34 = vrot.slane %v1615_v8, 1  ;;  %v1331_v49 = vpop.f32.mrb[35].mxu0  ;;  %v1617_v42 = vpop.f32.mrb[35].mxu1 }
 0x1d7   : > { %10254 = vmatmul.mubr.msk.f32.gmra.mrb[126].mxu0 %vm1064_vm1, %v12605_v17  ;;  %10314 = vmatmul.mubr.msk.f32.gmra.mrb[126].mxu1 %vm1064_vm1, %v12605_v17  ;;  %v1829_v47 = vrot.slane %v1617_v42, 1 }
 0x1d8   : > { %3284 = vmatprep.mubr.f32.mxu0 %v16542_v21  ;;  %6294 = vmatprep.mubr.f32.mxu1 %v16542_v21  ;;  %v1827_v11 = vsel %vm1768_vm10, %v1825_v12, %v1826_v34 }
 0x1d9   : > { %v12970_v45 = vadd.f32 %v1827_v11, %v1323_v1  ;;  %v1830_v46 = vsel %vm1768_vm10, %v1828_v39, %v1829_v47 }
 0x1da   : > { %v12973_v50 = vadd.f32 %v1830_v46, %v1325_v30  ;;  %v11366_v46 = vld [vmem:[#allocation2 + $0x20] sm:$0xff] }
 0x1db   : > { %10343 = vmatmul.mubr.msk.f32.vlgmr.msra.gmra.mrb[128].mxu0 %vm1064_vm1, %v12625_v29 }
 0x1dc   : > { %3290 = vmatprep.mubr.f32.mxu0 %v16542_v21  ;;  %v1335_v17 = vpop.f32.mrb[36].mxu0  ;;  %v1621_v51 = vpop.f32.mrb[36].mxu1 }
 0x1dd   : > { %v1831_v22 = vrot.slane %v1621_v51, 1  ;;  %v1337_v55 = vpop.f32.mrb[37].mxu0  ;;  %v1623_v56 = vpop.f32.mrb[37].mxu1 }
 0x1de   : > { %v1833_v0 = vrot.slane %v1623_v56, 1 }
 0x1df   : > { %10344 = vmatmul.mubr.msk.f32.gmra.mrb[130].mxu0 %vm1064_vm1, %v12645_v40  ;;  %v1832_v61 = vsel %vm1768_vm10, %v1826_v34, %v1831_v22 }
 0x1e0   : > { %3296 = vmatprep.mubr.f32.mxu0 %v16542_v21  ;;  %v12982_v5 = vadd.f32 %v1832_v61, %v1329_v33  ;;  %v1834_v26 = vsel %vm1768_vm10, %v1829_v47, %v1833_v0  ;;  %v11367_v61 = vld [vmem:[#allocation2 + $0x28] sm:$0xff] }
 0x1e1   : > { %v12985_v29 = vadd.f32 %v1834_v26, %v1331_v49  ;;  %v1341_v6 = vpop.f32.mrb[38].mxu0  ;;  %v1627_v59 = vpop.f32.mrb[38].mxu1  ;;  %v11365_v49 = vld [vmem:[#allocation2 + $0x18] sm:$0xff] }
 0x1e2   : > { %v1835_v19 = vrot.slane %v1627_v59, 1  ;;  %v1343_v7 = vpop.f32.mrb[39].mxu0  ;;  %v1629_v1 = vpop.f32.mrb[39].mxu1 }
 0x1e3   : > { %10345 = vmatmul.mubr.msk.f32.gmra.mrb[132].mxu0 %vm1064_vm1, %v11364_v37  ;;  %v1837_v30 = vrot.slane %v1629_v1, 1  ;;  %v11368_v37 = vld [vmem:[#allocation2 + $0x30] sm:$0xff] }
 0x1e4   : > { %3302 = vmatprep.mubr.f32.mxu0 %v16542_v21  ;;  %v1836_v40 = vsel %vm1768_vm10, %v1831_v22, %v1835_v19  ;;  %v12990_v3 = vadd.f32 %v1835_v19, %v1341_v6 }
 0x1e5   : > { %v12992_v33 = vadd.f32 %v1836_v40, %v1335_v17  ;;  %v1838_v8 = vsel %vm1768_vm10, %v1833_v0, %v1837_v30  ;;  %v12995_v12 = vadd.f32 %v1837_v30, %v1343_v7 }
 0x1e6   : > { %v12997_v34 = vadd.f32 %v1838_v8, %v1337_v55 }
 0x1e7   : > { %10346 = vmatmul.mubr.msk.f32.gmra.mrb[134].mxu0 %vm1064_vm1, %v11365_v49 }
 0x1e8   : > { %3308 = vmatprep.mubr.f32.mxu0 %v16542_v21  ;;  %v1347_v42 = vpop.f32.mrb[40].mxu0  ;;  %v1633_v39 = vpop.f32.mrb[40].mxu1 }
 0x1e9   : > { %v1349_v47 = vpop.f32.mrb[41].mxu0  ;;  %v1635_v11 = vpop.f32.mrb[41].mxu1  ;;  %v1839_v22 = vrot.slane %v1633_v39, 1 }
 0x1ea   : > { %v1842_v26 = vrot.slane %v1635_v11, 1 }
 0x1eb   : > { %10347 = vmatmul.mubr.msk.f32.gmra.mrb[136].mxu0 %vm1064_vm1, %v11366_v46  ;;  %v11369_v46 = vld [vmem:[#allocation2 + $0x38] sm:$0xff] }
 0x1ec   : > { %3314 = vmatprep.mubr.f32.mxu0 %v16542_v21 }
 0x1ee   : > { %v1353_v17 = vpop.f32.mrb[42].mxu0  ;;  %v1639_v51 = vpop.f32.mrb[42].mxu1 }
 0x1ef   : > { %v1840_v56 = vrot.slane %v1639_v51, 1  ;;  %v1355_v55 = vpop.f32.mrb[43].mxu0  ;;  %v1641_v0 = vpop.f32.mrb[43].mxu1  ;;  %10348 = vmatmul.mubr.msk.f32.gmra.mrb[138].mxu0 %vm1064_vm1, %v11367_v61 }
 0x1f0   : > { %v1843_v6 = vrot.slane %v1641_v0, 1  ;;  %3320 = vmatprep.mubr.f32.mxu0 %v16542_v21 }
 0x1f1   : > { %v1841_v59 = vsel %vm1768_vm10, %v1839_v22, %v1840_v56 }
 0x1f2   : > { %v13006_v19 = vadd.f32 %v1841_v59, %v1347_v42  ;;  %v1844_v7 = vsel %vm1768_vm10, %v1842_v26, %v1843_v6 }
 0x1f3   : > { %v13009_v1 = vadd.f32 %v1844_v7, %v1349_v47  ;;  %10349 = vmatmul.mubr.msk.f32.gmra.mrb[140].mxu0 %vm1064_vm1, %v11368_v37  ;;  %v11370_v37 = vld [vmem:[#allocation2 + $0x40] sm:$0xff] }
 0x1f4   : > { %3326 = vmatprep.mubr.f32.mxu0 %v16542_v21  ;;  %v1359_v30 = vpop.f32.mrb[44].mxu0  ;;  %v1645_v40 = vpop.f32.mrb[44].mxu1 }
 0x1f5   : > { %16572 = vst [vmem:[#allocation7_spill] sm:$0xff] %v13009_v1  ;;  %v1845_v8 = vrot.slane %v1645_v40, 1  ;;  %v1361_v49 = vpop.f32.mrb[45].mxu0  ;;  %v1647_v39 = vpop.f32.mrb[45].mxu1 }
 0x1f6   : > { %v1847_v11 = vrot.slane %v1647_v39, 1 }
 0x1f7   : > { %10350 = vmatmul.mubr.msk.f32.gmra.mrb[142].mxu0 %vm1064_vm1, %v11369_v46  ;;  %v1846_v42 = vsel %vm1768_vm10, %v1840_v56, %v1845_v8 }
 0x1f8   : > { %3332 = vmatprep.mubr.f32.mxu0 %v16542_v21  ;;  %v13016_v47 = vadd.f32 %v1846_v42, %v1353_v17  ;;  %v1848_v51 = vsel %vm1768_vm10, %v1843_v6, %v1847_v11  ;;  %v11371_v42 = vld [vmem:[#allocation2 + $0x48] sm:$0xff] }
 0x1f9   : > { %v13019_v22 = vadd.f32 %v1848_v51, %v1355_v55 }
 0x1fa   : > { %16573 = vst [vmem:[#allocation8_spill] sm:$0xff] %v13016_v47  ;;  %v1365_v0 = vpop.f32.mrb[46].mxu0  ;;  %v1651_v61 = vpop.f32.mrb[46].mxu1  ;;  %v11385_v47 = vld [vmem:[#allocation2 + $0xb8] sm:$0xff] }
 0x1fb   : > { %16574 = vst [vmem:[#allocation9_spill] sm:$0xff] %v13019_v22  ;;  %v1849_v26 = vrot.slane %v1651_v61, 1  ;;  %v1367_v59 = vpop.f32.mrb[47].mxu0  ;;  %v1653_v7 = vpop.f32.mrb[47].mxu1  ;;  %10351 = vmatmul.mubr.msk.f32.gmra.mrb[144].mxu0 %vm1064_vm1, %v11370_v37  ;;  %v11375_v22 = vld [vmem:[#allocation2 + $0x68] sm:$0xff] }
 0x1fc   : > { %v1851_v40 = vrot.slane %v1653_v7, 1  ;;  %3338 = vmatprep.mubr.f32.mxu0 %v16542_v21 }
 0x1fd   : > { %v1850_v56 = vsel %vm1768_vm10, %v1845_v8, %v1849_v26  ;;  %v13024_v39 = vadd.f32 %v1849_v26, %v1365_v0  ;;  %v11372_v8 = vld [vmem:[#allocation2 + $0x50] sm:$0xff] }
 0x1fe   : > { %v13026_v17 = vadd.f32 %v1850_v56, %v1359_v30  ;;  %v1852_v55 = vsel %vm1768_vm10, %v1847_v11, %v1851_v40  ;;  %v13029_v6 = vadd.f32 %v1851_v40, %v1367_v59  ;;  %v11373_v40 = vld [vmem:[#allocation2 + $0x58] sm:$0xff] }
 0x1ff   : > { %16575 = vst [vmem:[#allocation10_spill] sm:$0xff] %v13024_v39  ;;  %v13031_v46 = vadd.f32 %v1852_v55, %v1361_v49  ;;  %10352 = vmatmul.mubr.msk.f32.gmra.mrb[146].mxu0 %vm1064_vm1, %v11371_v42 }
 0x200   : > { %16576 = vst [vmem:[#allocation11_spill] sm:$0xff] %v13026_v17  ;;  %16577 = vst [vmem:[#allocation12_spill] sm:$0xff] %v13029_v6  ;;  %3344 = vmatprep.mubr.f32.mxu0 %v16542_v21  ;;  %v1371_v51 = vpop.f32.mrb[48].mxu0  ;;  %v1657_v61 = vpop.f32.mrb[48].mxu1  ;;  %v11374_v17 = vld [vmem:[#allocation2 + $0x60] sm:$0xff] }
 0x201   : > { %16578 = vst [vmem:[#allocation13_spill] sm:$0xff] %v13031_v46  ;;  %v1373_v7 = vpop.f32.mrb[49].mxu0  ;;  %v1659_v37 = vpop.f32.mrb[49].mxu1  ;;  %v1853_v0 = vrot.slane %v1657_v61, 1 }
 0x202   : > { %v1856_v56 = vrot.slane %v1659_v37, 1 }
 0x203   : > { %10353 = vmatmul.mubr.msk.f32.gmra.mrb[148].mxu0 %vm1064_vm1, %v11372_v8 }
 0x204   : > { %3350 = vmatprep.mubr.f32.mxu0 %v16542_v21 }
 0x206   : > { %v1377_v30 = vpop.f32.mrb[50].mxu0  ;;  %v1663_v11 = vpop.f32.mrb[50].mxu1 }
 0x207   : > { %v1854_v26 = vrot.slane %v1663_v11, 1  ;;  %v1379_v49 = vpop.f32.mrb[51].mxu0  ;;  %v1665_v59 = vpop.f32.mrb[51].mxu1  ;;  %10354 = vmatmul.mubr.msk.f32.gmra.mrb[150].mxu0 %vm1064_vm1, %v11373_v40 }
 0x208   : > { %v1857_v55 = vrot.slane %v1665_v59, 1  ;;  %3356 = vmatprep.mubr.f32.mxu0 %v16542_v21 }
 0x209   : > { %v1855_v42 = vsel %vm1768_vm10, %v1853_v0, %v1854_v26 }
 0x20a   : > { %v13040_v46 = vadd.f32 %v1855_v42, %v1371_v51  ;;  %v1858_v8 = vsel %vm1768_vm10, %v1856_v56, %v1857_v55 }
 0x20b   : > { %v13043_v6 = vadd.f32 %v1858_v8, %v1373_v7  ;;  %10355 = vmatmul.mubr.msk.f32.gmra.mrb[152].mxu0 %vm1064_vm1, %v11374_v17 }
 0x20c   : > { %16579 = vst [vmem:[#allocation14_spill] sm:$0xff] %v13040_v46  ;;  %3362 = vmatprep.mubr.f32.mxu0 %v16542_v21  ;;  %v1383_v61 = vpop.f32.mrb[52].mxu0  ;;  %v1669_v11 = vpop.f32.mrb[52].mxu1  ;;  %v11376_v46 = vld [vmem:[#allocation2 + $0x70] sm:$0xff] }
 0x20d   : > { %16580 = vst [vmem:[#allocation15_spill] sm:$0xff] %v13043_v6  ;;  %v1859_v40 = vrot.slane %v1669_v11, 1  ;;  %v1385_v37 = vpop.f32.mrb[53].mxu0  ;;  %v1671_v59 = vpop.f32.mrb[53].mxu1 }
 0x20e   : > { %v1861_v39 = vrot.slane %v1671_v59, 1 }
 0x20f   : > { %10356 = vmatmul.mubr.msk.f32.gmra.mrb[154].mxu0 %vm1064_vm1, %v11375_v22  ;;  %v1860_v51 = vsel %vm1768_vm10, %v1854_v26, %v1859_v40 }
 0x210   : > { %3368 = vmatprep.mubr.f32.mxu0 %v16542_v21  ;;  %v13050_v7 = vadd.f32 %v1860_v51, %v1377_v30  ;;  %v1862_v0 = vsel %vm1768_vm10, %v1857_v55, %v1861_v39 }
 0x211   : > { %v13053_v17 = vadd.f32 %v1862_v0, %v1379_v49  ;;  %v11377_v0 = vld [vmem:[#allocation2 + $0x78] sm:$0xff] }
 0x212   : > { %16581 = vst [vmem:[#allocation16_spill] sm:$0xff] %v13050_v7  ;;  %v1389_v56 = vpop.f32.mrb[54].mxu0  ;;  %v1675_v42 = vpop.f32.mrb[54].mxu1  ;;  %v11381_v7 = vld [vmem:[#allocation2 + $0x98] sm:$0xff] }
 0x213   : > { %16582 = vst [vmem:[#allocation17_spill] sm:$0xff] %v13053_v17  ;;  %v1863_v8 = vrot.slane %v1675_v42, 1  ;;  %v1391_v11 = vpop.f32.mrb[55].mxu0  ;;  %v1677_v6 = vpop.f32.mrb[55].mxu1  ;;  %10357 = vmatmul.mubr.msk.f32.gmra.mrb[156].mxu0 %vm1064_vm1, %v11376_v46 }
 0x214   : > { %v1865_v59 = vrot.slane %v1677_v6, 1  ;;  %3374 = vmatprep.mubr.f32.mxu0 %v16542_v21 }
 0x215   : > { %v1864_v22 = vsel %vm1768_vm10, %v1859_v40, %v1863_v8  ;;  %v13058_v26 = vadd.f32 %v1863_v8, %v1389_v56  ;;  %v11378_v40 = vld [vmem:[#allocation2 + $0x80] sm:$0xff] }
 0x216   : > { %v13060_v30 = vadd.f32 %v1864_v22, %v1383_v61  ;;  %v1866_v49 = vsel %vm1768_vm10, %v1861_v39, %v1865_v59  ;;  %v13063_v55 = vadd.f32 %v1865_v59, %v1391_v11  ;;  %v11379_v59 = vld [vmem:[#allocation2 + $0x88] sm:$0xff] }
 0x217   : > { %16583 = vst [vmem:[#allocation18_spill] sm:$0xff] %v13058_v26  ;;  %v13065_v51 = vadd.f32 %v1866_v49, %v1385_v37  ;;  %10358 = vmatmul.mubr.msk.f32.gmra.mrb[158].mxu0 %vm1064_vm1, %v11377_v0 }
 0x218   : > { %16584 = vst [vmem:[#allocation19_spill] sm:$0xff] %v13060_v30  ;;  %16585 = vst [vmem:[#allocation20_spill] sm:$0xff] %v13063_v55  ;;  %3380 = vmatprep.mubr.f32.mxu0 %v16542_v21  ;;  %v1395_v6 = vpop.f32.mrb[56].mxu0  ;;  %v1681_v46 = vpop.f32.mrb[56].mxu1  ;;  %v11380_v30 = vld [vmem:[#allocation2 + $0x90] sm:$0xff] }
 0x219   : > { %16586 = vst [vmem:[#allocation21_spill] sm:$0xff] %v13065_v51  ;;  %v1397_v42 = vpop.f32.mrb[57].mxu0  ;;  %v1683_v17 = vpop.f32.mrb[57].mxu1  ;;  %v1867_v56 = vrot.slane %v1681_v46, 1 }
 0x21a   : > { %v1870_v22 = vrot.slane %v1683_v17, 1 }
 0x21b   : > { %10359 = vmatmul.mubr.msk.f32.gmra.mrb[160].mxu0 %vm1064_vm1, %v11378_v40 }
 0x21c   : > { %3386 = vmatprep.mubr.f32.mxu0 %v16542_v21 }
 0x21e   : > { %v1401_v61 = vpop.f32.mrb[58].mxu0  ;;  %v1687_v39 = vpop.f32.mrb[58].mxu1 }
 0x21f   : > { %v1868_v8 = vrot.slane %v1687_v39, 1  ;;  %v1403_v37 = vpop.f32.mrb[59].mxu0  ;;  %v1689_v11 = vpop.f32.mrb[59].mxu1  ;;  %10360 = vmatmul.mubr.msk.f32.gmra.mrb[162].mxu0 %vm1064_vm1, %v11379_v59 }
 0x220   : > { %v1871_v49 = vrot.slane %v1689_v11, 1  ;;  %3392 = vmatprep.mubr.f32.mxu0 %v16542_v21 }
 0x221   : > { %v1869_v0 = vsel %vm1768_vm10, %v1867_v56, %v1868_v8 }
 0x222   : > { %v13074_v51 = vadd.f32 %v1869_v0, %v1395_v6  ;;  %v1872_v40 = vsel %vm1768_vm10, %v1870_v22, %v1871_v49 }
 0x223   : > { %v13077_v55 = vadd.f32 %v1872_v40, %v1397_v42  ;;  %10361 = vmatmul.mubr.msk.f32.gmra.mrb[164].mxu0 %vm1064_vm1, %v11380_v30 }
 0x224   : > { %16587 = vst [vmem:[#allocation22_spill] sm:$0xff] %v13074_v51  ;;  %3398 = vmatprep.mubr.f32.mxu0 %v16542_v21  ;;  %v1407_v46 = vpop.f32.mrb[60].mxu0  ;;  %v1693_v39 = vpop.f32.mrb[60].mxu1  ;;  %v11382_v51 = vld [vmem:[#allocation2 + $0xa0] sm:$0xff] }
 0x225   : > { %16588 = vst [vmem:[#allocation23_spill] sm:$0xff] %v13077_v55  ;;  %v1873_v59 = vrot.slane %v1693_v39, 1  ;;  %v1409_v17 = vpop.f32.mrb[61].mxu0  ;;  %v1695_v11 = vpop.f32.mrb[61].mxu1 }
 0x226   : > { %v1875_v26 = vrot.slane %v1695_v11, 1 }
 0x227   : > { %10362 = vmatmul.mubr.msk.f32.gmra.mrb[166].mxu0 %vm1064_vm1, %v11381_v7  ;;  %v1874_v6 = vsel %vm1768_vm10, %v1868_v8, %v1873_v59 }
 0x228   : > { %3404 = vmatprep.mubr.f32.mxu0 %v16542_v21  ;;  %v13084_v42 = vadd.f32 %v1874_v6, %v1401_v61  ;;  %v1876_v56 = vsel %vm1768_vm10, %v1871_v49, %v1875_v26 }
 0x229   : > { %v13087_v30 = vadd.f32 %v1876_v56, %v1403_v37 }
 0x22a   : > { %16589 = vst [vmem:[#allocation24_spill] sm:$0xff] %v13084_v42  ;;  %v1413_v22 = vpop.f32.mrb[62].mxu0  ;;  %v1699_v0 = vpop.f32.mrb[62].mxu1 }
 0x22b   : > { %16590 = vst [vmem:[#allocation25_spill] sm:$0xff] %v13087_v30  ;;  %v1877_v40 = vrot.slane %v1699_v0, 1  ;;  %v1415_v39 = vpop.f32.mrb[63].mxu0  ;;  %v1701_v55 = vpop.f32.mrb[63].mxu1  ;;  %10363 = vmatmul.mubr.msk.f32.gmra.mrb[168].mxu0 %vm1064_vm1, %v11382_v51  ;;  %v11383_v51 = vld [vmem:[#allocation2 + $0xa8] sm:$0xff] }
 0x22c   : > { %v1879_v11 = vrot.slane %v1701_v55, 1  ;;  %3410 = vmatprep.mubr.f32.mxu0 %v16542_v21 }
 0x22d   : > { %v1878_v7 = vsel %vm1768_vm10, %v1873_v59, %v1877_v40  ;;  %v13092_v8 = vadd.f32 %v1877_v40, %v1413_v22 }
 0x22e   : > { %v13094_v61 = vadd.f32 %v1878_v7, %v1407_v46  ;;  %v1880_v37 = vsel %vm1768_vm10, %v1875_v26, %v1879_v11  ;;  %v13097_v49 = vadd.f32 %v1879_v11, %v1415_v39  ;;  %v2104_v6 = vpop.f32.mrb[64].mxu0  ;;  %v2695_v56 = vpop.f32.mrb[64].mxu1  ;;  %v11384_v7 = vld [vmem:[#allocation2 + $0xb0] sm:$0xff] }
 0x22f   : > { %16591 = vst [vmem:[#allocation26_spill] sm:$0xff] %v13092_v8  ;;  %v13099_v0 = vadd.f32 %v1880_v37, %v1409_v17  ;;  %v2106_v30 = vpop.f32.mrb[65].mxu0  ;;  %v2697_v42 = vpop.f32.mrb[65].mxu1  ;;  %10364 = vmatmul.mubr.msk.f32.gmra.mrb[170].mxu0 %vm1064_vm1, %v11383_v51  ;;  %v2360_v46 = vrot.slane %v2104_v6, 2  ;;  %v2951_v22 = vrot.slane %v2695_v56, 3 }
 0x230   : > { %16592 = vst [vmem:[#allocation27_spill] sm:$0xff] %v13094_v61  ;;  %16593 = vst [vmem:[#allocation28_spill] sm:$0xff] %v13097_v49  ;;  %3416 = vmatprep.mubr.f32.mxu0 %v16542_v21  ;;  %v2363_v17 = vrot.slane %v2106_v30, 2  ;;  %v2954_v37 = vrot.slane %v2697_v42, 3 }
 0x231   : > { %16594 = vst [vmem:[#allocation29_spill] sm:$0xff] %v13099_v0 }
 0x232   : > { %v2110_v55 = vpop.f32.mrb[66].mxu0  ;;  %v2701_v59 = vpop.f32.mrb[66].mxu1 }
 0x233   : > { %v2361_v26 = vrot.slane %v2110_v55, 2  ;;  %v2952_v40 = vrot.slane %v2701_v59, 3  ;;  %v2112_v39 = vpop.f32.mrb[67].mxu0  ;;  %v2703_v11 = vpop.f32.mrb[67].mxu1  ;;  %10365 = vmatmul.mubr.msk.f32.gmra.mrb[172].mxu0 %vm1064_vm1, %v11384_v7 }
 0x234   : > { %v2364_v0 = vrot.slane %v2112_v39, 2  ;;  %v2955_v49 = vrot.slane %v2703_v11, 3  ;;  %3422 = vmatprep.mubr.f32.mxu0 %v16542_v21 }
 0x235   : > { %v2362_v51 = vsel %vm2359_vm11, %v2360_v46, %v2361_v26  ;;  %v2953_v61 = vsel %vm2950_vm12, %v2951_v22, %v2952_v40  ;;  %v16595_v22 = vmov 0.0  }
 0x236   : > { %v2536_v6 = vadd.f32 %v2362_v51, %v12743_v36  ;;  %v2365_v56 = vsel %vm2359_vm11, %v2363_v17, %v2364_v0  ;;  %v2956_v55 = vsel %vm2950_vm12, %v2954_v37, %v2955_v49  ;;  %v2116_v59 = vpop.f32.mrb[68].mxu0  ;;  %v2707_v8 = vpop.f32.mrb[68].mxu1 }
 0x237   : > { %v2537_v7 = vadd.f32 %v2365_v56, %v12747_v48  ;;  %v2366_v30 = vrot.slane %v2116_v59, 2  ;;  %v2957_v42 = vrot.slane %v2707_v8, 3  ;;  %v2118_v39 = vpop.f32.mrb[69].mxu0  ;;  %v2709_v11 = vpop.f32.mrb[69].mxu1  ;;  %10366 = vmatmul.mubr.msk.f32.gmra.mrb[174].mxu0 %vm1064_vm1, %v11385_v47 }
 0x238   : > { %v2368_v46 = vrot.slane %v2118_v39, 2  ;;  %v2959_v21 = vrot.slane %v2709_v11, 3  ;;  %3428 = vmatprep.mubr.f32.mxu0 %v16595_v22  ;;  %v13113_v36 = vadd.f32 %v2953_v61, %v2536_v6 }
 0x239   : > { %v2367_v17 = vsel %vm2359_vm11, %v2361_v26, %v2366_v30  ;;  %v2958_v37 = vsel %vm2950_vm12, %v2952_v40, %v2957_v42  ;;  %v13117_v51 = vadd.f32 %v2956_v55, %v2537_v7 }
 0x23a   : > { %16596 = vst [vmem:[#allocation30_spill] sm:$0xff] %v13113_v36  ;;  %v2538_v48 = vadd.f32 %v2367_v17, %v12757_v62  ;;  %v2369_v8 = vsel %vm2359_vm11, %v2364_v0, %v2368_v46  ;;  %v2960_v56 = vsel %vm2950_vm12, %v2955_v49, %v2959_v21  ;;  %v2122_v59 = vpop.f32.mrb[70].mxu0  ;;  %v2713_v47 = vpop.f32.mrb[70].mxu1  ;;  %v11386_v36 = vld [vmem:[#allocation2 + $0xc0] sm:$0xff] }
 0x23b   : > { %v2539_v39 = vadd.f32 %v2369_v8, %v12759_v2  ;;  %v2370_v11 = vrot.slane %v2122_v59, 2  ;;  %v2961_v1 = vrot.slane %v2713_v47, 3  ;;  %v2124_v61 = vpop.f32.mrb[71].mxu0  ;;  %v2715_v6 = vpop.f32.mrb[71].mxu1  ;;  %10367 = vmatmul.mubr.msk.f32.gmra.mrb[176].mxu0 %vm1064_vm1, %v11386_v36 }
 0x23c   : > { %v13124_v26 = vadd.f32 %v2958_v37, %v2538_v48  ;;  %v2372_v40 = vrot.slane %v2124_v61, 2  ;;  %v2963_v55 = vrot.slane %v2715_v6, 3  ;;  %3434 = vmatprep.mubr.f32.mxu0 %v16595_v22 }
 0x23d   : > { %v13127_v62 = vadd.f32 %v2960_v56, %v2539_v39  ;;  %v2371_v49 = vsel %vm2359_vm11, %v2366_v30, %v2370_v11  ;;  %v2542_v0 = vadd.f32 %v2370_v11, %v12768_v14  ;;  %v2962_v2 = vsel %vm2950_vm12, %v2957_v42, %v2961_v1  ;;  %v11387_v39 = vld [vmem:[#allocation2 + $0xc8] sm:$0xff] }
 0x23e   : > { %v2540_v7 = vadd.f32 %v2371_v49, %v12775_v32  ;;  %v2373_v17 = vsel %vm2359_vm11, %v2368_v46, %v2372_v40  ;;  %v2543_v36 = vadd.f32 %v2372_v40, %v12777_v18  ;;  %v2964_v37 = vsel %vm2950_vm12, %v2959_v21, %v2963_v55  ;;  %v2128_v48 = vpop.f32.mrb[72].mxu0  ;;  %v2719_v8 = vpop.f32.mrb[72].mxu1  ;;  %v11388_v40 = vld [vmem:[#allocation2 + $0xd0] sm:$0xff] }
 0x23f   : > { %v13136_v59 = vadd.f32 %v2961_v1, %v2542_v0  ;;  %v2541_v56 = vadd.f32 %v2373_v17, %v12781_v54  ;;  %v2130_v47 = vpop.f32.mrb[73].mxu0  ;;  %v2721_v30 = vpop.f32.mrb[73].mxu1  ;;  %10368 = vmatmul.mubr.msk.f32.gmra.mrb[178].mxu0 %vm1064_vm1, %v11387_v39  ;;  %v2374_v46 = vrot.slane %v2128_v48, 2  ;;  %v2965_v1 = vrot.slane %v2719_v8, 3 }
 0x240   : > { %v13140_v14 = vadd.f32 %v2962_v2, %v2540_v7  ;;  %v13142_v32 = vadd.f32 %v2963_v55, %v2543_v36  ;;  %3440 = vmatprep.mubr.f32.mxu0 %v16595_v22  ;;  %v2377_v49 = vrot.slane %v2130_v47, 2  ;;  %v2968_v0 = vrot.slane %v2721_v30, 3 }
 0x241   : > { %v13145_v18 = vadd.f32 %v2964_v37, %v2541_v56 }
 0x242   : > { %v2134_v21 = vpop.f32.mrb[74].mxu0  ;;  %v2725_v42 = vpop.f32.mrb[74].mxu1 }
 0x243   : > { %v2375_v11 = vrot.slane %v2134_v21, 2  ;;  %v2966_v61 = vrot.slane %v2725_v42, 3  ;;  %v2136_v54 = vpop.f32.mrb[75].mxu0  ;;  %v2727_v6 = vpop.f32.mrb[75].mxu1  ;;  %10369 = vmatmul.mubr.msk.f32.gmra.mrb[180].mxu0 %vm1064_vm1, %v11388_v40 }
 0x244   : > { %v2378_v2 = vrot.slane %v2136_v54, 2  ;;  %v2969_v55 = vrot.slane %v2727_v6, 3  ;;  %3446 = vmatprep.mubr.f32.mxu0 %v16595_v22  ;;  %v11389_v54 = vld [vmem:[#allocation2 + $0xd8] sm:$0xff] }
 0x245   : > { %v2376_v7 = vsel %vm2359_vm11, %v2374_v46, %v2375_v11  ;;  %v2967_v17 = vsel %vm2950_vm12, %v2965_v1, %v2966_v61 }
 0x246   : > { %v2544_v36 = vadd.f32 %v2376_v7, %v12801_v52  ;;  %v2379_v37 = vsel %vm2359_vm11, %v2377_v49, %v2378_v2  ;;  %v2970_v48 = vsel %vm2950_vm12, %v2968_v0, %v2969_v55  ;;  %v2140_v8 = vpop.f32.mrb[76].mxu0  ;;  %v2731_v56 = vpop.f32.mrb[76].mxu1 }
 0x247   : > { %v2545_v39 = vadd.f32 %v2379_v37, %v12805_v20  ;;  %v2380_v47 = vrot.slane %v2140_v8, 2  ;;  %v2971_v30 = vrot.slane %v2731_v56, 3  ;;  %v2142_v21 = vpop.f32.mrb[77].mxu0  ;;  %v2733_v42 = vpop.f32.mrb[77].mxu1  ;;  %10370 = vmatmul.mubr.msk.f32.gmra.mrb[182].mxu0 %vm1064_vm1, %v11389_v54 }
 0x248   : > { %v13156_v46 = vadd.f32 %v2967_v17, %v2544_v36  ;;  %v2382_v1 = vrot.slane %v2142_v21, 2  ;;  %v2973_v6 = vrot.slane %v2733_v42, 3  ;;  %3452 = vmatprep.mubr.f32.mxu0 %v16595_v22 }
 0x249   : > { %v13159_v52 = vadd.f32 %v2970_v48, %v2545_v39  ;;  %v2381_v40 = vsel %vm2359_vm11, %v2375_v11, %v2380_v47  ;;  %v2972_v49 = vsel %vm2950_vm12, %v2966_v61, %v2971_v30  ;;  %v11390_v48 = vld [vmem:[#allocation2 + $0xe0] sm:$0xff] }
 0x24a   : > { %v2546_v20 = vadd.f32 %v2381_v40, %v12815_v57  ;;  %v2383_v0 = vsel %vm2359_vm11, %v2378_v2, %v2382_v1  ;;  %v2974_v7 = vsel %vm2950_vm12, %v2969_v55, %v2973_v6  ;;  %v2146_v37 = vpop.f32.mrb[78].mxu0  ;;  %v2737_v8 = vpop.f32.mrb[78].mxu1 }
 0x24b   : > { %v2547_v17 = vadd.f32 %v2383_v0, %v12817_v63  ;;  %v2384_v36 = vrot.slane %v2146_v37, 2  ;;  %v2975_v56 = vrot.slane %v2737_v8, 3  ;;  %v2148_v21 = vpop.f32.mrb[79].mxu0  ;;  %v2739_v42 = vpop.f32.mrb[79].mxu1  ;;  %10371 = vmatmul.mubr.msk.f32.gmra.mrb[184].mxu0 %vm1064_vm1, %v11390_v48 }
 0x24c   : > { %v13168_v11 = vadd.f32 %v2972_v49, %v2546_v20  ;;  %v2386_v61 = vrot.slane %v2148_v21, 2  ;;  %v2977_v39 = vrot.slane %v2739_v42, 3  ;;  %3458 = vmatprep.mubr.f32.mxu0 %v16595_v22  ;;  %v11391_v21 = vld [vmem:[#allocation2 + $0xe8] sm:$0xff] }
 0x24d   : > { %v13171_v57 = vadd.f32 %v2974_v7, %v2547_v17  ;;  %v2385_v2 = vsel %vm2359_vm11, %v2380_v47, %v2384_v36  ;;  %v2550_v55 = vadd.f32 %v2384_v36, %v12826_v41  ;;  %v2976_v63 = vsel %vm2950_vm12, %v2971_v30, %v2975_v56 }
 0x24e   : > { %v2548_v54 = vadd.f32 %v2385_v2, %v12833_v4  ;;  %v2387_v40 = vsel %vm2359_vm11, %v2382_v1, %v2386_v61  ;;  %v2551_v0 = vadd.f32 %v2386_v61, %v12835_v10  ;;  %v2978_v49 = vsel %vm2950_vm12, %v2973_v6, %v2977_v39  ;;  %v2152_v20 = vpop.f32.mrb[80].mxu0  ;;  %v2743_v37 = vpop.f32.mrb[80].mxu1  ;;  %v11392_v61 = vld [vmem:[#allocation2 + $0xf0] sm:$0xff] }
 0x24f   : > { %v13180_v8 = vadd.f32 %v2975_v56, %v2550_v55  ;;  %v2549_v7 = vadd.f32 %v2387_v40, %v12839_v15  ;;  %v2154_v17 = vpop.f32.mrb[81].mxu0  ;;  %v2745_v47 = vpop.f32.mrb[81].mxu1  ;;  %10372 = vmatmul.mubr.msk.f32.gmra.mrb[186].mxu0 %vm1064_vm1, %v11391_v21  ;;  %v2388_v6 = vrot.slane %v2152_v20, 2  ;;  %v2979_v36 = vrot.slane %v2743_v37, 3 }
 0x250   : > { %v13184_v41 = vadd.f32 %v2976_v63, %v2548_v54  ;;  %v13186_v4 = vadd.f32 %v2977_v39, %v2551_v0  ;;  %3464 = vmatprep.mubr.f32.mxu0 %v16595_v22  ;;  %v2391_v2 = vrot.slane %v2154_v17, 2  ;;  %v2982_v55 = vrot.slane %v2745_v47, 3 }
 0x251   : > { %v13189_v10 = vadd.f32 %v2978_v49, %v2549_v7 }
 0x252   : > { %v2158_v30 = vpop.f32.mrb[82].mxu0  ;;  %v2749_v1 = vpop.f32.mrb[82].mxu1 }
 0x253   : > { %v2389_v56 = vrot.slane %v2158_v30, 2  ;;  %v2980_v42 = vrot.slane %v2749_v1, 3  ;;  %v2160_v15 = vpop.f32.mrb[83].mxu0  ;;  %v2751_v48 = vpop.f32.mrb[83].mxu1  ;;  %10373 = vmatmul.mubr.msk.f32.gmra.mrb[188].mxu0 %vm1064_vm1, %v11392_v61 }
 0x254   : > { %v2392_v63 = vrot.slane %v2160_v15, 2  ;;  %v2983_v39 = vrot.slane %v2751_v48, 3  ;;  %3470 = vmatprep.mubr.f32.mxu0 %v16595_v22  ;;  %v11393_v15 = vld [vmem:[#allocation2 + $0xf8] sm:$0xff] }
 0x255   : > { %v2390_v54 = vsel %vm2359_vm11, %v2388_v6, %v2389_v56  ;;  %v2981_v40 = vsel %vm2950_vm12, %v2979_v36, %v2980_v42 }
 0x256   : > { %v2552_v0 = vadd.f32 %v2390_v54, %v12859_v16  ;;  %v2393_v49 = vsel %vm2359_vm11, %v2391_v2, %v2392_v63  ;;  %v2984_v20 = vsel %vm2950_vm12, %v2982_v55, %v2983_v39  ;;  %v2164_v37 = vpop.f32.mrb[84].mxu0  ;;  %v2755_v7 = vpop.f32.mrb[84].mxu1 }
 0x257   : > { %v2553_v21 = vadd.f32 %v2393_v49, %v12863_v38  ;;  %v2394_v17 = vrot.slane %v2164_v37, 2  ;;  %v2985_v47 = vrot.slane %v2755_v7, 3  ;;  %v2166_v30 = vpop.f32.mrb[85].mxu0  ;;  %v2757_v1 = vpop.f32.mrb[85].mxu1  ;;  %10374 = vmatmul.mubr.msk.f32.gmra.mrb[190].mxu0 %vm1064_vm1, %v11393_v15 }
 0x258   : > { %v13200_v6 = vadd.f32 %v2981_v40, %v2552_v0  ;;  %v2396_v36 = vrot.slane %v2166_v30, 2  ;;  %v2987_v48 = vrot.slane %v2757_v1, 3  ;;  %6882 = vmatprep.mubr.f32.mxu0 %v16595_v22 }
 0x259   : > { %v13203_v16 = vadd.f32 %v2984_v20, %v2553_v21  ;;  %v2395_v61 = vsel %vm2359_vm11, %v2389_v56, %v2394_v17  ;;  %v2986_v2 = vsel %vm2950_vm12, %v2980_v42, %v2985_v47 }
 0x25a   : > { %v2554_v38 = vadd.f32 %v2395_v61, %v12873_v58  ;;  %v2397_v55 = vsel %vm2359_vm11, %v2392_v63, %v2396_v36  ;;  %v2988_v54 = vsel %vm2950_vm12, %v2983_v39, %v2987_v48  ;;  %v2170_v49 = vpop.f32.mrb[86].mxu0  ;;  %v2761_v37 = vpop.f32.mrb[86].mxu1 }
 0x25b   : > { %v2555_v40 = vadd.f32 %v2397_v55, %v12875_v28  ;;  %v2398_v0 = vrot.slane %v2170_v49, 2  ;;  %v2989_v7 = vrot.slane %v2761_v37, 3  ;;  %v2172_v30 = vpop.f32.mrb[87].mxu0  ;;  %v2763_v1 = vpop.f32.mrb[87].mxu1 }
 0x25c   : > { %v13211_v20 = vadd.f32 %v2986_v2, %v2554_v38  ;;  %v2400_v21 = vrot.slane %v2172_v30, 2  ;;  %v2991_v56 = vrot.slane %v2763_v1, 3 }
 0x25d   : > { %v13213_v15 = vadd.f32 %v2988_v54, %v2555_v40  ;;  %v2399_v58 = vsel %vm2359_vm11, %v2394_v17, %v2398_v0  ;;  %v2558_v42 = vadd.f32 %v2398_v0, %v12884_v13  ;;  %v2990_v63 = vsel %vm2950_vm12, %v2985_v47, %v2989_v7 }
 0x25e   : > { %v2556_v39 = vadd.f32 %v2399_v58, %v12886_v9  ;;  %v2401_v28 = vsel %vm2359_vm11, %v2396_v36, %v2400_v21  ;;  %v2559_v61 = vadd.f32 %v2400_v21, %v12889_v23  ;;  %v2992_v55 = vsel %vm2950_vm12, %v2987_v48, %v2991_v56  ;;  %v2176_v2 = vpop.f32.mrb[88].mxu0  ;;  %v2767_v38 = vpop.f32.mrb[88].mxu1 }
 0x25f   : > { %v13222_v49 = vadd.f32 %v2989_v7, %v2558_v42  ;;  %v2557_v54 = vadd.f32 %v2401_v28, %v12891_v24  ;;  %v2178_v37 = vpop.f32.mrb[89].mxu0  ;;  %v2769_v17 = vpop.f32.mrb[89].mxu1  ;;  %v2402_v0 = vrot.slane %v2176_v2, 2  ;;  %v2993_v23 = vrot.slane %v2767_v38, 3 }
 0x260   : > { %v13225_v40 = vadd.f32 %v2990_v63, %v2556_v39  ;;  %v13227_v13 = vadd.f32 %v2991_v56, %v2559_v61  ;;  %v2405_v7 = vrot.slane %v2178_v37, 2  ;;  %v2996_v58 = vrot.slane %v2769_v17, 3 }
 0x261   : > { %v13229_v47 = vadd.f32 %v2992_v55, %v2557_v54 }
 0x262   : > { %v2182_v9 = vpop.f32.mrb[90].mxu0  ;;  %v2773_v36 = vpop.f32.mrb[90].mxu1 }
 0x263   : > { %v2403_v30 = vrot.slane %v2182_v9, 2  ;;  %v2994_v48 = vrot.slane %v2773_v36, 3  ;;  %v2184_v1 = vpop.f32.mrb[91].mxu0  ;;  %v2775_v21 = vpop.f32.mrb[91].mxu1 }
 0x264   : > { %v2406_v42 = vrot.slane %v2184_v1, 2  ;;  %v2997_v24 = vrot.slane %v2775_v21, 3 }
 0x265   : > { %v2404_v28 = vsel %vm2359_vm11, %v2402_v0, %v2403_v30  ;;  %v2995_v63 = vsel %vm2950_vm12, %v2993_v23, %v2994_v48 }
 0x266   : > { %v2560_v56 = vadd.f32 %v2404_v28, %v12912_v35  ;;  %v2407_v39 = vsel %vm2359_vm11, %v2405_v7, %v2406_v42  ;;  %v2998_v61 = vsel %vm2950_vm12, %v2996_v58, %v2997_v24  ;;  %v2188_v55 = vpop.f32.mrb[92].mxu0  ;;  %v2779_v2 = vpop.f32.mrb[92].mxu1 }
 0x267   : > { %v2561_v38 = vadd.f32 %v2407_v39, %v12915_v43  ;;  %v2408_v54 = vrot.slane %v2188_v55, 2  ;;  %v2999_v9 = vrot.slane %v2779_v2, 3  ;;  %v2190_v37 = vpop.f32.mrb[93].mxu0  ;;  %v2781_v17 = vpop.f32.mrb[93].mxu1 }
 0x268   : > { %v13237_v36 = vadd.f32 %v2995_v63, %v2560_v56  ;;  %v2410_v1 = vrot.slane %v2190_v37, 2  ;;  %v3001_v0 = vrot.slane %v2781_v17, 3 }
 0x269   : > { %v13239_v21 = vadd.f32 %v2998_v61, %v2561_v38  ;;  %v2409_v35 = vsel %vm2359_vm11, %v2403_v30, %v2408_v54  ;;  %v3000_v23 = vsel %vm2950_vm12, %v2994_v48, %v2999_v9  ;;  %v6131_v30 = vld [vmem:[%s16531_s3 + $0x8] sm:$0xff] }
 0x26a   : > { %v2562_v7 = vadd.f32 %v2409_v35, %v12930_v53  ;;  %v2411_v58 = vsel %vm2359_vm11, %v2406_v42, %v2410_v1  ;;  %v3002_v43 = vsel %vm2950_vm12, %v2997_v24, %v3001_v0  ;;  %v2194_v28 = vpop.f32.mrb[94].mxu0  ;;  %v2785_v39 = vpop.f32.mrb[94].mxu1  ;;  %v6133_v53 = vld [vmem:[%s16531_s3 + $0x18] sm:$0xff] }
 0x26b   : > { %v2563_v55 = vadd.f32 %v2411_v58, %v12933_v60  ;;  %v2412_v63 = vrot.slane %v2194_v28, 2  ;;  %v3003_v56 = vrot.slane %v2785_v39, 3  ;;  %v2196_v2 = vpop.f32.mrb[95].mxu0  ;;  %v2787_v37 = vpop.f32.mrb[95].mxu1  ;;  %v11063_v61 = vpack.c.bf16 %v6133_v53, %v6131_v30 }
 0x26c   : > { %v13253_v48 = vadd.f32 %v3000_v23, %v2562_v7  ;;  %v2414_v42 = vrot.slane %v2196_v2, 2  ;;  %v3005_v24 = vrot.slane %v2787_v37, 3 }
 0x26d   : > { %v13255_v38 = vadd.f32 %v3002_v43, %v2563_v55  ;;  %v2413_v60 = vsel %vm2359_vm11, %v2408_v54, %v2412_v63  ;;  %v2566_v17 = vadd.f32 %v2412_v63, %v12942_v31  ;;  %v3004_v35 = vsel %vm2950_vm12, %v2999_v9, %v3003_v56  ;;  %11064 = vmatprep.subr.bf16.mxu1 %v11063_v61  ;;  %v6130_v43 = vld [vmem:[%s16531_s3] sm:$0xff]  ;;  %v6132_v31 = vld [vmem:[%s16531_s3 + $0x10] sm:$0xff] }
 0x26e   : > { %v2564_v58 = vadd.f32 %v2413_v60, %v12944_v25  ;;  %v2415_v28 = vsel %vm2359_vm11, %v2410_v1, %v2414_v42  ;;  %v2567_v39 = vadd.f32 %v2414_v42, %v12947_v44  ;;  %v3006_v23 = vsel %vm2950_vm12, %v3001_v0, %v3005_v24  ;;  %v2200_v7 = vpop.f32.mrb[96].mxu0  ;;  %v2791_v2 = vpop.f32.mrb[96].mxu1 }
 0x26f   : > { %v13270_v54 = vadd.f32 %v3003_v56, %v2566_v17  ;;  %v2565_v25 = vadd.f32 %v2415_v28, %v12949_v27  ;;  %v2202_v9 = vpop.f32.mrb[97].mxu0  ;;  %v2793_v1 = vpop.f32.mrb[97].mxu1  ;;  %v11065_v63 = vpack.c.bf16 %v6132_v31, %v6130_v43  ;;  %v2416_v53 = vrot.slane %v2200_v7, 2 }
 0x270   : > { %v13273_v44 = vadd.f32 %v3004_v35, %v2564_v58  ;;  %v13275_v0 = vadd.f32 %v3005_v24, %v2567_v39  ;;  %v3007_v42 = vrot.slane %v2791_v2, 3  ;;  %v2419_v17 = vrot.slane %v2202_v9, 2 }
 0x271   : > { %16597 = vst [vmem:[#allocation31_spill] sm:$0xff] %v13270_v54  ;;  %v13277_v55 = vadd.f32 %v3006_v23, %v2565_v25  ;;  %11066 = vmatpush1.bf16.msra.mxu1 %v11065_v63  ;;  %v3010_v27 = vrot.slane %v2793_v1, 3 }
 0x272   : > { %v2206_v37 = vpop.f32.mrb[98].mxu0  ;;  %v2797_v30 = vpop.f32.mrb[98].mxu1 }
 0x273   : > { %v2417_v61 = vrot.slane %v2206_v37, 2  ;;  %v3008_v60 = vrot.slane %v2797_v30, 3  ;;  %v2208_v22 = vpop.f32.mrb[99].mxu0  ;;  %v2799_v56 = vpop.f32.mrb[99].mxu1 }
 0x274   : > { %v2420_v28 = vrot.slane %v2208_v22, 2  ;;  %v3011_v54 = vrot.slane %v2799_v56, 3 }
 0x275   : > { %v2418_v35 = vsel %vm2359_vm11, %v2416_v53, %v2417_v61  ;;  %v3009_v24 = vsel %vm2950_vm12, %v3007_v42, %v3008_v60 }
 0x276   : > { %v2568_v58 = vadd.f32 %v2418_v35, %v12970_v45  ;;  %v2421_v39 = vsel %vm2359_vm11, %v2419_v17, %v2420_v28  ;;  %v3012_v23 = vsel %vm2950_vm12, %v3010_v27, %v3011_v54  ;;  %v2212_v7 = vpop.f32.mrb[100].mxu0  ;;  %v2803_v2 = vpop.f32.mrb[100].mxu1 }
 0x277   : > { %v2569_v43 = vadd.f32 %v2421_v39, %v12973_v50  ;;  %v2422_v31 = vrot.slane %v2212_v7, 2  ;;  %v3013_v25 = vrot.slane %v2803_v2, 3  ;;  %v2214_v9 = vpop.f32.mrb[101].mxu0  ;;  %v2805_v1 = vpop.f32.mrb[101].mxu1 }
 0x278   : > { %v13285_v22 = vadd.f32 %v3009_v24, %v2568_v58  ;;  %v2424_v63 = vrot.slane %v2214_v9, 2  ;;  %v3015_v37 = vrot.slane %v2805_v1, 3 }
 0x279   : > { %v13287_v30 = vadd.f32 %v3012_v23, %v2569_v43  ;;  %v2423_v45 = vsel %vm2359_vm11, %v2417_v61, %v2422_v31  ;;  %v3014_v53 = vsel %vm2950_vm12, %v3008_v60, %v3013_v25 }
 0x27a   : > { %v2570_v42 = vadd.f32 %v2423_v45, %v12982_v5  ;;  %v2425_v56 = vsel %vm2359_vm11, %v2420_v28, %v2424_v63  ;;  %v3016_v50 = vsel %vm2950_vm12, %v3011_v54, %v3015_v37  ;;  %v2218_v17 = vpop.f32.mrb[102].mxu0  ;;  %v2809_v27 = vpop.f32.mrb[102].mxu1 }
 0x27b   : > { %v2571_v35 = vadd.f32 %v2425_v56, %v12985_v29  ;;  %v2426_v24 = vrot.slane %v2218_v17, 2  ;;  %v3017_v58 = vrot.slane %v2809_v27, 3  ;;  %v2220_v39 = vpop.f32.mrb[103].mxu0  ;;  %v2811_v7 = vpop.f32.mrb[103].mxu1 }
 0x27c   : > { %v13295_v23 = vadd.f32 %v3014_v53, %v2570_v42  ;;  %v2428_v2 = vrot.slane %v2220_v39, 2  ;;  %v3019_v61 = vrot.slane %v2811_v7, 3 }
 0x27d   : > { %v13297_v43 = vadd.f32 %v3016_v50, %v2571_v35  ;;  %v2427_v5 = vsel %vm2359_vm11, %v2422_v31, %v2426_v24  ;;  %v2574_v60 = vadd.f32 %v2426_v24, %v12990_v3  ;;  %v3018_v54 = vsel %vm2950_vm12, %v3013_v25, %v3017_v58  ;;  %v6135_v3 = vld [vmem:[%s16531_s3 + $0x28] sm:$0xff] }
 0x27e   : > { %v2572_v28 = vadd.f32 %v2427_v5, %v12992_v33  ;;  %v2429_v29 = vsel %vm2359_vm11, %v2424_v63, %v2428_v2  ;;  %v2575_v9 = vadd.f32 %v2428_v2, %v12995_v12  ;;  %v3020_v1 = vsel %vm2950_vm12, %v3015_v37, %v3019_v61  ;;  %v2224_v45 = vpop.f32.mrb[104].mxu0  ;;  %v2815_v53 = vpop.f32.mrb[104].mxu1  ;;  %v6137_v33 = vld [vmem:[%s16531_s3 + $0x38] sm:$0xff]  ;;  %v6134_v63 = vld [vmem:[%s16531_s3 + $0x20] sm:$0xff] }
 0x27f   : > { %v13306_v42 = vadd.f32 %v3017_v58, %v2574_v60  ;;  %v2573_v56 = vadd.f32 %v2429_v29, %v12997_v34  ;;  %v2226_v50 = vpop.f32.mrb[105].mxu0  ;;  %v2817_v31 = vpop.f32.mrb[105].mxu1  ;;  %v6136_v34 = vld [vmem:[%s16531_s3 + $0x30] sm:$0xff]  ;;  %v11067_v17 = vpack.c.bf16 %v6137_v33, %v6135_v3  ;;  %v2430_v58 = vrot.slane %v2224_v45, 2 }
 0x280   : > { %v13315_v25 = vadd.f32 %v3018_v54, %v2572_v28  ;;  %v13317_v12 = vadd.f32 %v3019_v61, %v2575_v9  ;;  %v11069_v27 = vpack.c.bf16 %v6136_v34, %v6134_v63  ;;  %v3021_v39 = vrot.slane %v2815_v53, 3  ;;  %v16598_v63 = vld [vmem:[#allocation7_spill] sm:$0xff] }
 0x281   : > { %v13325_v37 = vadd.f32 %v3020_v1, %v2573_v56  ;;  %11068 = vmatprep.subr.bf16.mxu1 %v11067_v17  ;;  %v2433_v60 = vrot.slane %v2226_v50, 2  ;;  %v3024_v54 = vrot.slane %v2817_v31, 3 }
 0x282   : > { %v2230_v35 = vpop.f32.mrb[106].mxu0  ;;  %v2821_v24 = vpop.f32.mrb[106].mxu1  ;;  %11070 = vmatpush1.bf16.msra.mxu1 %v11069_v27 }
 0x283   : > { %v2431_v7 = vrot.slane %v2230_v35, 2  ;;  %v3022_v2 = vrot.slane %v2821_v24, 3  ;;  %v2232_v61 = vpop.f32.mrb[107].mxu0  ;;  %v2823_v5 = vpop.f32.mrb[107].mxu1 }
 0x284   : > { %v2434_v28 = vrot.slane %v2232_v61, 2  ;;  %v3025_v29 = vrot.slane %v2823_v5, 3  ;;  %v16601_v5 = vld [vmem:[#allocation8_spill] sm:$0xff] }
 0x285   : > { %v2432_v9 = vsel %vm2359_vm11, %v2430_v58, %v2431_v7  ;;  %v3023_v1 = vsel %vm2950_vm12, %v3021_v39, %v3022_v2 }
 0x286   : > { %v2576_v56 = vadd.f32 %v2432_v9, %v13006_v19  ;;  %v2435_v3 = vsel %vm2359_vm11, %v2433_v60, %v2434_v28  ;;  %v3026_v45 = vsel %vm2950_vm12, %v3024_v54, %v3025_v29  ;;  %v2236_v53 = vpop.f32.mrb[108].mxu0  ;;  %v2827_v33 = vpop.f32.mrb[108].mxu1 }
 0x287   : > { %v2577_v34 = vadd.f32 %v2435_v3, %v16598_v63  ;;  %v2436_v17 = vrot.slane %v2236_v53, 2  ;;  %v3027_v50 = vrot.slane %v2827_v33, 3  ;;  %v2238_v31 = vpop.f32.mrb[109].mxu0  ;;  %v2829_v35 = vpop.f32.mrb[109].mxu1  ;;  %v16602_v33 = vld [vmem:[#allocation9_spill] sm:$0xff] }
 0x288   : > { %v13333_v24 = vadd.f32 %v3023_v1, %v2576_v56  ;;  %v2438_v27 = vrot.slane %v2238_v31, 2  ;;  %v3029_v58 = vrot.slane %v2829_v35, 3 }
 0x289   : > { %v13335_v61 = vadd.f32 %v3026_v45, %v2577_v34  ;;  %v2437_v19 = vsel %vm2359_vm11, %v2431_v7, %v2436_v17  ;;  %v3028_v39 = vsel %vm2950_vm12, %v3022_v2, %v3027_v50 }
 0x28a   : > { %16599 = vst [vmem:[#allocation7_spill] sm:$0xff] %v13333_v24  ;;  %v2578_v60 = vadd.f32 %v2437_v19, %v16601_v5  ;;  %v2439_v54 = vsel %vm2359_vm11, %v2434_v28, %v2438_v27  ;;  %v3030_v9 = vsel %vm2950_vm12, %v3025_v29, %v3029_v58  ;;  %v2242_v3 = vpop.f32.mrb[110].mxu0  ;;  %v2833_v53 = vpop.f32.mrb[110].mxu1  ;;  %v16605_v19 = vld [vmem:[#allocation10_spill] sm:$0xff]  ;;  %v16606_v5 = vld [vmem:[#allocation11_spill] sm:$0xff] }
 0x28b   : > { %16600 = vst [vmem:[#allocation32_spill] sm:$0xff] %v13335_v61  ;;  %v2579_v63 = vadd.f32 %v2439_v54, %v16602_v33  ;;  %v2440_v1 = vrot.slane %v2242_v3, 2  ;;  %v3031_v56 = vrot.slane %v2833_v53, 3  ;;  %v2244_v31 = vpop.f32.mrb[111].mxu0  ;;  %v2835_v35 = vpop.f32.mrb[111].mxu1  ;;  %v16607_v3 = vld [vmem:[#allocation12_spill] sm:$0xff] }
 0x28c   : > { %v13343_v45 = vadd.f32 %v3028_v39, %v2578_v60  ;;  %v2442_v34 = vrot.slane %v2244_v31, 2  ;;  %v3033_v7 = vrot.slane %v2835_v35, 3 }
 0x28d   : > { %v13345_v61 = vadd.f32 %v3030_v9, %v2579_v63  ;;  %v2441_v2 = vsel %vm2359_vm11, %v2436_v17, %v2440_v1  ;;  %v2582_v28 = vadd.f32 %v2440_v1, %v16605_v19  ;;  %v3032_v29 = vsel %vm2950_vm12, %v3027_v50, %v3031_v56  ;;  %v16609_v9 = vld [vmem:[#allocation13_spill] sm:$0xff]  ;;  %v6139_v50 = vld [vmem:[%s16531_s3 + $0x48] sm:$0xff] }
 0x28e   : > { %16603 = vst [vmem:[#allocation8_spill] sm:$0xff] %v13343_v45  ;;  %v2580_v24 = vadd.f32 %v2441_v2, %v16606_v5  ;;  %v2443_v54 = vsel %vm2359_vm11, %v2438_v27, %v2442_v34  ;;  %v2583_v53 = vadd.f32 %v2442_v34, %v16607_v3  ;;  %v3034_v33 = vsel %vm2950_vm12, %v3029_v58, %v3033_v7  ;;  %v2248_v39 = vpop.f32.mrb[112].mxu0  ;;  %v2839_v60 = vpop.f32.mrb[112].mxu1  ;;  %v6141_v27 = vld [vmem:[%s16531_s3 + $0x58] sm:$0xff]  ;;  %v6138_v58 = vld [vmem:[%s16531_s3 + $0x40] sm:$0xff] }
 0x28f   : > { %16604 = vst [vmem:[#allocation9_spill] sm:$0xff] %v13345_v61  ;;  %v13354_v31 = vadd.f32 %v3031_v56, %v2582_v28  ;;  %v2581_v63 = vadd.f32 %v2443_v54, %v16609_v9  ;;  %v2250_v35 = vpop.f32.mrb[113].mxu0  ;;  %v2841_v17 = vpop.f32.mrb[113].mxu1  ;;  %v6140_v56 = vld [vmem:[%s16531_s3 + $0x50] sm:$0xff]  ;;  %v11071_v19 = vpack.c.bf16 %v6141_v27, %v6139_v50  ;;  %v2444_v3 = vrot.slane %v2248_v39, 2 }
 0x290   : > { %v13363_v1 = vadd.f32 %v3032_v29, %v2580_v24  ;;  %v13365_v34 = vadd.f32 %v3033_v7, %v2583_v53  ;;  %v11073_v28 = vpack.c.bf16 %v6140_v56, %v6138_v58  ;;  %v3035_v9 = vrot.slane %v2839_v60, 3  ;;  %v16614_v56 = vld [vmem:[#allocation15_spill] sm:$0xff] }
 0x291   : > { %16608 = vst [vmem:[#allocation10_spill] sm:$0xff] %v13354_v31  ;;  %v13373_v2 = vadd.f32 %v3034_v33, %v2581_v63  ;;  %11072 = vmatprep.subr.bf16.mxu1 %v11071_v19  ;;  %v16613_v63 = vld [vmem:[#allocation14_spill] sm:$0xff] }
 0x292   : > { %16610 = vst [vmem:[#allocation11_spill] sm:$0xff] %v13363_v1  ;;  %16611 = vst [vmem:[#allocation12_spill] sm:$0xff] %v13365_v34  ;;  %v2254_v5 = vpop.f32.mrb[114].mxu0  ;;  %v2845_v54 = vpop.f32.mrb[114].mxu1  ;;  %v2447_v34 = vrot.slane %v2250_v35, 2  ;;  %v3038_v1 = vrot.slane %v2841_v17, 3  ;;  %11074 = vmatpush1.bf16.msra.mxu1 %v11073_v28 }
 0x293   : > { %16612 = vst [vmem:[#allocation13_spill] sm:$0xff] %v13373_v2  ;;  %v2445_v24 = vrot.slane %v2254_v5, 2  ;;  %v3036_v29 = vrot.slane %v2845_v54, 3  ;;  %v2256_v7 = vpop.f32.mrb[115].mxu0  ;;  %v2847_v53 = vpop.f32.mrb[115].mxu1 }
 0x294   : > { %v2448_v31 = vrot.slane %v2256_v7, 2  ;;  %v3039_v61 = vrot.slane %v2847_v53, 3 }
 0x295   : > { %v2446_v45 = vsel %vm2359_vm11, %v2444_v3, %v2445_v24  ;;  %v3037_v33 = vsel %vm2950_vm12, %v3035_v9, %v3036_v29  ;;  %v16617_v9 = vld [vmem:[#allocation16_spill] sm:$0xff] }
 0x296   : > { %v2584_v50 = vadd.f32 %v2446_v45, %v16613_v63  ;;  %v2449_v27 = vsel %vm2359_vm11, %v2447_v34, %v2448_v31  ;;  %v3040_v39 = vsel %vm2950_vm12, %v3038_v1, %v3039_v61  ;;  %v2260_v60 = vpop.f32.mrb[116].mxu0  ;;  %v2851_v58 = vpop.f32.mrb[116].mxu1 }
 0x297   : > { %v2585_v5 = vadd.f32 %v2449_v27, %v16614_v56  ;;  %v2450_v19 = vrot.slane %v2260_v60, 2  ;;  %v3041_v35 = vrot.slane %v2851_v58, 3  ;;  %v2262_v17 = vpop.f32.mrb[117].mxu0  ;;  %v2853_v54 = vpop.f32.mrb[117].mxu1  ;;  %v16618_v56 = vld [vmem:[#allocation17_spill] sm:$0xff] }
 0x298   : > { %v13381_v7 = vadd.f32 %v3037_v33, %v2584_v50  ;;  %v2452_v28 = vrot.slane %v2262_v17, 2  ;;  %v3043_v3 = vrot.slane %v2853_v54, 3 }
 0x299   : > { %v13383_v53 = vadd.f32 %v3040_v39, %v2585_v5  ;;  %v2451_v45 = vsel %vm2359_vm11, %v2445_v24, %v2450_v19  ;;  %v3042_v34 = vsel %vm2950_vm12, %v3036_v29, %v3041_v35 }
 0x29a   : > { %16615 = vst [vmem:[#allocation14_spill] sm:$0xff] %v13381_v7  ;;  %v2586_v1 = vadd.f32 %v2451_v45, %v16617_v9  ;;  %v2453_v63 = vsel %vm2359_vm11, %v2448_v31, %v2452_v28  ;;  %v3044_v27 = vsel %vm2950_vm12, %v3039_v61, %v3043_v3  ;;  %v2266_v60 = vpop.f32.mrb[118].mxu0  ;;  %v2857_v58 = vpop.f32.mrb[118].mxu1  ;;  %v16621_v45 = vld [vmem:[#allocation18_spill] sm:$0xff]  ;;  %v16622_v9 = vld [vmem:[#allocation19_spill] sm:$0xff] }
 0x29b   : > { %16616 = vst [vmem:[#allocation15_spill] sm:$0xff] %v13383_v53  ;;  %v2587_v2 = vadd.f32 %v2453_v63, %v16618_v56  ;;  %v2454_v33 = vrot.slane %v2266_v60, 2  ;;  %v3045_v50 = vrot.slane %v2857_v58, 3  ;;  %v2268_v17 = vpop.f32.mrb[119].mxu0  ;;  %v2859_v54 = vpop.f32.mrb[119].mxu1  ;;  %v16623_v60 = vld [vmem:[#allocation20_spill] sm:$0xff] }
 0x29c   : > { %v13391_v39 = vadd.f32 %v3042_v34, %v2586_v1  ;;  %v2456_v5 = vrot.slane %v2268_v17, 2  ;;  %v3047_v24 = vrot.slane %v2859_v54, 3 }
 0x29d   : > { %v13393_v53 = vadd.f32 %v3044_v27, %v2587_v2  ;;  %v2455_v29 = vsel %vm2359_vm11, %v2450_v19, %v2454_v33  ;;  %v2590_v31 = vadd.f32 %v2454_v33, %v16621_v45  ;;  %v3046_v61 = vsel %vm2950_vm12, %v3041_v35, %v3045_v50  ;;  %v16625_v2 = vld [vmem:[#allocation21_spill] sm:$0xff]  ;;  %v6143_v35 = vld [vmem:[%s16531_s3 + $0x68] sm:$0xff] }
 0x29e   : > { %16619 = vst [vmem:[#allocation16_spill] sm:$0xff] %v13391_v39  ;;  %v2588_v7 = vadd.f32 %v2455_v29, %v16622_v9  ;;  %v2457_v63 = vsel %vm2359_vm11, %v2452_v28, %v2456_v5  ;;  %v2591_v58 = vadd.f32 %v2456_v5, %v16623_v60  ;;  %v3048_v56 = vsel %vm2950_vm12, %v3043_v3, %v3047_v24  ;;  %v2272_v34 = vpop.f32.mrb[120].mxu0  ;;  %v2863_v1 = vpop.f32.mrb[120].mxu1  ;;  %v6145_v28 = vld [vmem:[%s16531_s3 + $0x78] sm:$0xff]  ;;  %v6142_v3 = vld [vmem:[%s16531_s3 + $0x60] sm:$0xff] }
 0x29f   : > { %16620 = vst [vmem:[#allocation17_spill] sm:$0xff] %v13393_v53  ;;  %v13402_v17 = vadd.f32 %v3045_v50, %v2590_v31  ;;  %v2589_v27 = vadd.f32 %v2457_v63, %v16625_v2  ;;  %v2274_v54 = vpop.f32.mrb[121].mxu0  ;;  %v2865_v19 = vpop.f32.mrb[121].mxu1  ;;  %v11075_v5 = vpack.c.bf16 %v6145_v28, %v6143_v35  ;;  %v2458_v31 = vrot.slane %v2272_v34, 2  ;;  %v16629_v28 = vld [vmem:[#allocation22_spill] sm:$0xff] }
 0x2a0   : > { %v13405_v53 = vadd.f32 %v3046_v61, %v2588_v7  ;;  %v13407_v33 = vadd.f32 %v3047_v24, %v2591_v58  ;;  %v6144_v7 = vld [vmem:[%s16531_s3 + $0x70] sm:$0xff]  ;;  %v3049_v61 = vrot.slane %v2863_v1, 3  ;;  %v2461_v2 = vrot.slane %v2274_v54, 2 }
 0x2a1   : > { %16624 = vst [vmem:[#allocation18_spill] sm:$0xff] %v13402_v17  ;;  %v13418_v50 = vadd.f32 %v3048_v56, %v2589_v27  ;;  %v11077_v45 = vpack.c.bf16 %v6144_v7, %v6142_v3  ;;  %11076 = vmatprep.subr.bf16.mxu1 %v11075_v5 }
 0x2a2   : > { %16626 = vst [vmem:[#allocation19_spill] sm:$0xff] %v13405_v53  ;;  %16627 = vst [vmem:[#allocation20_spill] sm:$0xff] %v13407_v33  ;;  %v2278_v24 = vpop.f32.mrb[122].mxu0  ;;  %v2869_v29 = vpop.f32.mrb[122].mxu1  ;;  %v3052_v33 = vrot.slane %v2865_v19, 3 }
 0x2a3   : > { %16628 = vst [vmem:[#allocation21_spill] sm:$0xff] %v13418_v50  ;;  %v2459_v9 = vrot.slane %v2278_v24, 2  ;;  %v3050_v63 = vrot.slane %v2869_v29, 3  ;;  %v2280_v60 = vpop.f32.mrb[123].mxu0  ;;  %v2871_v58 = vpop.f32.mrb[123].mxu1  ;;  %11078 = vmatpush1.bf16.msra.mxu1 %v11077_v45  ;;  %v16630_v24 = vld [vmem:[#allocation23_spill] sm:$0xff] }
 0x2a4   : > { %v2462_v53 = vrot.slane %v2280_v60, 2  ;;  %v3053_v56 = vrot.slane %v2871_v58, 3 }
 0x2a5   : > { %v2460_v27 = vsel %vm2359_vm11, %v2458_v31, %v2459_v9  ;;  %v3051_v35 = vsel %vm2950_vm12, %v3049_v61, %v3050_v63 }
 0x2a6   : > { %v2592_v50 = vadd.f32 %v2460_v27, %v16629_v28  ;;  %v2463_v3 = vsel %vm2359_vm11, %v2461_v2, %v2462_v53  ;;  %v3054_v34 = vsel %vm2950_vm12, %v3052_v33, %v3053_v56  ;;  %v2284_v1 = vpop.f32.mrb[124].mxu0  ;;  %v2875_v7 = vpop.f32.mrb[124].mxu1  ;;  %v16633_v27 = vld [vmem:[#allocation24_spill] sm:$0xff] }
 0x2a7   : > { %v2593_v29 = vadd.f32 %v2463_v3, %v16630_v24  ;;  %v2464_v5 = vrot.slane %v2284_v1, 2  ;;  %v3055_v54 = vrot.slane %v2875_v7, 3  ;;  %v2286_v19 = vpop.f32.mrb[125].mxu0  ;;  %v2877_v60 = vpop.f32.mrb[125].mxu1  ;;  %v16634_v24 = vld [vmem:[#allocation25_spill] sm:$0xff] }
 0x2a8   : > { %v13429_v58 = vadd.f32 %v3051_v35, %v2592_v50  ;;  %v2466_v45 = vrot.slane %v2286_v19, 2  ;;  %v3057_v31 = vrot.slane %v2877_v60, 3 }
 0x2a9   : > { %v13431_v17 = vadd.f32 %v3054_v34, %v2593_v29  ;;  %v2465_v61 = vsel %vm2359_vm11, %v2459_v9, %v2464_v5  ;;  %v3056_v2 = vsel %vm2950_vm12, %v3050_v63, %v3055_v54 }
 0x2aa   : > { %16631 = vst [vmem:[#allocation22_spill] sm:$0xff] %v13429_v58  ;;  %v2594_v33 = vadd.f32 %v2465_v61, %v16633_v27  ;;  %v2467_v28 = vsel %vm2359_vm11, %v2462_v53, %v2466_v45  ;;  %v3058_v3 = vsel %vm2950_vm12, %v3053_v56, %v3057_v31  ;;  %v2290_v1 = vpop.f32.mrb[126].mxu0  ;;  %v2881_v7 = vpop.f32.mrb[126].mxu1  ;;  %v16635_v61 = vld [vmem:[#allocation26_spill] sm:$0xff]  ;;  %v16636_v27 = vld [vmem:[#allocation27_spill] sm:$0xff] }
 0x2ab   : > { %16632 = vst [vmem:[#allocation23_spill] sm:$0xff] %v13431_v17  ;;  %v2595_v39 = vadd.f32 %v2467_v28, %v16634_v24  ;;  %v2468_v50 = vrot.slane %v2290_v1, 2  ;;  %v3059_v35 = vrot.slane %v2881_v7, 3  ;;  %v2292_v19 = vpop.f32.mrb[127].mxu0  ;;  %v2883_v60 = vpop.f32.mrb[127].mxu1  ;;  %v16637_v1 = vld [vmem:[#allocation28_spill] sm:$0xff] }
 0x2ac   : > { %v13439_v34 = vadd.f32 %v3056_v2, %v2594_v33  ;;  %v2470_v29 = vrot.slane %v2292_v19, 2  ;;  %v3061_v9 = vrot.slane %v2883_v60, 3  ;;  %v16638_v19 = vld [vmem:[#allocation29_spill] sm:$0xff] }
 0x2ad   : > { %v13441_v17 = vadd.f32 %v3058_v3, %v2595_v39  ;;  %v2469_v63 = vsel %vm2359_vm11, %v2464_v5, %v2468_v50  ;;  %v2598_v53 = vadd.f32 %v2468_v50, %v16635_v61  ;;  %v3060_v56 = vsel %vm2950_vm12, %v3055_v54, %v3059_v35  ;;  %v10565_v5 = vld [vmem:[%s16531_s3 + $0x1c8] sm:$0xff]  ;;  %v10567_v54 = vld [vmem:[%s16531_s3 + $0x1d8] sm:$0xff] }
 0x2ae   : > { %v2596_v58 = vadd.f32 %v2469_v63, %v16636_v27  ;;  %v2471_v28 = vsel %vm2359_vm11, %v2466_v45, %v2470_v29  ;;  %v2599_v7 = vadd.f32 %v2470_v29, %v16637_v1  ;;  %v3062_v24 = vsel %vm2950_vm12, %v3057_v31, %v3061_v9  ;;  %v3286_v2 = vpop.f32.mrb[128].mxu0  ;;  %v10564_v31 = vld [vmem:[%s16531_s3 + $0x1c0] sm:$0xff]  ;;  %v10569_v1 = vld [vmem:[%s16531_s3 + $0x1e8] sm:$0xff] }
 0x2af   : > { %v13450_v33 = vadd.f32 %v3059_v35, %v2598_v53  ;;  %v2597_v39 = vadd.f32 %v2471_v28, %v16638_v19  ;;  %v3288_v3 = vpop.f32.mrb[129].mxu0  ;;  %v10566_v35 = vld [vmem:[%s16531_s3 + $0x1d0] sm:$0xff]  ;;  %v11119_v29 = vpack.c.bf16 %v10567_v54, %v10565_v5  ;;  %v3542_v53 = vrot.slane %v3286_v2, 4  ;;  %v16639_v19 = vld [vmem:[#allocation30_spill] sm:$0xff] }
 0x2b0   : > { %v13459_v50 = vadd.f32 %v3060_v56, %v2596_v58  ;;  %v13461_v45 = vadd.f32 %v3061_v9, %v2599_v7  ;;  %v11121_v61 = vpack.c.bf16 %v10566_v35, %v10564_v31  ;;  %v3545_v9 = vrot.slane %v3288_v3, 4  ;;  %v10571_v7 = vld [vmem:[%s16531_s3 + $0x1f8] sm:$0xff]  ;;  %v10568_v3 = vld [vmem:[%s16531_s3 + $0x1e0] sm:$0xff]  ;;  %v10570_v5 = vld [vmem:[%s16531_s3 + $0x1f0] sm:$0xff] }
 0x2b1   : > { %v13469_v60 = vadd.f32 %v3062_v24, %v2597_v39  ;;  %11120 = vmatprep.subr.bf16.mxu0 %v11119_v29  ;;  %v11123_v29 = vpack.c.bf16 %v10571_v7, %v10569_v1 }
 0x2b2   : > { %v3292_v63 = vpop.f32.mrb[130].mxu0  ;;  %11122 = vmatpush1.bf16.msra.mxu0 %v11121_v61  ;;  %v11125_v61 = vpack.c.bf16 %v10570_v5, %v10568_v3  ;;  %v10573_v3 = vld [vmem:[%s16531_s3 + $0x208] sm:$0xff]  ;;  %v10575_v5 = vld [vmem:[%s16531_s3 + $0x218] sm:$0xff] }
 0x2b3   : > { %v3543_v27 = vrot.slane %v3292_v63, 4  ;;  %v3294_v58 = vpop.f32.mrb[131].mxu0  ;;  %11124 = vmatprep.subr.bf16.mxu0 %v11123_v29  ;;  %v11127_v29 = vpack.c.bf16 %v10575_v5, %v10573_v3 }
 0x2b4   : > { %v3546_v56 = vrot.slane %v3294_v58, 4 }
 0x2b5   : > { %v3544_v28 = vsel %vm3541_vm13, %v3542_v53, %v3543_v27 }
 0x2b6   : > { %v3298_v24 = vpop.f32.mrb[132].mxu0  ;;  %v13479_v39 = vadd.f32 %v3544_v28, %v16639_v19  ;;  %v3547_v2 = vsel %vm3541_vm13, %v3545_v9, %v3546_v56  ;;  %11126 = vmatpush1.bf16.msra.mxu0 %v11125_v61 }
 0x2b7   : > { %v3548_v54 = vrot.slane %v3298_v24, 4  ;;  %v3300_v31 = vpop.f32.mrb[133].mxu0  ;;  %v3719_v35 = vadd.f32 %v3547_v2, %v13117_v51  ;;  %11128 = vmatprep.subr.bf16.mxu0 %v11127_v29 }
 0x2b8   : > { %v3550_v63 = vrot.slane %v3300_v31, 4  ;;  %3846 = vrot.lane.b32.xlu0 %v13479_v39, %s11480_s22 }
 0x2b9   : > { %v3549_v53 = vsel %vm3541_vm13, %v3543_v27, %v3548_v54  ;;  %3848 = vrot.lane.b32.xlu1 %v3719_v35, %s11480_s22  ;;  %v10572_v35 = vld [vmem:[%s16531_s3 + $0x200] sm:$0xff] }
 0x2ba   : > { %v13494_v58 = vadd.f32 %v3549_v53, %v13124_v26  ;;  %v3551_v9 = vsel %vm3541_vm13, %v3546_v56, %v3550_v63  ;;  %v3304_v28 = vpop.f32.mrb[134].mxu0  ;;  %v6146_v53 = vld [vmem:[%s16531_s3 + $0x80] sm:$0xff] }
 0x2bb   : > { %v3721_v51 = vadd.f32 %v3551_v9, %v13127_v62  ;;  %v3552_v1 = vrot.slane %v3304_v28, 4  ;;  %v3306_v7 = vpop.f32.mrb[135].mxu0  ;;  %v6148_v9 = vld [vmem:[%s16531_s3 + $0x90] sm:$0xff]  ;;  %v10577_v28 = vld [vmem:[%s16531_s3 + $0x228] sm:$0xff] }
 0x2bc   : > { %v3554_v24 = vrot.slane %v3306_v7, 4  ;;  %3850 = vrot.lane.b32.xlu0 %v13494_v58, %s11480_s22 }
 0x2bd   : > { %v3553_v27 = vsel %vm3541_vm13, %v3548_v54, %v3552_v1  ;;  %v13502_v19 = vadd.f32 %v3552_v1, %v13136_v59  ;;  %3852 = vrot.lane.b32.xlu1 %v3721_v51, %s11480_s22 }
 0x2be   : > { %v13506_v26 = vadd.f32 %v3553_v27, %v13140_v14  ;;  %v3555_v56 = vsel %vm3541_vm13, %v3550_v63, %v3554_v24  ;;  %v3725_v62 = vadd.f32 %v3554_v24, %v13142_v32  ;;  %v3310_v2 = vpop.f32.mrb[136].mxu0  ;;  %v6147_v14 = vld [vmem:[%s16531_s3 + $0x88] sm:$0xff]  ;;  %v6149_v32 = vld [vmem:[%s16531_s3 + $0x98] sm:$0xff]  ;;  %v11081_v24 = vpack.c.bf16 %v6148_v9, %v6146_v53 }
 0x2bf   : > { %v3723_v59 = vadd.f32 %v3555_v56, %v13145_v18  ;;  %v3312_v54 = vpop.f32.mrb[137].mxu0  ;;  %v11079_v31 = vpack.c.bf16 %v6149_v32, %v6147_v14  ;;  %v10574_v18 = vld [vmem:[%s16531_s3 + $0x210] sm:$0xff]  ;;  %v3556_v51 = vrot.slane %v3310_v2, 4  ;;  %v10579_v27 = vld [vmem:[%s16531_s3 + $0x238] sm:$0xff]  ;;  %v10576_v56 = vld [vmem:[%s16531_s3 + $0x220] sm:$0xff] }
 0x2c0   : > { %3858 = vrot.lane.b32.xlu0 %v13502_v19, %s11480_s22  ;;  %v11129_v63 = vpack.c.bf16 %v10574_v18, %v10572_v35  ;;  %v3559_v3 = vrot.slane %v3312_v54, 4  ;;  %v11131_v2 = vpack.c.bf16 %v10579_v27, %v10577_v28  ;;  %v10580_v27 = vld [vmem:[%s16531_s3 + $0x240] sm:$0xff] }
 0x2c1   : > { %3860 = vrot.lane.b32.xlu1 %v3725_v62, %s11480_s22  ;;  %11080 = vmatprep.subr.bf16.mxu1 %v11079_v31  ;;  %v10578_v62 = vld [vmem:[%s16531_s3 + $0x230] sm:$0xff] }
 0x2c2   : > { %v3316_v61 = vpop.f32.mrb[138].mxu0  ;;  %11130 = vmatpush1.bf16.msra.mxu0 %v11129_v63  ;;  %v11133_v14 = vpack.c.bf16 %v10578_v62, %v10576_v56  ;;  %11082 = vmatpush1.bf16.msra.mxu1 %v11081_v24 }
 0x2c3   : > { %v3557_v1 = vrot.slane %v3316_v61, 4  ;;  %v3318_v7 = vpop.f32.mrb[139].mxu0  ;;  %11132 = vmatprep.subr.bf16.mxu0 %v11131_v2 }
 0x2c4   : > { %v3560_v5 = vrot.slane %v3318_v7, 4  ;;  %3854 = vrot.lane.b32.xlu0 %v13506_v26, %s11480_s22  ;;  %v10581_v7 = vld [vmem:[%s16531_s3 + $0x248] sm:$0xff] }
 0x2c5   : > { %v3558_v32 = vsel %vm3541_vm13, %v3556_v51, %v3557_v1  ;;  %3856 = vrot.lane.b32.xlu1 %v3723_v59, %s11480_s22 }
 0x2c6   : > { %v13555_v31 = vadd.f32 %v3558_v32, %v13156_v46  ;;  %v3561_v35 = vsel %vm3541_vm13, %v3559_v3, %v3560_v5  ;;  %v3322_v18 = vpop.f32.mrb[140].mxu0  ;;  %11134 = vmatpush1.bf16.msra.mxu0 %v11133_v14 }
 0x2c7   : > { %v3727_v54 = vadd.f32 %v3561_v35, %v13159_v52  ;;  %v3562_v29 = vrot.slane %v3322_v18, 4  ;;  %v3324_v61 = vpop.f32.mrb[141].mxu0 }
 0x2c8   : > { %v3564_v53 = vrot.slane %v3324_v61, 4  ;;  %3862 = vrot.lane.b32.xlu0 %v13555_v31, %s11480_s22  ;;  %v6151_v61 = vld [vmem:[%s16531_s3 + $0xa8] sm:$0xff] }
 0x2c9   : > { %v3563_v63 = vsel %vm3541_vm13, %v3557_v1, %v3562_v29  ;;  %3864 = vrot.lane.b32.xlu1 %v3727_v54, %s11480_s22  ;;  %v10583_v1 = vld [vmem:[%s16531_s3 + $0x258] sm:$0xff] }
 0x2ca   : > { %v13564_v46 = vadd.f32 %v3563_v63, %v13168_v11  ;;  %v3565_v59 = vsel %vm3541_vm13, %v3560_v5, %v3564_v53  ;;  %v3328_v9 = vpop.f32.mrb[142].mxu0  ;;  %v11135_v11 = vpack.c.bf16 %v10583_v1, %v10581_v7 }
 0x2cb   : > { %v3729_v28 = vadd.f32 %v3565_v59, %v13171_v57  ;;  %v3566_v52 = vrot.slane %v3328_v9, 4  ;;  %v3330_v51 = vpop.f32.mrb[143].mxu0  ;;  %v10582_v57 = vld [vmem:[%s16531_s3 + $0x250] sm:$0xff]  ;;  %v10587_v9 = vld [vmem:[%s16531_s3 + $0x278] sm:$0xff] }
 0x2cc   : > { %v3568_v24 = vrot.slane %v3330_v51, 4  ;;  %3866 = vrot.lane.b32.xlu0 %v13564_v46, %s11480_s22  ;;  %v11137_v3 = vpack.c.bf16 %v10582_v57, %v10580_v27  ;;  %11136 = vmatprep.subr.bf16.mxu0 %v11135_v11  ;;  %v10586_v11 = vld [vmem:[%s16531_s3 + $0x270] sm:$0xff] }
 0x2cd   : > { %v3567_v56 = vsel %vm3541_vm13, %v3562_v29, %v3566_v52  ;;  %v13584_v62 = vadd.f32 %v3566_v52, %v13180_v8  ;;  %3868 = vrot.lane.b32.xlu1 %v3729_v28, %s11480_s22  ;;  %v6150_v28 = vld [vmem:[%s16531_s3 + $0xa0] sm:$0xff]  ;;  %v6152_v52 = vld [vmem:[%s16531_s3 + $0xb0] sm:$0xff] }
 0x2ce   : > { %v13588_v5 = vadd.f32 %v3567_v56, %v13184_v41  ;;  %v3569_v2 = vsel %vm3541_vm13, %v3564_v53, %v3568_v24  ;;  %v3733_v14 = vadd.f32 %v3568_v24, %v13186_v4  ;;  %v3334_v32 = vpop.f32.mrb[144].mxu0  ;;  %11138 = vmatpush1.bf16.msra.mxu0 %v11137_v3  ;;  %v6153_v4 = vld [vmem:[%s16531_s3 + $0xb8] sm:$0xff]  ;;  %v11085_v1 = vpack.c.bf16 %v6152_v52, %v6150_v28  ;;  %v10584_v24 = vld [vmem:[%s16531_s3 + $0x260] sm:$0xff] }
 0x2cf   : > { %v3731_v35 = vadd.f32 %v3569_v2, %v13189_v10  ;;  %v3336_v18 = vpop.f32.mrb[145].mxu0  ;;  %v3570_v54 = vrot.slane %v3334_v32, 4  ;;  %v10585_v10 = vld [vmem:[%s16531_s3 + $0x268] sm:$0xff]  ;;  %v11083_v59 = vpack.c.bf16 %v6153_v4, %v6151_v61  ;;  %v11141_v3 = vpack.c.bf16 %v10586_v11, %v10584_v24  ;;  %v6156_v61 = vld [vmem:[%s16531_s3 + $0xd0] sm:$0xff] }
 0x2d0   : > { %3874 = vrot.lane.b32.xlu0 %v13584_v62, %s11480_s22  ;;  %v3573_v53 = vrot.slane %v3336_v18, 4  ;;  %v11139_v7 = vpack.c.bf16 %v10587_v9, %v10585_v10  ;;  %v10589_v18 = vld [vmem:[%s16531_s3 + $0x288] sm:$0xff]  ;;  %v10590_v9 = vld [vmem:[%s16531_s3 + $0x290] sm:$0xff] }
 0x2d1   : > { %3876 = vrot.lane.b32.xlu1 %v3733_v14, %s11480_s22  ;;  %11084 = vmatprep.subr.bf16.mxu1 %v11083_v59  ;;  %v10588_v59 = vld [vmem:[%s16531_s3 + $0x280] sm:$0xff] }
 0x2d2   : > { %v3340_v8 = vpop.f32.mrb[146].mxu0  ;;  %11140 = vmatprep.subr.bf16.mxu0 %v11139_v7  ;;  %11086 = vmatpush1.bf16.msra.mxu1 %v11085_v1 }
 0x2d3   : > { %v3571_v29 = vrot.slane %v3340_v8, 4  ;;  %v3342_v41 = vpop.f32.mrb[147].mxu0  ;;  %11142 = vmatpush1.bf16.msra.mxu0 %v11141_v3 }
 0x2d4   : > { %v3574_v63 = vrot.slane %v3342_v41, 4  ;;  %3870 = vrot.lane.b32.xlu0 %v13588_v5, %s11480_s22  ;;  %v6154_v41 = vld [vmem:[%s16531_s3 + $0xc0] sm:$0xff] }
 0x2d5   : > { %v3572_v51 = vsel %vm3541_vm13, %v3570_v54, %v3571_v29  ;;  %3872 = vrot.lane.b32.xlu1 %v3731_v35, %s11480_s22  ;;  %v6155_v35 = vld [vmem:[%s16531_s3 + $0xc8] sm:$0xff]  ;;  %v10591_v54 = vld [vmem:[%s16531_s3 + $0x298] sm:$0xff] }
 0x2d6   : > { %v13625_v27 = vadd.f32 %v3572_v51, %v13200_v6  ;;  %v3575_v57 = vsel %vm3541_vm13, %v3573_v53, %v3574_v63  ;;  %v3346_v56 = vpop.f32.mrb[148].mxu0  ;;  %v6157_v6 = vld [vmem:[%s16531_s3 + $0xd8] sm:$0xff]  ;;  %v11143_v10 = vpack.c.bf16 %v10591_v54, %v10589_v18  ;;  %v11089_v53 = vpack.c.bf16 %v6156_v61, %v6154_v41 }
 0x2d7   : > { %v3735_v2 = vadd.f32 %v3575_v57, %v13203_v16  ;;  %v3576_v14 = vrot.slane %v3346_v56, 4  ;;  %v3348_v32 = vpop.f32.mrb[149].mxu0  ;;  %v11087_v16 = vpack.c.bf16 %v6157_v6, %v6155_v35 }
 0x2d8   : > { %v3578_v8 = vrot.slane %v3348_v32, 4  ;;  %3878 = vrot.lane.b32.xlu0 %v13625_v27, %s11480_s22  ;;  %11144 = vmatprep.subr.bf16.mxu0 %v11143_v10 }
 0x2d9   : > { %v3577_v4 = vsel %vm3541_vm13, %v3571_v29, %v3576_v14  ;;  %3880 = vrot.lane.b32.xlu1 %v3735_v2, %s11480_s22  ;;  %11088 = vmatprep.subr.bf16.mxu1 %v11087_v16  ;;  %v11145_v29 = vpack.c.bf16 %v10590_v9, %v10588_v59 }
 0x2da   : > { %v13658_v28 = vadd.f32 %v3577_v4, %v13211_v20  ;;  %v3579_v52 = vsel %vm3541_vm13, %v3574_v63, %v3578_v8  ;;  %v3352_v51 = vpop.f32.mrb[150].mxu0  ;;  %11090 = vmatpush1.bf16.msra.mxu1 %v11089_v53 }
 0x2db   : > { %v3737_v7 = vadd.f32 %v3579_v52, %v13213_v15  ;;  %v3580_v1 = vrot.slane %v3352_v51, 4  ;;  %v3354_v24 = vpop.f32.mrb[151].mxu0  ;;  %11146 = vmatpush1.bf16.msra.mxu0 %v11145_v29 }
 0x2dc   : > { %v3582_v11 = vrot.slane %v3354_v24, 4  ;;  %3882 = vrot.lane.b32.xlu0 %v13658_v28, %s11480_s22 }
 0x2dd   : > { %v3581_v57 = vsel %vm3541_vm13, %v3576_v14, %v3580_v1  ;;  %v13666_v20 = vadd.f32 %v3580_v1, %v13222_v49  ;;  %3884 = vrot.lane.b32.xlu1 %v3737_v7, %s11480_s22  ;;  %v16640_v7 = vld [vmem:[#allocation31_spill] sm:$0xff] }
 0x2de   : > { %v13670_v63 = vadd.f32 %v3581_v57, %v13225_v40  ;;  %v3583_v15 = vsel %vm3541_vm13, %v3578_v8, %v3582_v11  ;;  %v3741_v56 = vadd.f32 %v3582_v11, %v13227_v13  ;;  %v3358_v3 = vpop.f32.mrb[152].mxu0 }
 0x2df   : > { %v3739_v2 = vadd.f32 %v3583_v15, %v13229_v47  ;;  %v3360_v32 = vpop.f32.mrb[153].mxu0  ;;  %v3584_v14 = vrot.slane %v3358_v3, 4 }
 0x2e0   : > { %3890 = vrot.lane.b32.xlu0 %v13666_v20, %s11480_s22  ;;  %v3587_v18 = vrot.slane %v3360_v32, 4 }
 0x2e1   : > { %3892 = vrot.lane.b32.xlu1 %v3741_v56, %s11480_s22 }
 0x2e2   : > { %v3364_v49 = vpop.f32.mrb[154].mxu0 }
 0x2e3   : > { %v3585_v35 = vrot.slane %v3364_v49, 4  ;;  %v3366_v6 = vpop.f32.mrb[155].mxu0 }
 0x2e4   : > { %v3588_v40 = vrot.slane %v3366_v6, 4  ;;  %3886 = vrot.lane.b32.xlu0 %v13670_v63, %s11480_s22 }
 0x2e5   : > { %v3586_v13 = vsel %vm3541_vm13, %v3584_v14, %v3585_v35  ;;  %3888 = vrot.lane.b32.xlu1 %v3739_v2, %s11480_s22 }
 0x2e6   : > { %v13683_v47 = vadd.f32 %v3586_v13, %v13237_v36  ;;  %v3589_v8 = vsel %vm3541_vm13, %v3587_v18, %v3588_v40  ;;  %v3370_v16 = vpop.f32.mrb[156].mxu0 }
 0x2e7   : > { %v3743_v54 = vadd.f32 %v3589_v8, %v13239_v21  ;;  %v3590_v41 = vrot.slane %v3370_v16, 4  ;;  %v3372_v61 = vpop.f32.mrb[157].mxu0 }
 0x2e8   : > { %v3592_v4 = vrot.slane %v3372_v61, 4  ;;  %3894 = vrot.lane.b32.xlu0 %v13683_v47, %s11480_s22 }
 0x2e9   : > { %v3591_v10 = vsel %vm3541_vm13, %v3585_v35, %v3590_v41  ;;  %3896 = vrot.lane.b32.xlu1 %v3743_v54, %s11480_s22 }
 0x2ea   : > { %v13692_v53 = vadd.f32 %v3591_v10, %v13253_v48  ;;  %v3593_v36 = vsel %vm3541_vm13, %v3588_v40, %v3592_v4  ;;  %v3376_v59 = vpop.f32.mrb[158].mxu0 }
 0x2eb   : > { %v3745_v9 = vadd.f32 %v3593_v36, %v13255_v38  ;;  %v3594_v52 = vrot.slane %v3376_v59, 4  ;;  %v3378_v21 = vpop.f32.mrb[159].mxu0 }
 0x2ec   : > { %v3596_v51 = vrot.slane %v3378_v21, 4  ;;  %3898 = vrot.lane.b32.xlu0 %v13692_v53, %s11480_s22 }
 0x2ed   : > { %v3595_v29 = vsel %vm3541_vm13, %v3590_v41, %v3594_v52  ;;  %v13700_v1 = vadd.f32 %v3594_v52, %v16640_v7  ;;  %3900 = vrot.lane.b32.xlu1 %v3745_v9, %s11480_s22 }
 0x2ee   : > { %v13704_v48 = vadd.f32 %v3595_v29, %v13273_v44  ;;  %v3597_v24 = vsel %vm3541_vm13, %v3592_v4, %v3596_v51  ;;  %v3749_v38 = vadd.f32 %v3596_v51, %v13275_v0  ;;  %v3382_v11 = vpop.f32.mrb[160].mxu0 }
 0x2ef   : > { %v3747_v57 = vadd.f32 %v3597_v24, %v13277_v55  ;;  %v3384_v15 = vpop.f32.mrb[161].mxu0  ;;  %v3598_v3 = vrot.slane %v3382_v11, 4 }
 0x2f0   : > { %3906 = vrot.lane.b32.xlu0 %v13700_v1, %s11480_s22  ;;  %v3601_v49 = vrot.slane %v3384_v15, 4  ;;  %v16642_v15 = vld [vmem:[#allocation32_spill] sm:$0xff] }
 0x2f1   : > { %3908 = vrot.lane.b32.xlu1 %v3749_v38, %s11480_s22 }
 0x2f2   : > { %v3388_v56 = vpop.f32.mrb[162].mxu0 }
 0x2f3   : > { %v3599_v2 = vrot.slane %v3388_v56, 4  ;;  %v3390_v32 = vpop.f32.mrb[163].mxu0 }
 0x2f4   : > { %v3602_v44 = vrot.slane %v3390_v32, 4  ;;  %3902 = vrot.lane.b32.xlu0 %v13704_v48, %s11480_s22 }
 0x2f5   : > { %v3600_v0 = vsel %vm3541_vm13, %v3598_v3, %v3599_v2  ;;  %3904 = vrot.lane.b32.xlu1 %v3747_v57, %s11480_s22 }
 0x2f6   : > { %v13717_v55 = vadd.f32 %v3600_v0, %v13285_v22  ;;  %v3603_v14 = vsel %vm3541_vm13, %v3601_v49, %v3602_v44  ;;  %v3394_v35 = vpop.f32.mrb[164].mxu0 }
 0x2f7   : > { %v3751_v6 = vadd.f32 %v3603_v14, %v13287_v30  ;;  %v3604_v18 = vrot.slane %v3394_v35, 4  ;;  %v3396_v40 = vpop.f32.mrb[165].mxu0 }
 0x2f8   : > { %v3606_v13 = vrot.slane %v3396_v40, 4  ;;  %3910 = vrot.lane.b32.xlu0 %v13717_v55, %s11480_s22 }
 0x2f9   : > { %v3605_v8 = vsel %vm3541_vm13, %v3599_v2, %v3604_v18  ;;  %3912 = vrot.lane.b32.xlu1 %v3751_v6, %s11480_s22  ;;  %v16644_v6 = vld [vmem:[#allocation9_spill] sm:$0xff] }
 0x2fa   : > { %v13726_v16 = vadd.f32 %v3605_v8, %v13295_v23  ;;  %v3607_v22 = vsel %vm3541_vm13, %v3602_v44, %v3606_v13  ;;  %v3400_v54 = vpop.f32.mrb[166].mxu0  ;;  %v16643_v44 = vld [vmem:[#allocation8_spill] sm:$0xff] }
 0x2fb   : > { %v3753_v41 = vadd.f32 %v3607_v22, %v13297_v43  ;;  %v3608_v61 = vrot.slane %v3400_v54, 4  ;;  %v3402_v30 = vpop.f32.mrb[167].mxu0  ;;  %v16645_v54 = vld [vmem:[#allocation10_spill] sm:$0xff] }
 0x2fc   : > { %v3610_v4 = vrot.slane %v3402_v30, 4  ;;  %3914 = vrot.lane.b32.xlu0 %v13726_v16, %s11480_s22 }
 0x2fd   : > { %v3609_v10 = vsel %vm3541_vm13, %v3604_v18, %v3608_v61  ;;  %v13734_v36 = vadd.f32 %v3608_v61, %v13306_v42  ;;  %3916 = vrot.lane.b32.xlu1 %v3753_v41, %s11480_s22  ;;  %v16646_v61 = vld [vmem:[#allocation11_spill] sm:$0xff] }
 0x2fe   : > { %v13738_v23 = vadd.f32 %v3609_v10, %v13315_v25  ;;  %v3611_v59 = vsel %vm3541_vm13, %v3606_v13, %v3610_v4  ;;  %v3757_v43 = vadd.f32 %v3610_v4, %v13317_v12  ;;  %v3406_v9 = vpop.f32.mrb[168].mxu0  ;;  %v16647_v10 = vld [vmem:[#allocation12_spill] sm:$0xff] }
 0x2ff   : > { %v3755_v52 = vadd.f32 %v3611_v59, %v13325_v37  ;;  %v3408_v21 = vpop.f32.mrb[169].mxu0  ;;  %v3612_v51 = vrot.slane %v3406_v9, 4  ;;  %v16641_v37 = vld [vmem:[#allocation7_spill] sm:$0xff]  ;;  %v16648_v9 = vld [vmem:[#allocation13_spill] sm:$0xff] }
 0x300   : > { %3922 = vrot.lane.b32.xlu0 %v13734_v36, %s11480_s22  ;;  %v3615_v24 = vrot.slane %v3408_v21, 4 }
 0x301   : > { %3924 = vrot.lane.b32.xlu1 %v3757_v43, %s11480_s22 }
 0x302   : > { %v3412_v42 = vpop.f32.mrb[170].mxu0 }
 0x303   : > { %v3613_v29 = vrot.slane %v3412_v42, 4  ;;  %v3414_v7 = vpop.f32.mrb[171].mxu0 }
 0x304   : > { %v3616_v25 = vrot.slane %v3414_v7, 4  ;;  %3918 = vrot.lane.b32.xlu0 %v13738_v23, %s11480_s22 }
 0x305   : > { %v3614_v12 = vsel %vm3541_vm13, %v3612_v51, %v3613_v29  ;;  %3920 = vrot.lane.b32.xlu1 %v3755_v52, %s11480_s22 }
 0x306   : > { %v13751_v38 = vadd.f32 %v3614_v12, %v16641_v37  ;;  %v3617_v11 = vsel %vm3541_vm13, %v3615_v24, %v3616_v25  ;;  %v3418_v57 = vpop.f32.mrb[172].mxu0  ;;  %v16649_v37 = vld [vmem:[#allocation14_spill] sm:$0xff] }
 0x307   : > { %v3759_v56 = vadd.f32 %v3617_v11, %v16642_v15  ;;  %v3618_v3 = vrot.slane %v3418_v57, 4  ;;  %v3420_v2 = vpop.f32.mrb[173].mxu0 }
 0x308   : > { %v3620_v32 = vrot.slane %v3420_v2, 4  ;;  %3926 = vrot.lane.b32.xlu0 %v13751_v38, %s11480_s22 }
 0x309   : > { %v3619_v49 = vsel %vm3541_vm13, %v3613_v29, %v3618_v3  ;;  %3928 = vrot.lane.b32.xlu1 %v3759_v56, %s11480_s22  ;;  %v16650_v56 = vld [vmem:[#allocation15_spill] sm:$0xff] }
 0x30a   : > { %v13760_v0 = vadd.f32 %v3619_v49, %v16643_v44  ;;  %v3621_v14 = vsel %vm3541_vm13, %v3616_v25, %v3620_v32  ;;  %v3424_v35 = vpop.f32.mrb[174].mxu0 }
 0x30b   : > { %v3761_v18 = vadd.f32 %v3621_v14, %v16644_v6  ;;  %v3622_v40 = vrot.slane %v3424_v35, 4  ;;  %v3426_v13 = vpop.f32.mrb[175].mxu0  ;;  %v16651_v14 = vld [vmem:[#allocation16_spill] sm:$0xff] }
 0x30c   : > { %v3624_v8 = vrot.slane %v3426_v13, 4  ;;  %3930 = vrot.lane.b32.xlu0 %v13760_v0, %s11480_s22 }
 0x30d   : > { %v3623_v22 = vsel %vm3541_vm13, %v3618_v3, %v3622_v40  ;;  %v13768_v41 = vadd.f32 %v3622_v40, %v16645_v54  ;;  %3932 = vrot.lane.b32.xlu1 %v3761_v18, %s11480_s22  ;;  %v16652_v40 = vld [vmem:[#allocation17_spill] sm:$0xff] }
 0x30e   : > { %v13772_v30 = vadd.f32 %v3623_v22, %v16646_v61  ;;  %v3625_v4 = vsel %vm3541_vm13, %v3620_v32, %v3624_v8  ;;  %v3765_v59 = vadd.f32 %v3624_v8, %v16647_v10  ;;  %v3430_v43 = vpop.f32.mrb[176].mxu0 }
 0x30f   : > { %v3763_v52 = vadd.f32 %v3625_v4, %v16648_v9  ;;  %v3432_v21 = vpop.f32.mrb[177].mxu0  ;;  %v3626_v51 = vrot.slane %v3430_v43, 4  ;;  %v16653_v4 = vld [vmem:[#allocation18_spill] sm:$0xff] }
 0x310   : > { %3938 = vrot.lane.b32.xlu0 %v13768_v41, %s11480_s22  ;;  %v3629_v24 = vrot.slane %v3432_v21, 4 }
 0x311   : > { %3940 = vrot.lane.b32.xlu1 %v3765_v59, %s11480_s22  ;;  %v16654_v59 = vld [vmem:[#allocation19_spill] sm:$0xff] }
 0x312   : > { %v3436_v42 = vpop.f32.mrb[178].mxu0 }
 0x313   : > { %v3627_v29 = vrot.slane %v3436_v42, 4  ;;  %v3438_v7 = vpop.f32.mrb[179].mxu0 }
 0x314   : > { %v3630_v25 = vrot.slane %v3438_v7, 4  ;;  %3934 = vrot.lane.b32.xlu0 %v13772_v30, %s11480_s22 }
 0x315   : > { %v3628_v12 = vsel %vm3541_vm13, %v3626_v51, %v3627_v29  ;;  %3936 = vrot.lane.b32.xlu1 %v3763_v52, %s11480_s22  ;;  %v16656_v52 = vld [vmem:[#allocation20_spill] sm:$0xff]  ;;  %v16657_v51 = vld [vmem:[#allocation21_spill] sm:$0xff] }
 0x316   : > { %v13785_v11 = vadd.f32 %v3628_v12, %v16649_v37  ;;  %v3631_v57 = vsel %vm3541_vm13, %v3629_v24, %v3630_v25  ;;  %v3442_v15 = vpop.f32.mrb[180].mxu0  ;;  %v11481_v24 = vmov 1983009808   ;;  %v4107_v12 = vlaneseq }
 0x317   : > { %v3767_v3 = vadd.f32 %v3631_v57, %v16650_v56  ;;  %v3632_v2 = vrot.slane %v3442_v15, 4  ;;  %v3444_v32 = vpop.f32.mrb[181].mxu0 }
 0x318   : > { %v3634_v49 = vrot.slane %v3444_v32, 4  ;;  %3942 = vrot.lane.b32.xlu0 %v13785_v11, %s11480_s22 }
 0x319   : > { %v3633_v44 = vsel %vm3541_vm13, %v3627_v29, %v3632_v2  ;;  %3944 = vrot.lane.b32.xlu1 %v3767_v3, %s11480_s22 }
 0x31a   : > { %v13794_v35 = vadd.f32 %v3633_v44, %v16651_v14  ;;  %v3635_v6 = vsel %vm3541_vm13, %v3630_v25, %v3634_v49  ;;  %v3448_v18 = vpop.f32.mrb[182].mxu0  ;;  %v4105_v25 = vunpack.c.l.s4 %v11481_v24  ;;  %v10487_v14 = vld [vmem:[%s16530_s2] ss:$0 sm:$0xff] }
 0x31b   : > { %v3769_v13 = vadd.f32 %v3635_v6, %v16652_v40  ;;  %v3636_v8 = vrot.slane %v3448_v18, 4  ;;  %v3450_v22 = vpop.f32.mrb[183].mxu0  ;;  %v16659_v6 = vld [vmem:[#allocation22_spill] sm:$0xff] }
 0x31c   : > { %v3638_v54 = vrot.slane %v3450_v22, 4  ;;  %3946 = vrot.lane.b32.xlu0 %v13794_v35, %s11480_s22  ;;  %v4106_v3 = vunpack.c.0.s8 %v4105_v25  ;;  %v10513_v22 = vld [vmem:[%s16531_s3 + $0xe8] sm:$0xff] }
 0x31d   : > { %v3637_v61 = vsel %vm3541_vm13, %v3632_v2, %v3636_v8  ;;  %v13802_v10 = vadd.f32 %v3636_v8, %v16653_v4  ;;  %3948 = vrot.lane.b32.xlu1 %v3769_v13, %s11480_s22  ;;  %v13814_v2 = vshrl.u32 %v4107_v12, 7  ;;  %v5141_v8 = vcombine.high %v10487_v14, %v10487_v14 }
 0x31e   : > { %v13806_v43 = vadd.f32 %v3637_v61, %v16654_v59  ;;  %v3639_v9 = vsel %vm3541_vm13, %v3634_v49, %v3638_v54  ;;  %v3773_v21 = vadd.f32 %v3638_v54, %v16656_v52  ;;  %v3454_v42 = vpop.f32.mrb[184].mxu0  ;;  %v10515_v54 = vld [vmem:[%s16531_s3 + $0xf8] sm:$0xff]  ;;  %v16661_v61 = vld [vmem:[#allocation23_spill] sm:$0xff] }
 0x31f   : > { %v3771_v29 = vadd.f32 %v3639_v9, %v16657_v51  ;;  %v3456_v7 = vpop.f32.mrb[185].mxu0  ;;  %v3640_v57 = vrot.slane %v3454_v42, 4  ;;  %16658 = vst [vmem:[#allocation25_spill] sm:$0xff] %v13814_v2  ;;  %v13835_v52 = vsub.s32 %v4106_v3, %v13814_v2 }
 0x320   : > { %16655 = vst [vmem:[#allocation24_spill] sm:$0xff] %v13806_v43  ;;  %3954 = vrot.lane.b32.xlu0 %v13802_v10, %s11480_s22  ;;  %v3643_v32 = vrot.slane %v3456_v7, 4 }
 0x321   : > { %3956 = vrot.lane.b32.xlu1 %v3773_v21, %s11480_s22  ;;  %16662 = vst [vmem:[#allocation27_spill] sm:$0xff] %v13835_v52  ;;  %v11091_v21 = vpack.c.bf16 %v10515_v54, %v10513_v22 }
 0x322   : > { %v3460_v37 = vpop.f32.mrb[186].mxu0 }
 0x323   : > { %v3641_v15 = vrot.slane %v3460_v37, 4  ;;  %v3462_v56 = vpop.f32.mrb[187].mxu0  ;;  %11092 = vmatprep.subr.bf16.mxu1 %v11091_v21  ;;  %v13849_v37 = vrot.slane %v5141_v8, %v13835_v52 }
 0x324   : > { %v3644_v49 = vrot.slane %v3462_v56, 4  ;;  %3950 = vrot.lane.b32.xlu0 %v13806_v43, %s11480_s22 }
 0x325   : > { %v3642_v44 = vsel %vm3541_vm13, %v3640_v57, %v3641_v15  ;;  %3952 = vrot.lane.b32.xlu1 %v3771_v29, %s11480_s22  ;;  %v13842_v29 = vrot.slane %v10487_v14, %v13835_v52 }
 0x326   : > { %v13824_v18 = vadd.f32 %v3642_v44, %v16659_v6  ;;  %v3645_v40 = vsel %vm3541_vm13, %v3643_v32, %v3644_v49  ;;  %v3466_v13 = vpop.f32.mrb[188].mxu0 }
 0x327   : > { %v3775_v4 = vadd.f32 %v3645_v40, %v16661_v61  ;;  %v3646_v59 = vrot.slane %v3466_v13, 4  ;;  %v3468_v9 = vpop.f32.mrb[189].mxu0  ;;  %v13861_v14 = vcombine.high %v13842_v29, %v13842_v29 }
 0x328   : > { %16660 = vst [vmem:[#allocation26_spill] sm:$0xff] %v13824_v18  ;;  %v3648_v42 = vrot.slane %v3468_v9, 4  ;;  %3958 = vrot.lane.b32.xlu0 %v13824_v18, %s11480_s22 }
 0x329   : > { %v3647_v51 = vsel %vm3541_vm13, %v3641_v15, %v3646_v59  ;;  %3960 = vrot.lane.b32.xlu1 %v3775_v4, %s11480_s22  ;;  %v13877_v4 = vsub.s32 0, %v13814_v2 }
 0x32a   : > { %v13845_v7 = vadd.f32 %v3647_v51, %v13439_v34  ;;  %v3649_v24 = vsel %vm3541_vm13, %v3644_v49, %v3648_v42  ;;  %v3847_v25 = vpop.permute.xlu0 %3846  ;;  %v3472_v12 = vpop.f32.mrb[190].mxu0  ;;  %v13896_v51 = vrot.slane %v13842_v29, 1 }
 0x32b   : > { %v3777_v57 = vadd.f32 %v3649_v24, %v13441_v17  ;;  %v3650_v15 = vrot.slane %v3472_v12, 4  ;;  %v3849_v56 = vpop.permute.xlu1 %3848  ;;  %v3474_v3 = vpop.f32.mrb[191].mxu0  ;;  %v13899_v24 = vrot.slane %v13861_v14, 1 }
 0x32c   : > { %16663 = vst [vmem:[#allocation28_spill] sm:$0xff] %v13845_v7  ;;  %v3975_v32 = vsel %vm3974_vm14, %v3847_v25, %v3849_v56  ;;  %v3652_v44 = vrot.slane %v3474_v3, 4  ;;  %3962 = vrot.lane.b32.xlu0 %v13845_v7, %s11480_s22 }
 0x32d   : > { %v3651_v34 = vsel %vm3541_vm13, %v3646_v59, %v3650_v15  ;;  %v13857_v49 = vadd.f32 %v3650_v15, %v13450_v33  ;;  %v4039_v17 = vmax.f32 %v13479_v39, %v3975_v32  ;;  %3964 = vrot.lane.b32.xlu1 %v3777_v57, %s11480_s22  ;;  %v13872_v33 = vcombine.high %v13849_v37, %v13849_v37 }
 0x32e   : > { %v13866_v6 = vadd.f32 %v3651_v34, %v13459_v50  ;;  %v3653_v40 = vsel %vm3541_vm13, %v3648_v42, %v3652_v44  ;;  %v3781_v13 = vadd.f32 %v3652_v44, %v13461_v45  ;;  %v3851_v8 = vpop.permute.xlu0 %3850  ;;  %v13893_v42 = vld [vmem:[%s16531_s3 + $0xf0] sm:$0xff] }
 0x32f   : > { %16664 = vst [vmem:[#allocation29_spill] sm:$0xff] %v13857_v49  ;;  %v4103_v22 = vcombine.high %v4039_v17, %v4039_v17  ;;  %v4110_v54 = vrot.slane %v4039_v17, %v13835_v52  ;;  %v3779_v61 = vadd.f32 %v3653_v40, %v13469_v60  ;;  %v3853_v39 = vpop.permute.xlu1 %3852  ;;  %v13888_v60 = vld [vmem:[%s16531_s3 + $0xe0] sm:$0xff]  ;;  %v13905_v25 = vrot.slane %v13872_v33, 1 }
 0x330   : > { %16665 = vst [vmem:[#allocation30_spill] sm:$0xff] %v13866_v6  ;;  %v3976_v50 = vsel %vm3974_vm14, %v3851_v8, %v3853_v39  ;;  %3966 = vrot.lane.b32.xlu0 %v13866_v6, %s11480_s22 }
 0x331   : > { %v4117_v45 = vrot.slane %v4103_v22, %v13835_v52  ;;  %v4118_v59 = vcombine.high %v4110_v54, %v4110_v54  ;;  %v10375_v9 = vrot.slane %v4110_v54, 9  ;;  %v4040_v21 = vmax.f32 %v13494_v58, %v3976_v50  ;;  %3968 = vrot.lane.b32.xlu1 %v3779_v61, %s11480_s22 }
 0x332   : > { %v13902_v58 = vrot.slane %v13849_v37, 1  ;;  %v3859_v12 = vpop.permute.xlu0 %3858 }
 0x333   : > { %v4119_v57 = vcombine.high %v4117_v45, %v4117_v45  ;;  %v10376_v15 = vrot.slane %v4118_v59, 9  ;;  %v10377_v56 = vrot.slane %v4117_v45, 9  ;;  %v5023_v3 = vmax.f32 %v4110_v54, %v10375_v9  ;;  %v3861_v32 = vpop.permute.xlu1 %3860 }
 0x334   : > { %v4120_v44 = vcombine.high %v4040_v21, %v4040_v21  ;;  %v4127_v34 = vrot.slane %v4040_v21, %v13835_v52  ;;  %v3978_v17 = vsel %vm3974_vm14, %v3859_v12, %v3861_v32  ;;  %3970 = vrot.lane.b32.xlu0 %v13857_v49, %s11480_s22 }
 0x335   : > { %v10378_v8 = vrot.slane %v4119_v57, 9  ;;  %v5024_v22 = vmax.f32 %v4118_v59, %v10376_v15  ;;  %v5025_v61 = vmax.f32 %v4117_v45, %v10377_v56  ;;  %v5170_v39 = vadd.f32 %v13842_v29, %v5023_v3  ;;  %3972 = vrot.lane.b32.xlu1 %v3781_v13, %s11480_s22 }
 0x336   : > { %v4134_v54 = vrot.slane %v4120_v44, %v13835_v52  ;;  %v4135_v50 = vcombine.high %v4127_v34, %v4127_v34  ;;  %v10379_v9 = vrot.slane %v4127_v34, 9  ;;  %v4042_v21 = vmax.f32 %v13502_v19, %v3978_v17  ;;  %v3855_v12 = vpop.permute.xlu0 %3854 }
 0x337   : > { %v5026_v32 = vmax.f32 %v4119_v57, %v10378_v8  ;;  %v5171_v2 = vadd.f32 %v13896_v51, %v5024_v22  ;;  %v5172_v40 = vadd.f32 %v13861_v14, %v5025_v61  ;;  %v5282_v49 = vmax.f32 %v5170_v39, 0.0  ;;  %v3857_v45 = vpop.permute.xlu1 %3856 }
 0x338   : > { %v4136_v59 = vcombine.high %v4134_v54, %v4134_v54  ;;  %v10380_v15 = vrot.slane %v4135_v50, 9  ;;  %v10381_v13 = vrot.slane %v4134_v54, 9  ;;  %v5027_v56 = vmax.f32 %v4127_v34, %v10379_v9 }
 0x339   : > { %v5173_v3 = vadd.f32 %v13899_v24, %v5026_v32  ;;  %v5283_v44 = vmax.f32 %v5171_v2, 0.0  ;;  %v5284_v6 = vmax.f32 %v5172_v40, 0.0  ;;  %v5525_v19 = vrot.slane %v5282_v49, %v13877_v4 }
 0x33a   : > { %v10382_v57 = vrot.slane %v4136_v59, 9  ;;  %v5028_v17 = vmax.f32 %v4135_v50, %v10380_v15  ;;  %v5029_v8 = vmax.f32 %v4134_v54, %v10381_v13  ;;  %v5174_v22 = vadd.f32 %v13849_v37, %v5027_v56  ;;  %v3863_v61 = vpop.permute.xlu0 %3862 }
 0x33b   : > { %v5285_v39 = vmax.f32 %v5173_v3, 0.0  ;;  %v5529_v7 = vrot.slane %v5283_v44, %v13877_v4  ;;  %v5533_v18 = vrot.slane %v5284_v6, %v13877_v4  ;;  %v4160_v34 = vrot.slane %v4042_v21, %v13835_v52  ;;  %v3865_v9 = vpop.permute.xlu1 %3864 }
 0x33c   : > { %v5030_v32 = vmax.f32 %v4136_v59, %v10382_v57  ;;  %v5175_v2 = vadd.f32 %v13902_v58, %v5028_v17  ;;  %v5176_v49 = vadd.f32 %v13872_v33, %v5029_v8  ;;  %v5286_v40 = vmax.f32 %v5174_v22, 0.0 }
 0x33d   : > { %v5537_v50 = vrot.slane %v5285_v39, %v13877_v4  ;;  %v5971_v54 = vsel %vm5970_vm15, %v5529_v7, %v5525_v19  ;;  %v4161_v15 = vcombine.high %v4160_v34, %v4160_v34  ;;  %v10387_v13 = vrot.slane %v4160_v34, 9 }
 0x33e   : > { %v5973_v56 = vsel %vm5972_vm0, %v5533_v18, %v5971_v54  ;;  %v5177_v3 = vadd.f32 %v13905_v25, %v5030_v32  ;;  %v5287_v6 = vmax.f32 %v5175_v2, 0.0  ;;  %v5288_v44 = vmax.f32 %v5176_v49, 0.0  ;;  %v3867_v21 = vpop.permute.xlu0 %3866 }
 0x33f   : > { %v5975_v59 = vsel %vm5974_vm2, %v5537_v50, %v5973_v56  ;;  %v5541_v57 = vrot.slane %v5286_v40, %v13877_v4  ;;  %v10388_v17 = vrot.slane %v4161_v15, 9  ;;  %v5035_v8 = vmax.f32 %v4160_v34, %v10387_v13  ;;  %v3869_v22 = vpop.permute.xlu1 %3868 }
 0x340   : > { %v5289_v43 = vmax.f32 %v5177_v3, 0.0  ;;  %v5545_v39 = vrot.slane %v5287_v6, %v13877_v4  ;;  %v5549_v7 = vrot.slane %v5288_v44, %v13877_v4  ;;  %v3977_v19 = vsel %vm3974_vm14, %v3855_v12, %v3857_v45 }
 0x341   : > { %v5977_v18 = vsel %vm5976_vm3, %v5541_v57, %v5975_v59  ;;  %v5036_v32 = vmax.f32 %v4161_v15, %v10388_v17  ;;  %v5182_v2 = vadd.f32 %v13849_v37, %v5035_v8  ;;  %v4041_v49 = vmax.f32 %v13506_v26, %v3977_v19 }
 0x342   : > { %v5553_v50 = vrot.slane %v5289_v43, %v13877_v4  ;;  %v5979_v40 = vsel %vm5978_vm4, %v5545_v39, %v5977_v18  ;;  %v3979_v34 = vsel %vm3974_vm14, %v3863_v61, %v3865_v9  ;;  %v3980_v54 = vsel %vm3974_vm14, %v3867_v21, %v3869_v22  ;;  %v3875_v13 = vpop.permute.xlu0 %3874 }
 0x343   : > { %v5981_v56 = vsel %vm5980_vm5, %v5549_v7, %v5979_v40  ;;  %v5183_v12 = vadd.f32 %v13902_v58, %v5036_v32  ;;  %v5294_v45 = vmax.f32 %v5182_v2, 0.0  ;;  %v4137_v3 = vcombine.high %v4041_v49, %v4041_v49  ;;  %v3877_v15 = vpop.permute.xlu1 %3876 }
 0x344   : > { %v5983_v6 = vsel %vm5982_vm6, %v5553_v50, %v5981_v56  ;;  %v4144_v26 = vrot.slane %v4041_v49, %v13835_v52  ;;  %v4043_v43 = vmax.f32 %v13555_v31, %v3979_v34  ;;  %v4044_v44 = vmax.f32 %v13564_v46, %v3980_v54 }
 0x345   : > { %6089 = vst.msk [vmem:[#allocation3 + $0x2] sm:$0xff] %vm1064_vm1, %v5983_v6  ;;  %v5295_v61 = vmax.f32 %v5183_v12, 0.0  ;;  %v13951_v9 = vrot.slane %v5294_v45, %v13877_v4  ;;  %v4151_v21 = vrot.slane %v4137_v3, %v13835_v52  ;;  %v13955_v59 = vsel %vm3974_vm14, %v3875_v13, %v3877_v15 }
 0x346   : > { %v4152_v57 = vcombine.high %v4144_v26, %v4144_v26  ;;  %v10383_v17 = vrot.slane %v4144_v26, 9  ;;  %v4162_v8 = vcombine.high %v4043_v43, %v4043_v43  ;;  %v4169_v22 = vrot.slane %v4043_v43, %v13835_v52 }
 0x347   : > { %v13959_v31 = vrot.slane %v5295_v61, %v13877_v4  ;;  %v4153_v46 = vcombine.high %v4151_v21, %v4151_v21  ;;  %v10385_v39 = vrot.slane %v4151_v21, 9  ;;  %v4179_v7 = vcombine.high %v4044_v44, %v4044_v44 }
 0x348   : > { %v10384_v19 = vrot.slane %v4152_v57, 9  ;;  %v5031_v18 = vmax.f32 %v4144_v26, %v10383_v17  ;;  %v4176_v32 = vrot.slane %v4162_v8, %v13835_v52  ;;  %v4177_v2 = vcombine.high %v4169_v22, %v4169_v22 }
 0x349   : > { %v10386_v49 = vrot.slane %v4153_v46, 9  ;;  %v5033_v50 = vmax.f32 %v4151_v21, %v10385_v39  ;;  %v10389_v40 = vrot.slane %v4169_v22, 9  ;;  %v4186_v34 = vrot.slane %v4044_v44, %v13835_v52 }
 0x34a   : > { %v5032_v54 = vmax.f32 %v4152_v57, %v10384_v19  ;;  %v5178_v13 = vadd.f32 %v13842_v29, %v5031_v18  ;;  %v4178_v56 = vcombine.high %v4176_v32, %v4176_v32  ;;  %v10390_v12 = vrot.slane %v4177_v2, 9 }
 0x34b   : > { %v5034_v45 = vmax.f32 %v4153_v46, %v10386_v49  ;;  %v5180_v3 = vadd.f32 %v13861_v14, %v5033_v50  ;;  %v10391_v15 = vrot.slane %v4176_v32, 9  ;;  %v5037_v6 = vmax.f32 %v4169_v22, %v10389_v40 }
 0x34c   : > { %v5179_v26 = vadd.f32 %v13896_v51, %v5032_v54  ;;  %v5290_v43 = vmax.f32 %v5178_v13, 0.0  ;;  %v10392_v61 = vrot.slane %v4178_v56, 9  ;;  %v5038_v17 = vmax.f32 %v4177_v2, %v10390_v12  ;;  %v6106_v21 = vld [vmem:[#allocation3] sm:$0xff]  ;;  %v3871_v54 = vpop.permute.xlu0 %3870  ;;  %v3873_v13 = vpop.permute.xlu1 %3872 }
 0x34d   : > { %v5181_v8 = vadd.f32 %v13899_v24, %v5034_v45  ;;  %v5292_v44 = vmax.f32 %v5180_v3, 0.0  ;;  %v5039_v57 = vmax.f32 %v4176_v32, %v10391_v15  ;;  %v5184_v39 = vadd.f32 %v13842_v29, %v5037_v6  ;;  %10488 = vmatmul.mubr.msk.f32.vlgmr.msra.gmra.mrb[128].mxu1 %vm1064_vm1, %v6106_v21  ;;  %10592 = vmatmul.mubr.msk.f32.vlgmr.msra.gmra.mrb[192].mxu0 %vm1064_vm1, %v6106_v21 }
 0x34e   : > { %v5291_v46 = vmax.f32 %v5179_v26, 0.0  ;;  %v5557_v22 = vrot.slane %v5290_v43, %v13877_v4  ;;  %v5040_v19 = vmax.f32 %v4178_v56, %v10392_v61  ;;  %v5185_v18 = vadd.f32 %v13896_v51, %v5038_v17 }
 0x34f   : > { %v16666_v49 = vmov 0.0   ;;  %v5293_v2 = vmax.f32 %v5181_v8, 0.0  ;;  %v5565_v50 = vrot.slane %v5292_v44, %v13877_v4  ;;  %v5186_v32 = vadd.f32 %v13861_v14, %v5039_v57 }
 0x350   : > { %6300 = vmatprep.mubr.f32.mxu1 %v16666_v49  ;;  %6888 = vmatprep.mubr.f32.mxu0 %v16666_v49  ;;  %v5296_v40 = vmax.f32 %v5184_v39, 0.0  ;;  %v16667_v12 = vpack.c.bf16 %v13893_v42, %v13888_v60  ;;  %v5561_v56 = vrot.slane %v5291_v46, %v13877_v4  ;;  %v5187_v45 = vadd.f32 %v13899_v24, %v5040_v19 }
 0x351   : > { %v5297_v3 = vmax.f32 %v5185_v18, 0.0  ;;  %v4193_v15 = vrot.slane %v4179_v7, %v13835_v52  ;;  %v5569_v6 = vrot.slane %v5293_v2, %v13877_v4  ;;  %v5298_v26 = vmax.f32 %v5186_v32, 0.0 }
 0x352   : > { %11094 = vmatpush1.bf16.msra.mxu1 %v16667_v12  ;;  %v5581_v43 = vrot.slane %v5296_v40, %v13877_v4  ;;  %v4194_v61 = vcombine.high %v4186_v34, %v4186_v34  ;;  %v5984_v17 = vsel %vm5970_vm15, %v5561_v56, %v5557_v22  ;;  %v5299_v21 = vmax.f32 %v5187_v45, 0.0  ;;  %v3879_v12 = vpop.permute.xlu0 %3878 }
 0x353   : > { %v5585_v8 = vrot.slane %v5297_v3, %v13877_v4  ;;  %v4195_v60 = vcombine.high %v4193_v15, %v4193_v15  ;;  %v5985_v42 = vsel %vm5972_vm0, %v5565_v50, %v5984_v17  ;;  %v5589_v44 = vrot.slane %v5298_v26, %v13877_v4  ;;  %v3881_v50 = vpop.permute.xlu1 %3880 }
 0x354   : > { %v10393_v57 = vrot.slane %v4186_v34, 9  ;;  %v10394_v39 = vrot.slane %v4194_v61, 9  ;;  %v5986_v7 = vsel %vm5974_vm2, %v5569_v6, %v5985_v42  ;;  %v5593_v46 = vrot.slane %v5299_v21, %v13877_v4 }
 0x355   : > { %v5989_v19 = vsel %vm5970_vm15, %v5585_v8, %v5581_v43  ;;  %v10395_v18 = vrot.slane %v4193_v15, 9  ;;  %v5987_v22 = vsel %vm5976_vm3, %v13951_v9, %v5986_v7  ;;  %v10396_v32 = vrot.slane %v4195_v60, 9 }
 0x356   : > { %v5990_v2 = vsel %vm5972_vm0, %v5589_v44, %v5989_v19  ;;  %v5041_v40 = vmax.f32 %v4186_v34, %v10393_v57  ;;  %v5988_v56 = vsel %vm5978_vm4, %v13959_v31, %v5987_v22  ;;  %v5042_v3 = vmax.f32 %v4194_v61, %v10394_v39  ;;  %v14014_v22 = vpop.permute.xlu0 %3882 }
 0x357   : > { %v5991_v45 = vsel %vm5974_vm2, %v5593_v46, %v5990_v2  ;;  %v5043_v6 = vmax.f32 %v4193_v15, %v10395_v18  ;;  %6091 = vst.msk [vmem:[#allocation3 + $0xa] sm:$0x3f] %vm6090_vm7, %v5988_v56  ;;  %v5044_v26 = vmax.f32 %v4195_v60, %v10396_v32  ;;  %v4046_v9 = vmax.f32 %v13584_v62, %v13955_v59 }
 0x358   : > { %v5188_v43 = vadd.f32 %v13849_v37, %v5041_v40  ;;  %v3981_v17 = vsel %vm3974_vm14, %v3871_v54, %v3873_v13  ;;  %v5189_v34 = vadd.f32 %v13902_v58, %v5042_v3  ;;  %v3983_v8 = vsel %vm3974_vm14, %v3879_v12, %v3881_v50 }
 0x359   : > { %v5190_v21 = vadd.f32 %v13872_v33, %v5043_v6  ;;  %v4045_v31 = vmax.f32 %v13588_v5, %v3981_v17  ;;  %v5191_v15 = vadd.f32 %v13905_v25, %v5044_v26  ;;  %v4219_v60 = vrot.slane %v4046_v9, %v13835_v52 }
 0x35a   : > { %v5300_v61 = vmax.f32 %v5188_v43, 0.0  ;;  %v4047_v42 = vmax.f32 %v13625_v27, %v3983_v8  ;;  %v5301_v44 = vmax.f32 %v5189_v34, 0.0  ;;  %v3885_v27 = vpop.permute.xlu1 %3884 }
 0x35b   : > { %v5302_v57 = vmax.f32 %v5190_v21, 0.0  ;;  %v4196_v62 = vcombine.high %v4045_v31, %v4045_v31  ;;  %v4203_v59 = vrot.slane %v4045_v31, %v13835_v52  ;;  %v5303_v54 = vmax.f32 %v5191_v15, 0.0  ;;  %v6108_v15 = vld [vmem:[#allocation3 + $0x10] sm:$0xff] }
 0x35c   : > { %v5597_v13 = vrot.slane %v5300_v61, %v13877_v4  ;;  %v4220_v39 = vcombine.high %v4219_v60, %v4219_v60  ;;  %v10401_v7 = vrot.slane %v4219_v60, 9  ;;  %v5601_v5 = vrot.slane %v5301_v44, %v13877_v4 }
 0x35d   : > { %v5605_v46 = vrot.slane %v5302_v57, %v13877_v4  ;;  %v4210_v19 = vrot.slane %v4196_v62, %v13835_v52  ;;  %v4211_v18 = vcombine.high %v4203_v59, %v4203_v59  ;;  %v5609_v2 = vrot.slane %v5303_v54, %v13877_v4 }
 0x35e   : > { %v5992_v32 = vsel %vm5976_vm3, %v5597_v13, %v5991_v45  ;;  %v10402_v40 = vrot.slane %v4220_v39, 9  ;;  %v5049_v12 = vmax.f32 %v4219_v60, %v10401_v7  ;;  %v10397_v3 = vrot.slane %v4203_v59, 9  ;;  %v6107_v26 = vld [vmem:[#allocation3 + $0x8] sm:$0xff]  ;;  %v3893_v7 = vpop.permute.xlu1 %3892 }
 0x35f   : > { %v5993_v50 = vsel %vm5978_vm4, %v5601_v5, %v5992_v32  ;;  %v4212_v56 = vcombine.high %v4210_v19, %v4210_v19  ;;  %v10398_v6 = vrot.slane %v4211_v18, 9  ;;  %v10399_v34 = vrot.slane %v4210_v19, 9  ;;  %10489 = vmatmul.mubr.msk.f32.gmra.mrb[130].mxu1 %vm1064_vm1, %v6107_v26  ;;  %10593 = vmatmul.mubr.msk.f32.gmra.mrb[194].mxu0 %vm1064_vm1, %v6107_v26 }
 0x360   : > { %v5994_v43 = vsel %vm5980_vm5, %v5605_v46, %v5993_v50  ;;  %v5050_v9 = vmax.f32 %v4220_v39, %v10402_v40  ;;  %v5196_v17 = vadd.f32 %v13849_v37, %v5049_v12  ;;  %v5045_v31 = vmax.f32 %v4203_v59, %v10397_v3  ;;  %6306 = vmatprep.mubr.f32.mxu1 %v16666_v49  ;;  %v3891_v39 = vpop.permute.xlu0 %3890 }
 0x361   : > { %v5995_v45 = vsel %vm5982_vm6, %v5609_v2, %v5994_v43  ;;  %v10400_v21 = vrot.slane %v4212_v56, 9  ;;  %v5046_v8 = vmax.f32 %v4211_v18, %v10398_v6  ;;  %6894 = vmatprep.mubr.f32.mxu0 %v16666_v49  ;;  %v5047_v44 = vmax.f32 %v4210_v19, %v10399_v34 }
 0x362   : > { %6092 = vst.msk [vmem:[#allocation3 + $0x1a] sm:$0xff] %vm1064_vm1, %v5995_v45  ;;  %v5197_v61 = vadd.f32 %v13902_v58, %v5050_v9  ;;  %v5308_v60 = vmax.f32 %v5196_v17, 0.0  ;;  %v4221_v57 = vcombine.high %v4047_v42, %v4047_v42  ;;  %v5192_v54 = vadd.f32 %v13842_v29, %v5045_v31 }
 0x363   : > { %v5048_v62 = vmax.f32 %v4212_v56, %v10400_v21  ;;  %v5193_v13 = vadd.f32 %v13896_v51, %v5046_v8  ;;  %v4228_v59 = vrot.slane %v4047_v42, %v13835_v52  ;;  %v5194_v18 = vadd.f32 %v13861_v14, %v5047_v44  ;;  %10490 = vmatmul.mubr.msk.f32.gmra.mrb[132].mxu1 %vm1064_vm1, %v6108_v15  ;;  %v3889_v44 = vpop.permute.xlu1 %3888 }
 0x364   : > { %v5309_v5 = vmax.f32 %v5197_v61, 0.0  ;;  %v5629_v46 = vrot.slane %v5308_v60, %v13877_v4  ;;  %v4235_v2 = vrot.slane %v4221_v57, %v13835_v52  ;;  %10594 = vmatmul.mubr.msk.f32.gmra.mrb[196].mxu0 %vm1064_vm1, %v6108_v15  ;;  %v5304_v32 = vmax.f32 %v5192_v54, 0.0  ;;  %6310 = vmatprep.mubr.f32.mxu1 %v16666_v49  ;;  %v3887_v60 = vpop.permute.xlu0 %3886 }
 0x365   : > { %v5195_v19 = vadd.f32 %v13899_v24, %v5048_v62  ;;  %v5305_v40 = vmax.f32 %v5193_v13, 0.0  ;;  %v4236_v12 = vcombine.high %v4228_v59, %v4228_v59  ;;  %6898 = vmatprep.mubr.f32.mxu0 %v16666_v49  ;;  %v5306_v50 = vmax.f32 %v5194_v18, 0.0 }
 0x366   : > { %v5633_v42 = vrot.slane %v5309_v5, %v13877_v4  ;;  %v4237_v56 = vcombine.high %v4235_v2, %v4235_v2  ;;  %v10403_v3 = vrot.slane %v4228_v59, 9  ;;  %v5613_v26 = vrot.slane %v5304_v32, %v13877_v4 }
 0x367   : > { %v5307_v6 = vmax.f32 %v5195_v19, 0.0  ;;  %v5617_v43 = vrot.slane %v5305_v40, %v13877_v4  ;;  %v10404_v9 = vrot.slane %v4236_v12, 9  ;;  %v5621_v17 = vrot.slane %v5306_v50, %v13877_v4 }
 0x368   : > { %v10405_v34 = vrot.slane %v4235_v2, 9  ;;  %v10406_v45 = vrot.slane %v4237_v56, 9  ;;  %v5051_v21 = vmax.f32 %v4228_v59, %v10403_v3  ;;  %v3984_v61 = vsel %vm3974_vm14, %v14014_v22, %v3885_v27 }
 0x369   : > { %v5625_v31 = vrot.slane %v5307_v6, %v13877_v4  ;;  %v5996_v8 = vsel %vm5970_vm15, %v5617_v43, %v5613_v26  ;;  %v5052_v15 = vmax.f32 %v4236_v12, %v10404_v9  ;;  %v6109_v57 = vld [vmem:[#allocation3 + $0x18] sm:$0xff]  ;;  %v4048_v19 = vmax.f32 %v13658_v28, %v3984_v61 }
 0x36a   : > { %v5997_v62 = vsel %vm5972_vm0, %v5621_v17, %v5996_v8  ;;  %v5053_v54 = vmax.f32 %v4235_v2, %v10405_v34  ;;  %v5054_v13 = vmax.f32 %v4237_v56, %v10406_v45  ;;  %v5198_v5 = vadd.f32 %v13842_v29, %v5051_v21  ;;  %10491 = vmatmul.mubr.msk.f32.gmra.mrb[134].mxu1 %vm1064_vm1, %v6109_v57  ;;  %v3895_v17 = vpop.permute.xlu0 %3894 }
 0x36b   : > { %v5998_v59 = vsel %vm5974_vm2, %v5625_v31, %v5997_v62  ;;  %v5199_v18 = vadd.f32 %v13896_v51, %v5052_v15  ;;  %v3986_v32 = vsel %vm3974_vm14, %v3891_v39, %v3893_v7  ;;  %10595 = vmatmul.mubr.msk.f32.gmra.mrb[198].mxu0 %vm1064_vm1, %v6109_v57  ;;  %6316 = vmatprep.mubr.f32.mxu1 %v16666_v49 }
 0x36c   : > { %v5999_v22 = vsel %vm5976_vm3, %v5629_v46, %v5998_v59  ;;  %v5200_v27 = vadd.f32 %v13861_v14, %v5053_v54  ;;  %v5201_v2 = vadd.f32 %v13899_v24, %v5054_v13  ;;  %v5310_v40 = vmax.f32 %v5198_v5, 0.0  ;;  %6904 = vmatprep.mubr.f32.mxu0 %v16666_v49 }
 0x36d   : > { %v6000_v12 = vsel %vm5978_vm4, %v5633_v42, %v5999_v22  ;;  %v5311_v50 = vmax.f32 %v5199_v18, 0.0  ;;  %v4238_v56 = vcombine.high %v4048_v19, %v4048_v19  ;;  %v4245_v28 = vrot.slane %v4048_v19, %v13835_v52  ;;  %v3897_v42 = vpop.permute.xlu1 %3896 }
 0x36e   : > { %6093 = vst.msk [vmem:[#allocation3 + $0x22] sm:$0x3f] %vm6090_vm7, %v6000_v12  ;;  %v5312_v39 = vmax.f32 %v5200_v27, 0.0  ;;  %v5313_v7 = vmax.f32 %v5201_v2, 0.0  ;;  %v5637_v46 = vrot.slane %v5310_v40, %v13877_v4  ;;  %v4050_v3 = vmax.f32 %v13666_v20, %v3986_v32 }
 0x36f   : > { %v5641_v6 = vrot.slane %v5311_v50, %v13877_v4  ;;  %v4252_v26 = vrot.slane %v4238_v56, %v13835_v52  ;;  %v4253_v43 = vcombine.high %v4245_v28, %v4245_v28  ;;  %v10407_v9 = vrot.slane %v4245_v28, 9  ;;  %v3899_v50 = vpop.permute.xlu0 %3898 }
 0x370   : > { %v5645_v34 = vrot.slane %v5312_v39, %v13877_v4  ;;  %v5649_v45 = vrot.slane %v5313_v7, %v13877_v4  ;;  %v4278_v21 = vrot.slane %v4050_v3, %v13835_v52  ;;  %v3985_v31 = vsel %vm3974_vm14, %v3887_v60, %v3889_v44 }
 0x371   : > { %v6001_v8 = vsel %vm5970_vm15, %v5641_v6, %v5637_v46  ;;  %v4254_v15 = vcombine.high %v4252_v26, %v4252_v26  ;;  %v10408_v20 = vrot.slane %v4253_v43, 9  ;;  %v10409_v61 = vrot.slane %v4252_v26, 9  ;;  %v3901_v56 = vpop.permute.xlu1 %3900 }
 0x372   : > { %v6002_v57 = vsel %vm5972_vm0, %v5645_v34, %v6001_v8  ;;  %v5055_v62 = vmax.f32 %v4245_v28, %v10407_v9  ;;  %v4279_v54 = vcombine.high %v4278_v21, %v4278_v21  ;;  %v10415_v13 = vrot.slane %v4278_v21, 9  ;;  %v6111_v9 = vld [vmem:[#allocation3 + $0x28] sm:$0xff] }
 0x373   : > { %v6003_v5 = vsel %vm5974_vm2, %v5649_v45, %v6002_v57  ;;  %v10410_v59 = vrot.slane %v4254_v15, 9  ;;  %v5056_v18 = vmax.f32 %v4253_v43, %v10408_v20  ;;  %v5057_v19 = vmax.f32 %v4252_v26, %v10409_v61 }
 0x374   : > { %v5202_v32 = vadd.f32 %v13849_v37, %v5055_v62  ;;  %v10416_v22 = vrot.slane %v4279_v54, 9  ;;  %v5063_v27 = vmax.f32 %v4278_v21, %v10415_v13  ;;  %v4049_v60 = vmax.f32 %v13670_v63, %v3985_v31 }
 0x375   : > { %v5058_v44 = vmax.f32 %v4254_v15, %v10410_v59  ;;  %v5203_v2 = vadd.f32 %v13902_v58, %v5056_v18  ;;  %v5204_v40 = vadd.f32 %v13872_v33, %v5057_v19  ;;  %v3987_v12 = vsel %vm3974_vm14, %v3895_v17, %v3897_v42  ;;  %v6110_v28 = vld [vmem:[#allocation3 + $0x20] sm:$0xff]  ;;  %v3907_v19 = vpop.permute.xlu0 %3906 }
 0x376   : > { %v5314_v39 = vmax.f32 %v5202_v32, 0.0  ;;  %v5064_v7 = vmax.f32 %v4279_v54, %v10416_v22  ;;  %v5210_v46 = vadd.f32 %v13849_v37, %v5063_v27  ;;  %v4255_v3 = vcombine.high %v4049_v60, %v4049_v60  ;;  %10492 = vmatmul.mubr.msk.f32.gmra.mrb[136].mxu1 %vm1064_vm1, %v6110_v28  ;;  %10596 = vmatmul.mubr.msk.f32.gmra.mrb[200].mxu0 %vm1064_vm1, %v6110_v28  ;;  %v3909_v32 = vpop.permute.xlu1 %3908 }
 0x377   : > { %v5205_v63 = vadd.f32 %v13905_v25, %v5058_v44  ;;  %v5315_v6 = vmax.f32 %v5203_v2, 0.0  ;;  %v5316_v26 = vmax.f32 %v5204_v40, 0.0  ;;  %v4262_v43 = vrot.slane %v4049_v60, %v13835_v52  ;;  %6322 = vmatprep.mubr.f32.mxu1 %v16666_v49  ;;  %6910 = vmatprep.mubr.f32.mxu0 %v16666_v49 }
 0x378   : > { %v5653_v17 = vrot.slane %v5314_v39, %v13877_v4  ;;  %v5211_v42 = vadd.f32 %v13902_v58, %v5064_v7  ;;  %v5322_v34 = vmax.f32 %v5210_v46, 0.0  ;;  %v4269_v45 = vrot.slane %v4255_v3, %v13835_v52 }
 0x379   : > { %v5317_v21 = vmax.f32 %v5205_v63, 0.0  ;;  %v5657_v31 = vrot.slane %v5315_v6, %v13877_v4  ;;  %v5661_v8 = vrot.slane %v5316_v26, %v13877_v4  ;;  %v4270_v15 = vcombine.high %v4262_v43, %v4262_v43 }
 0x37a   : > { %v6004_v20 = vsel %vm5976_vm3, %v5653_v17, %v6003_v5  ;;  %v5323_v61 = vmax.f32 %v5211_v42, 0.0  ;;  %v14093_v57 = vrot.slane %v5322_v34, %v13877_v4  ;;  %v4271_v62 = vcombine.high %v4269_v45, %v4269_v45  ;;  %10493 = vmatmul.mubr.msk.f32.gmra.mrb[138].mxu1 %vm1064_vm1, %v6111_v9  ;;  %10597 = vmatmul.mubr.msk.f32.gmra.mrb[202].mxu0 %vm1064_vm1, %v6111_v9 }
 0x37b   : > { %v5665_v54 = vrot.slane %v5317_v21, %v13877_v4  ;;  %v6005_v13 = vsel %vm5978_vm4, %v5657_v31, %v6004_v20  ;;  %v10411_v59 = vrot.slane %v4262_v43, 9  ;;  %v10412_v18 = vrot.slane %v4270_v15, 9  ;;  %6326 = vmatprep.mubr.f32.mxu1 %v16666_v49  ;;  %6914 = vmatprep.mubr.f32.mxu0 %v16666_v49 }
 0x37c   : > { %v6006_v5 = vsel %vm5980_vm5, %v5661_v8, %v6005_v13  ;;  %v5689_v22 = vrot.slane %v5323_v61, %v13877_v4  ;;  %v10413_v27 = vrot.slane %v4269_v45, 9  ;;  %v10414_v60 = vrot.slane %v4271_v62, 9 }
 0x37d   : > { %v6007_v44 = vsel %vm5982_vm6, %v5665_v54, %v6006_v5  ;;  %v5059_v2 = vmax.f32 %v4262_v43, %v10411_v59  ;;  %v5060_v40 = vmax.f32 %v4270_v15, %v10412_v18  ;;  %v4051_v28 = vmax.f32 %v13683_v47, %v3987_v12 }
 0x37e   : > { %6094 = vst.msk [vmem:[#allocation3 + $0x32] sm:$0xff] %vm1064_vm1, %v6007_v44  ;;  %v5061_v39 = vmax.f32 %v4269_v45, %v10413_v27  ;;  %v5062_v7 = vmax.f32 %v4271_v62, %v10414_v60  ;;  %v3988_v46 = vsel %vm3974_vm14, %v3899_v50, %v3901_v56  ;;  %v14108_v3 = vsel %vm3974_vm14, %v3907_v19, %v3909_v32 }
 0x37f   : > { %v5206_v63 = vadd.f32 %v13842_v29, %v5059_v2  ;;  %v5207_v6 = vadd.f32 %v13896_v51, %v5060_v40  ;;  %v4280_v26 = vcombine.high %v4051_v28, %v4051_v28  ;;  %v4287_v9 = vrot.slane %v4051_v28, %v13835_v52  ;;  %v3903_v40 = vpop.permute.xlu0 %3902  ;;  %v3905_v28 = vpop.permute.xlu1 %3904 }
 0x380   : > { %v5208_v43 = vadd.f32 %v13861_v14, %v5061_v39  ;;  %v5209_v47 = vadd.f32 %v13899_v24, %v5062_v7  ;;  %v4052_v12 = vmax.f32 %v13692_v53, %v3988_v46  ;;  %v4054_v17 = vmax.f32 %v13700_v1, %v14108_v3 }
 0x381   : > { %v5318_v50 = vmax.f32 %v5206_v63, 0.0  ;;  %v5319_v56 = vmax.f32 %v5207_v6, 0.0  ;;  %v4294_v42 = vrot.slane %v4280_v26, %v13835_v52  ;;  %v4295_v34 = vcombine.high %v4287_v9, %v4287_v9 }
 0x382   : > { %v5320_v45 = vmax.f32 %v5208_v43, 0.0  ;;  %v5321_v21 = vmax.f32 %v5209_v47, 0.0  ;;  %v10417_v31 = vrot.slane %v4287_v9, 9  ;;  %v4297_v8 = vcombine.high %v4052_v12, %v4052_v12 }
 0x383   : > { %v5669_v15 = vrot.slane %v5318_v50, %v13877_v4  ;;  %v5673_v20 = vrot.slane %v5319_v56, %v13877_v4  ;;  %v4296_v61 = vcombine.high %v4294_v42, %v4294_v42  ;;  %v10418_v62 = vrot.slane %v4295_v34, 9 }
 0x384   : > { %v5677_v53 = vrot.slane %v5320_v45, %v13877_v4  ;;  %v5681_v54 = vrot.slane %v5321_v21, %v13877_v4  ;;  %v10419_v1 = vrot.slane %v4294_v42, 9  ;;  %v5065_v13 = vmax.f32 %v4287_v9, %v10417_v31 }
 0x385   : > { %v6008_v59 = vsel %vm5970_vm15, %v5673_v20, %v5669_v15  ;;  %v10420_v18 = vrot.slane %v4296_v61, 9  ;;  %v5066_v19 = vmax.f32 %v4295_v34, %v10418_v62  ;;  %v4304_v32 = vrot.slane %v4052_v12, %v13835_v52  ;;  %v6112_v5 = vld [vmem:[#allocation3 + $0x30] sm:$0xff]  ;;  %v3911_v62 = vpop.permute.xlu0 %3910 }
 0x386   : > { %v6009_v27 = vsel %vm5972_vm0, %v5677_v53, %v6008_v59  ;;  %v5067_v60 = vmax.f32 %v4294_v42, %v10419_v1  ;;  %v5212_v44 = vadd.f32 %v13842_v29, %v5065_v13  ;;  %v4311_v2 = vrot.slane %v4297_v8, %v13835_v52  ;;  %10494 = vmatmul.mubr.msk.f32.gmra.mrb[140].mxu1 %vm1064_vm1, %v6112_v5  ;;  %v3913_v53 = vpop.permute.xlu1 %3912 }
 0x387   : > { %v6010_v39 = vsel %vm5974_vm2, %v5681_v54, %v6009_v27  ;;  %v5068_v7 = vmax.f32 %v4296_v61, %v10420_v18  ;;  %v5213_v46 = vadd.f32 %v13896_v51, %v5066_v19  ;;  %v4312_v3 = vcombine.high %v4304_v32, %v4304_v32  ;;  %10598 = vmatmul.mubr.msk.f32.gmra.mrb[204].mxu0 %vm1064_vm1, %v6112_v5 }
 0x388   : > { %v6011_v63 = vsel %vm5976_vm3, %v14093_v57, %v6010_v39  ;;  %v5214_v6 = vadd.f32 %v13861_v14, %v5067_v60  ;;  %v5324_v26 = vmax.f32 %v5212_v44, 0.0  ;;  %v4313_v9 = vcombine.high %v4311_v2, %v4311_v2  ;;  %6332 = vmatprep.mubr.f32.mxu1 %v16666_v49  ;;  %6920 = vmatprep.mubr.f32.mxu0 %v16666_v49 }
 0x389   : > { %v6012_v43 = vsel %vm5978_vm4, %v5689_v22, %v6011_v63  ;;  %v5215_v47 = vadd.f32 %v13899_v24, %v5068_v7  ;;  %v5325_v12 = vmax.f32 %v5213_v46, 0.0  ;;  %v10421_v50 = vrot.slane %v4304_v32, 9 }
 0x38a   : > { %6095 = vst.msk [vmem:[#allocation3 + $0x3a] sm:$0x3f] %vm6090_vm7, %v6012_v43  ;;  %v5326_v56 = vmax.f32 %v5214_v6, 0.0  ;;  %v5693_v42 = vrot.slane %v5324_v26, %v13877_v4  ;;  %v10422_v57 = vrot.slane %v4312_v3, 9  ;;  %v10423_v34 = vrot.slane %v4311_v2, 9 }
 0x38b   : > { %v5327_v45 = vmax.f32 %v5215_v47, 0.0  ;;  %v5697_v21 = vrot.slane %v5325_v12, %v13877_v4  ;;  %v10424_v31 = vrot.slane %v4313_v9, 9  ;;  %v5069_v8 = vmax.f32 %v4304_v32, %v10421_v50 }
 0x38c   : > { %v5701_v15 = vrot.slane %v5326_v56, %v13877_v4  ;;  %v5070_v20 = vmax.f32 %v4312_v3, %v10422_v57  ;;  %v5071_v22 = vmax.f32 %v4311_v2, %v10423_v34  ;;  %v4337_v61 = vrot.slane %v4054_v17, %v13835_v52  ;;  %v3915_v56 = vpop.permute.xlu0 %3914 }
 0x38d   : > { %v5705_v54 = vrot.slane %v5327_v45, %v13877_v4  ;;  %v6013_v1 = vsel %vm5970_vm15, %v5697_v21, %v5693_v42  ;;  %v5072_v13 = vmax.f32 %v4313_v9, %v10424_v31  ;;  %v5216_v59 = vadd.f32 %v13849_v37, %v5069_v8  ;;  %v3917_v42 = vpop.permute.xlu1 %3916 }
 0x38e   : > { %v6014_v18 = vsel %vm5972_vm0, %v5701_v15, %v6013_v1  ;;  %v5217_v19 = vadd.f32 %v13902_v58, %v5070_v20  ;;  %v5218_v32 = vadd.f32 %v13872_v33, %v5071_v22  ;;  %v4338_v5 = vcombine.high %v4337_v61, %v4337_v61 }
 0x38f   : > { %v6015_v27 = vsel %vm5974_vm2, %v5705_v54, %v6014_v18  ;;  %v5219_v17 = vadd.f32 %v13905_v25, %v5072_v13  ;;  %v5328_v60 = vmax.f32 %v5216_v59, 0.0  ;;  %v10429_v44 = vrot.slane %v4337_v61, 9 }
 0x390   : > { %v5329_v2 = vmax.f32 %v5217_v19, 0.0  ;;  %v5330_v39 = vmax.f32 %v5218_v32, 0.0  ;;  %v10430_v7 = vrot.slane %v4338_v5, 9  ;;  %v3989_v46 = vsel %vm3974_vm14, %v3903_v40, %v3905_v28 }
 0x391   : > { %v5331_v3 = vmax.f32 %v5219_v17, 0.0  ;;  %v5709_v63 = vrot.slane %v5328_v60, %v13877_v4  ;;  %v5077_v6 = vmax.f32 %v4337_v61, %v10429_v44  ;;  %v4053_v26 = vmax.f32 %v13704_v48, %v3989_v46  ;;  %v6113_v9 = vld [vmem:[#allocation3 + $0x38] sm:$0xff]  ;;  %v6114_v48 = vld [vmem:[#allocation3 + $0x40] sm:$0xff] }
 0x392   : > { %v5713_v43 = vrot.slane %v5329_v2, %v13877_v4  ;;  %v5717_v47 = vrot.slane %v5330_v39, %v13877_v4  ;;  %v5078_v12 = vmax.f32 %v4338_v5, %v10430_v7  ;;  %v3991_v50 = vsel %vm3974_vm14, %v3911_v62, %v3913_v53  ;;  %10495 = vmatmul.mubr.msk.f32.gmra.mrb[142].mxu1 %vm1064_vm1, %v6113_v9 }
 0x393   : > { %v5721_v40 = vrot.slane %v5331_v3, %v13877_v4  ;;  %v6016_v28 = vsel %vm5976_vm3, %v5709_v63, %v6015_v27  ;;  %v5224_v57 = vadd.f32 %v13849_v37, %v5077_v6  ;;  %v4314_v34 = vcombine.high %v4053_v26, %v4053_v26  ;;  %10599 = vmatmul.mubr.msk.f32.gmra.mrb[206].mxu0 %vm1064_vm1, %v6113_v9 }
 0x394   : > { %v6017_v45 = vsel %vm5978_vm4, %v5713_v43, %v6016_v28  ;;  %v5225_v21 = vadd.f32 %v13902_v58, %v5078_v12  ;;  %v4321_v31 = vrot.slane %v4053_v26, %v13835_v52  ;;  %v4055_v8 = vmax.f32 %v13717_v55, %v3991_v50  ;;  %6338 = vmatprep.mubr.f32.mxu1 %v16666_v49 }
 0x395   : > { %v6018_v15 = vsel %vm5980_vm5, %v5717_v47, %v6017_v45  ;;  %v5336_v20 = vmax.f32 %v5224_v57, 0.0  ;;  %v4328_v22 = vrot.slane %v4314_v34, %v13835_v52  ;;  %v3992_v61 = vsel %vm3974_vm14, %v3915_v56, %v3917_v42  ;;  %6926 = vmatprep.mubr.f32.mxu0 %v16666_v49  ;;  %v3923_v56 = vpop.permute.xlu0 %3922  ;;  %v3925_v42 = vpop.permute.xlu1 %3924 }
 0x396   : > { %v6019_v62 = vsel %vm5982_vm6, %v5721_v40, %v6018_v15  ;;  %v5337_v53 = vmax.f32 %v5225_v21, 0.0  ;;  %v4329_v54 = vcombine.high %v4321_v31, %v4321_v31  ;;  %v10425_v1 = vrot.slane %v4321_v31, 9  ;;  %10496 = vmatmul.mubr.msk.f32.gmra.mrb[144].mxu1 %vm1064_vm1, %v6114_v48 }
 0x397   : > { %6096 = vst.msk [vmem:[#allocation3 + $0x4a] sm:$0xff] %vm1064_vm1, %v6019_v62  ;;  %v14176_v55 = vrot.slane %v5336_v20, %v13877_v4  ;;  %v4330_v13 = vcombine.high %v4328_v22, %v4328_v22  ;;  %v10427_v59 = vrot.slane %v4328_v22, 9  ;;  %v4339_v18 = vcombine.high %v4055_v8, %v4055_v8  ;;  %10600 = vmatmul.mubr.msk.f32.gmra.mrb[208].mxu0 %vm1064_vm1, %v6114_v48 }
 0x398   : > { %6342 = vmatprep.mubr.f32.mxu1 %v16666_v49  ;;  %v14181_v19 = vrot.slane %v5337_v53, %v13877_v4  ;;  %v10426_v32 = vrot.slane %v4329_v54, 9  ;;  %v5073_v5 = vmax.f32 %v4321_v31, %v10425_v1  ;;  %v4346_v27 = vrot.slane %v4055_v8, %v13835_v52  ;;  %6930 = vmatprep.mubr.f32.mxu0 %v16666_v49 }
 0x399   : > { %v10428_v17 = vrot.slane %v4330_v13, 9  ;;  %v5075_v60 = vmax.f32 %v4328_v22, %v10427_v59  ;;  %v4353_v44 = vrot.slane %v4339_v18, %v13835_v52  ;;  %v4056_v2 = vmax.f32 %v13726_v16, %v3992_v61 }
 0x39a   : > { %v5074_v39 = vmax.f32 %v4329_v54, %v10426_v32  ;;  %v5220_v7 = vadd.f32 %v13842_v29, %v5073_v5  ;;  %v4354_v46 = vcombine.high %v4346_v27, %v4346_v27  ;;  %v10431_v3 = vrot.slane %v4346_v27, 9 }
 0x39b   : > { %v5076_v63 = vmax.f32 %v4330_v13, %v10428_v17  ;;  %v5222_v6 = vadd.f32 %v13861_v14, %v5075_v60  ;;  %v4355_v26 = vcombine.high %v4353_v44, %v4353_v44  ;;  %v10433_v9 = vrot.slane %v4353_v44, 9  ;;  %v3919_v60 = vpop.permute.xlu0 %3918 }
 0x39c   : > { %v5221_v43 = vadd.f32 %v13896_v51, %v5074_v39  ;;  %v5332_v47 = vmax.f32 %v5220_v7, 0.0  ;;  %v10432_v12 = vrot.slane %v4354_v46, 9  ;;  %v5079_v50 = vmax.f32 %v4346_v27, %v10431_v3 }
 0x39d   : > { %v5223_v40 = vadd.f32 %v13899_v24, %v5076_v63  ;;  %v5334_v16 = vmax.f32 %v5222_v6, 0.0  ;;  %v10434_v28 = vrot.slane %v4355_v26, 9  ;;  %v5081_v57 = vmax.f32 %v4353_v44, %v10433_v9  ;;  %v3921_v44 = vpop.permute.xlu1 %3920 }
 0x39e   : > { %v5333_v34 = vmax.f32 %v5221_v43, 0.0  ;;  %v5725_v48 = vrot.slane %v5332_v47, %v13877_v4  ;;  %v5080_v45 = vmax.f32 %v4354_v46, %v10432_v12  ;;  %v5226_v21 = vadd.f32 %v13842_v29, %v5079_v50  ;;  %v6115_v31 = vld [vmem:[#allocation3 + $0x48] sm:$0xff] }
 0x39f   : > { %v5335_v8 = vmax.f32 %v5223_v40, 0.0  ;;  %v5733_v15 = vrot.slane %v5334_v16, %v13877_v4  ;;  %v5082_v20 = vmax.f32 %v4355_v26, %v10434_v28  ;;  %v5228_v22 = vadd.f32 %v13861_v14, %v5081_v57  ;;  %10497 = vmatmul.mubr.msk.f32.gmra.mrb[146].mxu1 %vm1064_vm1, %v6115_v31  ;;  %10601 = vmatmul.mubr.msk.f32.gmra.mrb[210].mxu0 %vm1064_vm1, %v6115_v31  ;;  %v10517_v57 = vld [vmem:[%s16531_s3 + $0x108] sm:$0xff] }
 0x3a0   : > { %v5729_v61 = vrot.slane %v5333_v34, %v13877_v4  ;;  %v5227_v62 = vadd.f32 %v13896_v51, %v5080_v45  ;;  %v5338_v53 = vmax.f32 %v5226_v21, 0.0  ;;  %v4356_v54 = vcombine.high %v4056_v2, %v4056_v2  ;;  %6348 = vmatprep.mubr.f32.mxu1 %v16666_v49  ;;  %6936 = vmatprep.mubr.f32.mxu0 %v16666_v49  ;;  %v10519_v34 = vld [vmem:[%s16531_s3 + $0x118] sm:$0xff] }
 0x3a1   : > { %v5737_v1 = vrot.slane %v5335_v8, %v13877_v4  ;;  %v5229_v13 = vadd.f32 %v13899_v24, %v5082_v20  ;;  %v5340_v59 = vmax.f32 %v5228_v22, 0.0  ;;  %v4363_v18 = vrot.slane %v4056_v2, %v13835_v52  ;;  %v10516_v20 = vld [vmem:[%s16531_s3 + $0x100] sm:$0xff]  ;;  %v10518_v22 = vld [vmem:[%s16531_s3 + $0x110] sm:$0xff] }
 0x3a2   : > { %v6020_v32 = vsel %vm5970_vm15, %v5729_v61, %v5725_v48  ;;  %v5339_v5 = vmax.f32 %v5227_v62, 0.0  ;;  %v5749_v27 = vrot.slane %v5338_v53, %v13877_v4  ;;  %v4370_v17 = vrot.slane %v4356_v54, %v13835_v52  ;;  %v3927_v61 = vpop.permute.xlu0 %3926  ;;  %v3929_v62 = vpop.permute.xlu1 %3928 }
 0x3a3   : > { %v6021_v39 = vsel %vm5972_vm0, %v5733_v15, %v6020_v32  ;;  %v5341_v7 = vmax.f32 %v5229_v13, 0.0  ;;  %v5757_v46 = vrot.slane %v5340_v59, %v13877_v4  ;;  %v4371_v3 = vcombine.high %v4363_v18, %v4363_v18 }
 0x3a4   : > { %v6022_v63 = vsel %vm5974_vm2, %v5737_v1, %v6021_v39  ;;  %v5753_v6 = vrot.slane %v5339_v5, %v13877_v4  ;;  %v4372_v2 = vcombine.high %v4370_v17, %v4370_v17  ;;  %v10435_v26 = vrot.slane %v4363_v18, 9 }
 0x3a5   : > { %v6023_v9 = vsel %vm5976_vm3, %v14176_v55, %v6022_v63  ;;  %v5761_v43 = vrot.slane %v5341_v7, %v13877_v4  ;;  %v10436_v47 = vrot.slane %v4371_v3, 9  ;;  %v10437_v12 = vrot.slane %v4370_v17, 9 }
 0x3a6   : > { %v6024_v50 = vsel %vm5978_vm4, %v14181_v19, %v6023_v9  ;;  %v6025_v40 = vsel %vm5970_vm15, %v5753_v6, %v5749_v27  ;;  %v10438_v16 = vrot.slane %v4372_v2, 9  ;;  %v5083_v28 = vmax.f32 %v4363_v18, %v10435_v26 }
 0x3a7   : > { %6097 = vst.msk [vmem:[#allocation3 + $0x52] sm:$0x3f] %vm6090_vm7, %v6024_v50  ;;  %v6026_v55 = vsel %vm5972_vm0, %v5757_v46, %v6025_v40  ;;  %v5084_v48 = vmax.f32 %v4371_v3, %v10436_v47  ;;  %v5085_v45 = vmax.f32 %v4370_v17, %v10437_v12  ;;  %v3994_v19 = vsel %vm3974_vm14, %v3923_v56, %v3925_v42 }
 0x3a8   : > { %v6027_v21 = vsel %vm5974_vm2, %v5761_v43, %v6026_v55  ;;  %v5086_v31 = vmax.f32 %v4372_v2, %v10438_v16  ;;  %v5230_v8 = vadd.f32 %v13849_v37, %v5083_v28  ;;  %v4058_v15 = vmax.f32 %v13734_v36, %v3994_v19 }
 0x3a9   : > { %v5231_v53 = vadd.f32 %v13902_v58, %v5084_v48  ;;  %v5232_v56 = vadd.f32 %v13872_v33, %v5085_v45  ;;  %v11095_v42 = vpack.c.bf16 %v10519_v34, %v10517_v57  ;;  %v3993_v54 = vsel %vm3974_vm14, %v3919_v60, %v3921_v44  ;;  %v6117_v34 = vld [vmem:[#allocation3 + $0x58] sm:$0xff] }
 0x3aa   : > { %v5233_v1 = vadd.f32 %v13905_v25, %v5086_v31  ;;  %v5342_v36 = vmax.f32 %v5230_v8, 0.0  ;;  %v4396_v13 = vrot.slane %v4058_v15, %v13835_v52  ;;  %v4057_v59 = vmax.f32 %v13738_v23, %v3993_v54  ;;  %v3933_v31 = vpop.permute.xlu1 %3932 }
 0x3ab   : > { %v5343_v18 = vmax.f32 %v5231_v53, 0.0  ;;  %v5344_v32 = vmax.f32 %v5232_v56, 0.0  ;;  %11096 = vmatprep.subr.bf16.mxu1 %v11095_v42  ;;  %v11097_v5 = vpack.c.bf16 %v10518_v22, %v10516_v20  ;;  %v3995_v27 = vsel %vm3974_vm14, %v3927_v61, %v3929_v62 }
 0x3ac   : > { %v5345_v17 = vmax.f32 %v5233_v1, 0.0  ;;  %v5765_v39 = vrot.slane %v5342_v36, %v13877_v4  ;;  %v4397_v7 = vcombine.high %v4396_v13, %v4396_v13  ;;  %v10443_v46 = vrot.slane %v4396_v13, 9 }
 0x3ad   : > { %v5769_v60 = vrot.slane %v5343_v18, %v13877_v4  ;;  %v5773_v44 = vrot.slane %v5344_v32, %v13877_v4  ;;  %v4373_v3 = vcombine.high %v4057_v59, %v4057_v59  ;;  %v4380_v63 = vrot.slane %v4057_v59, %v13835_v52  ;;  %11098 = vmatpush1.bf16.msra.mxu1 %v11097_v5 }
 0x3ae   : > { %v5777_v23 = vrot.slane %v5345_v17, %v13877_v4  ;;  %v6028_v6 = vsel %vm5976_vm3, %v5765_v39, %v6027_v21  ;;  %v10444_v2 = vrot.slane %v4397_v7, 9  ;;  %v5091_v26 = vmax.f32 %v4396_v13, %v10443_v46  ;;  %v6116_v9 = vld [vmem:[#allocation3 + $0x50] sm:$0xff]  ;;  %v3931_v21 = vpop.permute.xlu0 %3930 }
 0x3af   : > { %v6029_v43 = vsel %vm5978_vm4, %v5769_v60, %v6028_v6  ;;  %v4387_v47 = vrot.slane %v4373_v3, %v13835_v52  ;;  %v4388_v12 = vcombine.high %v4380_v63, %v4380_v63  ;;  %v10439_v50 = vrot.slane %v4380_v63, 9  ;;  %10498 = vmatmul.mubr.msk.f32.gmra.mrb[148].mxu1 %vm1064_vm1, %v6116_v9  ;;  %10602 = vmatmul.mubr.msk.f32.gmra.mrb[212].mxu0 %vm1064_vm1, %v6116_v9  ;;  %v3941_v3 = vpop.permute.xlu1 %3940 }
 0x3b0   : > { %v6030_v40 = vsel %vm5980_vm5, %v5773_v44, %v6029_v43  ;;  %v5092_v16 = vmax.f32 %v4397_v7, %v10444_v2  ;;  %v5238_v28 = vadd.f32 %v13849_v37, %v5091_v26  ;;  %v4059_v57 = vmax.f32 %v13751_v38, %v3995_v27  ;;  %6354 = vmatprep.mubr.f32.mxu1 %v16666_v49 }
 0x3b1   : > { %v6031_v55 = vsel %vm5982_vm6, %v5777_v23, %v6030_v40  ;;  %v4389_v48 = vcombine.high %v4387_v47, %v4387_v47  ;;  %v10440_v45 = vrot.slane %v4388_v12, 9  ;;  %v10441_v19 = vrot.slane %v4387_v47, 9  ;;  %6942 = vmatprep.mubr.f32.mxu0 %v16666_v49 }
 0x3b2   : > { %6098 = vst.msk [vmem:[#allocation3 + $0x62] sm:$0xff] %vm1064_vm1, %v6031_v55  ;;  %v5239_v8 = vadd.f32 %v13902_v58, %v5092_v16  ;;  %v5350_v15 = vmax.f32 %v5238_v28, 0.0  ;;  %v5087_v20 = vmax.f32 %v4380_v63, %v10439_v50  ;;  %v4398_v22 = vcombine.high %v4059_v57, %v4059_v57  ;;  %v3939_v44 = vpop.permute.xlu0 %3938 }
 0x3b3   : > { %v10442_v38 = vrot.slane %v4389_v48, 9  ;;  %v5088_v61 = vmax.f32 %v4388_v12, %v10440_v45  ;;  %v5089_v62 = vmax.f32 %v4387_v47, %v10441_v19  ;;  %v4405_v53 = vrot.slane %v4059_v57, %v13835_v52  ;;  %10499 = vmatmul.mubr.msk.f32.gmra.mrb[150].mxu1 %vm1064_vm1, %v6117_v34  ;;  %10603 = vmatmul.mubr.msk.f32.gmra.mrb[214].mxu0 %vm1064_vm1, %v6117_v34 }
 0x3b4   : > { %v5351_v56 = vmax.f32 %v5239_v8, 0.0  ;;  %v5797_v42 = vrot.slane %v5350_v15, %v13877_v4  ;;  %v5234_v54 = vadd.f32 %v13842_v29, %v5087_v20  ;;  %v4412_v1 = vrot.slane %v4398_v22, %v13835_v52  ;;  %6358 = vmatprep.mubr.f32.mxu1 %v16666_v49  ;;  %6946 = vmatprep.mubr.f32.mxu0 %v16666_v49 }
 0x3b5   : > { %v5090_v36 = vmax.f32 %v4389_v48, %v10442_v38  ;;  %v5235_v13 = vadd.f32 %v13896_v51, %v5088_v61  ;;  %v5236_v59 = vadd.f32 %v13861_v14, %v5089_v62  ;;  %v4413_v18 = vcombine.high %v4405_v53, %v4405_v53  ;;  %v3937_v38 = vpop.permute.xlu1 %3936 }
 0x3b6   : > { %v5801_v32 = vrot.slane %v5351_v56, %v13877_v4  ;;  %v5346_v5 = vmax.f32 %v5234_v54, 0.0  ;;  %v4414_v27 = vcombine.high %v4412_v1, %v4412_v1  ;;  %v10445_v17 = vrot.slane %v4405_v53, 9 }
 0x3b7   : > { %v5237_v39 = vadd.f32 %v13899_v24, %v5090_v36  ;;  %v5347_v7 = vmax.f32 %v5235_v13, 0.0  ;;  %v5348_v46 = vmax.f32 %v5236_v59, 0.0  ;;  %v10446_v60 = vrot.slane %v4413_v18, 9  ;;  %v10521_v59 = vld [vmem:[%s16531_s3 + $0x128] sm:$0xff] }
 0x3b8   : > { %v5781_v63 = vrot.slane %v5346_v5, %v13877_v4  ;;  %v10447_v23 = vrot.slane %v4412_v1, 9  ;;  %v10448_v6 = vrot.slane %v4414_v27, 9  ;;  %v5093_v2 = vmax.f32 %v4405_v53, %v10445_v17 }
 0x3b9   : > { %v5349_v26 = vmax.f32 %v5237_v39, 0.0  ;;  %v5785_v9 = vrot.slane %v5347_v7, %v13877_v4  ;;  %v5789_v43 = vrot.slane %v5348_v46, %v13877_v4  ;;  %v5094_v47 = vmax.f32 %v4413_v18, %v10446_v60  ;;  %v6118_v12 = vld [vmem:[#allocation3 + $0x60] sm:$0xff]  ;;  %v10523_v18 = vld [vmem:[%s16531_s3 + $0x138] sm:$0xff] }
 0x3ba   : > { %v5095_v50 = vmax.f32 %v4412_v1, %v10447_v23  ;;  %v5096_v40 = vmax.f32 %v4414_v27, %v10448_v6  ;;  %v5240_v16 = vadd.f32 %v13842_v29, %v5093_v2  ;;  %v3996_v28 = vsel %vm3974_vm14, %v3931_v21, %v3933_v31  ;;  %10500 = vmatmul.mubr.msk.f32.gmra.mrb[152].mxu1 %vm1064_vm1, %v6118_v12  ;;  %v10520_v60 = vld [vmem:[%s16531_s3 + $0x120] sm:$0xff] }
 0x3bb   : > { %v5793_v57 = vrot.slane %v5349_v26, %v13877_v4  ;;  %v6032_v34 = vsel %vm5970_vm15, %v5785_v9, %v5781_v63  ;;  %v5241_v55 = vadd.f32 %v13896_v51, %v5094_v47  ;;  %v4060_v48 = vmax.f32 %v13760_v0, %v3996_v28  ;;  %10604 = vmatmul.mubr.msk.f32.gmra.mrb[216].mxu0 %vm1064_vm1, %v6118_v12  ;;  %v3935_v0 = vpop.permute.xlu0 %3934  ;;  %v10522_v63 = vld [vmem:[%s16531_s3 + $0x130] sm:$0xff]  ;;  %v3945_v12 = vpop.permute.xlu1 %3944 }
 0x3bc   : > { %v6033_v45 = vsel %vm5972_vm0, %v5789_v43, %v6032_v34  ;;  %v5242_v19 = vadd.f32 %v13861_v14, %v5095_v50  ;;  %v5243_v8 = vadd.f32 %v13899_v24, %v5096_v40  ;;  %v5352_v15 = vmax.f32 %v5240_v16, 0.0  ;;  %6364 = vmatprep.mubr.f32.mxu1 %v16666_v49  ;;  %6952 = vmatprep.mubr.f32.mxu0 %v16666_v49 }
 0x3bd   : > { %v6034_v21 = vsel %vm5974_vm2, %v5793_v57, %v6033_v45  ;;  %v5353_v31 = vmax.f32 %v5241_v55, 0.0  ;;  %v4415_v20 = vcombine.high %v4060_v48, %v4060_v48  ;;  %v4422_v22 = vrot.slane %v4060_v48, %v13835_v52 }
 0x3be   : > { %v6035_v61 = vsel %vm5976_vm3, %v5797_v42, %v6034_v21  ;;  %v5354_v62 = vmax.f32 %v5242_v19, 0.0  ;;  %v5355_v53 = vmax.f32 %v5243_v8, 0.0  ;;  %v5805_v56 = vrot.slane %v5352_v15, %v13877_v4 }
 0x3bf   : > { %v6036_v54 = vsel %vm5978_vm4, %v5801_v32, %v6035_v61  ;;  %v5809_v1 = vrot.slane %v5353_v31, %v13877_v4  ;;  %v4429_v36 = vrot.slane %v4415_v20, %v13835_v52  ;;  %v4430_v13 = vcombine.high %v4422_v22, %v4422_v22  ;;  %v3943_v47 = vpop.permute.xlu0 %3942 }
 0x3c0   : > { %6099 = vst.msk [vmem:[#allocation3 + $0x6a] sm:$0x3f] %vm6090_vm7, %v6036_v54  ;;  %v5813_v42 = vrot.slane %v5354_v62, %v13877_v4  ;;  %v5817_v5 = vrot.slane %v5355_v53, %v13877_v4  ;;  %v10449_v32 = vrot.slane %v4422_v22, 9  ;;  %v3998_v27 = vsel %vm3974_vm14, %v3939_v44, %v3941_v3 }
 0x3c1   : > { %v6037_v17 = vsel %vm5970_vm15, %v5809_v1, %v5805_v56  ;;  %v4431_v39 = vcombine.high %v4429_v36, %v4429_v36  ;;  %v10450_v7 = vrot.slane %v4430_v13, 9  ;;  %v10451_v46 = vrot.slane %v4429_v36, 9  ;;  %v6120_v1 = vld [vmem:[#allocation3 + $0x70] sm:$0xff] }
 0x3c2   : > { %v6038_v23 = vsel %vm5972_vm0, %v5813_v42, %v6037_v17  ;;  %v5097_v6 = vmax.f32 %v4422_v22, %v10449_v32  ;;  %v4062_v2 = vmax.f32 %v13768_v41, %v3998_v27  ;;  %v11099_v26 = vpack.c.bf16 %v10523_v18, %v10521_v59 }
 0x3c3   : > { %v6039_v44 = vsel %vm5974_vm2, %v5817_v5, %v6038_v23  ;;  %v10452_v3 = vrot.slane %v4431_v39, 9  ;;  %v5098_v9 = vmax.f32 %v4430_v13, %v10450_v7  ;;  %v5099_v43 = vmax.f32 %v4429_v36, %v10451_v46 }
 0x3c4   : > { %v5244_v50 = vadd.f32 %v13849_v37, %v5097_v6  ;;  %v4455_v40 = vrot.slane %v4062_v2, %v13835_v52  ;;  %11100 = vmatprep.subr.bf16.mxu1 %v11099_v26  ;;  %v11101_v16 = vpack.c.bf16 %v10522_v63, %v10520_v60  ;;  %v3997_v28 = vsel %vm3974_vm14, %v3935_v0, %v3937_v38  ;;  %v3947_v60 = vpop.permute.xlu0 %3946  ;;  %v3949_v63 = vpop.permute.xlu1 %3948 }
 0x3c5   : > { %v5100_v57 = vmax.f32 %v4431_v39, %v10452_v3  ;;  %v5245_v34 = vadd.f32 %v13902_v58, %v5098_v9  ;;  %v5246_v41 = vadd.f32 %v13872_v33, %v5099_v43  ;;  %v4061_v55 = vmax.f32 %v13772_v30, %v3997_v28 }
 0x3c6   : > { %v5356_v48 = vmax.f32 %v5244_v50, 0.0  ;;  %v4456_v45 = vcombine.high %v4455_v40, %v4455_v40  ;;  %v10457_v19 = vrot.slane %v4455_v40, 9  ;;  %11102 = vmatpush1.bf16.msra.mxu1 %v11101_v16  ;;  %v3999_v8 = vsel %vm3974_vm14, %v3943_v47, %v3945_v12 }
 0x3c7   : > { %v5247_v15 = vadd.f32 %v13905_v25, %v5100_v57  ;;  %v5357_v21 = vmax.f32 %v5245_v34, 0.0  ;;  %v5358_v31 = vmax.f32 %v5246_v41, 0.0  ;;  %v4432_v20 = vcombine.high %v4061_v55, %v4061_v55  ;;  %v6119_v22 = vld [vmem:[#allocation3 + $0x68] sm:$0xff] }
 0x3c8   : > { %v5821_v0 = vrot.slane %v5356_v48, %v13877_v4  ;;  %v10458_v38 = vrot.slane %v4456_v45, 9  ;;  %v5105_v61 = vmax.f32 %v4455_v40, %v10457_v19  ;;  %v4439_v62 = vrot.slane %v4061_v55, %v13835_v52  ;;  %10501 = vmatmul.mubr.msk.f32.gmra.mrb[154].mxu1 %vm1064_vm1, %v6119_v22  ;;  %10605 = vmatmul.mubr.msk.f32.gmra.mrb[218].mxu0 %vm1064_vm1, %v6119_v22 }
 0x3c9   : > { %v5359_v30 = vmax.f32 %v5247_v15, 0.0  ;;  %v5825_v53 = vrot.slane %v5357_v21, %v13877_v4  ;;  %v5829_v56 = vrot.slane %v5358_v31, %v13877_v4  ;;  %v4446_v54 = vrot.slane %v4432_v20, %v13835_v52  ;;  %6370 = vmatprep.mubr.f32.mxu1 %v16666_v49  ;;  %6958 = vmatprep.mubr.f32.mxu0 %v16666_v49 }
 0x3ca   : > { %v6040_v36 = vsel %vm5976_vm3, %v5821_v0, %v6039_v44  ;;  %v5106_v13 = vmax.f32 %v4456_v45, %v10458_v38  ;;  %v5252_v59 = vadd.f32 %v13849_v37, %v5105_v61  ;;  %v4447_v18 = vcombine.high %v4439_v62, %v4439_v62  ;;  %v3955_v0 = vpop.permute.xlu0 %3954  ;;  %v3957_v38 = vpop.permute.xlu1 %3956 }
 0x3cb   : > { %v5833_v42 = vrot.slane %v5359_v30, %v13877_v4  ;;  %v6041_v5 = vsel %vm5978_vm4, %v5825_v53, %v6040_v36  ;;  %v4448_v32 = vcombine.high %v4446_v54, %v4446_v54  ;;  %v10453_v27 = vrot.slane %v4439_v62, 9 }
 0x3cc   : > { %v6042_v17 = vsel %vm5980_vm5, %v5829_v56, %v6041_v5  ;;  %v5253_v39 = vadd.f32 %v13902_v58, %v5106_v13  ;;  %v5364_v7 = vmax.f32 %v5252_v59, 0.0  ;;  %v10454_v46 = vrot.slane %v4447_v18, 9  ;;  %10502 = vmatmul.mubr.msk.f32.gmra.mrb[156].mxu1 %vm1064_vm1, %v6120_v1  ;;  %10606 = vmatmul.mubr.msk.f32.gmra.mrb[220].mxu0 %vm1064_vm1, %v6120_v1 }
 0x3cd   : > { %v6043_v23 = vsel %vm5982_vm6, %v5833_v42, %v6042_v17  ;;  %v10455_v6 = vrot.slane %v4446_v54, 9  ;;  %v10456_v2 = vrot.slane %v4448_v32, 9  ;;  %v5101_v26 = vmax.f32 %v4439_v62, %v10453_v27  ;;  %6374 = vmatprep.mubr.f32.mxu1 %v16666_v49  ;;  %6962 = vmatprep.mubr.f32.mxu0 %v16666_v49 }
 0x3ce   : > { %6100 = vst.msk [vmem:[#allocation3 + $0x7a] sm:$0xff] %vm1064_vm1, %v6043_v23  ;;  %v5365_v44 = vmax.f32 %v5253_v39, 0.0  ;;  %v5853_v3 = vrot.slane %v5364_v7, %v13877_v4  ;;  %v5102_v9 = vmax.f32 %v4447_v18, %v10454_v46  ;;  %v4063_v43 = vmax.f32 %v13785_v11, %v3999_v8 }
 0x3cf   : > { %v5103_v47 = vmax.f32 %v4446_v54, %v10455_v6  ;;  %v5104_v12 = vmax.f32 %v4448_v32, %v10456_v2  ;;  %v5248_v50 = vadd.f32 %v13842_v29, %v5101_v26  ;;  %v4000_v40 = vsel %vm3974_vm14, %v3947_v60, %v3949_v63  ;;  %v3951_v26 = vpop.permute.xlu0 %3950 }
 0x3d0   : > { %v5857_v16 = vrot.slane %v5365_v44, %v13877_v4  ;;  %v5249_v28 = vadd.f32 %v13896_v51, %v5102_v9  ;;  %v4457_v57 = vcombine.high %v4063_v43, %v4063_v43  ;;  %v4464_v34 = vrot.slane %v4063_v43, %v13835_v52  ;;  %v3953_v44 = vpop.permute.xlu1 %3952 }
 0x3d1   : > { %v5250_v41 = vadd.f32 %v13861_v14, %v5103_v47  ;;  %v5251_v55 = vadd.f32 %v13899_v24, %v5104_v12  ;;  %v5360_v48 = vmax.f32 %v5248_v50, 0.0  ;;  %v4064_v11 = vmax.f32 %v13794_v35, %v4000_v40  ;;  %v10525_v50 = vld [vmem:[%s16531_s3 + $0x148] sm:$0xff]  ;;  %v10527_v40 = vld [vmem:[%s16531_s3 + $0x158] sm:$0xff] }
 0x3d2   : > { %v5361_v45 = vmax.f32 %v5249_v28, 0.0  ;;  %v4471_v19 = vrot.slane %v4457_v57, %v13835_v52  ;;  %v4472_v8 = vcombine.high %v4464_v34, %v4464_v34  ;;  %v10459_v15 = vrot.slane %v4464_v34, 9 }
 0x3d3   : > { %v5362_v21 = vmax.f32 %v5250_v41, 0.0  ;;  %v5363_v31 = vmax.f32 %v5251_v55, 0.0  ;;  %v5837_v20 = vrot.slane %v5360_v48, %v13877_v4  ;;  %v4474_v22 = vcombine.high %v4064_v11, %v4064_v11 }
 0x3d4   : > { %v5841_v61 = vrot.slane %v5361_v45, %v13877_v4  ;;  %v4473_v62 = vcombine.high %v4471_v19, %v4471_v19  ;;  %v10460_v30 = vrot.slane %v4472_v8, 9  ;;  %v10461_v53 = vrot.slane %v4471_v19, 9 }
 0x3d5   : > { %v5845_v56 = vrot.slane %v5362_v21, %v13877_v4  ;;  %v5849_v35 = vrot.slane %v5363_v31, %v13877_v4  ;;  %v5107_v54 = vmax.f32 %v4464_v34, %v10459_v15  ;;  %v4481_v1 = vrot.slane %v4064_v11, %v13835_v52  ;;  %v14360_v36 = vld [vmem:[#allocation3 + $0x78] sm:$0xff]  ;;  %v10524_v15 = vld [vmem:[%s16531_s3 + $0x140] sm:$0xff]  ;;  %v10526_v21 = vld [vmem:[%s16531_s3 + $0x150] sm:$0xff] }
 0x3d6   : > { %v6044_v13 = vsel %vm5970_vm15, %v5841_v61, %v5837_v20  ;;  %v10462_v59 = vrot.slane %v4473_v62, 9  ;;  %v5108_v18 = vmax.f32 %v4472_v8, %v10460_v30  ;;  %v5109_v42 = vmax.f32 %v4471_v19, %v10461_v53  ;;  %10503 = vmatmul.mubr.msk.f32.gmra.mrb[158].mxu1 %vm1064_vm1, %v14360_v36  ;;  %10607 = vmatmul.mubr.msk.f32.gmra.mrb[222].mxu0 %vm1064_vm1, %v14360_v36 }
 0x3d7   : > { %v6045_v5 = vsel %vm5972_vm0, %v5845_v56, %v6044_v13  ;;  %v5254_v32 = vadd.f32 %v13842_v29, %v5107_v54  ;;  %v4488_v27 = vrot.slane %v4474_v22, %v13835_v52  ;;  %v4489_v17 = vcombine.high %v4481_v1, %v4481_v1  ;;  %6380 = vmatprep.mubr.f32.mxu1 %v16666_v49  ;;  %v3961_v54 = vpop.permute.xlu1 %3960 }
 0x3d8   : > { %v6046_v39 = vsel %vm5974_vm2, %v5849_v35, %v6045_v5  ;;  %v5110_v7 = vmax.f32 %v4473_v62, %v10462_v59  ;;  %v5255_v46 = vadd.f32 %v13896_v51, %v5108_v18  ;;  %v5256_v60 = vadd.f32 %v13861_v14, %v5109_v42  ;;  %6968 = vmatprep.mubr.f32.mxu0 %v16666_v49  ;;  %v3959_v35 = vpop.permute.xlu0 %3958 }
 0x3d9   : > { %v6047_v63 = vsel %vm5976_vm3, %v5853_v3, %v6046_v39  ;;  %v5366_v23 = vmax.f32 %v5254_v32, 0.0  ;;  %v4490_v6 = vcombine.high %v4488_v27, %v4488_v27  ;;  %v10463_v2 = vrot.slane %v4481_v1, 9 }
 0x3da   : > { %v6048_v9 = vsel %vm5978_vm4, %v5857_v16, %v6047_v63  ;;  %v5257_v43 = vadd.f32 %v13899_v24, %v5110_v7  ;;  %v5367_v47 = vmax.f32 %v5255_v46, 0.0  ;;  %v5368_v12 = vmax.f32 %v5256_v60, 0.0 }
 0x3db   : > { %6101 = vst.msk [vmem:[#allocation3 + $0x82] sm:$0x3f] %vm6090_vm7, %v6048_v9  ;;  %v5861_v3 = vrot.slane %v5366_v23, %v13877_v4  ;;  %v10464_v28 = vrot.slane %v4489_v17, 9  ;;  %v10465_v57 = vrot.slane %v4488_v27, 9  ;;  %v10466_v34 = vrot.slane %v4490_v6, 9  ;;  %v16669_v23 = vld [vmem:[#allocation26_spill] sm:$0xff] }
 0x3dc   : > { %v5369_v16 = vmax.f32 %v5257_v43, 0.0  ;;  %v5865_v41 = vrot.slane %v5367_v47, %v13877_v4  ;;  %v5869_v55 = vrot.slane %v5368_v12, %v13877_v4  ;;  %v5111_v48 = vmax.f32 %v4481_v1, %v10463_v2  ;;  %v14421_v43 = vld [vmem:[#allocation3 + $0x88] sm:$0xff] }
 0x3dd   : > { %v5112_v11 = vmax.f32 %v4489_v17, %v10464_v28  ;;  %v5113_v45 = vmax.f32 %v4488_v27, %v10465_v57  ;;  %v5114_v19 = vmax.f32 %v4490_v6, %v10466_v34  ;;  %v11103_v8 = vpack.c.bf16 %v10527_v40, %v10525_v50  ;;  %v16668_v17 = vld [vmem:[#allocation24_spill] sm:$0xff] }
 0x3de   : > { %v5873_v31 = vrot.slane %v5369_v16, %v13877_v4  ;;  %v6049_v20 = vsel %vm5970_vm15, %v5865_v41, %v5861_v3  ;;  %v5258_v22 = vadd.f32 %v13849_v37, %v5111_v48  ;;  %v4002_v61 = vsel %vm3974_vm14, %v3955_v0, %v3957_v38 }
 0x3df   : > { %v6050_v62 = vsel %vm5972_vm0, %v5869_v55, %v6049_v20  ;;  %v5259_v30 = vadd.f32 %v13902_v58, %v5112_v11  ;;  %v5260_v53 = vadd.f32 %v13872_v33, %v5113_v45  ;;  %v5261_v56 = vadd.f32 %v13905_v25, %v5114_v19  ;;  %11104 = vmatprep.subr.bf16.mxu1 %v11103_v8 }
 0x3e0   : > { %v6051_v1 = vsel %vm5974_vm2, %v5873_v31, %v6050_v62  ;;  %v5370_v13 = vmax.f32 %v5258_v22, 0.0  ;;  %v4066_v59 = vmax.f32 %v13802_v10, %v4002_v61  ;;  %v11105_v18 = vpack.c.bf16 %v10526_v21, %v10524_v15 }
 0x3e1   : > { %v5371_v42 = vmax.f32 %v5259_v30, 0.0  ;;  %v5372_v5 = vmax.f32 %v5260_v53, 0.0  ;;  %v5373_v0 = vmax.f32 %v5261_v56, 0.0  ;;  %v4001_v38 = vsel %vm3974_vm14, %v3951_v26, %v3953_v44 }
 0x3e2   : > { %v5877_v32 = vrot.slane %v5370_v13, %v13877_v4  ;;  %v4514_v27 = vrot.slane %v4066_v59, %v13835_v52  ;;  %11106 = vmatpush1.bf16.msra.mxu1 %v11105_v18  ;;  %v4065_v39 = vmax.f32 %v16668_v17, %v4001_v38  ;;  %v4003_v7 = vsel %vm3974_vm14, %v3959_v35, %v3961_v54  ;;  %v14409_v46 = vld [vmem:[#allocation3 + $0x80] sm:$0xff]  ;;  %v3965_v13 = vpop.permute.xlu1 %3964 }
 0x3e3   : > { %v5881_v60 = vrot.slane %v5371_v42, %v13877_v4  ;;  %v5885_v10 = vrot.slane %v5372_v5, %v13877_v4  ;;  %v5889_v63 = vrot.slane %v5373_v0, %v13877_v4  ;;  %v4067_v6 = vmax.f32 %v16669_v23, %v4003_v7  ;;  %10504 = vmatmul.mubr.msk.f32.gmra.mrb[160].mxu1 %vm1064_vm1, %v14409_v46 }
 0x3e4   : > { %v6052_v2 = vsel %vm5976_vm3, %v5877_v32, %v6051_v1  ;;  %v4515_v26 = vcombine.high %v4514_v27, %v4514_v27  ;;  %v10471_v44 = vrot.slane %v4514_v27, 9  ;;  %v4491_v9 = vcombine.high %v4065_v39, %v4065_v39  ;;  %10608 = vmatmul.mubr.msk.f32.gmra.mrb[224].mxu0 %vm1064_vm1, %v14409_v46  ;;  %6386 = vmatprep.mubr.f32.mxu1 %v16666_v49  ;;  %v3963_v1 = vpop.permute.xlu0 %3962 }
 0x3e5   : > { %v6053_v47 = vsel %vm5978_vm4, %v5881_v60, %v6052_v2  ;;  %v4498_v12 = vrot.slane %v4065_v39, %v13835_v52  ;;  %v4516_v50 = vcombine.high %v4067_v6, %v4067_v6  ;;  %v4523_v40 = vrot.slane %v4067_v6, %v13835_v52  ;;  %6974 = vmatprep.mubr.f32.mxu0 %v16666_v49 }
 0x3e6   : > { %v6054_v3 = vsel %vm5980_vm5, %v5885_v10, %v6053_v47  ;;  %v10472_v28 = vrot.slane %v4515_v26, 9  ;;  %v5119_v57 = vmax.f32 %v4514_v27, %v10471_v44  ;;  %v4505_v34 = vrot.slane %v4491_v9, %v13835_v52 }
 0x3e7   : > { %v6055_v16 = vsel %vm5982_vm6, %v5889_v63, %v6054_v3  ;;  %v4506_v41 = vcombine.high %v4498_v12, %v4498_v12  ;;  %v10467_v55 = vrot.slane %v4498_v12, 9  ;;  %v4530_v48 = vrot.slane %v4516_v50, %v13835_v52  ;;  %10505 = vmatmul.mubr.msk.f32.gmra.mrb[162].mxu1 %vm1064_vm1, %v14421_v43  ;;  %v10531_v50 = vld [vmem:[%s16531_s3 + $0x178] sm:$0xff] }
 0x3e8   : > { %6102 = vst.msk [vmem:[#allocation3 + $0x92] sm:$0xff] %vm1064_vm1, %v6055_v16  ;;  %v5120_v11 = vmax.f32 %v4515_v26, %v10472_v28  ;;  %v5266_v45 = vadd.f32 %v13849_v37, %v5119_v57  ;;  %v4507_v19 = vcombine.high %v4505_v34, %v4505_v34  ;;  %v10469_v8 = vrot.slane %v4505_v34, 9  ;;  %10609 = vmatmul.mubr.msk.f32.gmra.mrb[226].mxu0 %vm1064_vm1, %v14421_v43  ;;  %v3969_v16 = vpop.permute.xlu1 %3968 }
 0x3e9   : > { %6390 = vmatprep.mubr.f32.mxu1 %v16666_v49  ;;  %v10468_v15 = vrot.slane %v4506_v41, 9  ;;  %v5115_v21 = vmax.f32 %v4498_v12, %v10467_v55  ;;  %v4531_v31 = vcombine.high %v4523_v40, %v4523_v40  ;;  %v4532_v20 = vcombine.high %v4530_v48, %v4530_v48  ;;  %6978 = vmatprep.mubr.f32.mxu0 %v16666_v49  ;;  %v10529_v12 = vld [vmem:[%s16531_s3 + $0x168] sm:$0xff] }
 0x3ea   : > { %v5267_v22 = vadd.f32 %v13902_v58, %v5120_v11  ;;  %v5378_v61 = vmax.f32 %v5266_v45, 0.0  ;;  %v10470_v62 = vrot.slane %v4507_v19, 9  ;;  %v5117_v30 = vmax.f32 %v4505_v34, %v10469_v8  ;;  %v3967_v34 = vpop.permute.xlu0 %3966  ;;  %v16670_v11 = vld [vmem:[#allocation28_spill] sm:$0xff] }
 0x3eb   : > { %v5116_v53 = vmax.f32 %v4506_v41, %v10468_v15  ;;  %v5262_v56 = vadd.f32 %v13842_v29, %v5115_v21  ;;  %v10473_v35 = vrot.slane %v4523_v40, 9  ;;  %v10474_v54 = vrot.slane %v4531_v31, 9 }
 0x3ec   : > { %v5379_v59 = vmax.f32 %v5267_v22, 0.0  ;;  %v5909_v18 = vrot.slane %v5378_v61, %v13877_v4  ;;  %v5118_v42 = vmax.f32 %v4507_v19, %v10470_v62  ;;  %v5264_v5 = vadd.f32 %v13861_v14, %v5117_v30 }
 0x3ed   : > { %v5263_v0 = vadd.f32 %v13896_v51, %v5116_v53  ;;  %v5374_v38 = vmax.f32 %v5262_v56, 0.0  ;;  %v10475_v32 = vrot.slane %v4530_v48, 9  ;;  %v10476_v27 = vrot.slane %v4532_v20, 9 }
 0x3ee   : > { %v5913_v17 = vrot.slane %v5379_v59, %v13877_v4  ;;  %v5265_v39 = vadd.f32 %v13899_v24, %v5118_v42  ;;  %v5376_v7 = vmax.f32 %v5264_v5, 0.0  ;;  %v5121_v60 = vmax.f32 %v4523_v40, %v10473_v35 }
 0x3ef   : > { %v5375_v10 = vmax.f32 %v5263_v0, 0.0  ;;  %v5893_v63 = vrot.slane %v5374_v38, %v13877_v4  ;;  %v5122_v23 = vmax.f32 %v4531_v31, %v10474_v54  ;;  %v5123_v6 = vmax.f32 %v4530_v48, %v10475_v32  ;;  %v14447_v2 = vld [vmem:[#allocation3 + $0x90] sm:$0xff]  ;;  %v10528_v31 = vld [vmem:[%s16531_s3 + $0x160] sm:$0xff] }
 0x3f0   : > { %v5377_v26 = vmax.f32 %v5265_v39, 0.0  ;;  %v5901_v44 = vrot.slane %v5376_v7, %v13877_v4  ;;  %v5124_v9 = vmax.f32 %v4532_v20, %v10476_v27  ;;  %v5268_v47 = vadd.f32 %v13842_v29, %v5121_v60  ;;  %10506 = vmatmul.mubr.msk.f32.gmra.mrb[164].mxu1 %vm1064_vm1, %v14447_v2  ;;  %10610 = vmatmul.mubr.msk.f32.gmra.mrb[228].mxu0 %vm1064_vm1, %v14447_v2  ;;  %v10530_v20 = vld [vmem:[%s16531_s3 + $0x170] sm:$0xff]  ;;  %v3971_v27 = vpop.permute.xlu0 %3970  ;;  %v3973_v39 = vpop.permute.xlu1 %3972  ;;  %v10533_v7 = vld [vmem:[%s16531_s3 + $0x188] sm:$0xff] }
 0x3f1   : > { %v5897_v40 = vrot.slane %v5375_v10, %v13877_v4  ;;  %v5269_v3 = vadd.f32 %v13896_v51, %v5122_v23  ;;  %v5270_v28 = vadd.f32 %v13861_v14, %v5123_v6  ;;  %v4004_v57 = vsel %vm3974_vm14, %v3963_v1, %v3965_v13  ;;  %6396 = vmatprep.mubr.f32.mxu1 %v16666_v49 }
 0x3f2   : > { %v5905_v41 = vrot.slane %v5377_v26, %v13877_v4  ;;  %v5271_v55 = vadd.f32 %v13899_v24, %v5124_v9  ;;  %v5380_v48 = vmax.f32 %v5268_v47, 0.0  ;;  %v4068_v45 = vmax.f32 %v16670_v11, %v4004_v57  ;;  %6984 = vmatprep.mubr.f32.mxu0 %v16666_v49  ;;  %v10669_v47 = vld [vmem:[%s16531_s3 + $0x388] sm:$0xff]  ;;  %v16672_v11 = vld [vmem:[#allocation29_spill] sm:$0xff] }
 0x3f3   : > { %v6056_v19 = vsel %vm5970_vm15, %v5897_v40, %v5893_v63  ;;  %v5381_v8 = vmax.f32 %v5269_v3, 0.0  ;;  %v5382_v15 = vmax.f32 %v5270_v28, 0.0  ;;  %v11107_v21 = vpack.c.bf16 %v10531_v50, %v10529_v12  ;;  %v10671_v12 = vld [vmem:[%s16531_s3 + $0x398] sm:$0xff] }
 0x3f4   : > { %v6057_v22 = vsel %vm5972_vm0, %v5901_v44, %v6056_v19  ;;  %v5383_v61 = vmax.f32 %v5271_v55, 0.0  ;;  %v5917_v62 = vrot.slane %v5380_v48, %v13877_v4  ;;  %v4533_v30 = vcombine.high %v4068_v45, %v4068_v45  ;;  %v16671_v44 = vld [vmem:[#allocation30_spill] sm:$0xff] }
 0x3f5   : > { %v6058_v53 = vsel %vm5974_vm2, %v5905_v41, %v6057_v22  ;;  %v5921_v56 = vrot.slane %v5381_v8, %v13877_v4  ;;  %v5925_v35 = vrot.slane %v5382_v15, %v13877_v4  ;;  %v4540_v54 = vrot.slane %v4068_v45, %v13835_v52  ;;  %11108 = vmatprep.subr.bf16.mxu1 %v11107_v21 }
 0x3f6   : > { %v6059_v1 = vsel %vm5976_vm3, %v5909_v18, %v6058_v53  ;;  %v5929_v13 = vrot.slane %v5383_v61, %v13877_v4  ;;  %v4547_v59 = vrot.slane %v4533_v30, %v13835_v52  ;;  %v11109_v42 = vpack.c.bf16 %v10530_v20, %v10528_v31  ;;  %v10535_v18 = vld [vmem:[%s16531_s3 + $0x198] sm:$0xff] }
 0x3f7   : > { %v6060_v5 = vsel %vm5978_vm4, %v5913_v17, %v6059_v1  ;;  %v6061_v0 = vsel %vm5970_vm15, %v5921_v56, %v5917_v62  ;;  %v4548_v38 = vcombine.high %v4540_v54, %v4540_v54  ;;  %v10477_v32 = vrot.slane %v4540_v54, 9 }
 0x3f8   : > { %6103 = vst.msk [vmem:[#allocation3 + $0x9a] sm:$0x3f] %vm6090_vm7, %v6060_v5  ;;  %v6062_v60 = vsel %vm5972_vm0, %v5925_v35, %v6061_v0  ;;  %v4549_v10 = vcombine.high %v4547_v59, %v4547_v59  ;;  %v10479_v17 = vrot.slane %v4547_v59, 9  ;;  %11110 = vmatpush1.bf16.msra.mxu1 %v11109_v42  ;;  %v4005_v63 = vsel %vm3974_vm14, %v3967_v34, %v3969_v16 }
 0x3f9   : > { %v6063_v23 = vsel %vm5974_vm2, %v5929_v13, %v6062_v60  ;;  %v10478_v6 = vrot.slane %v4548_v38, 9  ;;  %v5125_v26 = vmax.f32 %v4540_v54, %v10477_v32  ;;  %v4069_v9 = vmax.f32 %v16671_v44, %v4005_v63  ;;  %v10532_v63 = vld [vmem:[%s16531_s3 + $0x180] sm:$0xff] }
 0x3fa   : > { %v10480_v50 = vrot.slane %v4549_v10, 9  ;;  %v5127_v40 = vmax.f32 %v4547_v59, %v10479_v17  ;;  %v4006_v3 = vsel %vm3974_vm14, %v3971_v27, %v3973_v39  ;;  %v11111_v28 = vpack.c.bf16 %v10535_v18, %v10533_v7 }
 0x3fb   : > { %v5126_v57 = vmax.f32 %v4548_v38, %v10478_v6  ;;  %v5272_v34 = vadd.f32 %v13849_v37, %v5125_v26  ;;  %v4550_v16 = vcombine.high %v4069_v9, %v4069_v9  ;;  %v4557_v41 = vrot.slane %v4069_v9, %v13835_v52  ;;  %v14526_v38 = vld [vmem:[#allocation3 + $0xa0] sm:$0xff] }
 0x3fc   : > { %v5128_v55 = vmax.f32 %v4549_v10, %v10480_v50  ;;  %v5274_v48 = vadd.f32 %v13872_v33, %v5127_v40  ;;  %v4070_v45 = vmax.f32 %v16672_v11, %v4006_v3  ;;  %11112 = vmatprep.subr.bf16.mxu1 %v11111_v28  ;;  %v11175_v19 = vpack.c.bf16 %v10671_v12, %v10669_v47  ;;  %v10668_v9 = vld [vmem:[%s16531_s3 + $0x380] sm:$0xff]  ;;  %v10673_v40 = vld [vmem:[%s16531_s3 + $0x3a8] sm:$0xff]  ;;  %v10675_v3 = vld [vmem:[%s16531_s3 + $0x3b8] sm:$0xff] }
 0x3fd   : > { %v5273_v8 = vadd.f32 %v13902_v58, %v5126_v57  ;;  %v5384_v15 = vmax.f32 %v5272_v34, 0.0  ;;  %v4564_v21 = vrot.slane %v4550_v16, %v13835_v52  ;;  %v4565_v31 = vcombine.high %v4557_v41, %v4557_v41  ;;  %v10672_v16 = vld [vmem:[%s16531_s3 + $0x3a0] sm:$0xff] }
 0x3fe   : > { %v5275_v20 = vadd.f32 %v13905_v25, %v5128_v55  ;;  %v5386_v22 = vmax.f32 %v5274_v48, 0.0  ;;  %v10481_v61 = vrot.slane %v4557_v41, 9  ;;  %v4573_v62 = vrot.slane %v4070_v45, %v13835_v52  ;;  %11176 = vmatprep.subr.bf16.mxu0 %v11175_v19  ;;  %v10677_v19 = vld [vmem:[%s16531_s3 + $0x3c8] sm:$0xff] }
 0x3ff   : > { %v5385_v30 = vmax.f32 %v5273_v8, 0.0  ;;  %v5933_v33 = vrot.slane %v5384_v15, %v13877_v4  ;;  %v4566_v53 = vcombine.high %v4564_v21, %v4564_v21  ;;  %v10482_v56 = vrot.slane %v4565_v31, 9  ;;  %v14515_v35 = vld [vmem:[#allocation3 + $0x98] sm:$0xff] }
 0x400   : > { %v5387_v54 = vmax.f32 %v5275_v20, 0.0  ;;  %v5941_v1 = vrot.slane %v5386_v22, %v13877_v4  ;;  %v10483_v13 = vrot.slane %v4564_v21, 9  ;;  %v5129_v59 = vmax.f32 %v4557_v41, %v10481_v61  ;;  %10507 = vmatmul.mubr.msk.f32.gmra.mrb[166].mxu1 %vm1064_vm1, %v14515_v35  ;;  %10611 = vmatmul.mubr.msk.f32.gmra.mrb[230].mxu0 %vm1064_vm1, %v14515_v35  ;;  %v10674_v41 = vld [vmem:[%s16531_s3 + $0x3b0] sm:$0xff]  ;;  %v10679_v8 = vld [vmem:[%s16531_s3 + $0x3d8] sm:$0xff]  ;;  %v10537_v20 = vld [vmem:[%s16531_s3 + $0x1a8] sm:$0xff] }
 0x401   : > { %v5937_v25 = vrot.slane %v5385_v30, %v13877_v4  ;;  %v6064_v42 = vsel %vm5976_vm3, %v5933_v33, %v6063_v23  ;;  %v10484_v5 = vrot.slane %v4566_v53, 9  ;;  %v5130_v0 = vmax.f32 %v4565_v31, %v10482_v56  ;;  %6402 = vmatprep.mubr.f32.mxu1 %v16666_v49  ;;  %6990 = vmatprep.mubr.f32.mxu0 %v16666_v49  ;;  %v10534_v23 = vld [vmem:[%s16531_s3 + $0x190] sm:$0xff] }
 0x402   : > { %v5945_v32 = vrot.slane %v5387_v54, %v13877_v4  ;;  %v5131_v27 = vmax.f32 %v4564_v21, %v10483_v13  ;;  %v5276_v39 = vadd.f32 %v13842_v29, %v5129_v59  ;;  %v4574_v7 = vcombine.high %v4573_v62, %v4573_v62  ;;  %v10538_v33 = vld [vmem:[%s16531_s3 + $0x1b0] sm:$0xff] }
 0x403   : > { %v6065_v18 = vsel %vm5978_vm4, %v5937_v25, %v6064_v42  ;;  %v5132_v60 = vmax.f32 %v4566_v53, %v10484_v5  ;;  %v5277_v10 = vadd.f32 %v13896_v51, %v5130_v0  ;;  %v10485_v17 = vrot.slane %v4573_v62, 9  ;;  %v10670_v51 = vld [vmem:[%s16531_s3 + $0x390] sm:$0xff]  ;;  %v10681_v42 = vld [vmem:[%s16531_s3 + $0x3e8] sm:$0xff]  ;;  %v10683_v5 = vld [vmem:[%s16531_s3 + $0x3f8] sm:$0xff] }
 0x404   : > { %v6066_v6 = vsel %vm5980_vm5, %v5941_v1, %v6065_v18  ;;  %v5278_v26 = vadd.f32 %v13861_v14, %v5131_v27  ;;  %v5388_v29 = vmax.f32 %v5276_v39, 0.0  ;;  %v10486_v44 = vrot.slane %v4574_v7, 9  ;;  %10508 = vmatmul.mubr.msk.f32.gmra.mrb[168].mxu1 %vm1064_vm1, %v14526_v38  ;;  %10612 = vmatmul.mubr.msk.f32.gmra.mrb[232].mxu0 %vm1064_vm1, %v14526_v38  ;;  %v10676_v1 = vld [vmem:[%s16531_s3 + $0x3c0] sm:$0xff]  ;;  %v10678_v13 = vld [vmem:[%s16531_s3 + $0x3d0] sm:$0xff]  ;;  %v10617_v39 = vld [vmem:[%s16531_s3 + $0x2a8] sm:$0xff] }
 0x405   : > { %v6067_v47 = vsel %vm5982_vm6, %v5945_v32, %v6066_v6  ;;  %v5279_v14 = vadd.f32 %v13899_v24, %v5132_v60  ;;  %v5389_v12 = vmax.f32 %v5277_v10, 0.0  ;;  %v5133_v50 = vmax.f32 %v4573_v62, %v10485_v17  ;;  %6406 = vmatprep.mubr.f32.mxu1 %v16666_v49  ;;  %6994 = vmatprep.mubr.f32.mxu0 %v16666_v49  ;;  %v10685_v6 = vld [vmem:[%s16531_s3 + $0x408] sm:$0xff] }
 0x406   : > { %6104 = vst.msk [vmem:[#allocation3 + $0xaa] sm:$0xff] %vm1064_vm1, %v6067_v47  ;;  %v5390_v28 = vmax.f32 %v5278_v26, 0.0  ;;  %v5949_v57 = vrot.slane %v5388_v29, %v13877_v4  ;;  %v5134_v24 = vmax.f32 %v4574_v7, %v10486_v44  ;;  %v11113_v34 = vpack.c.bf16 %v10534_v23, %v10532_v63  ;;  %v10619_v7 = vld [vmem:[%s16531_s3 + $0x2b8] sm:$0xff]  ;;  %v10682_v63 = vld [vmem:[%s16531_s3 + $0x3f0] sm:$0xff] }
 0x407   : > { %v5391_v55 = vmax.f32 %v5279_v14, 0.0  ;;  %v5953_v48 = vrot.slane %v5389_v12, %v13877_v4  ;;  %v5280_v11 = vadd.f32 %v13849_v37, %v5133_v50  ;;  %v11177_v45 = vpack.c.bf16 %v10670_v51, %v10668_v9  ;;  %v10539_v37 = vld [vmem:[%s16531_s3 + $0x1b8] sm:$0xff]  ;;  %v10684_v51 = vld [vmem:[%s16531_s3 + $0x400] sm:$0xff]  ;;  %v10686_v47 = vld [vmem:[%s16531_s3 + $0x410] sm:$0xff] }
 0x408   : > { %v5957_v15 = vrot.slane %v5390_v28, %v13877_v4  ;;  %v5281_v21 = vadd.f32 %v13902_v58, %v5134_v24  ;;  %11114 = vmatpush1.bf16.msra.mxu1 %v11113_v34  ;;  %v11179_v31 = vpack.c.bf16 %v10675_v3, %v10673_v40  ;;  %v11181_v30 = vpack.c.bf16 %v10674_v41, %v10672_v16  ;;  %v10536_v58 = vld [vmem:[%s16531_s3 + $0x1a0] sm:$0xff]  ;;  %v10687_v26 = vld [vmem:[%s16531_s3 + $0x418] sm:$0xff]  ;;  %v10689_v14 = vld [vmem:[%s16531_s3 + $0x428] sm:$0xff] }
 0x409   : > { %v5961_v22 = vrot.slane %v5391_v55, %v13877_v4  ;;  %v6068_v61 = vsel %vm5970_vm15, %v5953_v48, %v5949_v57  ;;  %v5392_v62 = vmax.f32 %v5280_v11, 0.0  ;;  %11178 = vmatpush1.bf16.msra.mxu0 %v11177_v45  ;;  %v11183_v54 = vpack.c.bf16 %v10679_v8, %v10677_v19  ;;  %v10691_v12 = vld [vmem:[%s16531_s3 + $0x438] sm:$0xff]  ;;  %v10688_v28 = vld [vmem:[%s16531_s3 + $0x420] sm:$0xff]  ;;  %v10690_v57 = vld [vmem:[%s16531_s3 + $0x430] sm:$0xff] }
 0x40a   : > { %v6069_v53 = vsel %vm5972_vm0, %v5957_v15, %v6068_v61  ;;  %v5393_v56 = vmax.f32 %v5281_v21, 0.0  ;;  %11180 = vmatprep.subr.bf16.mxu0 %v11179_v31  ;;  %v11115_v0 = vpack.c.bf16 %v10539_v37, %v10537_v20  ;;  %v11117_v27 = vpack.c.bf16 %v10538_v33, %v10536_v58  ;;  %v10693_v24 = vld [vmem:[%s16531_s3 + $0x448] sm:$0xff]  ;;  %v10695_v34 = vld [vmem:[%s16531_s3 + $0x458] sm:$0xff]  ;;  %v10692_v55 = vld [vmem:[%s16531_s3 + $0x440] sm:$0xff] }
 0x40b   : > { %v6070_v59 = vsel %vm5974_vm2, %v5961_v22, %v6069_v53  ;;  %v5965_v25 = vrot.slane %v5392_v62, %v13877_v4  ;;  %v11185_v60 = vpack.c.bf16 %v10678_v13, %v10676_v1  ;;  %v11187_v17 = vpack.c.bf16 %v10683_v5, %v10681_v42  ;;  %v14669_v16 = vld [vmem:[#allocation3 + $0xb8] sm:$0xff]  ;;  %v10616_v48 = vld [vmem:[%s16531_s3 + $0x2a0] sm:$0xff]  ;;  %v10618_v11 = vld [vmem:[%s16531_s3 + $0x2b0] sm:$0xff] }
 0x40c   : > { %v5969_v32 = vrot.slane %v5393_v56, %v13877_v4  ;;  %11116 = vmatprep.subr.bf16.mxu1 %v11115_v0  ;;  %v10680_v4 = vld [vmem:[%s16531_s3 + $0x3e0] sm:$0xff]  ;;  %v11147_v29 = vpack.c.bf16 %v10619_v7, %v10617_v39  ;;  %v11191_v9 = vpack.c.bf16 %v10687_v26, %v10685_v6  ;;  %v11193_v50 = vpack.c.bf16 %v10686_v47, %v10684_v51  ;;  %v10694_v19 = vld [vmem:[%s16531_s3 + $0x450] sm:$0xff]  ;;  %v10621_v8 = vld [vmem:[%s16531_s3 + $0x2c8] sm:$0xff] }
 0x40d   : > { %v6071_v18 = vsel %vm5976_vm3, %v5965_v25, %v6070_v59  ;;  %11182 = vmatpush1.bf16.msra.mxu0 %v11181_v30  ;;  %11118 = vmatpush1.bf16.msra.mxu1 %v11117_v27  ;;  %v14622_v23 = vld [vmem:[#allocation3 + $0xa8] sm:$0xff]  ;;  %v11189_v44 = vpack.c.bf16 %v10682_v63, %v10680_v4  ;;  %v11195_v3 = vpack.c.bf16 %v10691_v12, %v10689_v14  ;;  %v10623_v15 = vld [vmem:[%s16531_s3 + $0x2d8] sm:$0xff]  ;;  %v10620_v37 = vld [vmem:[%s16531_s3 + $0x2c0] sm:$0xff] }
 0x40e   : > { %v6072_v10 = vsel %vm5978_vm4, %v5969_v32, %v6071_v18  ;;  %11184 = vmatprep.subr.bf16.mxu0 %v11183_v54  ;;  %10509 = vmatmul.mubr.msk.f32.gmra.mrb[170].mxu1 %vm1064_vm1, %v14622_v23  ;;  %v11197_v41 = vpack.c.bf16 %v10690_v57, %v10688_v28  ;;  %v11199_v45 = vpack.c.bf16 %v10695_v34, %v10693_v24  ;;  %v10622_v22 = vld [vmem:[%s16531_s3 + $0x2d0] sm:$0xff]  ;;  %v14701_v61 = vld [vmem:[#allocation3] sm:$0xff]  ;;  %v10625_v62 = vld [vmem:[%s16531_s3 + $0x2e8] sm:$0xff] }
 0x40f   : > { %6105 = vst.msk [vmem:[#allocation3 + $0xb2] sm:$0x3f] %vm6090_vm7, %v6072_v10  ;;  %10613 = vmatmul.mubr.msk.f32.gmra.mrb[234].mxu0 %vm1064_vm1, %v14622_v23  ;;  %6412 = vmatprep.mubr.f32.mxu1 %v16666_v49  ;;  %v11149_v21 = vpack.c.bf16 %v10618_v11, %v10616_v48  ;;  %v11201_v31 = vpack.c.bf16 %v10694_v19, %v10692_v55  ;;  %v10627_v30 = vld [vmem:[%s16531_s3 + $0x2f8] sm:$0xff]  ;;  %v10624_v54 = vld [vmem:[%s16531_s3 + $0x2e0] sm:$0xff]  ;;  %v10626_v1 = vld [vmem:[%s16531_s3 + $0x2f0] sm:$0xff] }
 0x410   : > { %7000 = vmatprep.mubr.f32.mxu0 %v16666_v49  ;;  %11148 = vmatprep.subr.bf16.mxu1 %v11147_v29  ;;  %v11151_v20 = vpack.c.bf16 %v10623_v15, %v10621_v8  ;;  %v11153_v58 = vpack.c.bf16 %v10622_v22, %v10620_v37  ;;  %v11155_v56 = vpack.c.bf16 %v10627_v30, %v10625_v62  ;;  %v14726_v25 = vld [vmem:[#allocation3 + $0x8] sm:$0xff]  ;;  %v10631_v5 = vld [vmem:[%s16531_s3 + $0x318] sm:$0xff]  ;;  %v10628_v27 = vld [vmem:[%s16531_s3 + $0x300] sm:$0xff] }
 0x411   : > { %11186 = vmatpush1.bf16.msra.mxu0 %v11185_v60  ;;  %v10629_v42 = vld [vmem:[%s16531_s3 + $0x308] sm:$0xff]  ;;  %v11157_v0 = vpack.c.bf16 %v10626_v1, %v10624_v54  ;;  %v10630_v39 = vld [vmem:[%s16531_s3 + $0x310] sm:$0xff]  ;;  %v10635_v60 = vld [vmem:[%s16531_s3 + $0x338] sm:$0xff] }
 0x412   : > { %11188 = vmatprep.subr.bf16.mxu0 %v11187_v17  ;;  %v11159_v32 = vpack.c.bf16 %v10631_v5, %v10629_v42  ;;  %v14746_v7 = vld [vmem:[#allocation3 + $0x10] sm:$0xff]  ;;  %v10633_v18 = vld [vmem:[%s16531_s3 + $0x328] sm:$0xff]  ;;  %v11161_v10 = vpack.c.bf16 %v10630_v39, %v10628_v27  ;;  %v10632_v4 = vld [vmem:[%s16531_s3 + $0x320] sm:$0xff] }
 0x413   : > { %v11163_v17 = vpack.c.bf16 %v10635_v60, %v10633_v18  ;;  %v10634_v63 = vld [vmem:[%s16531_s3 + $0x330] sm:$0xff]  ;;  %v14766_v6 = vld [vmem:[#allocation3 + $0x18] sm:$0xff]  ;;  %v10637_v26 = vld [vmem:[%s16531_s3 + $0x348] sm:$0xff] }
 0x414   : > { %v10639_v29 = vld [vmem:[%s16531_s3 + $0x358] sm:$0xff]  ;;  %v10636_v51 = vld [vmem:[%s16531_s3 + $0x340] sm:$0xff]  ;;  %v10638_v47 = vld [vmem:[%s16531_s3 + $0x350] sm:$0xff] }
 0x415   : > { %11190 = vmatpush1.bf16.msra.mxu0 %v11189_v44  ;;  %v11165_v44 = vpack.c.bf16 %v10634_v63, %v10632_v4  ;;  %v14786_v14 = vld [vmem:[#allocation3 + $0x20] sm:$0xff]  ;;  %v10641_v12 = vld [vmem:[%s16531_s3 + $0x368] sm:$0xff]  ;;  %v10642_v24 = vld [vmem:[%s16531_s3 + $0x370] sm:$0xff] }
 0x416   : > { %11192 = vmatprep.subr.bf16.mxu0 %v11191_v9  ;;  %v14649_v40 = vld [vmem:[#allocation3 + $0xb0] sm:$0xff]  ;;  %v11167_v9 = vpack.c.bf16 %v10639_v29, %v10637_v26  ;;  %v10640_v57 = vld [vmem:[%s16531_s3 + $0x360] sm:$0xff]  ;;  %v14806_v34 = vld [vmem:[#allocation3 + $0x28] sm:$0xff] }
 0x417   : > { %10510 = vmatmul.mubr.msk.f32.gmra.mrb[172].mxu1 %vm1064_vm1, %v14649_v40  ;;  %10614 = vmatmul.mubr.msk.f32.gmra.mrb[236].mxu0 %vm1064_vm1, %v14649_v40  ;;  %v14822_v19 = vld [vmem:[#allocation3 + $0x30] sm:$0xff]  ;;  %v14844_v30 = vld [vmem:[#allocation3 + $0x40] sm:$0xff] }
 0x418   : > { %6418 = vmatprep.mubr.f32.mxu1 %v16666_v49  ;;  %7006 = vmatprep.mubr.f32.mxu0 %v16666_v49  ;;  %v14862_v54 = vld [vmem:[#allocation3 + $0x50] sm:$0xff] }
 0x419   : > { %11194 = vmatpush1.bf16.msra.mxu0 %v11193_v50  ;;  %v10643_v50 = vld [vmem:[%s16531_s3 + $0x378] sm:$0xff]  ;;  %v14902_v4 = vld [vmem:[#allocation3 + $0x70] sm:$0xff] }
 0x41a   : > { %11196 = vmatprep.subr.bf16.mxu0 %v11195_v3  ;;  %v11169_v3 = vpack.c.bf16 %v10638_v47, %v10636_v51  ;;  %v11171_v28 = vpack.c.bf16 %v10643_v50, %v10641_v12 }
 0x41b   : > { %10511 = vmatmul.mubr.msk.f32.gmra.mrb[174].mxu1 %vm1064_vm1, %v14669_v16  ;;  %10615 = vmatmul.mubr.msk.f32.gmra.mrb[238].mxu0 %vm1064_vm1, %v14669_v16 }
 0x41c   : > { %6516 = vmatprep.mubr.f32.mxu1 %v16666_v49  ;;  %7678 = vmatprep.mubr.f32.mxu0 %v16666_v49 }
 0x41d   : > { %11198 = vmatpush1.bf16.msra.mxu0 %v11197_v41 }
 0x41e   : > { %11200 = vmatprep.subr.bf16.mxu0 %v11199_v45  ;;  %v11173_v45 = vpack.c.bf16 %v10642_v24, %v10640_v57 }
 0x41f   : > { %10540 = vmatmul.mubr.msk.f32.vlgmr.msra.gmra.mrb[176].mxu1 %vm1064_vm1, %v14701_v61 }
 0x420   : > { %11150 = vmatpush1.bf16.msra.mxu1 %v11149_v21  ;;  %6522 = vmatprep.mubr.f32.mxu1 %v16666_v49  ;;  %v14712_v33 = vpop.f32.mrb[128].mxu1  ;;  %v14714_v53 = vpop.f32.mrb[192].mxu0 }
 0x421   : > { %11202 = vmatpush1.bf16.msra.mxu0 %v11201_v31  ;;  %11152 = vmatprep.subr.bf16.mxu1 %v11151_v20  ;;  %v14722_v13 = vpop.f32.mrb[129].mxu1  ;;  %v14724_v59 = vpop.f32.mrb[193].mxu0  ;;  %v14830_v20 = vld [vmem:[#allocation3 + $0x38] sm:$0xff] }
 0x423   : > { %10541 = vmatmul.mubr.msk.f32.gmra.mrb[178].mxu1 %vm1064_vm1, %v14726_v25 }
 0x424   : > { %10696 = vmatmul.mubr.msk.f32.vlgmr.msra.gmra.mrb[240].mxu0 %vm1064_vm1, %v14701_v61  ;;  %6528 = vmatprep.mubr.f32.mxu1 %v16666_v49 }
 0x425   : > { %7684 = vmatprep.mubr.f32.mxu0 %v16666_v49  ;;  %11154 = vmatpush1.bf16.msra.mxu1 %v11153_v58 }
 0x426   : > { %11156 = vmatprep.subr.bf16.mxu1 %v11155_v56  ;;  %v14854_v56 = vld [vmem:[#allocation3 + $0x48] sm:$0xff] }
 0x427   : > { %10542 = vmatmul.mubr.msk.f32.gmra.mrb[180].mxu1 %vm1064_vm1, %v14746_v7 }
 0x428   : > { %10697 = vmatmul.mubr.msk.f32.gmra.mrb[242].mxu0 %vm1064_vm1, %v14726_v25  ;;  %6532 = vmatprep.mubr.f32.mxu1 %v16666_v49 }
 0x429   : > { %7690 = vmatprep.mubr.f32.mxu0 %v16666_v49  ;;  %11158 = vmatpush1.bf16.msra.mxu1 %v11157_v0 }
 0x42a   : > { %11160 = vmatprep.subr.bf16.mxu1 %v11159_v32  ;;  %v14878_v32 = vld [vmem:[#allocation3 + $0x58] sm:$0xff] }
 0x42b   : > { %10543 = vmatmul.mubr.msk.f32.gmra.mrb[182].mxu1 %vm1064_vm1, %v14766_v6 }
 0x42c   : > { %10698 = vmatmul.mubr.msk.f32.gmra.mrb[244].mxu0 %vm1064_vm1, %v14746_v7  ;;  %6538 = vmatprep.mubr.f32.mxu1 %v16666_v49 }
 0x42d   : > { %7696 = vmatprep.mubr.f32.mxu0 %v16666_v49  ;;  %11162 = vmatpush1.bf16.msra.mxu1 %v11161_v10  ;;  %v14886_v10 = vld [vmem:[#allocation3 + $0x60] sm:$0xff] }
 0x42e   : > { %11164 = vmatprep.subr.bf16.mxu1 %v11163_v17  ;;  %v14894_v17 = vld [vmem:[#allocation3 + $0x68] sm:$0xff] }
 0x42f   : > { %10544 = vmatmul.mubr.msk.f32.gmra.mrb[184].mxu1 %vm1064_vm1, %v14786_v14 }
 0x430   : > { %10699 = vmatmul.mubr.msk.f32.gmra.mrb[246].mxu0 %vm1064_vm1, %v14766_v6  ;;  %6544 = vmatprep.mubr.f32.mxu1 %v16666_v49 }
 0x431   : > { %7702 = vmatprep.mubr.f32.mxu0 %v16666_v49  ;;  %11166 = vmatpush1.bf16.msra.mxu1 %v11165_v44 }
 0x432   : > { %11168 = vmatprep.subr.bf16.mxu1 %v11167_v9  ;;  %v14810_v41 = vpop.f32.mrb[130].mxu1  ;;  %v14812_v55 = vpop.f32.mrb[194].mxu0 }
 0x433   : > { %10545 = vmatmul.mubr.msk.f32.gmra.mrb[186].mxu1 %vm1064_vm1, %v14806_v34  ;;  %v14817_v48 = vpop.f32.mrb[131].mxu1  ;;  %v14819_v11 = vpop.f32.mrb[195].mxu0 }
 0x434   : > { %10700 = vmatmul.mubr.msk.f32.gmra.mrb[248].mxu0 %vm1064_vm1, %v14786_v14  ;;  %6548 = vmatprep.mubr.f32.mxu1 %v16666_v49 }
 0x435   : > { %7708 = vmatprep.mubr.f32.mxu0 %v16666_v49  ;;  %11170 = vmatpush1.bf16.msra.mxu1 %v11169_v3 }
 0x436   : > { %11172 = vmatprep.subr.bf16.mxu1 %v11171_v28  ;;  %v6308_v8 = vpop.f32.mrb[132].mxu1 }
 0x437   : > { %10546 = vmatmul.mubr.msk.f32.gmra.mrb[188].mxu1 %vm1064_vm1, %v14822_v19  ;;  %v6896_v15 = vpop.f32.mrb[196].mxu0  ;;  %v6309_v21 = vpop.f32.mrb[133].mxu1 }
 0x438   : > { %10701 = vmatmul.mubr.msk.f32.gmra.mrb[250].mxu0 %vm1064_vm1, %v14806_v34  ;;  %6554 = vmatprep.mubr.f32.mxu1 %v16666_v49  ;;  %v6897_v31 = vpop.f32.mrb[197].mxu0 }
 0x439   : > { %7714 = vmatprep.mubr.f32.mxu0 %v16666_v49  ;;  %11174 = vmatpush1.bf16.msra.mxu1 %v11173_v45 }
 0x43b   : > { %10547 = vmatmul.mubr.msk.f32.gmra.mrb[190].mxu1 %vm1064_vm1, %v14830_v20 }
 0x43c   : > { %10702 = vmatmul.mubr.msk.f32.gmra.mrb[252].mxu0 %vm1064_vm1, %v14822_v19  ;;  %6560 = vmatprep.mubr.f32.mxu1 %v16666_v49 }
 0x43d   : > { %7720 = vmatprep.mubr.f32.mxu0 %v16666_v49  ;;  %v14838_v37 = vpop.f32.mrb[134].mxu1 }
 0x43e   : > { %v14840_v22 = vpop.f32.mrb[198].mxu0  ;;  %v14842_v62 = vpop.f32.mrb[135].mxu1 }
 0x43f   : > { %10548 = vmatmul.mubr.msk.f32.gmra.mrb[192].mxu1 %vm1064_vm1, %v14844_v30  ;;  %v14848_v58 = vpop.f32.mrb[199].mxu0 }
 0x440   : > { %10703 = vmatmul.mubr.msk.f32.gmra.mrb[254].mxu0 %vm1064_vm1, %v14830_v20  ;;  %6564 = vmatprep.mubr.f32.mxu1 %v16666_v49 }
 0x441   : > { %7726 = vmatprep.mubr.f32.mxu0 %v16666_v49 }
 0x443   : > { %10549 = vmatmul.mubr.msk.f32.gmra.mrb[194].mxu1 %vm1064_vm1, %v14854_v56 }
 0x444   : > { %10704 = vmatmul.mubr.msk.f32.gmra.mrb[0].mxu0 %vm1064_vm1, %v14844_v30  ;;  %6570 = vmatprep.mubr.f32.mxu1 %v16666_v49 }
 0x445   : > { %7732 = vmatprep.mubr.f32.mxu0 %v16666_v49 }
 0x447   : > { %10550 = vmatmul.mubr.msk.f32.gmra.mrb[196].mxu1 %vm1064_vm1, %v14862_v54 }
 0x448   : > { %10705 = vmatmul.mubr.msk.f32.gmra.mrb[2].mxu0 %vm1064_vm1, %v14854_v56  ;;  %6576 = vmatprep.mubr.f32.mxu1 %v16666_v49 }
 0x449   : > { %7738 = vmatprep.mubr.f32.mxu0 %v16666_v49  ;;  %v14870_v1 = vpop.f32.mrb[136].mxu1  ;;  %v14872_v42 = vpop.f32.mrb[200].mxu0 }
 0x44a   : > { %v14874_v5 = vpop.f32.mrb[137].mxu1  ;;  %v14876_v0 = vpop.f32.mrb[201].mxu0 }
 0x44b   : > { %10551 = vmatmul.mubr.msk.f32.gmra.mrb[198].mxu1 %vm1064_vm1, %v14878_v32 }
 0x44c   : > { %10706 = vmatmul.mubr.msk.f32.gmra.mrb[4].mxu0 %vm1064_vm1, %v14862_v54  ;;  %6580 = vmatprep.mubr.f32.mxu1 %v16666_v49 }
 0x44d   : > { %7744 = vmatprep.mubr.f32.mxu0 %v16666_v49  ;;  %v6324_v27 = vpop.f32.mrb[138].mxu1  ;;  %v6912_v39 = vpop.f32.mrb[202].mxu0 }
 0x44e   : > { %v6325_v18 = vpop.f32.mrb[139].mxu1  ;;  %v6913_v60 = vpop.f32.mrb[203].mxu0 }
 0x44f   : > { %10552 = vmatmul.mubr.msk.f32.gmra.mrb[200].mxu1 %vm1064_vm1, %v14886_v10 }
 0x450   : > { %10707 = vmatmul.mubr.msk.f32.gmra.mrb[6].mxu0 %vm1064_vm1, %v14878_v32  ;;  %6586 = vmatprep.mubr.f32.mxu1 %v16666_v49 }
 0x451   : > { %7750 = vmatprep.mubr.f32.mxu0 %v16666_v49 }
 0x453   : > { %10553 = vmatmul.mubr.msk.f32.gmra.mrb[202].mxu1 %vm1064_vm1, %v14894_v17 }
 0x454   : > { %10708 = vmatmul.mubr.msk.f32.gmra.mrb[8].mxu0 %vm1064_vm1, %v14886_v10  ;;  %6592 = vmatprep.mubr.f32.mxu1 %v16666_v49 }
 0x455   : > { %7756 = vmatprep.mubr.f32.mxu0 %v16666_v49 }
 0x457   : > { %10554 = vmatmul.mubr.msk.f32.gmra.mrb[204].mxu1 %vm1064_vm1, %v14902_v4 }
 0x458   : > { %10709 = vmatmul.mubr.msk.f32.gmra.mrb[10].mxu0 %vm1064_vm1, %v14894_v17  ;;  %6596 = vmatprep.mubr.f32.mxu1 %v16666_v49 }
 0x459   : > { %7762 = vmatprep.mubr.f32.mxu0 %v16666_v49  ;;  %v14910_v63 = vpop.f32.mrb[140].mxu1 }
 0x45a   : > { %v14912_v26 = vpop.f32.mrb[204].mxu0  ;;  %v14914_v29 = vpop.f32.mrb[141].mxu1 }
 0x45b   : > { %10555 = vmatmul.mubr.msk.f32.gmra.mrb[206].mxu1 %vm1064_vm1, %v14360_v36  ;;  %v14918_v44 = vpop.f32.mrb[205].mxu0 }
 0x45c   : > { %10710 = vmatmul.mubr.msk.f32.gmra.mrb[12].mxu0 %vm1064_vm1, %v14902_v4  ;;  %6602 = vmatprep.mubr.f32.mxu1 %v16666_v49 }
 0x45d   : > { %7768 = vmatprep.mubr.f32.mxu0 %v16666_v49 }
 0x45f   : > { %10556 = vmatmul.mubr.msk.f32.gmra.mrb[208].mxu1 %vm1064_vm1, %v14409_v46 }
 0x460   : > { %10711 = vmatmul.mubr.msk.f32.gmra.mrb[14].mxu0 %vm1064_vm1, %v14360_v36  ;;  %6608 = vmatprep.mubr.f32.mxu1 %v16666_v49 }
 0x461   : > { %7774 = vmatprep.mubr.f32.mxu0 %v16666_v49 }
 0x463   : > { %10557 = vmatmul.mubr.msk.f32.gmra.mrb[210].mxu1 %vm1064_vm1, %v14421_v43 }
 0x464   : > { %10712 = vmatmul.mubr.msk.f32.gmra.mrb[16].mxu0 %vm1064_vm1, %v14409_v46  ;;  %6612 = vmatprep.mubr.f32.mxu1 %v16666_v49 }
 0x465   : > { %7780 = vmatprep.mubr.f32.mxu0 %v16666_v49  ;;  %v14936_v9 = vpop.f32.mrb[142].mxu1 }
 0x466   : > { %v14938_v51 = vpop.f32.mrb[206].mxu0  ;;  %v14940_v47 = vpop.f32.mrb[143].mxu1 }
 0x467   : > { %10558 = vmatmul.mubr.msk.f32.gmra.mrb[212].mxu1 %vm1064_vm1, %v14447_v2  ;;  %v14944_v36 = vpop.f32.mrb[207].mxu0 }
 0x468   : > { %10713 = vmatmul.mubr.msk.f32.gmra.mrb[18].mxu0 %vm1064_vm1, %v14421_v43  ;;  %6618 = vmatprep.mubr.f32.mxu1 %v16666_v49 }
 0x469   : > { %7786 = vmatprep.mubr.f32.mxu0 %v16666_v49  ;;  %v6340_v46 = vpop.f32.mrb[144].mxu1 }
 0x46a   : > { %v6928_v12 = vpop.f32.mrb[208].mxu0  ;;  %v6341_v50 = vpop.f32.mrb[145].mxu1 }
 0x46b   : > { %10559 = vmatmul.mubr.msk.f32.gmra.mrb[214].mxu1 %vm1064_vm1, %v14515_v35  ;;  %v6929_v3 = vpop.f32.mrb[209].mxu0 }
 0x46c   : > { %10714 = vmatmul.mubr.msk.f32.gmra.mrb[20].mxu0 %vm1064_vm1, %v14447_v2  ;;  %6624 = vmatprep.mubr.f32.mxu1 %v16666_v49 }
 0x46d   : > { %7792 = vmatprep.mubr.f32.mxu0 %v16666_v49 }
 0x46f   : > { %10560 = vmatmul.mubr.msk.f32.gmra.mrb[216].mxu1 %vm1064_vm1, %v14526_v38 }
 0x470   : > { %10715 = vmatmul.mubr.msk.f32.gmra.mrb[22].mxu0 %vm1064_vm1, %v14515_v35  ;;  %6628 = vmatprep.mubr.f32.mxu1 %v16666_v49 }
 0x471   : > { %7798 = vmatprep.mubr.f32.mxu0 %v16666_v49 }
 0x472   : > { %v14962_v43 = vpop.f32.mrb[146].mxu1  ;;  %v14964_v28 = vpop.f32.mrb[210].mxu0 }
 0x473   : > { %10561 = vmatmul.mubr.msk.f32.gmra.mrb[218].mxu1 %vm1064_vm1, %v14622_v23  ;;  %v14968_v57 = vpop.f32.mrb[147].mxu1  ;;  %v14970_v24 = vpop.f32.mrb[211].mxu0 }
 0x474   : > { %10716 = vmatmul.mubr.msk.f32.gmra.mrb[24].mxu0 %vm1064_vm1, %v14526_v38  ;;  %6634 = vmatprep.mubr.f32.mxu1 %v16666_v49 }
 0x475   : > { %7804 = vmatprep.mubr.f32.mxu0 %v16666_v49 }
 0x477   : > { %10562 = vmatmul.mubr.msk.f32.gmra.mrb[220].mxu1 %vm1064_vm1, %v14649_v40 }
 0x478   : > { %10717 = vmatmul.mubr.msk.f32.gmra.mrb[26].mxu0 %vm1064_vm1, %v14622_v23  ;;  %6640 = vmatprep.mubr.f32.mxu1 %v16666_v49 }
 0x479   : > { %7810 = vmatprep.mubr.f32.mxu0 %v16666_v49 }
 0x47b   : > { %10563 = vmatmul.mubr.msk.f32.gmra.mrb[222].mxu1 %vm1064_vm1, %v14669_v16 }
 0x47c   : > { %10718 = vmatmul.mubr.msk.f32.gmra.mrb[28].mxu0 %vm1064_vm1, %v14649_v40  ;;  %7248 = vmatprep.mubr.f32.mxu1 %v16666_v49 }
 0x47d   : > { %7816 = vmatprep.mubr.f32.mxu0 %v16666_v49 }
 0x47f   : > { %10644 = vmatmul.mubr.msk.f32.vlgmr.msra.gmra.mrb[224].mxu1 %vm1064_vm1, %v14701_v61 }
 0x480   : > { %10719 = vmatmul.mubr.msk.f32.gmra.mrb[30].mxu0 %vm1064_vm1, %v14669_v16  ;;  %7254 = vmatprep.mubr.f32.mxu1 %v16666_v49 }
 0x482   : > { %v14993_v45 = vpop.f32.mrb[148].mxu1  ;;  %v14995_v8 = vpop.f32.mrb[212].mxu0 }
 0x483   : > { %10645 = vmatmul.mubr.msk.f32.gmra.mrb[226].mxu1 %vm1064_vm1, %v14726_v25  ;;  %v14999_v15 = vpop.f32.mrb[149].mxu1  ;;  %v15001_v21 = vpop.f32.mrb[213].mxu0 }
 0x484   : > { %7260 = vmatprep.mubr.f32.mxu1 %v16666_v49 }
 0x486   : > { %v6356_v31 = vpop.f32.mrb[150].mxu1  ;;  %v6944_v61 = vpop.f32.mrb[214].mxu0 }
 0x487   : > { %10646 = vmatmul.mubr.msk.f32.gmra.mrb[228].mxu1 %vm1064_vm1, %v14746_v7  ;;  %v6357_v27 = vpop.f32.mrb[151].mxu1  ;;  %v6945_v39 = vpop.f32.mrb[215].mxu0 }
 0x488   : > { %7266 = vmatprep.mubr.f32.mxu1 %v16666_v49 }
 0x48b   : > { %10647 = vmatmul.mubr.msk.f32.gmra.mrb[230].mxu1 %vm1064_vm1, %v14766_v6 }
 0x48c   : > { %7272 = vmatprep.mubr.f32.mxu1 %v16666_v49 }
 0x48d   : > { %v15010_v25 = vpop.f32.mrb[152].mxu1 }
 0x48e   : > { %v6948_v18 = vpop.f32.mrb[216].mxu0  ;;  %v15012_v60 = vpop.f32.mrb[153].mxu1 }
 0x48f   : > { %10648 = vmatmul.mubr.msk.f32.gmra.mrb[232].mxu1 %vm1064_vm1, %v14786_v14  ;;  %v6950_v46 = vpop.f32.mrb[217].mxu0  ;;  %v7067_v14 = vrot.slane %v6948_v18, 2 }
 0x490   : > { %7278 = vmatprep.mubr.f32.mxu1 %v16666_v49  ;;  %v7070_v3 = vrot.slane %v6950_v46, 2 }
 0x493   : > { %10649 = vmatmul.mubr.msk.f32.gmra.mrb[234].mxu1 %vm1064_vm1, %v14806_v34 }
 0x494   : > { %7284 = vmatprep.mubr.f32.mxu1 %v16666_v49 }
 0x497   : > { %10650 = vmatmul.mubr.msk.f32.gmra.mrb[236].mxu1 %vm1064_vm1, %v14822_v19 }
 0x498   : > { %7290 = vmatprep.mubr.f32.mxu1 %v16666_v49 }
 0x49b   : > { %10651 = vmatmul.mubr.msk.f32.gmra.mrb[238].mxu1 %vm1064_vm1, %v14830_v20  ;;  %v15025_v7 = vpop.f32.mrb[154].mxu1  ;;  %v15027_v6 = vpop.f32.mrb[218].mxu0 }
 0x49c   : > { %7296 = vmatprep.mubr.f32.mxu1 %v16666_v49  ;;  %v16552_v12 = vrot.slane %v15027_v6, 2  ;;  %v15031_v34 = vpop.f32.mrb[155].mxu1  ;;  %v15033_v50 = vpop.f32.mrb[219].mxu0 }
 0x49d   : > { %v16551_v19 = vrot.slane %v15033_v50, 2 }
 0x49e   : > { %v15039_v20 = vsel %vm2359_vm11, %v7067_v14, %v16552_v12 }
 0x49f   : > { %10652 = vmatmul.mubr.msk.f32.gmra.mrb[240].mxu1 %vm1064_vm1, %v14844_v30  ;;  %v15046_v31 = vsel %vm2359_vm11, %v7070_v3, %v16551_v19  ;;  %v6372_v61 = vpop.f32.mrb[156].mxu1  ;;  %v6960_v27 = vpop.f32.mrb[220].mxu0  ;;  %v11409_v19 = vld [vmem:[#allocation3 + $0x78] sm:$0xff] }
 0x4a0   : > { %7302 = vmatprep.mubr.f32.mxu1 %v16666_v49  ;;  %v6373_v39 = vpop.f32.mrb[157].mxu1  ;;  %v6961_v18 = vpop.f32.mrb[221].mxu0 }
 0x4a3   : > { %10653 = vmatmul.mubr.msk.f32.gmra.mrb[242].mxu1 %vm1064_vm1, %v14854_v56 }
 0x4a4   : > { %7308 = vmatprep.mubr.f32.mxu1 %v16666_v49 }
 0x4a7   : > { %10654 = vmatmul.mubr.msk.f32.gmra.mrb[244].mxu1 %vm1064_vm1, %v14862_v54 }
 0x4a8   : > { %7314 = vmatprep.mubr.f32.mxu1 %v16666_v49 }
 0x4a9   : > { %v15055_v30 = vpop.f32.mrb[158].mxu1  ;;  %v6964_v46 = vpop.f32.mrb[222].mxu0 }
 0x4aa   : > { %v15057_v14 = vpop.f32.mrb[159].mxu1  ;;  %v6966_v3 = vpop.f32.mrb[223].mxu0  ;;  %v7073_v61 = vrot.slane %v6964_v46, 2 }
 0x4ab   : > { %16673 = vst [vmem:[#allocation31_spill] sm:$0xff] %v15057_v14  ;;  %10655 = vmatmul.mubr.msk.f32.gmra.mrb[246].mxu1 %vm1064_vm1, %v14878_v32  ;;  %v7076_v39 = vrot.slane %v6966_v3, 2  ;;  %v11410_v14 = vld [vmem:[#allocation3 + $0x80] sm:$0xff] }
 0x4ac   : > { %7320 = vmatprep.mubr.f32.mxu1 %v16666_v49 }
 0x4af   : > { %10656 = vmatmul.mubr.msk.f32.gmra.mrb[248].mxu1 %vm1064_vm1, %v14886_v10 }
 0x4b0   : > { %7326 = vmatprep.mubr.f32.mxu1 %v16666_v49 }
 0x4b3   : > { %10657 = vmatmul.mubr.msk.f32.gmra.mrb[250].mxu1 %vm1064_vm1, %v14894_v17 }
 0x4b4   : > { %7332 = vmatprep.mubr.f32.mxu1 %v16666_v49 }
 0x4b6   : > { %v15068_v56 = vpop.f32.mrb[160].mxu1 }
 0x4b7   : > { %10658 = vmatmul.mubr.msk.f32.gmra.mrb[252].mxu1 %vm1064_vm1, %v14902_v4  ;;  %v15072_v54 = vpop.f32.mrb[224].mxu0  ;;  %v15074_v32 = vpop.f32.mrb[161].mxu1 }
 0x4b8   : > { %7338 = vmatprep.mubr.f32.mxu1 %v16666_v49  ;;  %v16556_v10 = vrot.slane %v15072_v54, 2  ;;  %v15078_v27 = vpop.f32.mrb[225].mxu0 }
 0x4b9   : > { %v16555_v17 = vrot.slane %v15078_v27, 2 }
 0x4ba   : > { %v15084_v18 = vsel %vm2359_vm11, %v7073_v61, %v16556_v10  ;;  %v6388_v4 = vpop.f32.mrb[162].mxu1  ;;  %v11411_v61 = vld [vmem:[#allocation3 + $0x88] sm:$0xff] }
 0x4bb   : > { %16674 = vst [vmem:[#allocation7_spill] sm:$0xff] %v15084_v18  ;;  %10659 = vmatmul.mubr.msk.f32.gmra.mrb[254].mxu1 %vm1064_vm1, %v11409_v19  ;;  %v15090_v46 = vsel %vm2359_vm11, %v7076_v39, %v16555_v17  ;;  %v6976_v12 = vpop.f32.mrb[226].mxu0  ;;  %v6389_v52 = vpop.f32.mrb[163].mxu1 }
 0x4bc   : > { %16675 = vst [vmem:[#allocation32_spill] sm:$0xff] %v15090_v46  ;;  %7344 = vmatprep.mubr.f32.mxu1 %v16666_v49  ;;  %v6977_v3 = vpop.f32.mrb[227].mxu0 }
 0x4bf   : > { %10660 = vmatmul.mubr.msk.f32.gmra.mrb[0].mxu1 %vm1064_vm1, %v11410_v14 }
 0x4c0   : > { %7350 = vmatprep.mubr.f32.mxu1 %v16666_v49 }
 0x4c3   : > { %10661 = vmatmul.mubr.msk.f32.gmra.mrb[2].mxu1 %vm1064_vm1, %v11411_v61  ;;  %v15096_v4 = vpop.f32.mrb[164].mxu1  ;;  %v6980_v19 = vpop.f32.mrb[228].mxu0 }
 0x4c4   : > { %16676 = vst [vmem:[#allocation8_spill] sm:$0xff] %v15096_v4  ;;  %7356 = vmatprep.mubr.f32.mxu1 %v16666_v49  ;;  %v15099_v39 = vpop.f32.mrb[165].mxu1  ;;  %v6982_v12 = vpop.f32.mrb[229].mxu0 }
 0x4c5   : > { %16677 = vst [vmem:[#allocation9_spill] sm:$0xff] %v15099_v39  ;;  %v7082_v17 = vrot.slane %v6982_v12, 2 }
 0x4c7   : > { %10662 = vmatmul.mubr.msk.f32.gmra.mrb[4].mxu1 %vm1064_vm1, %v14447_v2  ;;  %v7079_v2 = vrot.slane %v6980_v19, 2 }
 0x4c8   : > { %7362 = vmatprep.mubr.f32.mxu1 %v16666_v49 }
 0x4cb   : > { %10663 = vmatmul.mubr.msk.f32.gmra.mrb[6].mxu1 %vm1064_vm1, %v14515_v35 }
 0x4cc   : > { %7368 = vmatprep.mubr.f32.mxu1 %v16666_v49 }
 0x4cf   : > { %10664 = vmatmul.mubr.msk.f32.gmra.mrb[8].mxu1 %vm1064_vm1, %v14526_v38 }
 0x4d0   : > { %7374 = vmatprep.mubr.f32.mxu1 %v16666_v49 }
 0x4d3   : > { %10665 = vmatmul.mubr.msk.f32.gmra.mrb[10].mxu1 %vm1064_vm1, %v14622_v23  ;;  %v15112_v52 = vpop.f32.mrb[166].mxu1  ;;  %v15114_v14 = vpop.f32.mrb[230].mxu0 }
 0x4d4   : > { %16678 = vst [vmem:[#allocation10_spill] sm:$0xff] %v15112_v52  ;;  %16679 = vst [vmem:[#allocation11_spill] sm:$0xff] %v15114_v14  ;;  %7380 = vmatprep.mubr.f32.mxu1 %v16666_v49  ;;  %v16558_v3 = vrot.slane %v15114_v14, 2  ;;  %v15118_v35 = vpop.f32.mrb[167].mxu1  ;;  %v15120_v61 = vpop.f32.mrb[231].mxu0 }
 0x4d5   : > { %16680 = vst [vmem:[#allocation12_spill] sm:$0xff] %v15118_v35  ;;  %16681 = vst [vmem:[#allocation13_spill] sm:$0xff] %v15120_v61  ;;  %v16560_v38 = vrot.slane %v15120_v61, 2 }
 0x4d6   : > { %v15126_v23 = vsel %vm2359_vm11, %v7079_v2, %v16558_v3 }
 0x4d7   : > { %16682 = vst [vmem:[#allocation14_spill] sm:$0xff] %v15126_v23  ;;  %10666 = vmatmul.mubr.msk.f32.gmra.mrb[12].mxu1 %vm1064_vm1, %v14649_v40  ;;  %v15133_v19 = vsel %vm2359_vm11, %v7082_v17, %v16560_v38  ;;  %v6404_v10 = vpop.f32.mrb[168].mxu1  ;;  %v6992_v39 = vpop.f32.mrb[232].mxu0 }
 0x4d8   : > { %16683 = vst [vmem:[#allocation15_spill] sm:$0xff] %v15133_v19  ;;  %7386 = vmatprep.mubr.f32.mxu1 %v16666_v49  ;;  %v6405_v12 = vpop.f32.mrb[169].mxu1  ;;  %v6993_v35 = vpop.f32.mrb[233].mxu0 }
 0x4db   : > { %10667 = vmatmul.mubr.msk.f32.gmra.mrb[14].mxu1 %vm1064_vm1, %v14669_v16 }
 0x4e1   : > { %v15138_v14 = vpop.f32.mrb[170].mxu1 }
 0x4e2   : > { %16684 = vst [vmem:[#allocation16_spill] sm:$0xff] %v15138_v14  ;;  %v6996_v2 = vpop.f32.mrb[234].mxu0  ;;  %v15140_v3 = vpop.f32.mrb[171].mxu1 }
 0x4e3   : > { %16685 = vst [vmem:[#allocation17_spill] sm:$0xff] %v15140_v3  ;;  %v6998_v40 = vpop.f32.mrb[235].mxu0  ;;  %v7085_v17 = vrot.slane %v6996_v2, 2 }
 0x4e4   : > { %v7088_v35 = vrot.slane %v6998_v40, 2  ;;  %v16566_v40 = vrot.slane %v14812_v55, 2 }
 0x4ea   : > { %v15142_v23 = vpop.f32.mrb[172].mxu1  ;;  %v15144_v61 = vpop.f32.mrb[236].mxu0 }
 0x4eb   : > { %16686 = vst [vmem:[#allocation18_spill] sm:$0xff] %v15142_v23  ;;  %16687 = vst [vmem:[#allocation19_spill] sm:$0xff] %v15144_v61  ;;  %v16563_v10 = vrot.slane %v15144_v61, 2  ;;  %v15147_v39 = vpop.f32.mrb[173].mxu1  ;;  %v15149_v12 = vpop.f32.mrb[237].mxu0 }
 0x4ec   : > { %16688 = vst [vmem:[#allocation20_spill] sm:$0xff] %v15147_v39  ;;  %16689 = vst [vmem:[#allocation21_spill] sm:$0xff] %v15149_v12  ;;  %v16565_v16 = vrot.slane %v15149_v12, 2 }
 0x4ed   : > { %v15155_v38 = vsel %vm2359_vm11, %v7085_v17, %v16563_v10  ;;  %v16567_v17 = vrot.slane %v14819_v11, 2 }
 0x4ee   : > { %16690 = vst [vmem:[#allocation22_spill] sm:$0xff] %v15155_v38  ;;  %v15160_v49 = vsel %vm2359_vm11, %v7088_v35, %v16565_v16  ;;  %v6420_v2 = vpop.f32.mrb[174].mxu1  ;;  %v7008_v3 = vpop.f32.mrb[238].mxu0  ;;  %v7043_v35 = vrot.slane %v14714_v53, 2 }
 0x4ef   : > { %v6421_v14 = vpop.f32.mrb[175].mxu1  ;;  %v7009_v23 = vpop.f32.mrb[239].mxu0 }
 0x4f0   : > { %v7046_v23 = vrot.slane %v14724_v59, 2 }
 0x4f2   : > { %v6518_v39 = vpop.f32.mrb[176].mxu1  ;;  %v7048_v59 = vsel %vm2359_vm11, %v7046_v23, %v16567_v17 }
 0x4f3   : > { %v6520_v19 = vpop.f32.mrb[177].mxu1  ;;  %v6677_v52 = vrot.slane %v6518_v39, 1 }
 0x4f4   : > { %v6680_v10 = vrot.slane %v6520_v19, 1 }
 0x4f6   : > { %v6524_v4 = vpop.f32.mrb[178].mxu1 }
 0x4f7   : > { %v7680_v46 = vpop.f32.mrb[240].mxu0  ;;  %v6678_v61 = vrot.slane %v6524_v4, 1  ;;  %v6526_v18 = vpop.f32.mrb[179].mxu1 }
 0x4f8   : > { %v7682_v38 = vpop.f32.mrb[241].mxu0  ;;  %v6681_v12 = vrot.slane %v6526_v18, 1  ;;  %v7045_v18 = vsel %vm2359_vm11, %v7043_v35, %v16566_v40 }
 0x4f9   : > { %v6679_v3 = vsel %vm1768_vm10, %v6677_v52, %v6678_v61  ;;  %v15167_v14 = vadd.f32 %v6678_v61, %v14810_v41  ;;  %v7871_v41 = vrot.slane %v7680_v46, 4 }
 0x4fa   : > { %v6757_v2 = vadd.f32 %v6679_v3, %v14712_v33  ;;  %v6682_v39 = vsel %vm1768_vm10, %v6680_v10, %v6681_v12  ;;  %v15173_v4 = vadd.f32 %v6681_v12, %v14817_v48  ;;  %v6530_v16 = vpop.f32.mrb[180].mxu1  ;;  %v7874_v48 = vrot.slane %v7682_v38, 4 }
 0x4fb   : > { %v7686_v53 = vpop.f32.mrb[242].mxu0  ;;  %v6758_v52 = vadd.f32 %v6682_v39, %v14722_v13  ;;  %v6531_v19 = vpop.f32.mrb[181].mxu1  ;;  %v7052_v38 = vrot.slane %v14848_v58, 2 }
 0x4fc   : > { %v7872_v33 = vrot.slane %v7686_v53, 4  ;;  %v7688_v61 = vpop.f32.mrb[243].mxu0  ;;  %v15182_v10 = vadd.f32 %v7045_v18, %v6757_v2 }
 0x4fd   : > { %v7875_v12 = vrot.slane %v7688_v61, 4  ;;  %v15184_v16 = vadd.f32 %v7048_v59, %v6758_v52 }
 0x4fe   : > { %v15187_v3 = vsel %vm3541_vm13, %v7871_v41, %v7872_v33  ;;  %v6534_v35 = vpop.f32.mrb[182].mxu1 }
 0x4ff   : > { %v15190_v13 = vsel %vm3541_vm13, %v7874_v48, %v7875_v12  ;;  %v7692_v39 = vpop.f32.mrb[244].mxu0  ;;  %v6536_v19 = vpop.f32.mrb[183].mxu1  ;;  %v6683_v52 = vrot.slane %v6534_v35, 1 }
 0x500   : > { %16691 = vst [vmem:[#allocation23_spill] sm:$0xff] %v15190_v13  ;;  %v7877_v40 = vrot.slane %v7692_v39, 4  ;;  %v7694_v23 = vpop.f32.mrb[245].mxu0  ;;  %v6686_v17 = vrot.slane %v6536_v19, 1  ;;  %v16693_v19 = vrot.slane %v14872_v42, 2 }
 0x501   : > { %v7879_v46 = vrot.slane %v7694_v23, 4  ;;  %v7049_v23 = vrot.slane %v14840_v22, 2 }
 0x502   : > { %v15193_v53 = vsel %vm3541_vm13, %v7872_v33, %v7877_v40  ;;  %v6540_v2 = vpop.f32.mrb[184].mxu1 }
 0x503   : > { %v15197_v18 = vsel %vm3541_vm13, %v7875_v12, %v7879_v46  ;;  %v7698_v59 = vpop.f32.mrb[246].mxu0  ;;  %v6684_v41 = vrot.slane %v6540_v2, 1  ;;  %v6542_v61 = vpop.f32.mrb[185].mxu1 }
 0x504   : > { %v7700_v13 = vpop.f32.mrb[247].mxu0  ;;  %v6687_v39 = vrot.slane %v6542_v61, 1  ;;  %v7051_v61 = vsel %vm2359_vm11, %v7049_v23, %v16693_v19 }
 0x505   : > { %v6685_v40 = vsel %vm1768_vm10, %v6683_v52, %v6684_v41  ;;  %v15203_v33 = vadd.f32 %v6684_v41, %v14870_v1  ;;  %v16694_v1 = vrot.slane %v14876_v0, 2  ;;  %v7881_v41 = vrot.slane %v7698_v59, 4 }
 0x506   : > { %v6761_v12 = vadd.f32 %v6685_v40, %v14838_v37  ;;  %v6688_v35 = vsel %vm1768_vm10, %v6686_v17, %v6687_v39  ;;  %v15209_v46 = vadd.f32 %v6687_v39, %v14874_v5  ;;  %v6546_v2 = vpop.f32.mrb[186].mxu1  ;;  %v7884_v5 = vrot.slane %v7700_v13, 4 }
 0x507   : > { %v7704_v22 = vpop.f32.mrb[248].mxu0  ;;  %v6762_v52 = vadd.f32 %v6688_v35, %v14842_v62  ;;  %v6547_v48 = vpop.f32.mrb[187].mxu1  ;;  %v7054_v58 = vsel %vm2359_vm11, %v7052_v38, %v16694_v1  ;;  %v7058_v13 = vrot.slane %v14918_v44, 2 }
 0x508   : > { %16692 = vst [vmem:[#allocation24_spill] sm:$0xff] %v15209_v46  ;;  %v7882_v37 = vrot.slane %v7704_v22, 4  ;;  %v7706_v40 = vpop.f32.mrb[249].mxu0  ;;  %v15218_v17 = vadd.f32 %v7051_v61, %v6761_v12 }
 0x509   : > { %v7885_v39 = vrot.slane %v7706_v40, 4  ;;  %v15220_v2 = vadd.f32 %v7054_v58, %v6762_v52 }
 0x50a   : > { %v15223_v46 = vsel %vm3541_vm13, %v7881_v41, %v7882_v37  ;;  %v6550_v23 = vpop.f32.mrb[188].mxu1 }
 0x50b   : > { %v15226_v62 = vsel %vm3541_vm13, %v7884_v5, %v7885_v39  ;;  %v7710_v48 = vpop.f32.mrb[250].mxu0  ;;  %v6552_v35 = vpop.f32.mrb[189].mxu1  ;;  %v6689_v52 = vrot.slane %v6550_v23, 1 }
 0x50c   : > { %16695 = vst [vmem:[#allocation26_spill] sm:$0xff] %v15226_v62  ;;  %v7887_v19 = vrot.slane %v7710_v48, 4  ;;  %v7712_v38 = vpop.f32.mrb[251].mxu0  ;;  %v6692_v5 = vrot.slane %v6552_v35, 1  ;;  %v16697_v35 = vrot.slane %v14938_v51, 2 }
 0x50d   : > { %v7889_v59 = vrot.slane %v7712_v38, 4  ;;  %v7055_v38 = vrot.slane %v14912_v26, 2 }
 0x50e   : > { %v15229_v22 = vsel %vm3541_vm13, %v7882_v37, %v7887_v19  ;;  %v6556_v12 = vpop.f32.mrb[190].mxu1 }
 0x50f   : > { %v15233_v61 = vsel %vm3541_vm13, %v7885_v39, %v7889_v59  ;;  %v7716_v1 = vpop.f32.mrb[252].mxu0  ;;  %v6690_v58 = vrot.slane %v6556_v12, 1  ;;  %v6558_v41 = vpop.f32.mrb[191].mxu1 }
 0x510   : > { %v7718_v62 = vpop.f32.mrb[253].mxu0  ;;  %v6693_v48 = vrot.slane %v6558_v41, 1  ;;  %v7057_v41 = vsel %vm2359_vm11, %v7055_v38, %v16697_v35 }
 0x511   : > { %v6691_v37 = vsel %vm1768_vm10, %v6689_v52, %v6690_v58  ;;  %v15239_v19 = vadd.f32 %v6690_v58, %v14936_v9  ;;  %v16698_v9 = vrot.slane %v14944_v36, 2  ;;  %v7891_v58 = vrot.slane %v7716_v1, 4 }
 0x512   : > { %v6765_v39 = vadd.f32 %v6691_v37, %v14910_v63  ;;  %v6694_v23 = vsel %vm1768_vm10, %v6692_v5, %v6693_v48  ;;  %v15245_v59 = vadd.f32 %v6693_v48, %v14940_v47  ;;  %v6562_v12 = vpop.f32.mrb[192].mxu1  ;;  %v7894_v47 = vrot.slane %v7718_v62, 4 }
 0x513   : > { %v7722_v26 = vpop.f32.mrb[254].mxu0  ;;  %v6766_v52 = vadd.f32 %v6694_v23, %v14914_v29  ;;  %v6563_v40 = vpop.f32.mrb[193].mxu1  ;;  %v7060_v44 = vsel %vm2359_vm11, %v7058_v13, %v16698_v9  ;;  %v7064_v62 = vrot.slane %v14970_v24, 2 }
 0x514   : > { %16696 = vst [vmem:[#allocation28_spill] sm:$0xff] %v15245_v59  ;;  %v7892_v63 = vrot.slane %v7722_v26, 4  ;;  %v7724_v37 = vpop.f32.mrb[255].mxu0  ;;  %v15254_v5 = vadd.f32 %v7057_v41, %v6765_v39 }
 0x515   : > { %v7895_v48 = vrot.slane %v7724_v37, 4  ;;  %v15256_v12 = vadd.f32 %v7060_v44, %v6766_v52 }
 0x516   : > { %v15259_v59 = vsel %vm3541_vm13, %v7891_v58, %v7892_v63  ;;  %v6566_v38 = vpop.f32.mrb[194].mxu1 }
 0x517   : > { %v15262_v29 = vsel %vm3541_vm13, %v7894_v47, %v7895_v48  ;;  %v7728_v40 = vpop.f32.mrb[0].mxu0  ;;  %v6568_v23 = vpop.f32.mrb[195].mxu1  ;;  %v6695_v52 = vrot.slane %v6566_v38, 1 }
 0x518   : > { %16699 = vst [vmem:[#allocation30_spill] sm:$0xff] %v15262_v29  ;;  %v7897_v35 = vrot.slane %v7728_v40, 4  ;;  %v7730_v13 = vpop.f32.mrb[1].mxu0  ;;  %v6698_v47 = vrot.slane %v6568_v23, 1  ;;  %v16701_v23 = vrot.slane %v14995_v8, 2 }
 0x519   : > { %v7899_v1 = vrot.slane %v7730_v13, 4  ;;  %v7061_v13 = vrot.slane %v14964_v28, 2 }
 0x51a   : > { %v15265_v26 = vsel %vm3541_vm13, %v7892_v63, %v7897_v35  ;;  %v6572_v39 = vpop.f32.mrb[196].mxu1 }
 0x51b   : > { %v15269_v41 = vsel %vm3541_vm13, %v7895_v48, %v7899_v1  ;;  %v7734_v9 = vpop.f32.mrb[2].mxu0  ;;  %v6696_v44 = vrot.slane %v6572_v39, 1  ;;  %v6574_v58 = vpop.f32.mrb[197].mxu1 }
 0x51c   : > { %v7736_v29 = vpop.f32.mrb[3].mxu0  ;;  %v6699_v40 = vrot.slane %v6574_v58, 1  ;;  %v7063_v58 = vsel %vm2359_vm11, %v7061_v13, %v16701_v23 }
 0x51d   : > { %v6697_v63 = vsel %vm1768_vm10, %v6695_v52, %v6696_v44  ;;  %v15275_v35 = vadd.f32 %v6696_v44, %v14993_v45  ;;  %v16702_v45 = vrot.slane %v15001_v21, 2  ;;  %v7901_v44 = vrot.slane %v7734_v9, 4 }
 0x51e   : > { %v6769_v48 = vadd.f32 %v6697_v63, %v14962_v43  ;;  %v6700_v38 = vsel %vm1768_vm10, %v6698_v47, %v6699_v40  ;;  %v15281_v1 = vadd.f32 %v6699_v40, %v14999_v15  ;;  %v6578_v39 = vpop.f32.mrb[198].mxu1  ;;  %v7904_v15 = vrot.slane %v7736_v29, 4 }
 0x51f   : > { %v7740_v28 = vpop.f32.mrb[4].mxu0  ;;  %v6770_v52 = vadd.f32 %v6700_v38, %v14968_v57  ;;  %v6579_v37 = vpop.f32.mrb[199].mxu1  ;;  %v7066_v24 = vsel %vm2359_vm11, %v7064_v62, %v16702_v45  ;;  %vm11490_vm11 = vmmov 0  }
 0x520   : > { %16700 = vst [vmem:[#allocation29_spill] sm:$0xff] %v15281_v1  ;;  %v7902_v43 = vrot.slane %v7740_v28, 4  ;;  %v7742_v63 = vpop.f32.mrb[5].mxu0  ;;  %v15290_v47 = vadd.f32 %v7063_v58, %v6769_v48 }
 0x521   : > { %v7905_v40 = vrot.slane %v7742_v63, 4  ;;  %v15292_v39 = vadd.f32 %v7066_v24, %v6770_v52 }
 0x522   : > { %v15295_v1 = vsel %vm3541_vm13, %v7901_v44, %v7902_v43  ;;  %v6582_v13 = vpop.f32.mrb[200].mxu1 }
 0x523   : > { %v15298_v57 = vsel %vm3541_vm13, %v7904_v15, %v7905_v40  ;;  %v7746_v37 = vpop.f32.mrb[6].mxu0  ;;  %v6584_v38 = vpop.f32.mrb[201].mxu1  ;;  %v6701_v58 = vrot.slane %v6582_v13, 1 }
 0x524   : > { %16703 = vst [vmem:[#allocation33_spill] sm:$0xff] %v15298_v57  ;;  %v7907_v23 = vrot.slane %v7746_v37, 4  ;;  %v7748_v62 = vpop.f32.mrb[7].mxu0  ;;  %v6704_v44 = vrot.slane %v6584_v38, 1 }
 0x525   : > { %v7909_v9 = vrot.slane %v7748_v62, 4 }
 0x526   : > { %v15301_v28 = vsel %vm3541_vm13, %v7902_v43, %v7907_v23  ;;  %v6588_v48 = vpop.f32.mrb[202].mxu1 }
 0x527   : > { %16704 = vst [vmem:[#allocation34_spill] sm:$0xff] %v15301_v28  ;;  %v15304_v29 = vsel %vm3541_vm13, %v7905_v40, %v7909_v9  ;;  %v7752_v52 = vpop.f32.mrb[8].mxu0  ;;  %v6702_v45 = vrot.slane %v6588_v48, 1  ;;  %v6590_v24 = vpop.f32.mrb[203].mxu1  ;;  %v16706_v40 = vrot.slane %v15027_v6, 2 }
 0x528   : > { %16705 = vst [vmem:[#allocation35_spill] sm:$0xff] %v15304_v29  ;;  %v7754_v63 = vpop.f32.mrb[9].mxu0  ;;  %v6705_v15 = vrot.slane %v6590_v24, 1  ;;  %v7911_v24 = vrot.slane %v7752_v52, 4 }
 0x529   : > { %v6703_v57 = vsel %vm1768_vm10, %v6701_v58, %v6702_v45  ;;  %v6775_v37 = vadd.f32 %v6702_v45, %v15025_v7  ;;  %v16707_v58 = vrot.slane %v15033_v50, 2 }
 0x52a   : > { %v6773_v62 = vadd.f32 %v6703_v57, %v15010_v25  ;;  %v6706_v43 = vsel %vm1768_vm10, %v6704_v44, %v6705_v15  ;;  %v6776_v23 = vadd.f32 %v6705_v15, %v15031_v34  ;;  %v6594_v28 = vpop.f32.mrb[204].mxu1  ;;  %v7914_v34 = vrot.slane %v7754_v63, 4 }
 0x52b   : > { %v15313_v13 = vadd.f32 %v16706_v40, %v6775_v37  ;;  %v7758_v9 = vpop.f32.mrb[10].mxu0  ;;  %v6774_v38 = vadd.f32 %v6706_v43, %v15012_v60  ;;  %v6595_v48 = vpop.f32.mrb[205].mxu1 }
 0x52c   : > { %v7912_v29 = vrot.slane %v7758_v9, 4  ;;  %v15318_v7 = vadd.f32 %v16707_v58, %v6776_v23  ;;  %v7760_v25 = vpop.f32.mrb[11].mxu0  ;;  %v15321_v57 = vadd.f32 %v15039_v20, %v6773_v62 }
 0x52d   : > { %v7915_v28 = vrot.slane %v7760_v25, 4  ;;  %v15324_v6 = vadd.f32 %v15046_v31, %v6774_v38 }
 0x52e   : > { %v15327_v45 = vsel %vm3541_vm13, %v7911_v24, %v7912_v29  ;;  %v6598_v60 = vpop.f32.mrb[206].mxu1 }
 0x52f   : > { %v15330_v52 = vsel %vm3541_vm13, %v7914_v34, %v7915_v28  ;;  %v7764_v44 = vpop.f32.mrb[12].mxu0  ;;  %v6600_v50 = vpop.f32.mrb[207].mxu1  ;;  %v6707_v31 = vrot.slane %v6598_v60, 1 }
 0x530   : > { %v7917_v15 = vrot.slane %v7764_v44, 4  ;;  %v7766_v37 = vpop.f32.mrb[13].mxu0  ;;  %v6710_v38 = vrot.slane %v6600_v50, 1 }
 0x531   : > { %v7919_v43 = vrot.slane %v7766_v37, 4 }
 0x532   : > { %v15333_v20 = vsel %vm3541_vm13, %v7912_v29, %v7917_v15  ;;  %v6604_v63 = vpop.f32.mrb[208].mxu1 }
 0x533   : > { %v15336_v62 = vsel %vm3541_vm13, %v7915_v28, %v7919_v43  ;;  %v7770_v23 = vpop.f32.mrb[14].mxu0  ;;  %v6708_v40 = vrot.slane %v6604_v63, 1  ;;  %v6606_v9 = vpop.f32.mrb[209].mxu1  ;;  %v16709_v28 = vrot.slane %v15072_v54, 2  ;;  %v16711_v43 = vld [vmem:[#allocation31_spill] sm:$0xff] }
 0x534   : > { %16708 = vst [vmem:[#allocation36_spill] sm:$0xff] %v15336_v62  ;;  %v7772_v48 = vpop.f32.mrb[15].mxu0  ;;  %v6711_v24 = vrot.slane %v6606_v9, 1  ;;  %v7921_v9 = vrot.slane %v7770_v23, 4 }
 0x535   : > { %v6709_v58 = vsel %vm1768_vm10, %v6707_v31, %v6708_v40  ;;  %v6779_v25 = vadd.f32 %v6708_v40, %v15068_v56  ;;  %v16712_v31 = vrot.slane %v15078_v27, 2  ;;  %v16714_v40 = vld [vmem:[#allocation7_spill] sm:$0xff] }
 0x536   : > { %v6777_v34 = vadd.f32 %v6709_v58, %v15055_v30  ;;  %v6712_v29 = vsel %vm1768_vm10, %v6710_v38, %v6711_v24  ;;  %v6780_v44 = vadd.f32 %v6711_v24, %v15074_v32  ;;  %v6610_v15 = vpop.f32.mrb[210].mxu1  ;;  %v7924_v32 = vrot.slane %v7772_v48, 4  ;;  %v16716_v58 = vld [vmem:[#allocation32_spill] sm:$0xff] }
 0x537   : > { %v15345_v60 = vadd.f32 %v16709_v28, %v6779_v25  ;;  %v7776_v37 = vpop.f32.mrb[16].mxu0  ;;  %v6778_v50 = vadd.f32 %v6712_v29, %v16711_v43  ;;  %v6611_v63 = vpop.f32.mrb[211].mxu1 }
 0x538   : > { %v7922_v62 = vrot.slane %v7776_v37, 4  ;;  %v15350_v56 = vadd.f32 %v16712_v31, %v6780_v44  ;;  %v7778_v30 = vpop.f32.mrb[17].mxu0  ;;  %v15353_v38 = vadd.f32 %v16714_v40, %v6777_v34 }
 0x539   : > { %16710 = vst [vmem:[#allocation37_spill] sm:$0xff] %v15345_v60  ;;  %v7925_v24 = vrot.slane %v7778_v30, 4  ;;  %v15356_v54 = vadd.f32 %v16716_v58, %v6778_v50  ;;  %v16723_v60 = vld [vmem:[#allocation8_spill] sm:$0xff] }
 0x53a   : > { %16713 = vst [vmem:[#allocation31_spill] sm:$0xff] %v15350_v56  ;;  %16715 = vst [vmem:[#allocation7_spill] sm:$0xff] %v15353_v38  ;;  %v15359_v25 = vsel %vm3541_vm13, %v7921_v9, %v7922_v62  ;;  %v6614_v29 = vpop.f32.mrb[212].mxu1  ;;  %v16722_v56 = vld [vmem:[#allocation10_spill] sm:$0xff] }
 0x53b   : > { %16717 = vst [vmem:[#allocation32_spill] sm:$0xff] %v15356_v54  ;;  %16718 = vst [vmem:[#allocation38_spill] sm:$0xff] %v15359_v25  ;;  %v15362_v23 = vsel %vm3541_vm13, %v7924_v32, %v7925_v24  ;;  %v7782_v15 = vpop.f32.mrb[18].mxu0  ;;  %v6616_v27 = vpop.f32.mrb[213].mxu1  ;;  %v6713_v50 = vrot.slane %v6614_v29, 1 }
 0x53c   : > { %16719 = vst [vmem:[#allocation39_spill] sm:$0xff] %v15362_v23  ;;  %v7927_v44 = vrot.slane %v7782_v15, 4  ;;  %v7784_v28 = vpop.f32.mrb[19].mxu0  ;;  %v6716_v30 = vrot.slane %v6616_v27, 1 }
 0x53d   : > { %v7929_v37 = vrot.slane %v7784_v28, 4 }
 0x53e   : > { %v15365_v34 = vsel %vm3541_vm13, %v7922_v62, %v7927_v44  ;;  %v6620_v48 = vpop.f32.mrb[214].mxu1  ;;  %v16724_v44 = vld [vmem:[#allocation12_spill] sm:$0xff] }
 0x53f   : > { %16720 = vst [vmem:[#allocation40_spill] sm:$0xff] %v15365_v34  ;;  %v15368_v43 = vsel %vm3541_vm13, %v7925_v24, %v7929_v37  ;;  %v7788_v63 = vpop.f32.mrb[20].mxu0  ;;  %v6714_v9 = vrot.slane %v6620_v48, 1  ;;  %v6622_v31 = vpop.f32.mrb[215].mxu1  ;;  %v16725_v24 = vld [vmem:[#allocation11_spill] sm:$0xff] }
 0x540   : > { %16721 = vst [vmem:[#allocation41_spill] sm:$0xff] %v15368_v43  ;;  %v7790_v40 = vpop.f32.mrb[21].mxu0  ;;  %v6717_v32 = vrot.slane %v6622_v31, 1  ;;  %v16726_v37 = vrot.slane %v16725_v24, 2  ;;  %v16728_v43 = vld [vmem:[#allocation9_spill] sm:$0xff]  ;;  %v7931_v31 = vrot.slane %v7788_v63, 4 }
 0x541   : > { %v6715_v58 = vsel %vm1768_vm10, %v6713_v50, %v6714_v9  ;;  %v6783_v15 = vadd.f32 %v6714_v9, %v16722_v56  ;;  %v16729_v50 = vld [vmem:[#allocation13_spill] sm:$0xff]  ;;  %v16732_v9 = vld [vmem:[#allocation14_spill] sm:$0xff] }
 0x542   : > { %v6781_v28 = vadd.f32 %v6715_v58, %v16723_v60  ;;  %v6718_v62 = vsel %vm1768_vm10, %v6716_v30, %v6717_v32  ;;  %v6784_v34 = vadd.f32 %v6717_v32, %v16724_v44  ;;  %v6626_v23 = vpop.f32.mrb[216].mxu1  ;;  %v16730_v38 = vrot.slane %v16729_v50, 2  ;;  %v16734_v58 = vld [vmem:[#allocation15_spill] sm:$0xff] }
 0x543   : > { %v15377_v29 = vadd.f32 %v16726_v37, %v6783_v15  ;;  %v7794_v48 = vpop.f32.mrb[22].mxu0  ;;  %v6782_v27 = vadd.f32 %v6718_v62, %v16728_v43  ;;  %v6627_v25 = vpop.f32.mrb[217].mxu1  ;;  %v7934_v32 = vrot.slane %v7790_v40, 4 }
 0x544   : > { %v7932_v54 = vrot.slane %v7794_v48, 4  ;;  %v15382_v56 = vadd.f32 %v16730_v38, %v6784_v34  ;;  %v7796_v60 = vpop.f32.mrb[23].mxu0  ;;  %v15385_v30 = vadd.f32 %v16732_v9, %v6781_v28 }
 0x545   : > { %16727 = vst [vmem:[#allocation10_spill] sm:$0xff] %v15377_v29  ;;  %v7935_v23 = vrot.slane %v7796_v60, 4  ;;  %v15388_v44 = vadd.f32 %v16734_v58, %v6782_v27  ;;  %v16741_v29 = vld [vmem:[#allocation16_spill] sm:$0xff] }
 0x546   : > { %16731 = vst [vmem:[#allocation8_spill] sm:$0xff] %v15382_v56  ;;  %16733 = vst [vmem:[#allocation12_spill] sm:$0xff] %v15385_v30  ;;  %v15391_v15 = vsel %vm3541_vm13, %v7931_v31, %v7932_v54  ;;  %v6630_v43 = vpop.f32.mrb[218].mxu1  ;;  %v16740_v56 = vld [vmem:[#allocation18_spill] sm:$0xff] }
 0x547   : > { %16735 = vst [vmem:[#allocation11_spill] sm:$0xff] %v15388_v44  ;;  %16736 = vst [vmem:[#allocation9_spill] sm:$0xff] %v15391_v15  ;;  %v15394_v25 = vsel %vm3541_vm13, %v7934_v32, %v7935_v23  ;;  %v7800_v63 = vpop.f32.mrb[24].mxu0  ;;  %v6632_v62 = vpop.f32.mrb[219].mxu1  ;;  %v6719_v48 = vrot.slane %v6630_v43, 1 }
 0x548   : > { %16737 = vst [vmem:[#allocation13_spill] sm:$0xff] %v15394_v25  ;;  %v7937_v38 = vrot.slane %v7800_v63, 4  ;;  %v7802_v34 = vpop.f32.mrb[25].mxu0  ;;  %v6722_v60 = vrot.slane %v6632_v62, 1 }
 0x549   : > { %v7939_v24 = vrot.slane %v7802_v34, 4 }
 0x54a   : > { %v15397_v28 = vsel %vm3541_vm13, %v7932_v54, %v7937_v38  ;;  %v6636_v40 = vpop.f32.mrb[220].mxu1  ;;  %v16742_v38 = vld [vmem:[#allocation20_spill] sm:$0xff] }
 0x54b   : > { %16738 = vst [vmem:[#allocation14_spill] sm:$0xff] %v15397_v28  ;;  %v15400_v37 = vsel %vm3541_vm13, %v7935_v23, %v7939_v24  ;;  %v7806_v27 = vpop.f32.mrb[26].mxu0  ;;  %v6720_v31 = vrot.slane %v6636_v40, 1  ;;  %v6638_v50 = vpop.f32.mrb[221].mxu1  ;;  %v16743_v23 = vld [vmem:[#allocation19_spill] sm:$0xff] }
 0x54c   : > { %16739 = vst [vmem:[#allocation15_spill] sm:$0xff] %v15400_v37  ;;  %v7808_v9 = vpop.f32.mrb[27].mxu0  ;;  %v6723_v32 = vrot.slane %v6638_v50, 1  ;;  %v16744_v24 = vrot.slane %v16743_v23, 2  ;;  %v16745_v37 = vld [vmem:[#allocation17_spill] sm:$0xff]  ;;  %v7941_v50 = vrot.slane %v7806_v27, 4 }
 0x54d   : > { %v6721_v58 = vsel %vm1768_vm10, %v6719_v48, %v6720_v31  ;;  %v6787_v63 = vadd.f32 %v6720_v31, %v16740_v56  ;;  %v16746_v48 = vld [vmem:[#allocation21_spill] sm:$0xff]  ;;  %v16748_v31 = vld [vmem:[#allocation22_spill] sm:$0xff] }
 0x54e   : > { %v6785_v34 = vadd.f32 %v6721_v58, %v16741_v29  ;;  %v6724_v54 = vsel %vm1768_vm10, %v6722_v60, %v6723_v32  ;;  %v6788_v28 = vadd.f32 %v6723_v32, %v16742_v38  ;;  %v6642_v25 = vpop.f32.mrb[222].mxu1  ;;  %v16747_v30 = vrot.slane %v16746_v48, 2 }
 0x54f   : > { %v15409_v43 = vadd.f32 %v16744_v24, %v6787_v63  ;;  %v7812_v40 = vpop.f32.mrb[28].mxu0  ;;  %v6786_v62 = vadd.f32 %v6724_v54, %v16745_v37  ;;  %v6643_v15 = vpop.f32.mrb[223].mxu1  ;;  %v7944_v32 = vrot.slane %v7808_v9, 4  ;;  %vm9451_vm10 = vcmask 261120  }
 0x550   : > { %v7942_v44 = vrot.slane %v7812_v40, 4  ;;  %v15414_v56 = vadd.f32 %v16747_v30, %v6788_v28  ;;  %v7814_v29 = vpop.f32.mrb[29].mxu0  ;;  %v15417_v60 = vadd.f32 %v16748_v31, %v6785_v34 }
 0x551   : > { %v7945_v25 = vrot.slane %v7814_v29, 4  ;;  %v15420_v58 = vadd.f32 %v15160_v49, %v6786_v62 }
 0x552   : > { %v15423_v63 = vsel %vm3541_vm13, %v7941_v50, %v7942_v44  ;;  %v7250_v37 = vpop.f32.mrb[224].mxu1 }
 0x553   : > { %v15426_v15 = vsel %vm3541_vm13, %v7944_v32, %v7945_v25  ;;  %v7818_v27 = vpop.f32.mrb[30].mxu0  ;;  %v7252_v54 = vpop.f32.mrb[225].mxu1  ;;  %v7441_v49 = vrot.slane %v7250_v37, 3 }
 0x554   : > { %v7947_v30 = vrot.slane %v7818_v27, 4  ;;  %v7820_v28 = vpop.f32.mrb[31].mxu0  ;;  %v7444_v62 = vrot.slane %v7252_v54, 3  ;;  %v16750_v54 = vrot.slane %v14819_v11, 2 }
 0x555   : > { %v7949_v38 = vrot.slane %v7820_v28, 4 }
 0x556   : > { %v15429_v34 = vsel %vm3541_vm13, %v7942_v44, %v7947_v30  ;;  %v7256_v9 = vpop.f32.mrb[226].mxu1 }
 0x557   : > { %v15432_v23 = vsel %vm3541_vm13, %v7945_v25, %v7949_v38  ;;  %v7442_v24 = vrot.slane %v7256_v9, 3  ;;  %v7258_v40 = vpop.f32.mrb[227].mxu1  ;;  %v16749_v25 = vrot.slane %v14812_v55, 2  ;;  %v7126_v9 = vadd.f32 %v16750_v54, %v15173_v4 }
 0x558   : > { %v7445_v50 = vrot.slane %v7258_v40, 3 }
 0x559   : > { %v7443_v48 = vsel %vm2950_vm12, %v7441_v49, %v7442_v24  ;;  %v7125_v28 = vadd.f32 %v16749_v25, %v15167_v14  ;;  %v16751_v49 = vld [vmem:[#allocation23_spill] sm:$0xff] }
 0x55a   : > { %v7553_v29 = vadd.f32 %v7443_v48, %v15182_v10  ;;  %v7446_v31 = vsel %vm2950_vm12, %v7444_v62, %v7445_v50  ;;  %v7262_v32 = vpop.f32.mrb[228].mxu1 }
 0x55b   : > { %v7554_v27 = vadd.f32 %v7446_v31, %v15184_v16  ;;  %v7447_v44 = vrot.slane %v7262_v32, 3  ;;  %v7264_v30 = vpop.f32.mrb[229].mxu1 }
 0x55c   : > { %v7449_v37 = vrot.slane %v7264_v30, 3  ;;  %v15442_v38 = vadd.f32 %v15187_v3, %v7553_v29 }
 0x55d   : > { %v7448_v10 = vsel %vm2950_vm12, %v7442_v24, %v7447_v44  ;;  %v7984_v40 = vadd.f32 %v16751_v49, %v7554_v27  ;;  %v16753_v49 = vld [vmem:[#allocation24_spill] sm:$0xff] }
 0x55e   : > { %v7555_v62 = vadd.f32 %v7448_v10, %v7125_v28  ;;  %v7450_v16 = vsel %vm2950_vm12, %v7445_v50, %v7449_v37  ;;  %8047 = vrot.lane.b32.xlu0 %v15442_v38, %s11480_s22  ;;  %v7268_v55 = vpop.f32.mrb[230].mxu1 }
 0x55f   : > { %v7556_v14 = vadd.f32 %v7450_v16, %v7126_v9  ;;  %8049 = vrot.lane.b32.xlu1 %v7984_v40, %s11480_s22  ;;  %v7270_v3 = vpop.f32.mrb[231].mxu1  ;;  %v7451_v24 = vrot.slane %v7268_v55, 3  ;;  %v16754_v40 = vrot.slane %v14876_v0, 2  ;;  %v16755_v16 = vld [vmem:[#allocation26_spill] sm:$0xff] }
 0x560   : > { %v15454_v48 = vadd.f32 %v15193_v53, %v7555_v62  ;;  %v7454_v32 = vrot.slane %v7270_v3, 3 }
 0x561   : > { %v15457_v11 = vadd.f32 %v15197_v18, %v7556_v14  ;;  %v16752_v18 = vrot.slane %v14872_v42, 2  ;;  %v7130_v62 = vadd.f32 %v16754_v40, %v16753_v49  ;;  %v16758_v49 = vrot.slane %v14944_v36, 2 }
 0x562   : > { %v7274_v4 = vpop.f32.mrb[232].mxu1 }
 0x563   : > { %v7452_v29 = vrot.slane %v7274_v4, 3  ;;  %v7276_v31 = vpop.f32.mrb[233].mxu1  ;;  %v7129_v54 = vadd.f32 %v16752_v18, %v15203_v33 }
 0x564   : > { %v7455_v50 = vrot.slane %v7276_v31, 3 }
 0x565   : > { %v7453_v27 = vsel %vm2950_vm12, %v7451_v24, %v7452_v29 }
 0x566   : > { %v7557_v44 = vadd.f32 %v7453_v27, %v15218_v17  ;;  %v7456_v30 = vsel %vm2950_vm12, %v7454_v32, %v7455_v50  ;;  %v7280_v25 = vpop.f32.mrb[234].mxu1 }
 0x567   : > { %v7558_v28 = vadd.f32 %v7456_v30, %v15220_v2  ;;  %v7457_v53 = vrot.slane %v7280_v25, 3  ;;  %v7282_v37 = vpop.f32.mrb[235].mxu1 }
 0x568   : > { %v7459_v9 = vrot.slane %v7282_v37, 3  ;;  %v15467_v10 = vadd.f32 %v15223_v46, %v7557_v44 }
 0x569   : > { %v7458_v17 = vsel %vm2950_vm12, %v7452_v29, %v7457_v53  ;;  %v7988_v55 = vadd.f32 %v16755_v16, %v7558_v28 }
 0x56a   : > { %v7559_v14 = vadd.f32 %v7458_v17, %v7129_v54  ;;  %v7460_v2 = vsel %vm2950_vm12, %v7455_v50, %v7459_v9  ;;  %8055 = vrot.lane.b32.xlu0 %v15467_v10, %s11480_s22  ;;  %v7286_v42 = vpop.f32.mrb[236].mxu1  ;;  %v16757_v9 = vld [vmem:[#allocation28_spill] sm:$0xff] }
 0x56b   : > { %v7560_v33 = vadd.f32 %v7460_v2, %v7130_v62  ;;  %8057 = vrot.lane.b32.xlu1 %v7988_v55, %s11480_s22  ;;  %v7288_v46 = vpop.f32.mrb[237].mxu1  ;;  %v7461_v24 = vrot.slane %v7286_v42, 3  ;;  %v7134_v40 = vadd.f32 %v16758_v49, %v16757_v9  ;;  %v16759_v62 = vld [vmem:[#allocation30_spill] sm:$0xff] }
 0x56c   : > { %v15479_v3 = vadd.f32 %v15229_v22, %v7559_v14  ;;  %v7464_v32 = vrot.slane %v7288_v46, 3  ;;  %v16764_v9 = vld [vmem:[#allocation34_spill] sm:$0xff] }
 0x56d   : > { %v15482_v0 = vadd.f32 %v15233_v61, %v7560_v33  ;;  %v16756_v61 = vrot.slane %v14938_v51, 2 }
 0x56e   : > { %v7292_v4 = vpop.f32.mrb[238].mxu1 }
 0x56f   : > { %v7462_v29 = vrot.slane %v7292_v4, 3  ;;  %v7294_v31 = vpop.f32.mrb[239].mxu1  ;;  %v7133_v37 = vadd.f32 %v16756_v61, %v15239_v19  ;;  %v16763_v61 = vld [vmem:[#allocation33_spill] sm:$0xff] }
 0x570   : > { %v7465_v50 = vrot.slane %v7294_v31, 3 }
 0x571   : > { %v7463_v27 = vsel %vm2950_vm12, %v7461_v24, %v7462_v29 }
 0x572   : > { %v7561_v44 = vadd.f32 %v7463_v27, %v15254_v5  ;;  %v7466_v30 = vsel %vm2950_vm12, %v7464_v32, %v7465_v50  ;;  %v7298_v25 = vpop.f32.mrb[240].mxu1 }
 0x573   : > { %v7562_v28 = vadd.f32 %v7466_v30, %v15256_v12  ;;  %v7467_v22 = vrot.slane %v7298_v25, 3  ;;  %v7300_v53 = vpop.f32.mrb[241].mxu1 }
 0x574   : > { %v7469_v18 = vrot.slane %v7300_v53, 3  ;;  %v15492_v54 = vadd.f32 %v15259_v59, %v7561_v44 }
 0x575   : > { %v7468_v5 = vsel %vm2950_vm12, %v7462_v29, %v7467_v22  ;;  %v7992_v17 = vadd.f32 %v16759_v62, %v7562_v28  ;;  %v16761_v28 = vld [vmem:[#allocation29_spill] sm:$0xff]  ;;  %v16762_v22 = vrot.slane %v15001_v21, 2  ;;  %v16765_v21 = vld [vmem:[#allocation35_spill] sm:$0xff] }
 0x576   : > { %v7563_v16 = vadd.f32 %v7468_v5, %v7133_v37  ;;  %v7470_v12 = vsel %vm2950_vm12, %v7465_v50, %v7469_v18  ;;  %8063 = vrot.lane.b32.xlu0 %v15492_v54, %s11480_s22  ;;  %v7304_v51 = vpop.f32.mrb[242].mxu1 }
 0x577   : > { %v7564_v19 = vadd.f32 %v7470_v12, %v7134_v40  ;;  %8065 = vrot.lane.b32.xlu1 %v7992_v17, %s11480_s22  ;;  %v7306_v59 = vpop.f32.mrb[243].mxu1  ;;  %v7471_v2 = vrot.slane %v7304_v51, 3  ;;  %v7138_v53 = vadd.f32 %v16762_v22, %v16761_v28 }
 0x578   : > { %v15504_v55 = vadd.f32 %v15265_v26, %v7563_v16  ;;  %v7474_v46 = vrot.slane %v7306_v59, 3 }
 0x579   : > { %v15507_v36 = vadd.f32 %v15269_v41, %v7564_v19  ;;  %v16760_v41 = vrot.slane %v14995_v8, 2 }
 0x57a   : > { %v7310_v14 = vpop.f32.mrb[244].mxu1 }
 0x57b   : > { %v7472_v42 = vrot.slane %v7310_v14, 3  ;;  %v7312_v33 = vpop.f32.mrb[245].mxu1  ;;  %v7137_v44 = vadd.f32 %v16760_v41, %v15275_v35 }
 0x57c   : > { %v7475_v4 = vrot.slane %v7312_v33, 3 }
 0x57d   : > { %v7473_v24 = vsel %vm2950_vm12, %v7471_v2, %v7472_v42 }
 0x57e   : > { %v7565_v29 = vadd.f32 %v7473_v24, %v15290_v47  ;;  %v7476_v31 = vsel %vm2950_vm12, %v7474_v46, %v7475_v4  ;;  %v7316_v32 = vpop.f32.mrb[246].mxu1 }
 0x57f   : > { %v7566_v50 = vadd.f32 %v7476_v31, %v15292_v39  ;;  %v7477_v26 = vrot.slane %v7316_v32, 3  ;;  %v7318_v27 = vpop.f32.mrb[247].mxu1 }
 0x580   : > { %v7479_v30 = vrot.slane %v7318_v27, 3  ;;  %v15517_v25 = vadd.f32 %v15295_v1, %v7565_v29  ;;  %v16766_v27 = vld [vmem:[#allocation36_spill] sm:$0xff] }
 0x581   : > { %v7478_v47 = vsel %vm2950_vm12, %v7472_v42, %v7477_v26  ;;  %v7996_v37 = vadd.f32 %v16763_v61, %v7566_v50 }
 0x582   : > { %v7567_v18 = vadd.f32 %v7478_v47, %v7137_v44  ;;  %v7480_v39 = vsel %vm2950_vm12, %v7475_v4, %v7479_v30  ;;  %8071 = vrot.lane.b32.xlu0 %v15517_v25, %s11480_s22  ;;  %v7322_v8 = vpop.f32.mrb[248].mxu1  ;;  %v16767_v47 = vld [vmem:[#allocation7_spill] sm:$0xff] }
 0x583   : > { %v7568_v35 = vadd.f32 %v7480_v39, %v7138_v53  ;;  %8073 = vrot.lane.b32.xlu1 %v7996_v37, %s11480_s22  ;;  %v7324_v1 = vpop.f32.mrb[249].mxu1  ;;  %v7481_v62 = vrot.slane %v7322_v8, 3 }
 0x584   : > { %v15529_v49 = vadd.f32 %v16764_v9, %v7567_v18  ;;  %v7484_v12 = vrot.slane %v7324_v1, 3  ;;  %v16768_v18 = vld [vmem:[#allocation32_spill] sm:$0xff]  ;;  %v16769_v1 = vld [vmem:[#allocation38_spill] sm:$0xff] }
 0x585   : > { %v15532_v40 = vadd.f32 %v16765_v21, %v7568_v35 }
 0x586   : > { %v7328_v5 = vpop.f32.mrb[250].mxu1 }
 0x587   : > { %v7482_v17 = vrot.slane %v7328_v5, 3  ;;  %v7330_v16 = vpop.f32.mrb[251].mxu1  ;;  %v16770_v5 = vld [vmem:[#allocation39_spill] sm:$0xff] }
 0x588   : > { %v7485_v51 = vrot.slane %v7330_v16, 3 }
 0x589   : > { %v7483_v19 = vsel %vm2950_vm12, %v7481_v62, %v7482_v17 }
 0x58a   : > { %v7569_v59 = vadd.f32 %v7483_v19, %v15321_v57  ;;  %v7486_v14 = vsel %vm2950_vm12, %v7484_v12, %v7485_v51  ;;  %v7334_v2 = vpop.f32.mrb[252].mxu1  ;;  %v16772_v19 = vld [vmem:[#allocation31_spill] sm:$0xff] }
 0x58b   : > { %v7570_v42 = vadd.f32 %v7486_v14, %v15324_v6  ;;  %v7487_v33 = vrot.slane %v7334_v2, 3  ;;  %v7336_v46 = vpop.f32.mrb[253].mxu1  ;;  %v16773_v2 = vld [vmem:[#allocation40_spill] sm:$0xff] }
 0x58c   : > { %v7489_v4 = vrot.slane %v7336_v46, 3  ;;  %v15539_v24 = vadd.f32 %v15327_v45, %v7569_v59 }
 0x58d   : > { %v7488_v29 = vsel %vm2950_vm12, %v7482_v17, %v7487_v33  ;;  %v8000_v31 = vadd.f32 %v15330_v52, %v7570_v42  ;;  %v16771_v17 = vld [vmem:[#allocation37_spill] sm:$0xff] }
 0x58e   : > { %v7571_v32 = vadd.f32 %v7488_v29, %v15313_v13  ;;  %v7490_v50 = vsel %vm2950_vm12, %v7485_v51, %v7489_v4  ;;  %8079 = vrot.lane.b32.xlu0 %v15539_v24, %s11480_s22  ;;  %v7340_v57 = vpop.f32.mrb[254].mxu1  ;;  %v16774_v33 = vld [vmem:[#allocation41_spill] sm:$0xff] }
 0x58f   : > { %v7572_v6 = vadd.f32 %v7490_v50, %v15318_v7  ;;  %8081 = vrot.lane.b32.xlu1 %v8000_v31, %s11480_s22  ;;  %v7342_v26 = vpop.f32.mrb[255].mxu1  ;;  %v7491_v44 = vrot.slane %v7340_v57, 3 }
 0x590   : > { %v15550_v45 = vadd.f32 %v15333_v20, %v7571_v32  ;;  %v7494_v28 = vrot.slane %v7342_v26, 3  ;;  %v16775_v26 = vld [vmem:[#allocation12_spill] sm:$0xff] }
 0x591   : > { %v15553_v41 = vadd.f32 %v16766_v27, %v7572_v6 }
 0x592   : > { %v7346_v52 = vpop.f32.mrb[0].mxu1 }
 0x593   : > { %v7492_v13 = vrot.slane %v7346_v52, 3  ;;  %v7348_v30 = vpop.f32.mrb[1].mxu1 }
 0x594   : > { %v7495_v22 = vrot.slane %v7348_v30, 3 }
 0x595   : > { %v7493_v53 = vsel %vm2950_vm12, %v7491_v44, %v7492_v13 }
 0x596   : > { %v7573_v61 = vadd.f32 %v7493_v53, %v16767_v47  ;;  %v7496_v7 = vsel %vm2950_vm12, %v7494_v28, %v7495_v22  ;;  %v7352_v37 = vpop.f32.mrb[2].mxu1  ;;  %v16777_v47 = vld [vmem:[#allocation9_spill] sm:$0xff] }
 0x597   : > { %v7574_v39 = vadd.f32 %v7496_v7, %v16768_v18  ;;  %v7497_v20 = vrot.slane %v7352_v37, 3  ;;  %v7354_v8 = vpop.f32.mrb[3].mxu1  ;;  %v16778_v37 = vld [vmem:[#allocation13_spill] sm:$0xff] }
 0x598   : > { %v7499_v35 = vrot.slane %v7354_v8, 3  ;;  %v15560_v9 = vadd.f32 %v16769_v1, %v7573_v61  ;;  %v16780_v1 = vld [vmem:[#allocation8_spill] sm:$0xff] }
 0x599   : > { %v7498_v21 = vsel %vm2950_vm12, %v7492_v13, %v7497_v20  ;;  %v8004_v62 = vadd.f32 %v16770_v5, %v7574_v39  ;;  %v16776_v13 = vld [vmem:[#allocation11_spill] sm:$0xff]  ;;  %v16779_v39 = vld [vmem:[#allocation10_spill] sm:$0xff] }
 0x59a   : > { %v7575_v16 = vadd.f32 %v7498_v21, %v16771_v17  ;;  %v7500_v12 = vsel %vm2950_vm12, %v7495_v22, %v7499_v35  ;;  %8087 = vrot.lane.b32.xlu0 %v15560_v9, %s11480_s22  ;;  %v7358_v51 = vpop.f32.mrb[4].mxu1 }
 0x59b   : > { %v7576_v59 = vadd.f32 %v7500_v12, %v16772_v19  ;;  %8089 = vrot.lane.b32.xlu1 %v8004_v62, %s11480_s22  ;;  %v7360_v14 = vpop.f32.mrb[5].mxu1  ;;  %v7501_v29 = vrot.slane %v7358_v51, 3  ;;  %v16781_v62 = vld [vmem:[#allocation14_spill] sm:$0xff] }
 0x59c   : > { %v15571_v42 = vadd.f32 %v16773_v2, %v7575_v16  ;;  %v7504_v50 = vrot.slane %v7360_v14, 3  ;;  %v16782_v16 = vld [vmem:[#allocation15_spill] sm:$0xff] }
 0x59d   : > { %v8006_v46 = vadd.f32 %v16774_v33, %v7576_v59 }
 0x59e   : > { %v7364_v4 = vpop.f32.mrb[6].mxu1 }
 0x59f   : > { %v7502_v31 = vrot.slane %v7364_v4, 3  ;;  %v7366_v32 = vpop.f32.mrb[7].mxu1 }
 0x5a0   : > { %v7505_v57 = vrot.slane %v7366_v32, 3 }
 0x5a1   : > { %v7503_v6 = vsel %vm2950_vm12, %v7501_v29, %v7502_v31 }
 0x5a2   : > { %v7577_v27 = vadd.f32 %v7503_v6, %v16775_v26  ;;  %v7506_v52 = vsel %vm2950_vm12, %v7504_v50, %v7505_v57  ;;  %v7370_v44 = vpop.f32.mrb[8].mxu1 }
 0x5a3   : > { %v7578_v30 = vadd.f32 %v7506_v52, %v16776_v13  ;;  %v7507_v28 = vrot.slane %v7370_v44, 3  ;;  %v7372_v22 = vpop.f32.mrb[9].mxu1 }
 0x5a4   : > { %v7509_v53 = vrot.slane %v7372_v22, 3  ;;  %v15579_v61 = vadd.f32 %v16777_v47, %v7577_v27 }
 0x5a5   : > { %v7508_v7 = vsel %vm2950_vm12, %v7502_v31, %v7507_v28  ;;  %v8008_v18 = vadd.f32 %v16778_v37, %v7578_v30 }
 0x5a6   : > { %v7579_v20 = vadd.f32 %v7508_v7, %v16779_v39  ;;  %v7510_v8 = vsel %vm2950_vm12, %v7505_v57, %v7509_v53  ;;  %8095 = vrot.lane.b32.xlu0 %v15579_v61, %s11480_s22  ;;  %v7376_v35 = vpop.f32.mrb[10].mxu1 }
 0x5a7   : > { %v7580_v21 = vadd.f32 %v7510_v8, %v16780_v1  ;;  %8097 = vrot.lane.b32.xlu1 %v8008_v18, %s11480_s22  ;;  %v7378_v5 = vpop.f32.mrb[11].mxu1  ;;  %v7511_v19 = vrot.slane %v7376_v35, 3 }
 0x5a8   : > { %v15590_v17 = vadd.f32 %v16781_v62, %v7579_v20  ;;  %v7514_v2 = vrot.slane %v7378_v5, 3 }
 0x5a9   : > { %v8010_v12 = vadd.f32 %v16782_v16, %v7580_v21 }
 0x5aa   : > { %v7382_v51 = vpop.f32.mrb[12].mxu1 }
 0x5ab   : > { %v7512_v59 = vrot.slane %v7382_v51, 3  ;;  %v7384_v14 = vpop.f32.mrb[13].mxu1 }
 0x5ac   : > { %v7515_v33 = vrot.slane %v7384_v14, 3  ;;  %v9453_v14 = vld [vmem:[%s16533_s5] sm:$0xff] }
 0x5ad   : > { %v7513_v4 = vsel %vm2950_vm12, %v7511_v19, %v7512_v59  ;;  %v9469_v19 = vld [vmem:[%s16533_s5 + $0x80] sm:$0xff] }
 0x5ae   : > { %v7581_v29 = vadd.f32 %v7513_v4, %v15417_v60  ;;  %v7516_v31 = vsel %vm2950_vm12, %v7514_v2, %v7515_v33  ;;  %v7388_v32 = vpop.f32.mrb[14].mxu1 }
 0x5af   : > { %v7582_v50 = vadd.f32 %v7516_v31, %v15420_v58  ;;  %v7517_v57 = vrot.slane %v7388_v32, 3  ;;  %v7390_v6 = vpop.f32.mrb[15].mxu1  ;;  %v9454_v32 = vld [vmem:[%s16533_s5 + $0x8] sm:$0xff] }
 0x5b0   : > { %v7519_v26 = vrot.slane %v7390_v6, 3  ;;  %v15598_v27 = vadd.f32 %v15423_v63, %v7581_v29 }
 0x5b1   : > { %v7518_v52 = vsel %vm2950_vm12, %v7512_v59, %v7517_v57  ;;  %v8012_v44 = vadd.f32 %v15426_v15, %v7582_v50  ;;  %v9470_v59 = vld [vmem:[%s16533_s5 + $0x88] sm:$0xff] }
 0x5b2   : > { %v7583_v13 = vadd.f32 %v7518_v52, %v15409_v43  ;;  %v7520_v30 = vsel %vm2950_vm12, %v7515_v33, %v7519_v26  ;;  %8103 = vrot.lane.b32.xlu0 %v15598_v27, %s11480_s22  ;;  %v11203_v6 = vpack.c.bf16 %v9470_v59, %v9469_v19  ;;  %v11205_v26 = vpack.c.bf16 %v9454_v32, %v9453_v14 }
 0x5b3   : > { %v7584_v60 = vadd.f32 %v7520_v30, %v15414_v56  ;;  %8105 = vrot.lane.b32.xlu1 %v8012_v44, %s11480_s22  ;;  %vm9449_vm12 = vcmask 392192  }
 0x5b4   : > { %v15609_v58 = vadd.f32 %v15429_v34, %v7583_v13  ;;  %11204 = vmatprep.subr.bf16.mxu1 %v11203_v6 }
 0x5b5   : > { %v8014_v63 = vadd.f32 %v15432_v23, %v7584_v60  ;;  %11206 = vmatpush3.bf16.msra.mxu1 %v11205_v26 }
 0x5b6   : > { %8051 = vrot.lane.b32.xlu0 %v15454_v48, %s11480_s22 }
 0x5b7   : > { %8053 = vrot.lane.b32.xlu1 %v15457_v11, %s11480_s22  ;;  %v16783_v11 = vld [vmem:[#allocation27_spill] sm:$0xff] }
 0x5ba   : > { %8059 = vrot.lane.b32.xlu0 %v15479_v3, %s11480_s22 }
 0x5bb   : > { %8061 = vrot.lane.b32.xlu1 %v15482_v0, %s11480_s22 }
 0x5be   : > { %8067 = vrot.lane.b32.xlu0 %v15504_v55, %s11480_s22 }
 0x5bf   : > { %8069 = vrot.lane.b32.xlu1 %v15507_v36, %s11480_s22 }
 0x5c2   : > { %8075 = vrot.lane.b32.xlu0 %v15529_v49, %s11480_s22 }
 0x5c3   : > { %8077 = vrot.lane.b32.xlu1 %v15532_v40, %s11480_s22  ;;  %v15648_v40 = vld [vmem:[%s16532_s4] ss:$0 sm:$0xff] }
 0x5c6   : > { %8083 = vrot.lane.b32.xlu0 %v15550_v45, %s11480_s22 }
 0x5c7   : > { %8085 = vrot.lane.b32.xlu1 %v15553_v41, %s11480_s22 }
 0x5ca   : > { %8091 = vrot.lane.b32.xlu0 %v15571_v42, %s11480_s22 }
 0x5cb   : > { %8093 = vrot.lane.b32.xlu1 %v8006_v46, %s11480_s22 }
 0x5ce   : > { %8099 = vrot.lane.b32.xlu0 %v15590_v17, %s11480_s22 }
 0x5cf   : > { %8101 = vrot.lane.b32.xlu1 %v8010_v12, %s11480_s22 }
 0x5d0   : > { %v8048_v43 = vpop.permute.xlu0 %8047 }
 0x5d1   : > { %v8050_v56 = vpop.permute.xlu1 %8049 }
 0x5d2   : > { %v8111_v15 = vsel %vm3974_vm14, %v8048_v43, %v8050_v56  ;;  %8107 = vrot.lane.b32.xlu0 %v15609_v58, %s11480_s22 }
 0x5d3   : > { %v8143_v34 = vmax.f32 %v15442_v38, %v8111_v15  ;;  %8109 = vrot.lane.b32.xlu1 %v8014_v63, %s11480_s22  ;;  %v15653_v38 = vrot.slane %v15648_v40, %v16783_v11  ;;  %s11483_s22 = smov 112  }
 0x5d5   : > { %v8175_v23 = vcombine.high %v8143_v34, %v8143_v34  ;;  %v8182_v0 = vrot.slane %v8143_v34, %v16783_v11  ;;  %v15659_v39 = vcombine.high %v15653_v38, %v15653_v38  ;;  %v15662_v35 = vrot.slane %v15653_v38, 1 }
 0x5d7   : > { %v8189_v36 = vrot.slane %v8175_v23, %v16783_v11  ;;  %v8190_v46 = vcombine.high %v8182_v0, %v8182_v0  ;;  %v10720_v1 = vrot.slane %v8182_v0, 9 }
 0x5d9   : > { %v8191_v53 = vcombine.high %v8189_v36, %v8189_v36  ;;  %v10721_v7 = vrot.slane %v8190_v46, 9  ;;  %v10722_v2 = vrot.slane %v8189_v36, 9  ;;  %v8663_v33 = vmax.f32 %v8182_v0, %v10720_v1 }
 0x5db   : > { %v10723_v20 = vrot.slane %v8191_v53, 9  ;;  %v8664_v21 = vmax.f32 %v8190_v46, %v10721_v7  ;;  %v8665_v30 = vmax.f32 %v8189_v36, %v10722_v2  ;;  %v8752_v56 = vadd.f32 %v15653_v38, %v8663_v33 }
 0x5dc   : > { %v8056_v41 = vpop.permute.xlu0 %8055 }
 0x5dd   : > { %v8058_v28 = vpop.permute.xlu1 %8057  ;;  %v8666_v16 = vmax.f32 %v8191_v53, %v10723_v20  ;;  %v8753_v4 = vadd.f32 %v15662_v35, %v8664_v21  ;;  %v8754_v53 = vadd.f32 %v15659_v39, %v8665_v30  ;;  %v8808_v7 = vmax.f32 %v8752_v56, 0.0  ;;  %v9472_v56 = vld [vmem:[%s16533_s5 + $0x98] sm:$0xff] }
 0x5de   : > { %v8113_v22 = vsel %vm3974_vm14, %v8056_v41, %v8058_v28 }
 0x5df   : > { %v8145_v47 = vmax.f32 %v15467_v10, %v8113_v22  ;;  %v15666_v10 = vrot.slane %v15659_v39, 1  ;;  %v8809_v60 = vmax.f32 %v8753_v4, 0.0  ;;  %v8810_v59 = vmax.f32 %v8754_v53, 0.0 }
 0x5e1   : > { %v8215_v37 = vrot.slane %v8145_v47, %v16783_v11  ;;  %v8208_v18 = vcombine.high %v8145_v47, %v8145_v47  ;;  %v8755_v52 = vadd.f32 %v15666_v10, %v8666_v16  ;;  %v15689_v36 = vrot.slane %v8809_v60, 7 }
 0x5e3   : > { %v8223_v8 = vcombine.high %v8215_v37, %v8215_v37  ;;  %v8222_v62 = vrot.slane %v8208_v18, %v16783_v11  ;;  %v10727_v29 = vrot.slane %v8215_v37, 9  ;;  %v8811_v23 = vmax.f32 %v8755_v52, 0.0 }
 0x5e4   : > { %v8923_v14 = vsel %vm5970_vm15, %v15689_v36, %v8808_v7 }
 0x5e5   : > { %v10728_v5 = vrot.slane %v8223_v8, 9  ;;  %v8224_v50 = vcombine.high %v8222_v62, %v8222_v62  ;;  %v8670_v34 = vmax.f32 %v8215_v37, %v10727_v29  ;;  %v10729_v0 = vrot.slane %v8222_v62, 9 }
 0x5e6   : > { %v15692_v1 = vrot.slane %v8811_v23, 7  ;;  %v15711_v6 = vsel %vm5974_vm2, %v15689_v36, %v8923_v14 }
 0x5e7   : > { %v8671_v12 = vmax.f32 %v8223_v8, %v10728_v5  ;;  %v10730_v15 = vrot.slane %v8224_v50, 9  ;;  %v8759_v20 = vadd.f32 %v15653_v38, %v8670_v34  ;;  %v8672_v37 = vmax.f32 %v8222_v62, %v10729_v0 }
 0x5e8   : > { %v8064_v51 = vpop.permute.xlu0 %8063  ;;  %v8930_v32 = vsel %vm5970_vm15, %v15692_v1, %v8810_v59 }
 0x5e9   : > { %v8066_v31 = vpop.permute.xlu1 %8065  ;;  %v8760_v13 = vadd.f32 %v15662_v35, %v8671_v12  ;;  %v8673_v18 = vmax.f32 %v8224_v50, %v10730_v15  ;;  %v8815_v29 = vmax.f32 %v8759_v20, 0.0  ;;  %v15706_v50 = vadd.f32 %v15659_v39, %v8672_v37  ;;  %v9455_v15 = vld [vmem:[%s16533_s5 + $0x10] sm:$0xff]  ;;  %v9457_v20 = vld [vmem:[%s16533_s5 + $0x20] sm:$0xff] }
 0x5ea   : > { %v8115_v57 = vsel %vm3974_vm14, %v8064_v51, %v8066_v31  ;;  %v8725_v51 = vcombine.high %v15648_v40, %v15648_v40  ;;  %v15733_v34 = vsel %vm5974_vm2, %v15692_v1, %v8930_v32 }
 0x5eb   : > { %v8147_v44 = vmax.f32 %v15492_v54, %v8115_v57  ;;  %v8816_v28 = vmax.f32 %v8760_v13, 0.0  ;;  %v11482_v54 = vmov 1934713408   ;;  %v8762_v4 = vadd.f32 %v15666_v10, %v8673_v18 }
 0x5ec   : > { %v9138_v22 = vunpack.c.l.s4 %v11482_v54  ;;  %v15716_v52 = vrot.slane %v8725_v51, %v16783_v11  ;;  %v9473_v54 = vld [vmem:[%s16533_s5 + $0xa0] sm:$0xff]  ;;  %v8817_v53 = vmax.f32 %v15706_v50, 0.0 }
 0x5ed   : > { %v8241_v63 = vcombine.high %v8147_v44, %v8147_v44  ;;  %v8248_v43 = vrot.slane %v8147_v44, %v16783_v11  ;;  %v15694_v16 = vrot.slane %v8816_v28, 7  ;;  %v16784_v44 = vld [vmem:[#allocation25_spill] sm:$0xff]  ;;  %v8818_v23 = vmax.f32 %v8762_v4, 0.0  ;;  %v9456_v28 = vld [vmem:[%s16533_s5 + $0x18] sm:$0xff] }
 0x5ee   : > { %v9139_v19 = vunpack.c.0.s8 %v9138_v22  ;;  %v9474_v22 = vld [vmem:[%s16533_s5 + $0xa8] sm:$0xff]  ;;  %v9501_v51 = vld [vmem:[%s16533_s5 + $0x180] sm:$0xff] }
 0x5ef   : > { %v8255_v41 = vrot.slane %v8241_v63, %v16783_v11  ;;  %v8256_v46 = vcombine.high %v8248_v43, %v8248_v43  ;;  %v10734_v21 = vrot.slane %v8248_v43, 9  ;;  %v8946_v26 = vsel %vm5970_vm15, %v15694_v16, %v8815_v29  ;;  %v9485_v4 = vld [vmem:[%s16533_s5 + $0x100] sm:$0xff]  ;;  %v9486_v29 = vld [vmem:[%s16533_s5 + $0x108] sm:$0xff] }
 0x5f0   : > { %v15719_v13 = vsub.s32 %v9139_v19, %v16784_v44  ;;  %v8947_v37 = vsel %vm5974_vm2, %v15694_v16, %v8946_v26  ;;  %v9459_v26 = vld [vmem:[%s16533_s5 + $0x30] sm:$0xff] }
 0x5f1   : > { %v10735_v47 = vrot.slane %v8256_v46, 9  ;;  %v8257_v8 = vcombine.high %v8255_v41, %v8255_v41  ;;  %v8677_v40 = vmax.f32 %v8248_v43, %v10734_v21  ;;  %v10736_v30 = vrot.slane %v8255_v41, 9 }
 0x5f3   : > { %v8678_v5 = vmax.f32 %v8256_v46, %v10735_v47  ;;  %v10737_v62 = vrot.slane %v8257_v8, 9  ;;  %v8766_v47 = vadd.f32 %v15653_v38, %v8677_v40  ;;  %v8679_v19 = vmax.f32 %v8255_v41, %v10736_v30  ;;  %v9475_v40 = vld [vmem:[%s16533_s5 + $0xb0] sm:$0xff] }
 0x5f4   : > { %v8072_v12 = vpop.permute.xlu0 %8071 }
 0x5f5   : > { %v8767_v2 = vadd.f32 %v15662_v35, %v8678_v5  ;;  %v8074_v33 = vpop.permute.xlu1 %8073  ;;  %v8680_v0 = vmax.f32 %v8257_v8, %v10737_v62  ;;  %v9458_v8 = vld [vmem:[%s16533_s5 + $0x28] sm:$0xff]  ;;  %v11209_v5 = vpack.c.bf16 %v9456_v28, %v9455_v15  ;;  %v15769_v62 = vrot.slane %v8818_v23, 7 }
 0x5f6   : > { %v8117_v31 = vsel %vm3974_vm14, %v8072_v12, %v8074_v33  ;;  %v11211_v12 = vpack.c.bf16 %v9474_v22, %v9473_v54  ;;  %v9502_v33 = vld [vmem:[%s16533_s5 + $0x188] sm:$0xff]  ;;  %v11213_v32 = vpack.c.bf16 %v9458_v8, %v9457_v20  ;;  %v8822_v44 = vmax.f32 %v8766_v47, 0.0  ;;  %v9487_v54 = vld [vmem:[%s16533_s5 + $0x110] sm:$0xff]  ;;  %v9488_v22 = vld [vmem:[%s16533_s5 + $0x118] sm:$0xff] }
 0x5f7   : > { %v8149_v57 = vmax.f32 %v15517_v25, %v8117_v31  ;;  %v8823_v60 = vmax.f32 %v8767_v2, 0.0  ;;  %v9471_v25 = vld [vmem:[%s16533_s5 + $0x90] sm:$0xff]  ;;  %v15772_v41 = vadd.f32 %v15666_v10, %v8680_v0  ;;  %v15795_v0 = vsel %vm5978_vm4, %v15694_v16, %v8947_v37  ;;  %v9477_v47 = vld [vmem:[%s16533_s5 + $0xc0] sm:$0xff] }
 0x5f8   : > { %v11207_v46 = vpack.c.bf16 %v9472_v56, %v9471_v25  ;;  %v9503_v25 = vld [vmem:[%s16533_s5 + $0x190] sm:$0xff]  ;;  %v9504_v56 = vld [vmem:[%s16533_s5 + $0x198] sm:$0xff]  ;;  %v11237_v28 = vpack.c.bf16 %v9486_v29, %v9485_v4  ;;  %v9505_v4 = vld [vmem:[%s16533_s5 + $0x1a0] sm:$0xff] }
 0x5f9   : > { %v8274_v63 = vcombine.high %v8149_v57, %v8149_v57  ;;  %v8281_v43 = vrot.slane %v8149_v57, %v16783_v11  ;;  %v15758_v59 = vrot.slane %v8823_v60, 7  ;;  %v9476_v57 = vld [vmem:[%s16533_s5 + $0xb8] sm:$0xff]  ;;  %v9506_v29 = vld [vmem:[%s16533_s5 + $0x1a8] sm:$0xff] }
 0x5fa   : > { %11208 = vmatprep.subr.bf16.mxu1 %v11207_v46  ;;  %v11235_v46 = vpack.c.bf16 %v9502_v33, %v9501_v51  ;;  %v9462_v51 = vld [vmem:[%s16533_s5 + $0x48] sm:$0xff] }
 0x5fb   : > { %v8288_v7 = vrot.slane %v8274_v63, %v16783_v11  ;;  %v8289_v18 = vcombine.high %v8281_v43, %v8281_v43  ;;  %v10741_v21 = vrot.slane %v8281_v43, 9  ;;  %11210 = vmatpush3.bf16.msra.mxu1 %v11209_v5  ;;  %v15811_v20 = vsel %vm5970_vm15, %v15758_v59, %v8822_v44  ;;  %v9478_v5 = vld [vmem:[%s16533_s5 + $0xc8] sm:$0xff] }
 0x5fc   : > { %11212 = vmatprep.subr.bf16.mxu1 %v11211_v12  ;;  %v9461_v12 = vld [vmem:[%s16533_s5 + $0x40] sm:$0xff]  ;;  %11236 = vmatprep.subr.bf16.mxu0 %v11235_v46 }
 0x5fd   : > { %v8290_v14 = vcombine.high %v8288_v7, %v8288_v7  ;;  %v10742_v2 = vrot.slane %v8289_v18, 9  ;;  %v8684_v31 = vmax.f32 %v8281_v43, %v10741_v21  ;;  %v10743_v30 = vrot.slane %v8288_v7, 9  ;;  %v9460_v43 = vld [vmem:[%s16533_s5 + $0x38] sm:$0xff]  ;;  %11238 = vmatpush3.bf16.msra.mxu0 %v11237_v28 }
 0x5fe   : > { %v11217_v33 = vpack.c.bf16 %v9460_v43, %v9459_v26  ;;  %v9480_v26 = vld [vmem:[%s16533_s5 + $0xd8] sm:$0xff]  ;;  %v11219_v43 = vpack.c.bf16 %v9478_v5, %v9477_v47  ;;  %v11221_v28 = vpack.c.bf16 %v9462_v51, %v9461_v12  ;;  %v9463_v12 = vld [vmem:[%s16533_s5 + $0x50] sm:$0xff] }
 0x5ff   : > { %v10744_v60 = vrot.slane %v8290_v14, 9  ;;  %v8685_v63 = vmax.f32 %v8289_v18, %v10742_v2  ;;  %v8773_v15 = vadd.f32 %v15653_v38, %v8684_v31  ;;  %v15807_v18 = vadd.f32 %v15659_v39, %v8679_v19  ;;  %11214 = vmatpush3.bf16.msra.mxu1 %v11213_v32  ;;  %v9489_v31 = vld [vmem:[%s16533_s5 + $0x120] sm:$0xff]  ;;  %v9464_v51 = vld [vmem:[%s16533_s5 + $0x58] sm:$0xff] }
 0x600   : > { %v8080_v23 = vpop.permute.xlu0 %8079  ;;  %v8825_v19 = vmax.f32 %v15772_v41, 0.0  ;;  %v8686_v44 = vmax.f32 %v8288_v7, %v10743_v30  ;;  %v11239_v7 = vpack.c.bf16 %v9504_v56, %v9503_v25  ;;  %v11241_v30 = vpack.c.bf16 %v9488_v22, %v9487_v54 }
 0x601   : > { %v8687_v8 = vmax.f32 %v8290_v14, %v10744_v60  ;;  %v8774_v37 = vadd.f32 %v15662_v35, %v8685_v63  ;;  %v8082_v21 = vpop.permute.xlu1 %8081  ;;  %v11215_v14 = vpack.c.bf16 %v9476_v57, %v9475_v40  ;;  %v9490_v40 = vld [vmem:[%s16533_s5 + $0x128] sm:$0xff]  ;;  %v9479_v57 = vld [vmem:[%s16533_s5 + $0xd0] sm:$0xff]  ;;  %v8829_v63 = vmax.f32 %v8773_v15, 0.0 }
 0x602   : > { %v8119_v2 = vsel %vm3974_vm14, %v8080_v23, %v8082_v21  ;;  %11240 = vmatprep.subr.bf16.mxu0 %v11239_v7  ;;  %v11243_v25 = vpack.c.bf16 %v9506_v29, %v9505_v4  ;;  %v11245_v56 = vpack.c.bf16 %v9490_v40, %v9489_v31  ;;  %v11223_v54 = vpack.c.bf16 %v9480_v26, %v9479_v57  ;;  %v9491_v4 = vld [vmem:[%s16533_s5 + $0x130] sm:$0xff]  ;;  %v9492_v29 = vld [vmem:[%s16533_s5 + $0x138] sm:$0xff] }
 0x603   : > { %v8776_v41 = vadd.f32 %v15666_v10, %v8687_v8  ;;  %v8830_v60 = vmax.f32 %v8774_v37, 0.0  ;;  %v8151_v32 = vmax.f32 %v15539_v24, %v8119_v2  ;;  %11216 = vmatprep.subr.bf16.mxu1 %v11215_v14  ;;  %v9507_v8 = vld [vmem:[%s16533_s5 + $0x1b0] sm:$0xff]  ;;  %v9508_v37 = vld [vmem:[%s16533_s5 + $0x1b8] sm:$0xff]  ;;  %v15856_v22 = vrot.slane %v8825_v19, 7  ;;  %11242 = vmatpush3.bf16.msra.mxu0 %v11241_v30 }
 0x604   : > { %11218 = vmatpush3.bf16.msra.mxu1 %v11217_v33  ;;  %v8953_v19 = vsel %vm5970_vm15, %v15769_v62, %v8817_v53  ;;  %v8775_v2 = vadd.f32 %v15659_v39, %v8686_v44  ;;  %v8925_v14 = vsel %vm5978_vm4, %v15689_v36, %v15711_v6  ;;  %11244 = vmatprep.subr.bf16.mxu0 %v11243_v25  ;;  %v8824_v50 = vmax.f32 %v15807_v18, 0.0  ;;  %v9481_v44 = vld [vmem:[%s16533_s5 + $0xe0] sm:$0xff] }
 0x605   : > { %v15845_v23 = vrot.slane %v8830_v60, 7  ;;  %v8307_v24 = vcombine.high %v8151_v32, %v8151_v32  ;;  %v15848_v46 = vrot.slane %v8151_v32, %v16783_v11  ;;  %v8832_v15 = vmax.f32 %v8776_v41, 0.0  ;;  %11220 = vmatprep.subr.bf16.mxu1 %v11219_v43  ;;  %v9482_v41 = vld [vmem:[%s16533_s5 + $0xe8] sm:$0xff]  ;;  %v9465_v43 = vld [vmem:[%s16533_s5 + $0x60] sm:$0xff] }
 0x606   : > { %v11247_v33 = vpack.c.bf16 %v9508_v37, %v9507_v8  ;;  %v8932_v6 = vsel %vm5978_vm4, %v15692_v1, %v15733_v34  ;;  %v8970_v18 = vsel %vm5974_vm2, %v15758_v59, %v15811_v20  ;;  %v8949_v32 = vsel %vm5982_vm6, %v15694_v16, %v15795_v0  ;;  %v9509_v25 = vld [vmem:[%s16533_s5 + $0x1c0] sm:$0xff] }
 0x607   : > { %v8992_v47 = vsel %vm5970_vm15, %v15845_v23, %v8829_v63  ;;  %v15861_v21 = vrot.slane %v8307_v24, %v16783_v11  ;;  %v8322_v5 = vcombine.high %v15848_v46, %v15848_v46  ;;  %v15902_v60 = vrot.slane %v8832_v15, 7  ;;  %11246 = vmatpush3.bf16.msra.mxu0 %v11245_v56  ;;  %v9510_v56 = vld [vmem:[%s16533_s5 + $0x1c8] sm:$0xff] }
 0x608   : > { %v8993_v53 = vsel %vm5974_vm2, %v15845_v23, %v8992_v47  ;;  %11222 = vmatpush3.bf16.msra.mxu1 %v11221_v28  ;;  %v11225_v34 = vpack.c.bf16 %v9464_v51, %v9463_v12  ;;  %v8954_v40 = vsel %vm5974_vm2, %v15769_v62, %v8953_v19  ;;  %v8976_v57 = vsel %vm5970_vm15, %v15856_v22, %v8824_v50 }
 0x609   : > { %v8323_v31 = vcombine.high %v15861_v21, %v15861_v21  ;;  %v10749_v26 = vrot.slane %v8322_v5, 9  ;;  %11224 = vmatprep.subr.bf16.mxu1 %v11223_v54  ;;  %v11249_v63 = vpack.c.bf16 %v9492_v29, %v9491_v4  ;;  %v8831_v7 = vmax.f32 %v8775_v2, 0.0  ;;  %11248 = vmatprep.subr.bf16.mxu0 %v11247_v33 }
 0x60a   : > { %v8926_v30 = vsel %vm5982_vm6, %v15689_v36, %v8925_v14  ;;  %v8994_v16 = vsel %vm5978_vm4, %v15845_v23, %v8993_v53  ;;  %v11227_v0 = vpack.c.bf16 %v9482_v41, %v9481_v44  ;;  %v8971_v8 = vsel %vm5978_vm4, %v15758_v59, %v8970_v18  ;;  %v9466_v36 = vld [vmem:[%s16533_s5 + $0x68] sm:$0xff] }
 0x60b   : > { %v10751_v24 = vrot.slane %v8323_v31, 9  ;;  %v9136_v37 = vcombine.low %v8926_v30, %v8949_v32  ;;  %v15922_v15 = vsel %vm5982_vm6, %v15692_v1, %v8932_v6  ;;  %v8977_v54 = vsel %vm5974_vm2, %v15856_v22, %v8976_v57  ;;  %11250 = vmatpush3.bf16.msra.mxu0 %v11249_v63  ;;  %v9493_v32 = vld [vmem:[%s16533_s5 + $0x140] sm:$0xff]  ;;  %v9483_v63 = vld [vmem:[%s16533_s5 + $0xf0] sm:$0xff] }
 0x60c   : > { %v8088_v20 = vpop.permute.xlu0 %8087  ;;  %v8999_v47 = vsel %vm5970_vm15, %v15902_v60, %v8831_v7  ;;  %v8955_v12 = vsel %vm5978_vm4, %v15769_v62, %v8954_v40  ;;  %11226 = vmatpush3.bf16.msra.mxu1 %v11225_v34  ;;  %v8692_v51 = vmax.f32 %v8322_v5, %v10749_v26  ;;  %v8995_v2 = vsel %vm5982_vm6, %v15845_v23, %v8994_v16 }
 0x60d   : > { %v8090_v28 = vpop.permute.xlu1 %8089  ;;  %11228 = vmatprep.subr.bf16.mxu1 %v11227_v0  ;;  %v10748_v14 = vrot.slane %v15848_v46, 9  ;;  %v8972_v33 = vsel %vm5982_vm6, %v15758_v59, %v8971_v8  ;;  %v11229_v4 = vpack.c.bf16 %v9466_v36, %v9465_v43  ;;  %v11251_v29 = vpack.c.bf16 %v9510_v56, %v9509_v25  ;;  %v9467_v0 = vld [vmem:[%s16533_s5 + $0x70] sm:$0xff]  ;;  %v9468_v43 = vld [vmem:[%s16533_s5 + $0x78] sm:$0xff] }
 0x60e   : > { %v8121_v1 = vsel %vm3974_vm14, %v8088_v20, %v8090_v28  ;;  %v9000_v50 = vsel %vm5974_vm2, %v15902_v60, %v8999_v47  ;;  %v8694_v53 = vmax.f32 %v8323_v31, %v10751_v24  ;;  %v15951_v23 = vsel %vm5982_vm6, %v15769_v62, %v8955_v12  ;;  %v9494_v62 = vld [vmem:[%s16533_s5 + $0x148] sm:$0xff]  ;;  %v9511_v47 = vld [vmem:[%s16533_s5 + $0x1d0] sm:$0xff] }
 0x60f   : > { %v8153_v19 = vmax.f32 %v15560_v9, %v8121_v1  ;;  %v9145_v9 = vcombine.low %v8972_v33, %v8995_v2  ;;  %v8978_v44 = vsel %vm5978_vm4, %v15856_v22, %v8977_v54  ;;  %11252 = vmatprep.subr.bf16.mxu0 %v11251_v29  ;;  %v10750_v59 = vrot.slane %v15861_v21, 9  ;;  %v9512_v1 = vld [vmem:[%s16533_s5 + $0x1d8] sm:$0xff] }
 0x610   : > { %11230 = vmatpush3.bf16.msra.mxu1 %v11229_v4  ;;  %v8781_v41 = vadd.f32 %v15662_v35, %v8692_v51  ;;  %v8691_v34 = vmax.f32 %v15848_v46, %v10748_v14  ;;  %v15966_v57 = vrot.slane %v9136_v37, %v15719_v13  ;;  %v9001_v26 = vsel %vm5978_vm4, %v15902_v60, %v9000_v50  ;;  %v9484_v46 = vld [vmem:[%s16533_s5 + $0xf8] sm:$0xff] }
 0x611   : > { %v8340_v6 = vcombine.high %v8153_v19, %v8153_v19  ;;  %v8347_v5 = vrot.slane %v8153_v19, %v16783_v11  ;;  %v8783_v7 = vadd.f32 %v15666_v10, %v8694_v53  ;;  %v15984_v28 = vrot.slane %v9145_v9, %v15719_v13 }
 0x612   : > { %v8979_v8 = vsel %vm5982_vm6, %v15856_v22, %v8978_v44  ;;  %v11253_v37 = vpack.c.bf16 %v9494_v62, %v9493_v32  ;;  %v8693_v36 = vmax.f32 %v15861_v21, %v10750_v59  ;;  %v8837_v25 = vmax.f32 %v8781_v41, 0.0 }
 0x613   : > { %v8354_v18 = vrot.slane %v8340_v6, %v16783_v11  ;;  %v8355_v31 = vcombine.high %v8347_v5, %v8347_v5  ;;  %v10755_v40 = vrot.slane %v8347_v5, 9  ;;  %v8780_v12 = vadd.f32 %v15653_v38, %v8691_v34 }
 0x614   : > { %v9002_v22 = vsel %vm5982_vm6, %v15902_v60, %v9001_v26  ;;  %11254 = vmatpush3.bf16.msra.mxu0 %v11253_v37  ;;  %v11231_v19 = vpack.c.bf16 %v9484_v46, %v9483_v63  ;;  %v11233_v21 = vpack.c.bf16 %v9468_v43, %v9467_v0  ;;  %v8839_v2 = vmax.f32 %v8783_v7, 0.0 }
 0x615   : > { %v8356_v20 = vcombine.high %v8354_v18, %v8354_v18  ;;  %v10756_v30 = vrot.slane %v8355_v31, 9  ;;  %v10757_v16 = vrot.slane %v8354_v18, 9  ;;  %v8698_v24 = vmax.f32 %v8347_v5, %v10755_v40 }
 0x616   : > { %11232 = vmatprep.subr.bf16.mxu1 %v11231_v19  ;;  %v11255_v6 = vpack.c.bf16 %v9512_v1, %v9511_v47  ;;  %v9280_v5 = vcombine.low %v15966_v57, %v15984_v28  ;;  %v16003_v9 = vrot.slane %v8837_v25, 7  ;;  %v8782_v41 = vadd.f32 %v15659_v39, %v8693_v36 }
 0x617   : > { %v10758_v56 = vrot.slane %v8356_v20, 9  ;;  %v8699_v54 = vmax.f32 %v8355_v31, %v10756_v30  ;;  %v8700_v14 = vmax.f32 %v8354_v18, %v10757_v16  ;;  %v8787_v50 = vadd.f32 %v15653_v38, %v8698_v24  ;;  %11234 = vmatpush3.bf16.msra.mxu1 %v11233_v21 }
 0x618   : > { %v8096_v51 = vpop.permute.xlu0 %8095  ;;  %v8836_v18 = vmax.f32 %v8780_v12, 0.0  ;;  %v9172_v31 = vcombine.low %v15922_v15, %v15951_v23  ;;  %v9181_v32 = vcombine.low %v8979_v8, %v9002_v22  ;;  %11256 = vmatprep.subr.bf16.mxu0 %v11255_v6  ;;  %v9021_v63 = vrot.slane %v8839_v2, 7 }
 0x619   : > { %v8701_v33 = vmax.f32 %v8356_v20, %v10758_v56  ;;  %v8788_v4 = vadd.f32 %v15662_v35, %v8699_v54  ;;  %v8098_v29 = vpop.permute.xlu1 %8097  ;;  %v8789_v7 = vadd.f32 %v15659_v39, %v8700_v14  ;;  %v8843_v20 = vmax.f32 %v8787_v50, 0.0 }
 0x61a   : > { %v8123_v53 = vsel %vm3974_vm14, %v8096_v51, %v8098_v29  ;;  %v8838_v46 = vmax.f32 %v8782_v41, 0.0  ;;  %v9188_v0 = vrot.slane %v9181_v32, %v15719_v13  ;;  %v16019_v8 = vcombine.high %v15716_v52, %v15716_v52 }
 0x61b   : > { %v8790_v60 = vadd.f32 %v15666_v10, %v8701_v33  ;;  %v8844_v44 = vmax.f32 %v8788_v4, 0.0  ;;  %v8155_v59 = vmax.f32 %v15579_v61, %v8123_v53  ;;  %v9015_v61 = vsel %vm5970_vm15, %v16003_v9, %v8836_v18 }
 0x61c   : > { %v9179_v37 = vrot.slane %v9172_v31, %v15719_v13  ;;  %v9016_v36 = vsel %vm5974_vm2, %v16003_v9, %v9015_v61  ;;  %v9022_v25 = vsel %vm5970_vm15, %v9021_v63, %v8838_v46  ;;  %v8845_v56 = vmax.f32 %v8789_v7, 0.0 }
 0x61d   : > { %v8846_v62 = vmax.f32 %v8790_v60, 0.0  ;;  %v9037_v34 = vrot.slane %v8844_v44, 7  ;;  %v8373_v40 = vcombine.high %v8155_v59, %v8155_v59  ;;  %v8380_v26 = vrot.slane %v8155_v59, %v16783_v11 }
 0x61e   : > { %v10777_v51 = vcombine.high %v15966_v57, %v15984_v28  ;;  %v9326_v2 = vcombine.low %v9179_v37, %v9188_v0  ;;  %v10779_v14 = vcombine.high %v9179_v37, %v9188_v0  ;;  %v9023_v33 = vsel %vm5974_vm2, %v9021_v63, %v9022_v25  ;;  %v9497_v57 = vld [vmem:[%s16533_s5 + $0x160] sm:$0xff]  ;;  %v9498_v28 = vld [vmem:[%s16533_s5 + $0x168] sm:$0xff] }
 0x61f   : > { %v8387_v30 = vrot.slane %v8373_v40, %v16783_v11  ;;  %v8388_v16 = vcombine.high %v8380_v26, %v8380_v26  ;;  %v9038_v15 = vsel %vm5970_vm15, %v9037_v34, %v8843_v20  ;;  %v9044_v23 = vrot.slane %v8846_v62, 7 }
 0x620   : > { %v10762_v54 = vrot.slane %v8380_v26, 9  ;;  %v9039_v47 = vsel %vm5974_vm2, %v9037_v34, %v9038_v15  ;;  %v16031_v50 = vrot.slane %v15716_v52, 1  ;;  %v9017_v53 = vsel %vm5978_vm4, %v16003_v9, %v9016_v36 }
 0x621   : > { %v8389_v43 = vcombine.high %v8387_v30, %v8387_v30  ;;  %v10763_v24 = vrot.slane %v8388_v16, 9  ;;  %v9045_v22 = vsel %vm5970_vm15, %v9044_v23, %v8845_v56  ;;  %v10764_v19 = vrot.slane %v8387_v30, 9 }
 0x622   : > { %v8705_v6 = vmax.f32 %v8380_v26, %v10762_v54  ;;  %v9040_v59 = vsel %vm5978_vm4, %v9037_v34, %v9039_v47  ;;  %v9046_v41 = vsel %vm5974_vm2, %v9044_v23, %v9045_v22  ;;  %v16042_v32 = vrot.slane %v10777_v51, %v16783_v11 }
 0x623   : > { %v10765_v1 = vrot.slane %v8389_v43, 9  ;;  %v8706_v12 = vmax.f32 %v8388_v16, %v10763_v24  ;;  %v8707_v62 = vmax.f32 %v8387_v30, %v10764_v19  ;;  %v9024_v7 = vsel %vm5978_vm4, %v9021_v63, %v9023_v33 }
 0x624   : > { %v8104_v21 = vpop.permute.xlu0 %8103  ;;  %v16046_v26 = vrot.slane %v9326_v2, %v16783_v11  ;;  %v16049_v20 = vrot.slane %v10779_v14, %v16783_v11  ;;  %v9041_v15 = vsel %vm5982_vm6, %v9037_v34, %v9040_v59  ;;  %v8794_v30 = vadd.f32 %v15653_v38, %v8705_v6 }
 0x625   : > { %v8708_v4 = vmax.f32 %v8389_v43, %v10765_v1  ;;  %v8106_v29 = vpop.permute.xlu1 %8105  ;;  %v8795_v60 = vadd.f32 %v15662_v35, %v8706_v12  ;;  %v9047_v24 = vsel %vm5978_vm4, %v9044_v23, %v9046_v41  ;;  %v9025_v56 = vsel %vm5982_vm6, %v9021_v63, %v9024_v7 }
 0x626   : > { %v8125_v44 = vsel %vm3974_vm14, %v8104_v21, %v8106_v29  ;;  %v8796_v54 = vadd.f32 %v15659_v39, %v8707_v62  ;;  %v9048_v21 = vsel %vm5982_vm6, %v9044_v23, %v9047_v24  ;;  %v8850_v2 = vmax.f32 %v8794_v30, 0.0 }
 0x627   : > { %v8797_v18 = vadd.f32 %v15666_v10, %v8708_v4  ;;  %v8157_v31 = vmax.f32 %v15598_v27, %v8125_v44  ;;  %v9018_v27 = vsel %vm5982_vm6, %v16003_v9, %v9017_v53  ;;  %v8851_v0 = vmax.f32 %v8795_v60, 0.0 }
 0x628   : > { %v8052_v40 = vpop.permute.xlu0 %8051  ;;  %v9154_v34 = vcombine.low %v9018_v27, %v9041_v15  ;;  %v8852_v7 = vmax.f32 %v8796_v54, 0.0  ;;  %v9190_v27 = vcombine.low %v9025_v56, %v9048_v21 }
 0x629   : > { %v8406_v61 = vcombine.high %v8157_v31, %v8157_v31  ;;  %v8413_v16 = vrot.slane %v8157_v31, %v16783_v11  ;;  %v8054_v46 = vpop.permute.xlu1 %8053  ;;  %v8853_v37 = vmax.f32 %v8797_v18, 0.0  ;;  %v16063_v14 = vrot.slane %v8851_v0, 7 }
 0x62a   : > { %v8112_v43 = vsel %vm3974_vm14, %v8052_v40, %v8054_v46 }
 0x62b   : > { %v8420_v36 = vrot.slane %v8406_v61, %v16783_v11  ;;  %v8421_v25 = vcombine.high %v8413_v16, %v8413_v16  ;;  %v10769_v47 = vrot.slane %v8413_v16, 9  ;;  %v8144_v9 = vmax.f32 %v15454_v48, %v8112_v43 }
 0x62c   : > { %v8060_v1 = vpop.permute.xlu0 %8059  ;;  %v16066_v63 = vrot.slane %v8853_v37, 7  ;;  %v9061_v43 = vsel %vm5970_vm15, %v16063_v14, %v8850_v2 }
 0x62d   : > { %v8422_v12 = vcombine.high %v8420_v36, %v8420_v36  ;;  %v10770_v51 = vrot.slane %v8421_v25, 9  ;;  %v10771_v22 = vrot.slane %v8420_v36, 9  ;;  %v8062_v19 = vpop.permute.xlu1 %8061  ;;  %v8192_v33 = vcombine.high %v8144_v9, %v8144_v9 }
 0x62e   : > { %v8199_v4 = vrot.slane %v8144_v9, %v16783_v11  ;;  %v8114_v48 = vsel %vm3974_vm14, %v8060_v1, %v8062_v19  ;;  %v8712_v6 = vmax.f32 %v8413_v16, %v10769_v47 }
 0x62f   : > { %v10772_v29 = vrot.slane %v8422_v12, 9  ;;  %v8713_v53 = vmax.f32 %v8421_v25, %v10770_v51  ;;  %v8206_v60 = vrot.slane %v8192_v33, %v16783_v11  ;;  %v8714_v18 = vmax.f32 %v8420_v36, %v10771_v22 }
 0x630   : > { %v8207_v44 = vcombine.high %v8199_v4, %v8199_v4  ;;  %v10724_v59 = vrot.slane %v8199_v4, 9  ;;  %v8068_v41 = vpop.permute.xlu0 %8067  ;;  %v8146_v62 = vmax.f32 %v15479_v3, %v8114_v48  ;;  %v8801_v24 = vadd.f32 %v15653_v38, %v8712_v6 }
 0x631   : > { %v8715_v23 = vmax.f32 %v8422_v12, %v10772_v29  ;;  %v8802_v31 = vadd.f32 %v15662_v35, %v8713_v53  ;;  %v8070_v40 = vpop.permute.xlu1 %8069  ;;  %v10726_v46 = vrot.slane %v8206_v60, 9  ;;  %v16078_v3 = vrot.slane %v9154_v34, %v15719_v13 }
 0x632   : > { %v10725_v61 = vrot.slane %v8207_v44, 9  ;;  %v8667_v16 = vmax.f32 %v8199_v4, %v10724_v59  ;;  %v8225_v0 = vcombine.high %v8146_v62, %v8146_v62  ;;  %v8232_v37 = vrot.slane %v8146_v62, %v16783_v11 }
 0x633   : > { %v8804_v15 = vadd.f32 %v15666_v10, %v8715_v23  ;;  %v8858_v30 = vmax.f32 %v8802_v31, 0.0  ;;  %v9068_v36 = vsel %vm5970_vm15, %v16066_v63, %v8852_v7  ;;  %v8803_v25 = vadd.f32 %v15659_v39, %v8714_v18 }
 0x634   : > { %v8076_v35 = vpop.permute.xlu0 %8075  ;;  %v8668_v56 = vmax.f32 %v8207_v44, %v10725_v61  ;;  %v8669_v9 = vmax.f32 %v8206_v60, %v10726_v46  ;;  %v8240_v1 = vcombine.high %v8232_v37, %v8232_v37  ;;  %v8116_v38 = vsel %vm3974_vm14, %v8068_v41, %v8070_v40 }
 0x635   : > { %v8860_v10 = vmax.f32 %v8804_v15, 0.0  ;;  %v8078_v54 = vpop.permute.xlu1 %8077  ;;  %v16083_v47 = vrot.slane %v8858_v30, 7  ;;  %v16088_v12 = vsel %vm5974_vm2, %v16063_v14, %v9061_v43  ;;  %v8756_v34 = vadd.f32 %v15716_v52, %v8667_v16 }
 0x636   : > { %v8239_v51 = vrot.slane %v8225_v0, %v16783_v11  ;;  %v16093_v22 = vrot.slane %v9190_v27, %v15719_v13  ;;  %v16097_v39 = vsel %vm5974_vm2, %v16066_v63, %v9068_v36  ;;  %v8857_v19 = vmax.f32 %v8801_v24, 0.0 }
 0x637   : > { %v10731_v21 = vrot.slane %v8232_v37, 9  ;;  %v10732_v2 = vrot.slane %v8240_v1, 9  ;;  %v8859_v33 = vmax.f32 %v8803_v25, 0.0  ;;  %v16099_v4 = vrot.slane %v8860_v10, 7 }
 0x638   : > { %v8757_v29 = vadd.f32 %v16031_v50, %v8668_v56  ;;  %v8148_v53 = vmax.f32 %v15504_v55, %v8116_v38  ;;  %v8084_v48 = vpop.permute.xlu0 %8083  ;;  %v9084_v60 = vsel %vm5970_vm15, %v16083_v47, %v8857_v19  ;;  %v16106_v44 = vadd.f32 %v16019_v8, %v8669_v9 }
 0x639   : > { %v8086_v6 = vpop.permute.xlu1 %8085  ;;  %v8675_v59 = vmax.f32 %v8240_v1, %v10732_v2  ;;  %v8118_v41 = vsel %vm3974_vm14, %v8076_v35, %v8078_v54  ;;  %v8812_v18 = vmax.f32 %v8756_v34, 0.0  ;;  %v10733_v23 = vrot.slane %v8239_v51, 9 }
 0x63a   : > { %v8258_v31 = vcombine.high %v8148_v53, %v8148_v53  ;;  %v8265_v62 = vrot.slane %v8148_v53, %v16783_v11  ;;  %v8674_v40 = vmax.f32 %v8232_v37, %v10731_v21  ;;  %v8150_v55 = vmax.f32 %v15529_v49, %v8118_v41 }
 0x63b   : > { %v8764_v7 = vadd.f32 %v16031_v50, %v8675_v59  ;;  %v8120_v61 = vsel %vm3974_vm14, %v8084_v48, %v8086_v6  ;;  %v16115_v46 = vsel %vm5974_vm2, %v16083_v47, %v9084_v60  ;;  %v9091_v27 = vsel %vm5970_vm15, %v16099_v4, %v8859_v33 }
 0x63c   : > { %v8813_v15 = vmax.f32 %v8757_v29, 0.0  ;;  %v8272_v30 = vrot.slane %v8258_v31, %v16783_v11  ;;  %v8273_v0 = vcombine.high %v8265_v62, %v8265_v62  ;;  %v10738_v43 = vrot.slane %v8265_v62, 9  ;;  %v8092_v9 = vpop.permute.xlu0 %8091 }
 0x63d   : > { %v8820_v16 = vmax.f32 %v8764_v7, 0.0  ;;  %v8291_v24 = vcombine.high %v8150_v55, %v8150_v55  ;;  %v8676_v37 = vmax.f32 %v8239_v51, %v10733_v23  ;;  %v8298_v49 = vrot.slane %v8150_v55, %v16783_v11  ;;  %v8094_v1 = vpop.permute.xlu1 %8093 }
 0x63e   : > { %v10740_v35 = vrot.slane %v8272_v30, 9  ;;  %v8152_v36 = vmax.f32 %v15550_v45, %v8120_v61  ;;  %v8763_v25 = vadd.f32 %v15716_v52, %v8674_v40  ;;  %v10739_v10 = vrot.slane %v8273_v0, 9 }
 0x63f   : > { %v8681_v56 = vmax.f32 %v8265_v62, %v10738_v43  ;;  %v8305_v54 = vrot.slane %v8291_v24, %v16783_v11  ;;  %v16124_v38 = vrot.slane %v8813_v15, 7  ;;  %v8306_v34 = vcombine.high %v8298_v49, %v8298_v49 }
 0x640   : > { %v10745_v19 = vrot.slane %v8298_v49, 9  ;;  %v8324_v21 = vcombine.high %v8152_v36, %v8152_v36  ;;  %v16128_v51 = vsel %vm5974_vm2, %v16099_v4, %v9091_v27  ;;  %v16130_v2 = vrot.slane %v8820_v16, 7 }
 0x641   : > { %v8682_v45 = vmax.f32 %v8273_v0, %v10739_v10  ;;  %v10747_v33 = vrot.slane %v8305_v54, 9  ;;  %v16133_v29 = vadd.f32 %v16019_v8, %v8676_v37  ;;  %v8683_v53 = vmax.f32 %v8272_v30, %v10740_v35  ;;  %v8100_v30 = vpop.permute.xlu0 %8099  ;;  %v8102_v16 = vpop.permute.xlu1 %8101 }
 0x642   : > { %v8770_v48 = vadd.f32 %v15716_v52, %v8681_v56  ;;  %v10746_v6 = vrot.slane %v8306_v34, 9  ;;  %v8819_v60 = vmax.f32 %v8763_v25, 0.0  ;;  %v8688_v41 = vmax.f32 %v8298_v49, %v10745_v19 }
 0x643   : > { %v8771_v59 = vadd.f32 %v16031_v50, %v8682_v45  ;;  %v8331_v23 = vrot.slane %v8152_v36, %v16783_v11  ;;  %v8937_v31 = vsel %vm5970_vm15, %v16124_v38, %v8812_v18  ;;  %v8690_v40 = vmax.f32 %v8305_v54, %v10747_v33 }
 0x644   : > { %v8689_v62 = vmax.f32 %v8306_v34, %v10746_v6  ;;  %v8338_v7 = vrot.slane %v8324_v21, %v16783_v11  ;;  %v8960_v55 = vsel %vm5970_vm15, %v16130_v2, %v8819_v60  ;;  %v16144_v0 = vadd.f32 %v16019_v8, %v8683_v53 }
 0x645   : > { %v8827_v61 = vmax.f32 %v8771_v59, 0.0  ;;  %v8339_v27 = vcombine.high %v8331_v23, %v8331_v23  ;;  %v10752_v15 = vrot.slane %v8331_v23, 9  ;;  %v8826_v43 = vmax.f32 %v8770_v48, 0.0 }
 0x646   : > { %v8778_v24 = vadd.f32 %v16031_v50, %v8689_v62  ;;  %v8122_v18 = vsel %vm3974_vm14, %v8092_v9, %v8094_v1  ;;  %v8777_v35 = vadd.f32 %v15716_v52, %v8688_v41  ;;  %v10754_v36 = vrot.slane %v8338_v7, 9 }
 0x647   : > { %v16148_v37 = vrot.slane %v8827_v61, 7  ;;  %v10753_v49 = vrot.slane %v8339_v27, 9  ;;  %v16152_v25 = vadd.f32 %v16019_v8, %v8690_v40  ;;  %v8695_v10 = vmax.f32 %v8331_v23, %v10752_v15 }
 0x648   : > { %v8154_v56 = vmax.f32 %v15571_v42, %v8122_v18  ;;  %v8124_v54 = vsel %vm3974_vm14, %v8100_v30, %v8102_v16  ;;  %v16158_v34 = vsel %vm5974_vm2, %v16124_v38, %v8937_v31  ;;  %v8821_v9 = vmax.f32 %v16133_v29, 0.0 }
 0x649   : > { %v16163_v1 = vsel %vm5974_vm2, %v16130_v2, %v8960_v55  ;;  %v8696_v19 = vmax.f32 %v8339_v27, %v10753_v49  ;;  %v8828_v21 = vmax.f32 %v16144_v0, 0.0  ;;  %v8983_v45 = vsel %vm5970_vm15, %v16148_v37, %v8826_v43  ;;  %v9534_v0 = vld [vmem:[%s16533_s5 + $0x288] sm:$0xff] }
 0x64a   : > { %v8834_v33 = vmax.f32 %v8778_v24, 0.0  ;;  %v8357_v42 = vcombine.high %v8154_v56, %v8154_v56  ;;  %v8697_v53 = vmax.f32 %v8338_v7, %v10754_v36  ;;  %v8364_v6 = vrot.slane %v8154_v56, %v16783_v11  ;;  %v8108_v56 = vpop.permute.xlu0 %8107 }
 0x64b   : > { %v8785_v48 = vadd.f32 %v16031_v50, %v8696_v19  ;;  %v8156_v60 = vmax.f32 %v15590_v17, %v8124_v54  ;;  %v8833_v59 = vmax.f32 %v8777_v35, 0.0  ;;  %v8835_v41 = vmax.f32 %v16152_v25, 0.0  ;;  %v9533_v25 = vld [vmem:[%s16533_s5 + $0x280] sm:$0xff] }
 0x64c   : > { %v8784_v23 = vadd.f32 %v15716_v52, %v8695_v10  ;;  %v8371_v31 = vrot.slane %v8357_v42, %v16783_v11  ;;  %v16176_v62 = vsel %vm5974_vm2, %v16148_v37, %v8983_v45  ;;  %v8372_v40 = vcombine.high %v8364_v6, %v8364_v6  ;;  %v8110_v45 = vpop.permute.xlu1 %8109 }
 0x64d   : > { %v10759_v55 = vrot.slane %v8364_v6, 9  ;;  %v9063_v7 = vsel %vm5978_vm4, %v16063_v14, %v16088_v12  ;;  %v8841_v61 = vmax.f32 %v8785_v48, 0.0  ;;  %v8390_v17 = vcombine.high %v8156_v60, %v8156_v60 }
 0x64e   : > { %v10761_v27 = vrot.slane %v8371_v31, 9  ;;  %v8397_v15 = vrot.slane %v8156_v60, %v16783_v11  ;;  %v16182_v30 = vrot.slane %v8834_v33, 7  ;;  %v16185_v16 = vadd.f32 %v16019_v8, %v8697_v53 }
 0x64f   : > { %v10760_v43 = vrot.slane %v8372_v40, 9  ;;  %v9086_v24 = vsel %vm5978_vm4, %v16083_v47, %v16115_v46  ;;  %v8702_v18 = vmax.f32 %v8364_v6, %v10759_v55  ;;  %v8404_v35 = vrot.slane %v8390_v17, %v16783_v11 }
 0x650   : > { %v8405_v49 = vcombine.high %v8397_v15, %v8397_v15  ;;  %v10766_v12 = vrot.slane %v8397_v15, 9  ;;  %v8840_v36 = vmax.f32 %v8784_v23, 0.0  ;;  %v9064_v54 = vsel %vm5982_vm6, %v16063_v14, %v9063_v7 }
 0x651   : > { %v8703_v10 = vmax.f32 %v8372_v40, %v10760_v43  ;;  %v9087_v19 = vsel %vm5982_vm6, %v16083_v47, %v9086_v24  ;;  %v16195_v33 = vrot.slane %v8841_v61, 7  ;;  %v8704_v42 = vmax.f32 %v8371_v31, %v10761_v27 }
 0x652   : > { %v10767_v53 = vrot.slane %v8405_v49, 9  ;;  %v10768_v46 = vrot.slane %v8404_v35, 9  ;;  %v9006_v48 = vsel %vm5970_vm15, %v16182_v30, %v8833_v59  ;;  %v8842_v6 = vmax.f32 %v16185_v16, 0.0 }
 0x653   : > { %v8792_v60 = vadd.f32 %v16031_v50, %v8703_v10  ;;  %v9163_v23 = vcombine.low %v9064_v54, %v9087_v19  ;;  %v8791_v40 = vadd.f32 %v15716_v52, %v8702_v18  ;;  %v8709_v14 = vmax.f32 %v8397_v15, %v10766_v12 }
 0x654   : > { %v8710_v55 = vmax.f32 %v8405_v49, %v10767_v53  ;;  %v8126_v47 = vsel %vm3974_vm14, %v8108_v56, %v8110_v45  ;;  %v8711_v61 = vmax.f32 %v8404_v35, %v10768_v46  ;;  %v9007_v59 = vsel %vm5974_vm2, %v16182_v30, %v9006_v48 }
 0x655   : > { %v8848_v7 = vmax.f32 %v8792_v60, 0.0  ;;  %v16204_v31 = vrot.slane %v9163_v23, %v15719_v13  ;;  %v8158_v27 = vmax.f32 %v15609_v58, %v8126_v47  ;;  %v9029_v17 = vsel %vm5970_vm15, %v16195_v33, %v8840_v36 }
 0x656   : > { %v16212_v43 = vadd.f32 %v16019_v8, %v8704_v42  ;;  %v8799_v15 = vadd.f32 %v16031_v50, %v8710_v55  ;;  %v9070_v58 = vsel %vm5978_vm4, %v16066_v63, %v16097_v39  ;;  %v8847_v49 = vmax.f32 %v8791_v40, 0.0 }
 0x657   : > { %v9051_v24 = vrot.slane %v8848_v7, 7  ;;  %v10778_v18 = vcombine.high %v16078_v3, %v16204_v31  ;;  %v8423_v35 = vcombine.high %v8158_v27, %v8158_v27  ;;  %v8798_v12 = vadd.f32 %v15716_v52, %v8709_v14 }
 0x658   : > { %v8855_v10 = vmax.f32 %v8799_v15, 0.0  ;;  %v8430_v36 = vrot.slane %v8158_v27, %v16783_v11  ;;  %v8800_v56 = vadd.f32 %v16019_v8, %v8711_v61  ;;  %v9093_v45 = vsel %vm5978_vm4, %v16099_v4, %v16128_v51 }
 0x659   : > { %v9317_v54 = vrot.slane %v10778_v18, %v16783_v11  ;;  %v8437_v19 = vrot.slane %v8423_v35, %v16783_v11  ;;  %v9071_v46 = vsel %vm5982_vm6, %v16066_v63, %v9070_v58  ;;  %v9052_v48 = vsel %vm5970_vm15, %v9051_v24, %v8847_v49 }
 0x65a   : > { %v16228_v42 = vrot.slane %v8855_v10, 7  ;;  %v8438_v53 = vcombine.high %v8430_v36, %v8430_v36  ;;  %v10773_v39 = vrot.slane %v8430_v36, 9  ;;  %v9094_v40 = vsel %vm5982_vm6, %v16099_v4, %v9093_v45 }
 0x65b   : > { %v9318_v60 = vcombine.low %v16042_v32, %v9317_v54  ;;  %v10775_v23 = vrot.slane %v8437_v19, 9  ;;  %v8854_v14 = vmax.f32 %v8798_v12, 0.0  ;;  %v9199_v7 = vcombine.low %v9071_v46, %v9094_v40 }
 0x65c   : > { %v10774_v55 = vrot.slane %v8438_v53, 9  ;;  %v8716_v47 = vmax.f32 %v8430_v36, %v10773_v39  ;;  %v9030_v51 = vsel %vm5974_vm2, %v16195_v33, %v9029_v17  ;;  %v8849_v61 = vmax.f32 %v16212_v43, 0.0 }
 0x65d   : > { %v8856_v27 = vmax.f32 %v8800_v56, 0.0  ;;  %9319 = vrot.lane.b32.xlu0 %v9318_v60, %s11483_s22  ;;  %v8718_v63 = vmax.f32 %v8437_v19, %v10775_v23  ;;  %v9053_v15 = vsel %vm5974_vm2, %v9051_v24, %v9052_v48  ;;  %v9075_v32 = vsel %vm5970_vm15, %v16228_v42, %v8854_v14  ;;  %s10788_s22 = sshll.u32 %s11563_s13, 7  ;;  %s11491_s13 = smov [#allocation4]  }
 0x65e   : > { %v8717_v18 = vmax.f32 %v8438_v53, %v10774_v55  ;;  %v9206_v4 = vrot.slane %v9199_v7, %v15719_v13  ;;  %v8805_v35 = vadd.f32 %v15716_v52, %v8716_v47  ;;  %v8962_v17 = vsel %vm5978_vm4, %v16130_v2, %v16163_v1  ;;  %s11416_s25 = sshll.u32 %s11491_s13, 4  ;;  %s11417_s25 = int_to_ptr.vmem [resolvable:$false] %s11416_s25 }
 0x65f   : > { %v8807_v58 = vadd.f32 %v16019_v8, %v8718_v63  ;;  %v9008_v43 = vsel %vm5978_vm4, %v16182_v30, %v9007_v59  ;;  %v8985_v36 = vsel %vm5978_vm4, %v16148_v37, %v16176_v62  ;;  %v8939_v8 = vsel %vm5978_vm4, %v16124_v38, %v16158_v34  ;;  %s11418_s26 = scalar_lea.vmem %s11417_s25, 256  ;;  %p11419_p0 = scmp.lt.s32.totalorder %s16488_s16, %s11417_s25 }
 0x660   : > { %v8806_v49 = vadd.f32 %v16031_v50, %v8717_v18  ;;  %v9327_v12 = vcombine.low %v16093_v22, %v9206_v4  ;;  %v10780_v10 = vcombine.high %v16093_v22, %v9206_v4  ;;  %v9009_v1 = vsel %vm5982_vm6, %v16182_v30, %v9008_v43  ;;  %v9516_v43 = vld [vmem:[%s16533_s5 + $0x1f8] sm:$0xff]  ;;  %p11420_p1 = scmp.lt.s32.totalorder %s11418_s26, %s11412_s17 }
 0x661   : > { %v8863_v52 = vmax.f32 %v8807_v58, 0.0  ;;  %v9031_v59 = vsel %vm5978_vm4, %v16195_v33, %v9030_v51  ;;  %v9054_v54 = vsel %vm5978_vm4, %v9051_v24, %v9053_v15  ;;  %v9076_v62 = vsel %vm5974_vm2, %v16228_v42, %v9075_v32 }
 0x662   : > { %v8862_v50 = vmax.f32 %v8806_v49, 0.0  ;;  %v9341_v56 = vrot.slane %v9327_v12, %v16783_v11  ;;  %v9365_v22 = vrot.slane %v10780_v10, %v16783_v11  ;;  %v8861_v19 = vmax.f32 %v8805_v35, 0.0  ;;  %p11421_p2 = por %p11420_p1, %p11419_p0 }
 0x663   : > { %v8963_v34 = vsel %vm5982_vm6, %v16130_v2, %v8962_v17  ;;  %v8986_v30 = vsel %vm5982_vm6, %v16148_v37, %v8985_v36  ;;  %v9055_v46 = vsel %vm5982_vm6, %v9051_v24, %v9054_v54  ;;  %v9268_v48 = vcombine.low %v8856_v27, %v8863_v52  ;;  %v9495_v2 = vld [vmem:[%s16533_s5 + $0x150] sm:$0xff] }
 0x664   : > { %v9097_v45 = vrot.slane %v8862_v50, 7  ;;  %v9342_v53 = vcombine.low %v16046_v26, %v9341_v56  ;;  %v9366_v39 = vcombine.low %v16049_v20, %v9365_v22  ;;  %v8940_v60 = vsel %vm5982_vm6, %v16124_v38, %v8939_v8  ;;  %v9496_v26 = vld [vmem:[%s16533_s5 + $0x158] sm:$0xff]  ;;  %v9515_v17 = vld [vmem:[%s16533_s5 + $0x1f0] sm:$0xff]  ;;  %p11422_p3 = pnand %p11421_p2, %p11415_p13 }
 0x665   : > { %v9032_v23 = vsel %vm5982_vm6, %v16195_v33, %v9031_v59  ;;  %v9217_v40 = vcombine.low %v8986_v30, %v9009_v1  ;;  %v8814_v20 = vmax.f32 %v16106_v44, 0.0  ;;  %v9077_v38 = vsel %vm5978_vm4, %v16228_v42, %v9076_v62  ;;  %v9499_v1 = vld [vmem:[%s16533_s5 + $0x170] sm:$0xff]  ;;  %v9500_v59 = vld [vmem:[%s16533_s5 + $0x178] sm:$0xff] }
 0x666   : > { %v9098_v37 = vsel %vm5970_vm15, %v9097_v45, %v8861_v19  ;;  %9343 = vrot.lane.b32.xlu1 %v9342_v53, %s11484_s29  ;;  %9367 = vrot.lane.b32.xlu0 %v9366_v39, %s11485_s14  ;;  %v9208_v33 = vcombine.low %v8940_v60, %v8963_v34  ;;  %v9252_v24 = vcombine.low %v8828_v21, %v8835_v41  ;;  %s11489_s29 = smov 32   ;;  %v9518_v60 = vld [vmem:[%s16533_s5 + $0x208] sm:$0xff]  ;;  %s9927_s14 = scalar_lea.sflag [#allocation5], %s326_s24 }
 0x667   : > { %v9260_v14 = vcombine.low %v8842_v6, %v8849_v61  ;;  %v9099_v44 = vsel %vm5974_vm2, %v9097_v45, %v9098_v37  ;;  %v9226_v55 = vcombine.low %v9032_v23, %v9055_v46  ;;  %v9224_v7 = vrot.slane %v9217_v40, %v15719_v13  ;;  %v9513_v6 = vld [vmem:[%s16533_s5 + $0x1e0] sm:$0xff]  ;;  %v9536_v23 = vld [vmem:[%s16533_s5 + $0x298] sm:$0xff] }
 0x668   : > { %v9100_v47 = vsel %vm5978_vm4, %v9097_v45, %v9099_v44  ;;  %v9281_v51 = vcombine.low %v16078_v3, %v16204_v31  ;;  %v11257_v27 = vpack.c.bf16 %v9496_v26, %v9495_v2  ;;  %v9244_v21 = vcombine.low %v8814_v20, %v8821_v9  ;;  %v9538_v44 = vld [vmem:[%s16533_s5 + $0x2a8] sm:$0xff] }
 0x669   : > { %v9078_v41 = vsel %vm5982_vm6, %v16228_v42, %v9077_v38  ;;  %v9101_v16 = vsel %vm5982_vm6, %v9097_v45, %v9100_v47  ;;  %v16315_v3 = vrot.slane %v9280_v5, %v16783_v11  ;;  %v9215_v31 = vrot.slane %v9208_v33, %v15719_v13  ;;  %v9514_v42 = vld [vmem:[%s16533_s5 + $0x1e8] sm:$0xff]  ;;  %v9519_v38 = vld [vmem:[%s16533_s5 + $0x210] sm:$0xff]  ;;  %v9520_v33 = vld [vmem:[%s16533_s5 + $0x218] sm:$0xff] }
 0x66a   : > { %v9235_v61 = vcombine.low %v9078_v41, %v9101_v16  ;;  %v9275_v29 = vrot.slane %v9268_v48, %v15719_v13  ;;  %v9295_v9 = vrot.slane %v9281_v51, %v16783_v11  ;;  %11258 = vmatpush3.bf16.msra.mxu0 %v11257_v27  ;;  %v9233_v5 = vrot.slane %v9226_v55, %v15719_v13  ;;  %v9517_v48 = vld [vmem:[%s16533_s5 + $0x200] sm:$0xff]  ;;  %v9522_v51 = vld [vmem:[%s16533_s5 + $0x228] sm:$0xff]  ;;  %v9539_v27 = vld [vmem:[%s16533_s5 + $0x2b0] sm:$0xff] }
 0x66b   : > { %v9259_v63 = vrot.slane %v9252_v24, %v15719_v13  ;;  %v9267_v15 = vrot.slane %v9260_v14, %v15719_v13  ;;  %v11267_v32 = vpack.c.bf16 %v9534_v0, %v9533_v25  ;;  %v10781_v4 = vcombine.high %v9215_v31, %v9224_v7  ;;  %v9537_v14 = vld [vmem:[%s16533_s5 + $0x2a0] sm:$0xff]  ;;  %v9540_v25 = vld [vmem:[%s16533_s5 + $0x2b8] sm:$0xff]  ;;  %v9523_v41 = vld [vmem:[%s16533_s5 + $0x230] sm:$0xff] }
 0x66c   : > { %v9242_v18 = vrot.slane %v9235_v61, %v15719_v13  ;;  %v9374_v35 = vcombine.low %v9215_v31, %v9224_v7  ;;  %v9296_v58 = vcombine.low %v16315_v3, %v9295_v9  ;;  %v9251_v49 = vrot.slane %v9244_v21, %v15719_v13  ;;  %v9521_v7 = vld [vmem:[%s16533_s5 + $0x220] sm:$0xff]  ;;  %v9524_v16 = vld [vmem:[%s16533_s5 + $0x238] sm:$0xff]  ;;  %v9550_v61 = vld [vmem:[%s16533_s5 + $0x308] sm:$0xff] }
 0x66d   : > { %11268 = vmatprep.subr.bf16.mxu1 %v11267_v32  ;;  %v11259_v12 = vpack.c.bf16 %v9514_v42, %v9513_v6  ;;  %v11261_v10 = vpack.c.bf16 %v9498_v28, %v9497_v57  ;;  %v9423_v8 = vcombine.low %v9267_v15, %v9275_v29  ;;  %v11263_v56 = vpack.c.bf16 %v9516_v43, %v9515_v17  ;;  %v9541_v3 = vld [vmem:[%s16533_s5 + $0x2c0] sm:$0xff]  ;;  %v9542_v6 = vld [vmem:[%s16533_s5 + $0x2c8] sm:$0xff]  ;;  %v9527_v17 = vld [vmem:[%s16533_s5 + $0x250] sm:$0xff] }
 0x66e   : > { %v10782_v36 = vcombine.high %v9233_v5, %v9242_v18  ;;  %v9375_v52 = vcombine.low %v9233_v5, %v9242_v18  ;;  %v9422_v50 = vcombine.low %v9251_v49, %v9259_v63  ;;  %v9406_v22 = vrot.slane %v10781_v4, %v16783_v11  ;;  %v9549_v31 = vld [vmem:[%s16533_s5 + $0x300] sm:$0xff]  ;;  %v9526_v28 = vld [vmem:[%s16533_s5 + $0x248] sm:$0xff]  ;;  %v9543_v5 = vld [vmem:[%s16533_s5 + $0x2d0] sm:$0xff] }
 0x66f   : > { %11260 = vmatprep.subr.bf16.mxu0 %v11259_v12  ;;  %v9382_v54 = vrot.slane %v9374_v35, %v16783_v11  ;;  %v11265_v19 = vpack.c.bf16 %v9500_v59, %v9499_v1  ;;  %v9437_v45 = vrot.slane %v9423_v8, %v16783_v11  ;;  %v11488_v46 = vmov 0.0|0.0   ;;  %v9525_v57 = vld [vmem:[%s16533_s5 + $0x240] sm:$0xff]  ;;  %v9544_v63 = vld [vmem:[%s16533_s5 + $0x2d8] sm:$0xff]  ;;  %v9546_v12 = vld [vmem:[%s16533_s5 + $0x2e8] sm:$0xff] }
 0x670   : > { %v9413_v13 = vrot.slane %v10782_v36, %v16783_v11  ;;  %v9389_v62 = vrot.slane %v9375_v52, %v16783_v11  ;;  %11262 = vmatpush3.bf16.msra.mxu0 %v11261_v10  ;;  %v9430_v53 = vrot.slane %v9422_v50, %v16783_v11  ;;  %v9535_v11 = vld [vmem:[%s16533_s5 + $0x290] sm:$0xff]  ;;  %v11269_v26 = vpack.c.bf16 %v9518_v60, %v9517_v48  ;;  %v9528_v43 = vld [vmem:[%s16533_s5 + $0x258] sm:$0xff]  ;;  %v9545_v49 = vld [vmem:[%s16533_s5 + $0x2e0] sm:$0xff] }
 0x671   : > { %11264 = vmatprep.subr.bf16.mxu0 %v11263_v56  ;;  %v11271_v37 = vpack.c.bf16 %v9536_v23, %v9535_v11  ;;  %v11273_v55 = vpack.c.bf16 %v9520_v33, %v9519_v38  ;;  %v11275_v47 = vpack.c.bf16 %v9538_v44, %v9537_v14  ;;  %v11277_v0 = vpack.c.bf16 %v9522_v51, %v9521_v7  ;;  %v9529_v50 = vld [vmem:[%s16533_s5 + $0x260] sm:$0xff]  ;;  %v9530_v56 = vld [vmem:[%s16533_s5 + $0x268] sm:$0xff]  ;;  %v9843_v48 = vld [vmem:[%s16535_s7 + $0x10] sm:$0xff] }
 0x672   : > { %v9414_v34 = vcombine.low %v9406_v22, %v9413_v13  ;;  %v9390_v30 = vcombine.low %v9382_v54, %v9389_v62  ;;  %v9438_v39 = vcombine.low %v9430_v53, %v9437_v45  ;;  %v11279_v21 = vpack.c.bf16 %v9540_v25, %v9539_v27  ;;  %v9547_v22 = vld [vmem:[%s16533_s5 + $0x2f0] sm:$0xff]  ;;  %v9548_v13 = vld [vmem:[%s16533_s5 + $0x2f8] sm:$0xff]  ;;  %v9841_v53 = vld [vmem:[%s16535_s7] sm:$0xff] }
 0x673   : > { %v11281_v29 = vpack.c.bf16 %v9524_v16, %v9523_v41  ;;  %v11283_v42 = vpack.c.bf16 %v9542_v6, %v9541_v3  ;;  %v11300_v32 = vpack.c.bf16 %v9550_v61, %v9549_v31  ;;  %v11285_v35 = vpack.c.bf16 %v9526_v28, %v9525_v57  ;;  %v9844_v11 = vld [vmem:[%s16535_s7 + $0x18] sm:$0xff] }
 0x674   : > { %9415 = vrot.lane.b32.xlu0 %v9414_v34, %s11486_s21  ;;  %9391 = vrot.lane.b32.xlu1 %v9390_v30, %s11487_s23  ;;  %v16785_v52 = vmov 0.0   ;;  %v11289_v1 = vpack.c.bf16 %v9528_v43, %v9527_v17  ;;  %v11291_v59 = vpack.c.bf16 %v9546_v12, %v9545_v49  ;;  %v11293_v54 = vpack.c.bf16 %v9530_v56, %v9529_v50  ;;  %v9532_v34 = vld [vmem:[%s16533_s5 + $0x278] sm:$0xff] }
 0x675   : > { %11266 = vmatpush3.bf16.msra.mxu0 %v11265_v19  ;;  %v11295_v62 = vpack.c.bf16 %v9548_v13, %v9547_v22  ;;  %v9531_v19 = vld [vmem:[%s16533_s5 + $0x270] sm:$0xff]  ;;  %v11306_v23 = vpack.c.bf16 %v9844_v11, %v9843_v48 }
 0x676   : > { %11299 = vmatprep.subr.bf16.mxu0 %v11488_v46  ;;  %v11297_v30 = vpack.c.bf16 %v9532_v34, %v9531_v19 }
 0x678   : > { %9439 = vrot.lane.b32.xlu1 %v9438_v39, %s11489_s29  ;;  %v9842_v39 = vld [vmem:[%s16535_s7 + $0x8] sm:$0xff]  ;;  %s16486_s29 = scalar_lea.hbm %s16537_s9, %s10788_s22 }
 0x679   : > { %v11303_v60 = vpack.c.bf16 %v9842_v39, %v9841_v53 }
 0x6cf   : > { %v9320_v40 = vpop.permute.xlu0 %9319 }
 0x6d0   : > { %v9442_v24 = vsel %vm1064_vm1, %v9296_v58, %v9320_v40  ;;  %vm9447_vm1 = vcmask 523264   ;;  %v11287_v58 = vpack.c.bf16 %v9544_v63, %v9543_v5 }
 0x6d8   : > { %v9344_v2 = vpop.permute.xlu1 %9343  ;;  %v9368_v9 = vpop.permute.xlu0 %9367 }
 0x6d9   : > { %v9444_v20 = vsel %vm9443_vm8, %v9320_v40, %v9344_v2  ;;  %v9446_v4 = vsel %vm9445_vm9, %v9344_v2, %v9368_v9 }
 0x6da   : > { %9624 = vmatprep.mubr.f32.mxu1 %v9444_v20  ;;  %v10783_v20 = vld [vmem:[%s16534_s6] ss:$0 sm:$0xff] }
 0x6db   : > { %9625 = vmatmul.mubr.f32.vlgmr.msra.gmra.mrb[16].mxu1 %v9442_v24 }
 0x6dc   : > { %11270 = vmatpush3.bf16.msra.mxu1 %v11269_v26 }
 0x6dd   : > { %11272 = vmatprep.subr.bf16.mxu1 %v11271_v37 }
 0x6e0   : > { %11274 = vmatpush3.bf16.msra.mxu1 %v11273_v55 }
 0x6e1   : > { %11276 = vmatprep.subr.bf16.mxu1 %v11275_v47 }
 0x6e4   : > { %11278 = vmatpush3.bf16.msra.mxu1 %v11277_v0  ;;  %v10785_v0 = vld [vmem:[%s16536_s8] ss:$0 sm:$0xff] }
 0x6e5   : > { %11280 = vmatprep.subr.bf16.mxu1 %v11279_v21 }
 0x6e6   : > { %v9392_v15 = vpop.permute.xlu1 %9391  ;;  %v9416_v10 = vpop.permute.xlu0 %9415 }
 0x6e7   : > { %v9448_v18 = vsel %vm9447_vm1, %v9368_v9, %v9392_v15  ;;  %v9450_v45 = vsel %vm9449_vm12, %v9392_v15, %v9416_v10 }
 0x6e8   : > { %11282 = vmatpush3.bf16.msra.mxu1 %v11281_v29  ;;  %9694 = vmatprep.mubr.f32.mxu0 %v9448_v18 }
 0x6e9   : > { %11284 = vmatprep.subr.bf16.mxu1 %v11283_v42  ;;  %9695 = vmatmul.mubr.f32.vlgmr.msra.gmra.mrb[32].mxu0 %v9446_v4 }
 0x6ea   : > { %11301 = vmatpush3.bf16.msra.mxu0 %v11300_v32  ;;  %v9440_v36 = vpop.permute.xlu1 %9439  ;;  %10909 = vmatprep.mubr.msk.f32.mxu0 %vm11490_vm11, %v16785_v52 }
 0x6eb   : > { %v9452_v8 = vsel %vm9451_vm10, %v9416_v10, %v9440_v36 }
 0x6ec   : > { %11286 = vmatpush3.bf16.msra.mxu1 %v11285_v35  ;;  %9764 = vmatprep.mubr.f32.mxu1 %v9452_v8 }
 0x6ed   : > { %11288 = vmatprep.subr.bf16.mxu1 %v11287_v58  ;;  %10910 = vmatmul.mubr.msk.f32.vlgmr.msra.gmra.mrb[34].mxu0 %vm3974_vm14, %v9440_v36 }
 0x6f0   : > { %11290 = vmatpush3.bf16.msra.mxu1 %v11289_v1 }
 0x6f1   : > { %11292 = vmatprep.subr.bf16.mxu1 %v11291_v59 }
 0x6f4   : > { %11294 = vmatpush3.bf16.msra.mxu1 %v11293_v54 }
 0x6f5   : > { %11296 = vmatprep.subr.bf16.mxu1 %v11295_v62 }
 0x6f8   : > { %11298 = vmatpush3.bf16.msra.mxu1 %v11297_v30 }
 0x6f9   : > { %11302 = vmatprep.subr.bf16.mxu1 %v11488_v46 }
 0x6fb   : > { %9765 = vmatmul.mubr.f32.vlgmr.msra.gmra.mrb[18].mxu1 %v9450_v45 }
 0x6fc   : > { %10920 = vmatprep.mubr.msk.f32.mxu1 %vm11490_vm11, %v16785_v52  ;;  %11304 = vmatpush3.bf16.msra.mxu1 %v11303_v60 }
 0x6fd   : > { %11305 = vmatprep.subr.bf16.mxu1 %v11488_v46 }
 0x700   : > { %11307 = vmatpush3.bf16.msra.mxu1 %v11306_v23 }
 0x7ae   : > { %v10824_v40 = vpop.f32.mrb[16].mxu1 }
 0x7af   : > { %v10825_v2 = vpop.f32.mrb[17].mxu1 }
 0x7b0   : > { %v10826_v26 = vadd.f32 %v10825_v2, %v10824_v40 }
 0x7b2   : > { %v9627_v33 = vadd.f32 %v10826_v26, %v10783_v20 }
 0x7bc   : > { %v10859_v37 = vpop.f32.mrb[32].mxu0 }
 0x7bd   : > { %v10860_v38 = vpop.f32.mrb[33].mxu0 }
 0x7be   : > { %v10861_v24 = vadd.f32 %v10860_v38, %v10859_v37 }
 0x7c0   : > { %v9697_v14 = vadd.f32 %v10861_v24, %v9627_v33  ;;  %v9836_v44 = vpop.f32.mrb[34].mxu0 }
 0x7c1   : > { %v10911_v55 = vpop.f32.mrb[35].mxu0 }
 0x7ce   : > { %v10894_v47 = vpop.f32.mrb[18].mxu1 }
 0x7cf   : > { %v10895_v7 = vpop.f32.mrb[19].mxu1 }
 0x7d0   : > { %v10896_v46 = vadd.f32 %v10895_v7, %v10894_v47 }
 0x7d2   : > { %v9767_v51 = vadd.f32 %v10896_v46, %v9697_v14 }
 0x7d4   : > { %v9837_v27 = vadd.f32 %v9836_v44, %v9767_v51 }
 0x7d6   : > { %v9840_v25 = vmax.f32 %v9837_v27, 0.0 }
 0x7d8   : > { %10921 = vmatmul.mubr.msk.f32.vlgmr.msra.gmra.mrb[20].mxu1 %vm9451_vm10, %v9840_v25 }
 0x8ab   : > { %v9921_v21 = vpop.f32.mrb[20].mxu1 }
 0x8ac   : > { %v9922_v41 = vadd.f32 %v10785_v0, %v9921_v21  ;;  %v10922_v16 = vpop.f32.mrb[21].mxu1 }
 0x8ae   : > { %9925 = vst [vmem:[%s328_s28] sm:$0xff] %v9922_v41 }
 0x8af   : > { %11425 = shalt.err (!%p11422_p3)
}
 0x8b0   : > { %s11426_s24 = scalar_lea.hbm %s16486_s29, 128  ;;  %s11430_s28 = scalar_lea.hbm %s16537_s9, 256 }
 0x8b1   : > { %p11427_p4 = scmp.ne.s32.totalorder %s16486_s29, %s11426_s24  ;;  %p11431_p9 = scmp.lt.u32.totalorder %s16486_s29, %s16537_s9 }
 0x8b2   : > { %p11432_p10 = scmp.lt.u32.totalorder %s11430_s28, %s11426_s24  ;;  %p11434_p12 = scmp.lt.u32.totalorder %s11426_s24, %s16486_s29 }
 0x8b3   : > { %p11428_p7 = pnand %p11427_p4, %p11580_p5 }
 0x8b4   : > { %p11433_p11 = por %p11432_p10, %p11431_p9 }
 0x8b5   : > { %p11429_p8 = pneg %p11428_p7 }
 0x8b6   : > { %p11435_p13 = por %p11434_p12, %p11433_p11 }
 0x8b8   : > { %p11436_p0 = pnand %p11435_p13, %p11429_p8 }
 0x8ba   : > { %11439 = shalt.err (!%p11436_p0)
}
 0x8bb   : > { %11308 = dma.vmem_to_hbm [thread:$0]  (%p11580_p5), %s16488_s16, 128, %s16486_s29, %s9927_s14  }
 0x8bc PF: > { %p11314_p1 = scmp.ge.s32.totalorder %s11474_s12, 2  ;;  %s9952_s17 = sand.u32 1, %s11462_s30  }
 0x8bd   : > { %s9953_s13 = scalar_lea.sflag [#allocation5], %s9952_s17 }
 0x8be   : > { %p11311_p2 = pnand %p11314_p1, %p11584_p6 }
 0x8c0   : > { %11457 = dma.done.wait (!%p11311_p2), %s9953_s13, 128  }
 0x8c1   : > { %11459 = vsyncadd (!%p11311_p2), %s9953_s13, 4294967168  ;;  %p19_p3 = scmp.ge.s32.totalorder %s11567_s15, 4   ;;  %s16786_s30 = smov %s11466_s10 }
 0x8c2   : > { %s16787_s10 = smov %s11470_s11  ;;  %s16788_s11 = smov %s11578_s18 }
 0x8c3   : > { %s16789_s12 = smov %s11567_s15  ;;  %21 = sbr.rel (!%p19_p3) target bundleno = 3 (0x3), region = 102 }
 0x8ca   :  { %9958 = vsyncpa [#allocation5], 1 }
 0x8cb   :  { %9960 = vsyncpa [#allocation5 + $0x1], 1 }

</bundles_post_ra>
